<compile_context>
chip_gen: v7x
topology: tpu7x:2x2x1
jax: 0.10.0
libtpu: 0.0.40
codegen_flags: <defaults>
</compile_context>

<pallas_src>
import jax
import jax.numpy as jnp
import numpy as np
from jax import lax
from jax.experimental import pallas as pl
from jax.experimental.pallas import tpu as pltpu

BN_EPS = 1e-5
LANE = 128      # lane-dense channel*width padding granularity
SUB = 8         # sublane (row) padding granularity

# (cin, cout, k, (stride_h, stride_w), pad, residual) for every Conv2d block
LAYER_CFGS = [
    (1,  8,  3, (1, 1), 1, False),
    (8,  8,  3, (1, 1), 1, True),
    (8,  8,  3, (1, 1), 1, True),
    (8,  10, 3, (3, 1), 1, False),
    (10, 10, 3, (1, 1), 1, True),
    (10, 10, 3, (1, 1), 1, True),
    (10, 12, 3, (3, 3), 1, False),
    (12, 12, 3, (1, 1), 1, True),
    (12, 12, 3, (1, 1), 1, True),
    (12, 14, 3, (3, 2), 1, False),
    (14, 14, 3, (1, 1), 1, True),
    (14, 14, 3, (1, 1), 1, True),
    (14, 17, 3, (1, 1), 0, False),
    (17, 17, 1, (1, 1), 0, False),
]


def _round_up(x, m):
    return (x + m - 1) // m * m


def compute_geometries(batch, h, w, c):
    """Static per-layer geometry + padded row/lane sizes for the fused layout."""
    geoms = []
    for (cin, cout, k, (sh, sw), pad, residual) in LAYER_CFGS:
        assert c == cin
        hout = (h + 2 * pad - k) // sh + 1
        wout = (w + 2 * pad - k) // sw + 1
        geoms.append(dict(
            k=k, sh=sh, sw=sw, pad=pad, residual=residual,
            Hin=h, Win=w, Cin=cin, Hout=hout, Wout=wout, Cout=cout,
            LIN=_round_up(w * cin, LANE), LOUT=_round_up(wout * cout, LANE),
            RIN=_round_up(batch * h, SUB), ROUT=_round_up(batch * hout, SUB)))
        h, w, c = hout, wout, cout
    return geoms


def init_params(key):
    """Deterministic synthetic conv + BN params, pre-fused into (w, scale, bias)."""
    params = []
    for (cin, cout, k, _s, _p, _r) in LAYER_CFGS:
        key, kw_, kb_, kg_, kbt_, km_, kv_ = jax.random.split(key, 7)
        fan_in = k * k * cin
        w = jax.random.normal(kw_, (k, k, cin, cout), jnp.float32) / jnp.sqrt(fan_in)
        bias = 0.01 * jax.random.normal(kb_, (cout,), jnp.float32)
        gamma = 1.0 + 0.1 * jax.random.normal(kg_, (cout,), jnp.float32)
        beta = 0.1 * jax.random.normal(kbt_, (cout,), jnp.float32)
        rmean = 0.1 * jax.random.normal(km_, (cout,), jnp.float32)
        rvar = 0.9 + 0.2 * jax.random.uniform(kv_, (cout,), jnp.float32)
        scale = gamma / jnp.sqrt(rvar + BN_EPS)          # eval-mode BN fused scale
        bias_eff = (bias - rmean) * scale + beta          # eval-mode BN fused bias
        params.append((w, scale, bias_eff))
    return params


def prepare_params(params, batch, h, w, c):
    """Hoisted (one-time) construction of the fused-kernel weight layout.

    Per layer:
      Wm : (k, LIN, LOUT)  width-folded conv weights (kw taps, W-stride, W-pad)
      S  : (k, ROUT, RIN)  0/1 row selection (kh tap, H-stride, H-pad, per batch)
      sb : (2, LOUT)       BN scale / bias broadcast over the (w, cout) lanes
    """
    geoms = compute_geometries(batch, h, w, c)
    prepared = []
    for (w_hwio, scale, bias_eff), g in zip(params, geoms):
        wnp = np.asarray(w_hwio, np.float32)          # (k, k, cin, cout)
        sc = np.asarray(scale, np.float32)
        bi = np.asarray(bias_eff, np.float32)
        k, sh, sw, pad = g["k"], g["sh"], g["sw"], g["pad"]
        Hin, Win, Cin = g["Hin"], g["Win"], g["Cin"]
        Hout, Wout, Cout = g["Hout"], g["Wout"], g["Cout"]

        Wm = np.zeros((k, g["LIN"], g["LOUT"]), np.float32)
        for kh in range(k):
            for kw in range(k):
                for ow in range(Wout):
                    wi = ow * sw + kw - pad
                    if 0 <= wi < Win:
                        Wm[kh, wi * Cin:(wi + 1) * Cin,
                           ow * Cout:(ow + 1) * Cout] = wnp[kh, kw]

        S = np.zeros((k, g["ROUT"], g["RIN"]), np.float32)
        for kh in range(k):
            for b in range(batch):
                for oh in range(Hout):
                    hi = oh * sh + kh - pad
                    if 0 <= hi < Hin:
                        S[kh, b * Hout + oh, b * Hin + hi] = 1.0

        sb = np.zeros((2, g["LOUT"]), np.float32)
        for ow in range(Wout):
            sb[0, ow * Cout:(ow + 1) * Cout] = sc
            sb[1, ow * Cout:(ow + 1) * Cout] = bi

        prepared.append((jnp.asarray(Wm), jnp.asarray(S), jnp.asarray(sb)))
    return prepared


def _full_spec(shape):
    nd = len(shape)
    return pl.BlockSpec(shape, lambda i, _nd=nd: (0,) * _nd)


def _make_fused_kernel(geoms):
    """Single kernel running all 14 conv blocks + final sigmoid on VMEM values."""
    def kernel(*refs):
        x = refs[0][...]                     # (RIN0, LIN0) layer-0 activation
        o_ref = refs[-1]
        prefs = refs[1:-1]                   # 3 refs per layer: Wm, S, sb
        for l, g in enumerate(geoms):
            w_ref, s_ref, sb_ref = prefs[3 * l], prefs[3 * l + 1], prefs[3 * l + 2]
            # Center tap of a stride-1 conv selects identical rows -> skip S matmul.
            identity_center = (g["sh"] == 1 and g["Hout"] == g["Hin"]
                               and g["ROUT"] == g["RIN"])
            acc = None
            for kh in range(g["k"]):         # static unroll over H taps
                if identity_center and kh == g["pad"]:
                    term = jnp.dot(x, w_ref[kh],
                                   preferred_element_type=jnp.float32)
                else:
                    sx = jnp.dot(s_ref[kh], x,
                                 preferred_element_type=jnp.float32)
                    term = jnp.dot(sx, w_ref[kh],
                                   preferred_element_type=jnp.float32)
                acc = term if acc is None else acc + term
            y = acc * sb_ref[0:1, :] + sb_ref[1:2, :]   # fused conv-bias + BN (eval)
            if g["residual"]:
                y = y + x                                # residual add (pre-ReLU)
            x = jnp.maximum(y, 0.0)                      # ReLU
        o_ref[...] = 1.0 / (1.0 + jnp.exp(-x))           # final sigmoid
    return kernel


def au_extractor_forward(audio_sequences_nchw, prepared_params):
    """Equivalent of AU_extractor.forward (size-print statements omitted)."""
    B, C, H, W = audio_sequences_nchw.shape
    geoms = compute_geometries(B, H, W, C)
    g0, gl = geoms[0], geoms[-1]

    # Layer-0 activation in fused layout: rows = B*H, lanes = W*C (zero-padded).
    x0 = jnp.transpose(audio_sequences_nchw, (0, 2, 3, 1)).reshape(B * H, W * C)
    x0 = jnp.pad(x0, ((0, g0["RIN"] - B * H), (0, g0["LIN"] - W * C)))

    inputs = [x0] + [a for layer in prepared_params for a in layer]
    kernel = _make_fused_kernel(geoms)
    out = pl.pallas_call(
        kernel,
        out_shape=jax.ShapeDtypeStruct((gl["ROUT"], gl["LOUT"]), jnp.float32),
        grid=(1,),
        in_specs=[_full_spec(a.shape) for a in inputs],
        out_specs=_full_spec((gl["ROUT"], gl["LOUT"])),
        compiler_params=pltpu.CompilerParams(
            dimension_semantics=("arbitrary",),
            vmem_limit_bytes=32 * 1024 * 1024),
    )(*inputs)

    n_out = gl["Wout"] * gl["Cout"]          # 1*1*17 -> 17
    return out[:B, :n_out]                   # (B, 17), sigmoid already applied


def reference_forward(x_nchw, params):
    """Pure-JAX/XLA reference with identical semantics, for verification."""
    x = x_nchw
    for (w_hwio, scale, bias_eff), cfg in zip(params, LAYER_CFGS):
        cin, cout, k, (sh, sw), pad, resd = cfg
        w_oihw = jnp.transpose(w_hwio, (3, 2, 0, 1))
        y = lax.conv_general_dilated(
            x, w_oihw, (sh, sw), [(pad, pad), (pad, pad)],
            dimension_numbers=('NCHW', 'OIHW', 'NCHW'))
        y = y * scale[None, :, None, None] + bias_eff[None, :, None, None]
        if resd:
            y = y + x
        x = jnp.maximum(y, 0.0)
    emb = x.reshape(x.shape[0], -1)
    return jax.nn.sigmoid(emb)


if __name__ == "__main__":
    key = jax.random.PRNGKey(0)
    kx, kp = jax.random.split(key)
    # PyTorch-style NCHW mel-spectrogram input: (batch=2, 1, 80 mel bins, 16 frames)
    audio_sequences = jax.random.normal(kx, (2, 1, 80, 16), jnp.float32)
    params = init_params(kp)
    prepared = prepare_params(params, 2, 80, 16, 1)     # hoisted one-time prep

    fwd = jax.jit(au_extractor_forward)
    out = jax.block_until_ready(fwd(audio_sequences, prepared))
    assert out.shape == (2, 17), out.shape

    ref = jax.block_until_ready(reference_forward(audio_sequences, params))
    np.testing.assert_allclose(np.asarray(out), np.asarray(ref), rtol=2e-4, atol=2e-4)
    print("KERNEL_OK")
</pallas_src>

<mosaic_0001>
module attributes {stable_mosaic.version = 11 : i64} {
  func.func @kernel(%arg0: i32, %arg1: memref<160x128xf32, #tpu.memory_space<vmem>>, %arg2: memref<3x128x128xf32, #tpu.memory_space<vmem>>, %arg3: memref<3x160x160xf32, #tpu.memory_space<vmem>>, %arg4: memref<2x128xf32, #tpu.memory_space<vmem>>, %arg5: memref<3x128x128xf32, #tpu.memory_space<vmem>>, %arg6: memref<3x160x160xf32, #tpu.memory_space<vmem>>, %arg7: memref<2x128xf32, #tpu.memory_space<vmem>>, %arg8: memref<3x128x128xf32, #tpu.memory_space<vmem>>, %arg9: memref<3x160x160xf32, #tpu.memory_space<vmem>>, %arg10: memref<2x128xf32, #tpu.memory_space<vmem>>, %arg11: memref<3x128x256xf32, #tpu.memory_space<vmem>>, %arg12: memref<3x56x160xf32, #tpu.memory_space<vmem>>, %arg13: memref<2x256xf32, #tpu.memory_space<vmem>>, %arg14: memref<3x256x256xf32, #tpu.memory_space<vmem>>, %arg15: memref<3x56x56xf32, #tpu.memory_space<vmem>>, %arg16: memref<2x256xf32, #tpu.memory_space<vmem>>, %arg17: memref<3x256x256xf32, #tpu.memory_space<vmem>>, %arg18: memref<3x56x56xf32, #tpu.memory_space<vmem>>, %arg19: memref<2x256xf32, #tpu.memory_space<vmem>>, %arg20: memref<3x256x128xf32, #tpu.memory_space<vmem>>, %arg21: memref<3x24x56xf32, #tpu.memory_space<vmem>>, %arg22: memref<2x128xf32, #tpu.memory_space<vmem>>, %arg23: memref<3x128x128xf32, #tpu.memory_space<vmem>>, %arg24: memref<3x24x24xf32, #tpu.memory_space<vmem>>, %arg25: memref<2x128xf32, #tpu.memory_space<vmem>>, %arg26: memref<3x128x128xf32, #tpu.memory_space<vmem>>, %arg27: memref<3x24x24xf32, #tpu.memory_space<vmem>>, %arg28: memref<2x128xf32, #tpu.memory_space<vmem>>, %arg29: memref<3x128x128xf32, #tpu.memory_space<vmem>>, %arg30: memref<3x8x24xf32, #tpu.memory_space<vmem>>, %arg31: memref<2x128xf32, #tpu.memory_space<vmem>>, %arg32: memref<3x128x128xf32, #tpu.memory_space<vmem>>, %arg33: memref<3x8x8xf32, #tpu.memory_space<vmem>>, %arg34: memref<2x128xf32, #tpu.memory_space<vmem>>, %arg35: memref<3x128x128xf32, #tpu.memory_space<vmem>>, %arg36: memref<3x8x8xf32, #tpu.memory_space<vmem>>, %arg37: memref<2x128xf32, #tpu.memory_space<vmem>>, %arg38: memref<3x128x128xf32, #tpu.memory_space<vmem>>, %arg39: memref<3x8x8xf32, #tpu.memory_space<vmem>>, %arg40: memref<2x128xf32, #tpu.memory_space<vmem>>, %arg41: memref<1x128x128xf32, #tpu.memory_space<vmem>>, %arg42: memref<1x8x8xf32, #tpu.memory_space<vmem>>, %arg43: memref<2x128xf32, #tpu.memory_space<vmem>>, %arg44: memref<8x128xf32, #tpu.memory_space<vmem>>) attributes {dimension_semantics = [#tpu.dimension_semantics<arbitrary>], iteration_bounds = array<i64: 1>, scalar_prefetch = 0 : i64, scratch_operands = 0 : i64, tpu.core_type = #tpu.core_type<tc>, window_params = [{pipeline_mode = #tpu.pipeline_mode<synchronous>, transform_indices = @transform_0, window_bounds = array<i64: 160, 128>}, {pipeline_mode = #tpu.pipeline_mode<synchronous>, transform_indices = @transform_1, window_bounds = array<i64: 3, 128, 128>}, {pipeline_mode = #tpu.pipeline_mode<synchronous>, transform_indices = @transform_2, window_bounds = array<i64: 3, 160, 160>}, {pipeline_mode = #tpu.pipeline_mode<synchronous>, transform_indices = @transform_3, window_bounds = array<i64: 2, 128>}, {pipeline_mode = #tpu.pipeline_mode<synchronous>, transform_indices = @transform_4, window_bounds = array<i64: 3, 128, 128>}, {pipeline_mode = #tpu.pipeline_mode<synchronous>, transform_indices = @transform_5, window_bounds = array<i64: 3, 160, 160>}, {pipeline_mode = #tpu.pipeline_mode<synchronous>, transform_indices = @transform_6, window_bounds = array<i64: 2, 128>}, {pipeline_mode = #tpu.pipeline_mode<synchronous>, transform_indices = @transform_7, window_bounds = array<i64: 3, 128, 128>}, {pipeline_mode = #tpu.pipeline_mode<synchronous>, transform_indices = @transform_8, window_bounds = array<i64: 3, 160, 160>}, {pipeline_mode = #tpu.pipeline_mode<synchronous>, transform_indices = @transform_9, window_bounds = array<i64: 2, 128>}, {pipeline_mode = #tpu.pipeline_mode<synchronous>, transform_indices = @transform_10, window_bounds = array<i64: 3, 128, 256>}, {pipeline_mode = #tpu.pipeline_mode<synchronous>, transform_indices = @transform_11, window_bounds = array<i64: 3, 56, 160>}, {pipeline_mode = #tpu.pipeline_mode<synchronous>, transform_indices = @transform_12, window_bounds = array<i64: 2, 256>}, {pipeline_mode = #tpu.pipeline_mode<synchronous>, transform_indices = @transform_13, window_bounds = array<i64: 3, 256, 256>}, {pipeline_mode = #tpu.pipeline_mode<synchronous>, transform_indices = @transform_14, window_bounds = array<i64: 3, 56, 56>}, {pipeline_mode = #tpu.pipeline_mode<synchronous>, transform_indices = @transform_15, window_bounds = array<i64: 2, 256>}, {pipeline_mode = #tpu.pipeline_mode<synchronous>, transform_indices = @transform_16, window_bounds = array<i64: 3, 256, 256>}, {pipeline_mode = #tpu.pipeline_mode<synchronous>, transform_indices = @transform_17, window_bounds = array<i64: 3, 56, 56>}, {pipeline_mode = #tpu.pipeline_mode<synchronous>, transform_indices = @transform_18, window_bounds = array<i64: 2, 256>}, {pipeline_mode = #tpu.pipeline_mode<synchronous>, transform_indices = @transform_19, window_bounds = array<i64: 3, 256, 128>}, {pipeline_mode = #tpu.pipeline_mode<synchronous>, transform_indices = @transform_20, window_bounds = array<i64: 3, 24, 56>}, {pipeline_mode = #tpu.pipeline_mode<synchronous>, transform_indices = @transform_21, window_bounds = array<i64: 2, 128>}, {pipeline_mode = #tpu.pipeline_mode<synchronous>, transform_indices = @transform_22, window_bounds = array<i64: 3, 128, 128>}, {pipeline_mode = #tpu.pipeline_mode<synchronous>, transform_indices = @transform_23, window_bounds = array<i64: 3, 24, 24>}, {pipeline_mode = #tpu.pipeline_mode<synchronous>, transform_indices = @transform_24, window_bounds = array<i64: 2, 128>}, {pipeline_mode = #tpu.pipeline_mode<synchronous>, transform_indices = @transform_25, window_bounds = array<i64: 3, 128, 128>}, {pipeline_mode = #tpu.pipeline_mode<synchronous>, transform_indices = @transform_26, window_bounds = array<i64: 3, 24, 24>}, {pipeline_mode = #tpu.pipeline_mode<synchronous>, transform_indices = @transform_27, window_bounds = array<i64: 2, 128>}, {pipeline_mode = #tpu.pipeline_mode<synchronous>, transform_indices = @transform_28, window_bounds = array<i64: 3, 128, 128>}, {pipeline_mode = #tpu.pipeline_mode<synchronous>, transform_indices = @transform_29, window_bounds = array<i64: 3, 8, 24>}, {pipeline_mode = #tpu.pipeline_mode<synchronous>, transform_indices = @transform_30, window_bounds = array<i64: 2, 128>}, {pipeline_mode = #tpu.pipeline_mode<synchronous>, transform_indices = @transform_31, window_bounds = array<i64: 3, 128, 128>}, {pipeline_mode = #tpu.pipeline_mode<synchronous>, transform_indices = @transform_32, window_bounds = array<i64: 3, 8, 8>}, {pipeline_mode = #tpu.pipeline_mode<synchronous>, transform_indices = @transform_33, window_bounds = array<i64: 2, 128>}, {pipeline_mode = #tpu.pipeline_mode<synchronous>, transform_indices = @transform_34, window_bounds = array<i64: 3, 128, 128>}, {pipeline_mode = #tpu.pipeline_mode<synchronous>, transform_indices = @transform_35, window_bounds = array<i64: 3, 8, 8>}, {pipeline_mode = #tpu.pipeline_mode<synchronous>, transform_indices = @transform_36, window_bounds = array<i64: 2, 128>}, {pipeline_mode = #tpu.pipeline_mode<synchronous>, transform_indices = @transform_37, window_bounds = array<i64: 3, 128, 128>}, {pipeline_mode = #tpu.pipeline_mode<synchronous>, transform_indices = @transform_38, window_bounds = array<i64: 3, 8, 8>}, {pipeline_mode = #tpu.pipeline_mode<synchronous>, transform_indices = @transform_39, window_bounds = array<i64: 2, 128>}, {pipeline_mode = #tpu.pipeline_mode<synchronous>, transform_indices = @transform_40, window_bounds = array<i64: 1, 128, 128>}, {pipeline_mode = #tpu.pipeline_mode<synchronous>, transform_indices = @transform_41, window_bounds = array<i64: 1, 8, 8>}, {pipeline_mode = #tpu.pipeline_mode<synchronous>, transform_indices = @transform_42, window_bounds = array<i64: 2, 128>}, {pipeline_mode = #tpu.pipeline_mode<synchronous>, transform_indices = @transform_43, window_bounds = array<i64: 8, 128>}]} {
    %c0 = arith.constant 0 : index
    %c0_0 = arith.constant 0 : index
    %0 = vector.load %arg1[%c0, %c0_0] : memref<160x128xf32, #tpu.memory_space<vmem>>, vector<160x128xf32>
    %c0_1 = arith.constant 0 : index
    %c0_2 = arith.constant 0 : index
    %c0_3 = arith.constant 0 : index
    %1 = vector.load %arg3[%c0_1, %c0_2, %c0_3] : memref<3x160x160xf32, #tpu.memory_space<vmem>>, vector<1x160x160xf32>
    %2 = vector.shape_cast %1 : vector<1x160x160xf32> to vector<160x160xf32>
    %cst = arith.constant dense<0.000000e+00> : vector<160x128xf32>
    %3 = tpu.matmul %2, %0, %cst {dimension_numbers = #tpu.dot_dimension_numbers<[1], [0], [0], [1], [0, 0, 1, 1], [], []>} : vector<160x160xf32>, vector<160x128xf32>, vector<160x128xf32> -> vector<160x128xf32>
    %c0_4 = arith.constant 0 : index
    %c0_5 = arith.constant 0 : index
    %c0_6 = arith.constant 0 : index
    %4 = vector.load %arg2[%c0_4, %c0_5, %c0_6] : memref<3x128x128xf32, #tpu.memory_space<vmem>>, vector<1x128x128xf32>
    %5 = vector.shape_cast %4 : vector<1x128x128xf32> to vector<128x128xf32>
    %cst_7 = arith.constant dense<0.000000e+00> : vector<160x128xf32>
    %6 = tpu.matmul %3, %5, %cst_7 {dimension_numbers = #tpu.dot_dimension_numbers<[1], [0], [0], [1], [0, 0, 1, 1], [], []>} : vector<160x128xf32>, vector<128x128xf32>, vector<160x128xf32> -> vector<160x128xf32>
    %c1 = arith.constant 1 : index
    %c0_8 = arith.constant 0 : index
    %c0_9 = arith.constant 0 : index
    %7 = vector.load %arg2[%c1, %c0_8, %c0_9] : memref<3x128x128xf32, #tpu.memory_space<vmem>>, vector<1x128x128xf32>
    %8 = vector.shape_cast %7 : vector<1x128x128xf32> to vector<128x128xf32>
    %cst_10 = arith.constant dense<0.000000e+00> : vector<160x128xf32>
    %9 = tpu.matmul %0, %8, %cst_10 {dimension_numbers = #tpu.dot_dimension_numbers<[1], [0], [0], [1], [0, 0, 1, 1], [], []>} : vector<160x128xf32>, vector<128x128xf32>, vector<160x128xf32> -> vector<160x128xf32>
    %10 = arith.addf %6, %9 : vector<160x128xf32>
    %c2 = arith.constant 2 : index
    %c0_11 = arith.constant 0 : index
    %c0_12 = arith.constant 0 : index
    %11 = vector.load %arg3[%c2, %c0_11, %c0_12] : memref<3x160x160xf32, #tpu.memory_space<vmem>>, vector<1x160x160xf32>
    %12 = vector.shape_cast %11 : vector<1x160x160xf32> to vector<160x160xf32>
    %cst_13 = arith.constant dense<0.000000e+00> : vector<160x128xf32>
    %13 = tpu.matmul %12, %0, %cst_13 {dimension_numbers = #tpu.dot_dimension_numbers<[1], [0], [0], [1], [0, 0, 1, 1], [], []>} : vector<160x160xf32>, vector<160x128xf32>, vector<160x128xf32> -> vector<160x128xf32>
    %c2_14 = arith.constant 2 : index
    %c0_15 = arith.constant 0 : index
    %c0_16 = arith.constant 0 : index
    %14 = vector.load %arg2[%c2_14, %c0_15, %c0_16] : memref<3x128x128xf32, #tpu.memory_space<vmem>>, vector<1x128x128xf32>
    %15 = vector.shape_cast %14 : vector<1x128x128xf32> to vector<128x128xf32>
    %cst_17 = arith.constant dense<0.000000e+00> : vector<160x128xf32>
    %16 = tpu.matmul %13, %15, %cst_17 {dimension_numbers = #tpu.dot_dimension_numbers<[1], [0], [0], [1], [0, 0, 1, 1], [], []>} : vector<160x128xf32>, vector<128x128xf32>, vector<160x128xf32> -> vector<160x128xf32>
    %17 = arith.addf %10, %16 : vector<160x128xf32>
    %c0_18 = arith.constant 0 : index
    %c0_19 = arith.constant 0 : index
    %18 = vector.load %arg4[%c0_18, %c0_19] : memref<2x128xf32, #tpu.memory_space<vmem>>, vector<1x128xf32>
    %19 = vector.broadcast %18 : vector<1x128xf32> to vector<160x128xf32>
    %20 = arith.mulf %17, %19 : vector<160x128xf32>
    %c1_20 = arith.constant 1 : index
    %c0_21 = arith.constant 0 : index
    %21 = vector.load %arg4[%c1_20, %c0_21] : memref<2x128xf32, #tpu.memory_space<vmem>>, vector<1x128xf32>
    %22 = vector.broadcast %21 : vector<1x128xf32> to vector<160x128xf32>
    %23 = arith.addf %20, %22 : vector<160x128xf32>
    %cst_22 = arith.constant 0.000000e+00 : f32
    %24 = vector.broadcast %cst_22 : f32 to vector<160x128xf32>
    %25 = arith.maximumf %23, %24 : vector<160x128xf32>
    %c0_23 = arith.constant 0 : index
    %c0_24 = arith.constant 0 : index
    %c0_25 = arith.constant 0 : index
    %26 = vector.load %arg6[%c0_23, %c0_24, %c0_25] : memref<3x160x160xf32, #tpu.memory_space<vmem>>, vector<1x160x160xf32>
    %27 = vector.shape_cast %26 : vector<1x160x160xf32> to vector<160x160xf32>
    %cst_26 = arith.constant dense<0.000000e+00> : vector<160x128xf32>
    %28 = tpu.matmul %27, %25, %cst_26 {dimension_numbers = #tpu.dot_dimension_numbers<[1], [0], [0], [1], [0, 0, 1, 1], [], []>} : vector<160x160xf32>, vector<160x128xf32>, vector<160x128xf32> -> vector<160x128xf32>
    %c0_27 = arith.constant 0 : index
    %c0_28 = arith.constant 0 : index
    %c0_29 = arith.constant 0 : index
    %29 = vector.load %arg5[%c0_27, %c0_28, %c0_29] : memref<3x128x128xf32, #tpu.memory_space<vmem>>, vector<1x128x128xf32>
    %30 = vector.shape_cast %29 : vector<1x128x128xf32> to vector<128x128xf32>
    %cst_30 = arith.constant dense<0.000000e+00> : vector<160x128xf32>
    %31 = tpu.matmul %28, %30, %cst_30 {dimension_numbers = #tpu.dot_dimension_numbers<[1], [0], [0], [1], [0, 0, 1, 1], [], []>} : vector<160x128xf32>, vector<128x128xf32>, vector<160x128xf32> -> vector<160x128xf32>
    %c1_31 = arith.constant 1 : index
    %c0_32 = arith.constant 0 : index
    %c0_33 = arith.constant 0 : index
    %32 = vector.load %arg5[%c1_31, %c0_32, %c0_33] : memref<3x128x128xf32, #tpu.memory_space<vmem>>, vector<1x128x128xf32>
    %33 = vector.shape_cast %32 : vector<1x128x128xf32> to vector<128x128xf32>
    %cst_34 = arith.constant dense<0.000000e+00> : vector<160x128xf32>
    %34 = tpu.matmul %25, %33, %cst_34 {dimension_numbers = #tpu.dot_dimension_numbers<[1], [0], [0], [1], [0, 0, 1, 1], [], []>} : vector<160x128xf32>, vector<128x128xf32>, vector<160x128xf32> -> vector<160x128xf32>
    %35 = arith.addf %31, %34 : vector<160x128xf32>
    %c2_35 = arith.constant 2 : index
    %c0_36 = arith.constant 0 : index
    %c0_37 = arith.constant 0 : index
    %36 = vector.load %arg6[%c2_35, %c0_36, %c0_37] : memref<3x160x160xf32, #tpu.memory_space<vmem>>, vector<1x160x160xf32>
    %37 = vector.shape_cast %36 : vector<1x160x160xf32> to vector<160x160xf32>
    %cst_38 = arith.constant dense<0.000000e+00> : vector<160x128xf32>
    %38 = tpu.matmul %37, %25, %cst_38 {dimension_numbers = #tpu.dot_dimension_numbers<[1], [0], [0], [1], [0, 0, 1, 1], [], []>} : vector<160x160xf32>, vector<160x128xf32>, vector<160x128xf32> -> vector<160x128xf32>
    %c2_39 = arith.constant 2 : index
    %c0_40 = arith.constant 0 : index
    %c0_41 = arith.constant 0 : index
    %39 = vector.load %arg5[%c2_39, %c0_40, %c0_41] : memref<3x128x128xf32, #tpu.memory_space<vmem>>, vector<1x128x128xf32>
    %40 = vector.shape_cast %39 : vector<1x128x128xf32> to vector<128x128xf32>
    %cst_42 = arith.constant dense<0.000000e+00> : vector<160x128xf32>
    %41 = tpu.matmul %38, %40, %cst_42 {dimension_numbers = #tpu.dot_dimension_numbers<[1], [0], [0], [1], [0, 0, 1, 1], [], []>} : vector<160x128xf32>, vector<128x128xf32>, vector<160x128xf32> -> vector<160x128xf32>
    %42 = arith.addf %35, %41 : vector<160x128xf32>
    %c0_43 = arith.constant 0 : index
    %c0_44 = arith.constant 0 : index
    %43 = vector.load %arg7[%c0_43, %c0_44] : memref<2x128xf32, #tpu.memory_space<vmem>>, vector<1x128xf32>
    %44 = vector.broadcast %43 : vector<1x128xf32> to vector<160x128xf32>
    %45 = arith.mulf %42, %44 : vector<160x128xf32>
    %c1_45 = arith.constant 1 : index
    %c0_46 = arith.constant 0 : index
    %46 = vector.load %arg7[%c1_45, %c0_46] : memref<2x128xf32, #tpu.memory_space<vmem>>, vector<1x128xf32>
    %47 = vector.broadcast %46 : vector<1x128xf32> to vector<160x128xf32>
    %48 = arith.addf %45, %47 : vector<160x128xf32>
    %49 = arith.addf %48, %25 : vector<160x128xf32>
    %cst_47 = arith.constant 0.000000e+00 : f32
    %50 = vector.broadcast %cst_47 : f32 to vector<160x128xf32>
    %51 = arith.maximumf %49, %50 : vector<160x128xf32>
    %c0_48 = arith.constant 0 : index
    %c0_49 = arith.constant 0 : index
    %c0_50 = arith.constant 0 : index
    %52 = vector.load %arg9[%c0_48, %c0_49, %c0_50] : memref<3x160x160xf32, #tpu.memory_space<vmem>>, vector<1x160x160xf32>
    %53 = vector.shape_cast %52 : vector<1x160x160xf32> to vector<160x160xf32>
    %cst_51 = arith.constant dense<0.000000e+00> : vector<160x128xf32>
    %54 = tpu.matmul %53, %51, %cst_51 {dimension_numbers = #tpu.dot_dimension_numbers<[1], [0], [0], [1], [0, 0, 1, 1], [], []>} : vector<160x160xf32>, vector<160x128xf32>, vector<160x128xf32> -> vector<160x128xf32>
    %c0_52 = arith.constant 0 : index
    %c0_53 = arith.constant 0 : index
    %c0_54 = arith.constant 0 : index
    %55 = vector.load %arg8[%c0_52, %c0_53, %c0_54] : memref<3x128x128xf32, #tpu.memory_space<vmem>>, vector<1x128x128xf32>
    %56 = vector.shape_cast %55 : vector<1x128x128xf32> to vector<128x128xf32>
    %cst_55 = arith.constant dense<0.000000e+00> : vector<160x128xf32>
    %57 = tpu.matmul %54, %56, %cst_55 {dimension_numbers = #tpu.dot_dimension_numbers<[1], [0], [0], [1], [0, 0, 1, 1], [], []>} : vector<160x128xf32>, vector<128x128xf32>, vector<160x128xf32> -> vector<160x128xf32>
    %c1_56 = arith.constant 1 : index
    %c0_57 = arith.constant 0 : index
    %c0_58 = arith.constant 0 : index
    %58 = vector.load %arg8[%c1_56, %c0_57, %c0_58] : memref<3x128x128xf32, #tpu.memory_space<vmem>>, vector<1x128x128xf32>
    %59 = vector.shape_cast %58 : vector<1x128x128xf32> to vector<128x128xf32>
    %cst_59 = arith.constant dense<0.000000e+00> : vector<160x128xf32>
    %60 = tpu.matmul %51, %59, %cst_59 {dimension_numbers = #tpu.dot_dimension_numbers<[1], [0], [0], [1], [0, 0, 1, 1], [], []>} : vector<160x128xf32>, vector<128x128xf32>, vector<160x128xf32> -> vector<160x128xf32>
    %61 = arith.addf %57, %60 : vector<160x128xf32>
    %c2_60 = arith.constant 2 : index
    %c0_61 = arith.constant 0 : index
    %c0_62 = arith.constant 0 : index
    %62 = vector.load %arg9[%c2_60, %c0_61, %c0_62] : memref<3x160x160xf32, #tpu.memory_space<vmem>>, vector<1x160x160xf32>
    %63 = vector.shape_cast %62 : vector<1x160x160xf32> to vector<160x160xf32>
    %cst_63 = arith.constant dense<0.000000e+00> : vector<160x128xf32>
    %64 = tpu.matmul %63, %51, %cst_63 {dimension_numbers = #tpu.dot_dimension_numbers<[1], [0], [0], [1], [0, 0, 1, 1], [], []>} : vector<160x160xf32>, vector<160x128xf32>, vector<160x128xf32> -> vector<160x128xf32>
    %c2_64 = arith.constant 2 : index
    %c0_65 = arith.constant 0 : index
    %c0_66 = arith.constant 0 : index
    %65 = vector.load %arg8[%c2_64, %c0_65, %c0_66] : memref<3x128x128xf32, #tpu.memory_space<vmem>>, vector<1x128x128xf32>
    %66 = vector.shape_cast %65 : vector<1x128x128xf32> to vector<128x128xf32>
    %cst_67 = arith.constant dense<0.000000e+00> : vector<160x128xf32>
    %67 = tpu.matmul %64, %66, %cst_67 {dimension_numbers = #tpu.dot_dimension_numbers<[1], [0], [0], [1], [0, 0, 1, 1], [], []>} : vector<160x128xf32>, vector<128x128xf32>, vector<160x128xf32> -> vector<160x128xf32>
    %68 = arith.addf %61, %67 : vector<160x128xf32>
    %c0_68 = arith.constant 0 : index
    %c0_69 = arith.constant 0 : index
    %69 = vector.load %arg10[%c0_68, %c0_69] : memref<2x128xf32, #tpu.memory_space<vmem>>, vector<1x128xf32>
    %70 = vector.broadcast %69 : vector<1x128xf32> to vector<160x128xf32>
    %71 = arith.mulf %68, %70 : vector<160x128xf32>
    %c1_70 = arith.constant 1 : index
    %c0_71 = arith.constant 0 : index
    %72 = vector.load %arg10[%c1_70, %c0_71] : memref<2x128xf32, #tpu.memory_space<vmem>>, vector<1x128xf32>
    %73 = vector.broadcast %72 : vector<1x128xf32> to vector<160x128xf32>
    %74 = arith.addf %71, %73 : vector<160x128xf32>
    %75 = arith.addf %74, %51 : vector<160x128xf32>
    %cst_72 = arith.constant 0.000000e+00 : f32
    %76 = vector.broadcast %cst_72 : f32 to vector<160x128xf32>
    %77 = arith.maximumf %75, %76 : vector<160x128xf32>
    %c0_73 = arith.constant 0 : index
    %c0_74 = arith.constant 0 : index
    %c0_75 = arith.constant 0 : index
    %78 = vector.load %arg12[%c0_73, %c0_74, %c0_75] : memref<3x56x160xf32, #tpu.memory_space<vmem>>, vector<1x56x160xf32>
    %79 = vector.shape_cast %78 : vector<1x56x160xf32> to vector<56x160xf32>
    %cst_76 = arith.constant dense<0.000000e+00> : vector<56x128xf32>
    %80 = tpu.matmul %79, %77, %cst_76 {dimension_numbers = #tpu.dot_dimension_numbers<[1], [0], [0], [1], [0, 0, 1, 1], [], []>} : vector<56x160xf32>, vector<160x128xf32>, vector<56x128xf32> -> vector<56x128xf32>
    %c0_77 = arith.constant 0 : index
    %c0_78 = arith.constant 0 : index
    %c0_79 = arith.constant 0 : index
    %81 = vector.load %arg11[%c0_77, %c0_78, %c0_79] : memref<3x128x256xf32, #tpu.memory_space<vmem>>, vector<1x128x256xf32>
    %82 = vector.shape_cast %81 : vector<1x128x256xf32> to vector<128x256xf32>
    %cst_80 = arith.constant dense<0.000000e+00> : vector<56x256xf32>
    %83 = tpu.matmul %80, %82, %cst_80 {dimension_numbers = #tpu.dot_dimension_numbers<[1], [0], [0], [1], [0, 0, 1, 1], [], []>} : vector<56x128xf32>, vector<128x256xf32>, vector<56x256xf32> -> vector<56x256xf32>
    %c1_81 = arith.constant 1 : index
    %c0_82 = arith.constant 0 : index
    %c0_83 = arith.constant 0 : index
    %84 = vector.load %arg12[%c1_81, %c0_82, %c0_83] : memref<3x56x160xf32, #tpu.memory_space<vmem>>, vector<1x56x160xf32>
    %85 = vector.shape_cast %84 : vector<1x56x160xf32> to vector<56x160xf32>
    %cst_84 = arith.constant dense<0.000000e+00> : vector<56x128xf32>
    %86 = tpu.matmul %85, %77, %cst_84 {dimension_numbers = #tpu.dot_dimension_numbers<[1], [0], [0], [1], [0, 0, 1, 1], [], []>} : vector<56x160xf32>, vector<160x128xf32>, vector<56x128xf32> -> vector<56x128xf32>
    %c1_85 = arith.constant 1 : index
    %c0_86 = arith.constant 0 : index
    %c0_87 = arith.constant 0 : index
    %87 = vector.load %arg11[%c1_85, %c0_86, %c0_87] : memref<3x128x256xf32, #tpu.memory_space<vmem>>, vector<1x128x256xf32>
    %88 = vector.shape_cast %87 : vector<1x128x256xf32> to vector<128x256xf32>
    %cst_88 = arith.constant dense<0.000000e+00> : vector<56x256xf32>
    %89 = tpu.matmul %86, %88, %cst_88 {dimension_numbers = #tpu.dot_dimension_numbers<[1], [0], [0], [1], [0, 0, 1, 1], [], []>} : vector<56x128xf32>, vector<128x256xf32>, vector<56x256xf32> -> vector<56x256xf32>
    %90 = arith.addf %83, %89 : vector<56x256xf32>
    %c2_89 = arith.constant 2 : index
    %c0_90 = arith.constant 0 : index
    %c0_91 = arith.constant 0 : index
    %91 = vector.load %arg12[%c2_89, %c0_90, %c0_91] : memref<3x56x160xf32, #tpu.memory_space<vmem>>, vector<1x56x160xf32>
    %92 = vector.shape_cast %91 : vector<1x56x160xf32> to vector<56x160xf32>
    %cst_92 = arith.constant dense<0.000000e+00> : vector<56x128xf32>
    %93 = tpu.matmul %92, %77, %cst_92 {dimension_numbers = #tpu.dot_dimension_numbers<[1], [0], [0], [1], [0, 0, 1, 1], [], []>} : vector<56x160xf32>, vector<160x128xf32>, vector<56x128xf32> -> vector<56x128xf32>
    %c2_93 = arith.constant 2 : index
    %c0_94 = arith.constant 0 : index
    %c0_95 = arith.constant 0 : index
    %94 = vector.load %arg11[%c2_93, %c0_94, %c0_95] : memref<3x128x256xf32, #tpu.memory_space<vmem>>, vector<1x128x256xf32>
    %95 = vector.shape_cast %94 : vector<1x128x256xf32> to vector<128x256xf32>
    %cst_96 = arith.constant dense<0.000000e+00> : vector<56x256xf32>
    %96 = tpu.matmul %93, %95, %cst_96 {dimension_numbers = #tpu.dot_dimension_numbers<[1], [0], [0], [1], [0, 0, 1, 1], [], []>} : vector<56x128xf32>, vector<128x256xf32>, vector<56x256xf32> -> vector<56x256xf32>
    %97 = arith.addf %90, %96 : vector<56x256xf32>
    %c0_97 = arith.constant 0 : index
    %c0_98 = arith.constant 0 : index
    %98 = vector.load %arg13[%c0_97, %c0_98] : memref<2x256xf32, #tpu.memory_space<vmem>>, vector<1x256xf32>
    %99 = vector.broadcast %98 : vector<1x256xf32> to vector<56x256xf32>
    %100 = arith.mulf %97, %99 : vector<56x256xf32>
    %c1_99 = arith.constant 1 : index
    %c0_100 = arith.constant 0 : index
    %101 = vector.load %arg13[%c1_99, %c0_100] : memref<2x256xf32, #tpu.memory_space<vmem>>, vector<1x256xf32>
    %102 = vector.broadcast %101 : vector<1x256xf32> to vector<56x256xf32>
    %103 = arith.addf %100, %102 : vector<56x256xf32>
    %cst_101 = arith.constant 0.000000e+00 : f32
    %104 = vector.broadcast %cst_101 : f32 to vector<56x256xf32>
    %105 = arith.maximumf %103, %104 : vector<56x256xf32>
    %c0_102 = arith.constant 0 : index
    %c0_103 = arith.constant 0 : index
    %c0_104 = arith.constant 0 : index
    %106 = vector.load %arg15[%c0_102, %c0_103, %c0_104] : memref<3x56x56xf32, #tpu.memory_space<vmem>>, vector<1x56x56xf32>
    %107 = vector.shape_cast %106 : vector<1x56x56xf32> to vector<56x56xf32>
    %cst_105 = arith.constant dense<0.000000e+00> : vector<56x256xf32>
    %108 = tpu.matmul %107, %105, %cst_105 {dimension_numbers = #tpu.dot_dimension_numbers<[1], [0], [0], [1], [0, 0, 1, 1], [], []>} : vector<56x56xf32>, vector<56x256xf32>, vector<56x256xf32> -> vector<56x256xf32>
    %c0_106 = arith.constant 0 : index
    %c0_107 = arith.constant 0 : index
    %c0_108 = arith.constant 0 : index
    %109 = vector.load %arg14[%c0_106, %c0_107, %c0_108] : memref<3x256x256xf32, #tpu.memory_space<vmem>>, vector<1x256x256xf32>
    %110 = vector.shape_cast %109 : vector<1x256x256xf32> to vector<256x256xf32>
    %cst_109 = arith.constant dense<0.000000e+00> : vector<56x256xf32>
    %111 = tpu.matmul %108, %110, %cst_109 {dimension_numbers = #tpu.dot_dimension_numbers<[1], [0], [0], [1], [0, 0, 1, 1], [], []>} : vector<56x256xf32>, vector<256x256xf32>, vector<56x256xf32> -> vector<56x256xf32>
    %c1_110 = arith.constant 1 : index
    %c0_111 = arith.constant 0 : index
    %c0_112 = arith.constant 0 : index
    %112 = vector.load %arg14[%c1_110, %c0_111, %c0_112] : memref<3x256x256xf32, #tpu.memory_space<vmem>>, vector<1x256x256xf32>
    %113 = vector.shape_cast %112 : vector<1x256x256xf32> to vector<256x256xf32>
    %cst_113 = arith.constant dense<0.000000e+00> : vector<56x256xf32>
    %114 = tpu.matmul %105, %113, %cst_113 {dimension_numbers = #tpu.dot_dimension_numbers<[1], [0], [0], [1], [0, 0, 1, 1], [], []>} : vector<56x256xf32>, vector<256x256xf32>, vector<56x256xf32> -> vector<56x256xf32>
    %115 = arith.addf %111, %114 : vector<56x256xf32>
    %c2_114 = arith.constant 2 : index
    %c0_115 = arith.constant 0 : index
    %c0_116 = arith.constant 0 : index
    %116 = vector.load %arg15[%c2_114, %c0_115, %c0_116] : memref<3x56x56xf32, #tpu.memory_space<vmem>>, vector<1x56x56xf32>
    %117 = vector.shape_cast %116 : vector<1x56x56xf32> to vector<56x56xf32>
    %cst_117 = arith.constant dense<0.000000e+00> : vector<56x256xf32>
    %118 = tpu.matmul %117, %105, %cst_117 {dimension_numbers = #tpu.dot_dimension_numbers<[1], [0], [0], [1], [0, 0, 1, 1], [], []>} : vector<56x56xf32>, vector<56x256xf32>, vector<56x256xf32> -> vector<56x256xf32>
    %c2_118 = arith.constant 2 : index
    %c0_119 = arith.constant 0 : index
    %c0_120 = arith.constant 0 : index
    %119 = vector.load %arg14[%c2_118, %c0_119, %c0_120] : memref<3x256x256xf32, #tpu.memory_space<vmem>>, vector<1x256x256xf32>
    %120 = vector.shape_cast %119 : vector<1x256x256xf32> to vector<256x256xf32>
    %cst_121 = arith.constant dense<0.000000e+00> : vector<56x256xf32>
    %121 = tpu.matmul %118, %120, %cst_121 {dimension_numbers = #tpu.dot_dimension_numbers<[1], [0], [0], [1], [0, 0, 1, 1], [], []>} : vector<56x256xf32>, vector<256x256xf32>, vector<56x256xf32> -> vector<56x256xf32>
    %122 = arith.addf %115, %121 : vector<56x256xf32>
    %c0_122 = arith.constant 0 : index
    %c0_123 = arith.constant 0 : index
    %123 = vector.load %arg16[%c0_122, %c0_123] : memref<2x256xf32, #tpu.memory_space<vmem>>, vector<1x256xf32>
    %124 = vector.broadcast %123 : vector<1x256xf32> to vector<56x256xf32>
    %125 = arith.mulf %122, %124 : vector<56x256xf32>
    %c1_124 = arith.constant 1 : index
    %c0_125 = arith.constant 0 : index
    %126 = vector.load %arg16[%c1_124, %c0_125] : memref<2x256xf32, #tpu.memory_space<vmem>>, vector<1x256xf32>
    %127 = vector.broadcast %126 : vector<1x256xf32> to vector<56x256xf32>
    %128 = arith.addf %125, %127 : vector<56x256xf32>
    %129 = arith.addf %128, %105 : vector<56x256xf32>
    %cst_126 = arith.constant 0.000000e+00 : f32
    %130 = vector.broadcast %cst_126 : f32 to vector<56x256xf32>
    %131 = arith.maximumf %129, %130 : vector<56x256xf32>
    %c0_127 = arith.constant 0 : index
    %c0_128 = arith.constant 0 : index
    %c0_129 = arith.constant 0 : index
    %132 = vector.load %arg18[%c0_127, %c0_128, %c0_129] : memref<3x56x56xf32, #tpu.memory_space<vmem>>, vector<1x56x56xf32>
    %133 = vector.shape_cast %132 : vector<1x56x56xf32> to vector<56x56xf32>
    %cst_130 = arith.constant dense<0.000000e+00> : vector<56x256xf32>
    %134 = tpu.matmul %133, %131, %cst_130 {dimension_numbers = #tpu.dot_dimension_numbers<[1], [0], [0], [1], [0, 0, 1, 1], [], []>} : vector<56x56xf32>, vector<56x256xf32>, vector<56x256xf32> -> vector<56x256xf32>
    %c0_131 = arith.constant 0 : index
    %c0_132 = arith.constant 0 : index
    %c0_133 = arith.constant 0 : index
    %135 = vector.load %arg17[%c0_131, %c0_132, %c0_133] : memref<3x256x256xf32, #tpu.memory_space<vmem>>, vector<1x256x256xf32>
    %136 = vector.shape_cast %135 : vector<1x256x256xf32> to vector<256x256xf32>
    %cst_134 = arith.constant dense<0.000000e+00> : vector<56x256xf32>
    %137 = tpu.matmul %134, %136, %cst_134 {dimension_numbers = #tpu.dot_dimension_numbers<[1], [0], [0], [1], [0, 0, 1, 1], [], []>} : vector<56x256xf32>, vector<256x256xf32>, vector<56x256xf32> -> vector<56x256xf32>
    %c1_135 = arith.constant 1 : index
    %c0_136 = arith.constant 0 : index
    %c0_137 = arith.constant 0 : index
    %138 = vector.load %arg17[%c1_135, %c0_136, %c0_137] : memref<3x256x256xf32, #tpu.memory_space<vmem>>, vector<1x256x256xf32>
    %139 = vector.shape_cast %138 : vector<1x256x256xf32> to vector<256x256xf32>
    %cst_138 = arith.constant dense<0.000000e+00> : vector<56x256xf32>
    %140 = tpu.matmul %131, %139, %cst_138 {dimension_numbers = #tpu.dot_dimension_numbers<[1], [0], [0], [1], [0, 0, 1, 1], [], []>} : vector<56x256xf32>, vector<256x256xf32>, vector<56x256xf32> -> vector<56x256xf32>
    %141 = arith.addf %137, %140 : vector<56x256xf32>
    %c2_139 = arith.constant 2 : index
    %c0_140 = arith.constant 0 : index
    %c0_141 = arith.constant 0 : index
    %142 = vector.load %arg18[%c2_139, %c0_140, %c0_141] : memref<3x56x56xf32, #tpu.memory_space<vmem>>, vector<1x56x56xf32>
    %143 = vector.shape_cast %142 : vector<1x56x56xf32> to vector<56x56xf32>
    %cst_142 = arith.constant dense<0.000000e+00> : vector<56x256xf32>
    %144 = tpu.matmul %143, %131, %cst_142 {dimension_numbers = #tpu.dot_dimension_numbers<[1], [0], [0], [1], [0, 0, 1, 1], [], []>} : vector<56x56xf32>, vector<56x256xf32>, vector<56x256xf32> -> vector<56x256xf32>
    %c2_143 = arith.constant 2 : index
    %c0_144 = arith.constant 0 : index
    %c0_145 = arith.constant 0 : index
    %145 = vector.load %arg17[%c2_143, %c0_144, %c0_145] : memref<3x256x256xf32, #tpu.memory_space<vmem>>, vector<1x256x256xf32>
    %146 = vector.shape_cast %145 : vector<1x256x256xf32> to vector<256x256xf32>
    %cst_146 = arith.constant dense<0.000000e+00> : vector<56x256xf32>
    %147 = tpu.matmul %144, %146, %cst_146 {dimension_numbers = #tpu.dot_dimension_numbers<[1], [0], [0], [1], [0, 0, 1, 1], [], []>} : vector<56x256xf32>, vector<256x256xf32>, vector<56x256xf32> -> vector<56x256xf32>
    %148 = arith.addf %141, %147 : vector<56x256xf32>
    %c0_147 = arith.constant 0 : index
    %c0_148 = arith.constant 0 : index
    %149 = vector.load %arg19[%c0_147, %c0_148] : memref<2x256xf32, #tpu.memory_space<vmem>>, vector<1x256xf32>
    %150 = vector.broadcast %149 : vector<1x256xf32> to vector<56x256xf32>
    %151 = arith.mulf %148, %150 : vector<56x256xf32>
    %c1_149 = arith.constant 1 : index
    %c0_150 = arith.constant 0 : index
    %152 = vector.load %arg19[%c1_149, %c0_150] : memref<2x256xf32, #tpu.memory_space<vmem>>, vector<1x256xf32>
    %153 = vector.broadcast %152 : vector<1x256xf32> to vector<56x256xf32>
    %154 = arith.addf %151, %153 : vector<56x256xf32>
    %155 = arith.addf %154, %131 : vector<56x256xf32>
    %cst_151 = arith.constant 0.000000e+00 : f32
    %156 = vector.broadcast %cst_151 : f32 to vector<56x256xf32>
    %157 = arith.maximumf %155, %156 : vector<56x256xf32>
    %c0_152 = arith.constant 0 : index
    %c0_153 = arith.constant 0 : index
    %c0_154 = arith.constant 0 : index
    %158 = vector.load %arg21[%c0_152, %c0_153, %c0_154] : memref<3x24x56xf32, #tpu.memory_space<vmem>>, vector<1x24x56xf32>
    %159 = vector.shape_cast %158 : vector<1x24x56xf32> to vector<24x56xf32>
    %cst_155 = arith.constant dense<0.000000e+00> : vector<24x256xf32>
    %160 = tpu.matmul %159, %157, %cst_155 {dimension_numbers = #tpu.dot_dimension_numbers<[1], [0], [0], [1], [0, 0, 1, 1], [], []>} : vector<24x56xf32>, vector<56x256xf32>, vector<24x256xf32> -> vector<24x256xf32>
    %c0_156 = arith.constant 0 : index
    %c0_157 = arith.constant 0 : index
    %c0_158 = arith.constant 0 : index
    %161 = vector.load %arg20[%c0_156, %c0_157, %c0_158] : memref<3x256x128xf32, #tpu.memory_space<vmem>>, vector<1x256x128xf32>
    %162 = vector.shape_cast %161 : vector<1x256x128xf32> to vector<256x128xf32>
    %cst_159 = arith.constant dense<0.000000e+00> : vector<24x128xf32>
    %163 = tpu.matmul %160, %162, %cst_159 {dimension_numbers = #tpu.dot_dimension_numbers<[1], [0], [0], [1], [0, 0, 1, 1], [], []>} : vector<24x256xf32>, vector<256x128xf32>, vector<24x128xf32> -> vector<24x128xf32>
    %c1_160 = arith.constant 1 : index
    %c0_161 = arith.constant 0 : index
    %c0_162 = arith.constant 0 : index
    %164 = vector.load %arg21[%c1_160, %c0_161, %c0_162] : memref<3x24x56xf32, #tpu.memory_space<vmem>>, vector<1x24x56xf32>
    %165 = vector.shape_cast %164 : vector<1x24x56xf32> to vector<24x56xf32>
    %cst_163 = arith.constant dense<0.000000e+00> : vector<24x256xf32>
    %166 = tpu.matmul %165, %157, %cst_163 {dimension_numbers = #tpu.dot_dimension_numbers<[1], [0], [0], [1], [0, 0, 1, 1], [], []>} : vector<24x56xf32>, vector<56x256xf32>, vector<24x256xf32> -> vector<24x256xf32>
    %c1_164 = arith.constant 1 : index
    %c0_165 = arith.constant 0 : index
    %c0_166 = arith.constant 0 : index
    %167 = vector.load %arg20[%c1_164, %c0_165, %c0_166] : memref<3x256x128xf32, #tpu.memory_space<vmem>>, vector<1x256x128xf32>
    %168 = vector.shape_cast %167 : vector<1x256x128xf32> to vector<256x128xf32>
    %cst_167 = arith.constant dense<0.000000e+00> : vector<24x128xf32>
    %169 = tpu.matmul %166, %168, %cst_167 {dimension_numbers = #tpu.dot_dimension_numbers<[1], [0], [0], [1], [0, 0, 1, 1], [], []>} : vector<24x256xf32>, vector<256x128xf32>, vector<24x128xf32> -> vector<24x128xf32>
    %170 = arith.addf %163, %169 : vector<24x128xf32>
    %c2_168 = arith.constant 2 : index
    %c0_169 = arith.constant 0 : index
    %c0_170 = arith.constant 0 : index
    %171 = vector.load %arg21[%c2_168, %c0_169, %c0_170] : memref<3x24x56xf32, #tpu.memory_space<vmem>>, vector<1x24x56xf32>
    %172 = vector.shape_cast %171 : vector<1x24x56xf32> to vector<24x56xf32>
    %cst_171 = arith.constant dense<0.000000e+00> : vector<24x256xf32>
    %173 = tpu.matmul %172, %157, %cst_171 {dimension_numbers = #tpu.dot_dimension_numbers<[1], [0], [0], [1], [0, 0, 1, 1], [], []>} : vector<24x56xf32>, vector<56x256xf32>, vector<24x256xf32> -> vector<24x256xf32>
    %c2_172 = arith.constant 2 : index
    %c0_173 = arith.constant 0 : index
    %c0_174 = arith.constant 0 : index
    %174 = vector.load %arg20[%c2_172, %c0_173, %c0_174] : memref<3x256x128xf32, #tpu.memory_space<vmem>>, vector<1x256x128xf32>
    %175 = vector.shape_cast %174 : vector<1x256x128xf32> to vector<256x128xf32>
    %cst_175 = arith.constant dense<0.000000e+00> : vector<24x128xf32>
    %176 = tpu.matmul %173, %175, %cst_175 {dimension_numbers = #tpu.dot_dimension_numbers<[1], [0], [0], [1], [0, 0, 1, 1], [], []>} : vector<24x256xf32>, vector<256x128xf32>, vector<24x128xf32> -> vector<24x128xf32>
    %177 = arith.addf %170, %176 : vector<24x128xf32>
    %c0_176 = arith.constant 0 : index
    %c0_177 = arith.constant 0 : index
    %178 = vector.load %arg22[%c0_176, %c0_177] : memref<2x128xf32, #tpu.memory_space<vmem>>, vector<1x128xf32>
    %179 = vector.broadcast %178 : vector<1x128xf32> to vector<24x128xf32>
    %180 = arith.mulf %177, %179 : vector<24x128xf32>
    %c1_178 = arith.constant 1 : index
    %c0_179 = arith.constant 0 : index
    %181 = vector.load %arg22[%c1_178, %c0_179] : memref<2x128xf32, #tpu.memory_space<vmem>>, vector<1x128xf32>
    %182 = vector.broadcast %181 : vector<1x128xf32> to vector<24x128xf32>
    %183 = arith.addf %180, %182 : vector<24x128xf32>
    %cst_180 = arith.constant 0.000000e+00 : f32
    %184 = vector.broadcast %cst_180 : f32 to vector<24x128xf32>
    %185 = arith.maximumf %183, %184 : vector<24x128xf32>
    %c0_181 = arith.constant 0 : index
    %c0_182 = arith.constant 0 : index
    %c0_183 = arith.constant 0 : index
    %186 = vector.load %arg24[%c0_181, %c0_182, %c0_183] : memref<3x24x24xf32, #tpu.memory_space<vmem>>, vector<1x24x24xf32>
    %187 = vector.shape_cast %186 : vector<1x24x24xf32> to vector<24x24xf32>
    %cst_184 = arith.constant dense<0.000000e+00> : vector<24x128xf32>
    %188 = tpu.matmul %187, %185, %cst_184 {dimension_numbers = #tpu.dot_dimension_numbers<[1], [0], [0], [1], [0, 0, 1, 1], [], []>} : vector<24x24xf32>, vector<24x128xf32>, vector<24x128xf32> -> vector<24x128xf32>
    %c0_185 = arith.constant 0 : index
    %c0_186 = arith.constant 0 : index
    %c0_187 = arith.constant 0 : index
    %189 = vector.load %arg23[%c0_185, %c0_186, %c0_187] : memref<3x128x128xf32, #tpu.memory_space<vmem>>, vector<1x128x128xf32>
    %190 = vector.shape_cast %189 : vector<1x128x128xf32> to vector<128x128xf32>
    %cst_188 = arith.constant dense<0.000000e+00> : vector<24x128xf32>
    %191 = tpu.matmul %188, %190, %cst_188 {dimension_numbers = #tpu.dot_dimension_numbers<[1], [0], [0], [1], [0, 0, 1, 1], [], []>} : vector<24x128xf32>, vector<128x128xf32>, vector<24x128xf32> -> vector<24x128xf32>
    %c1_189 = arith.constant 1 : index
    %c0_190 = arith.constant 0 : index
    %c0_191 = arith.constant 0 : index
    %192 = vector.load %arg23[%c1_189, %c0_190, %c0_191] : memref<3x128x128xf32, #tpu.memory_space<vmem>>, vector<1x128x128xf32>
    %193 = vector.shape_cast %192 : vector<1x128x128xf32> to vector<128x128xf32>
    %cst_192 = arith.constant dense<0.000000e+00> : vector<24x128xf32>
    %194 = tpu.matmul %185, %193, %cst_192 {dimension_numbers = #tpu.dot_dimension_numbers<[1], [0], [0], [1], [0, 0, 1, 1], [], []>} : vector<24x128xf32>, vector<128x128xf32>, vector<24x128xf32> -> vector<24x128xf32>
    %195 = arith.addf %191, %194 : vector<24x128xf32>
    %c2_193 = arith.constant 2 : index
    %c0_194 = arith.constant 0 : index
    %c0_195 = arith.constant 0 : index
    %196 = vector.load %arg24[%c2_193, %c0_194, %c0_195] : memref<3x24x24xf32, #tpu.memory_space<vmem>>, vector<1x24x24xf32>
    %197 = vector.shape_cast %196 : vector<1x24x24xf32> to vector<24x24xf32>
    %cst_196 = arith.constant dense<0.000000e+00> : vector<24x128xf32>
    %198 = tpu.matmul %197, %185, %cst_196 {dimension_numbers = #tpu.dot_dimension_numbers<[1], [0], [0], [1], [0, 0, 1, 1], [], []>} : vector<24x24xf32>, vector<24x128xf32>, vector<24x128xf32> -> vector<24x128xf32>
    %c2_197 = arith.constant 2 : index
    %c0_198 = arith.constant 0 : index
    %c0_199 = arith.constant 0 : index
    %199 = vector.load %arg23[%c2_197, %c0_198, %c0_199] : memref<3x128x128xf32, #tpu.memory_space<vmem>>, vector<1x128x128xf32>
    %200 = vector.shape_cast %199 : vector<1x128x128xf32> to vector<128x128xf32>
    %cst_200 = arith.constant dense<0.000000e+00> : vector<24x128xf32>
    %201 = tpu.matmul %198, %200, %cst_200 {dimension_numbers = #tpu.dot_dimension_numbers<[1], [0], [0], [1], [0, 0, 1, 1], [], []>} : vector<24x128xf32>, vector<128x128xf32>, vector<24x128xf32> -> vector<24x128xf32>
    %202 = arith.addf %195, %201 : vector<24x128xf32>
    %c0_201 = arith.constant 0 : index
    %c0_202 = arith.constant 0 : index
    %203 = vector.load %arg25[%c0_201, %c0_202] : memref<2x128xf32, #tpu.memory_space<vmem>>, vector<1x128xf32>
    %204 = vector.broadcast %203 : vector<1x128xf32> to vector<24x128xf32>
    %205 = arith.mulf %202, %204 : vector<24x128xf32>
    %c1_203 = arith.constant 1 : index
    %c0_204 = arith.constant 0 : index
    %206 = vector.load %arg25[%c1_203, %c0_204] : memref<2x128xf32, #tpu.memory_space<vmem>>, vector<1x128xf32>
    %207 = vector.broadcast %206 : vector<1x128xf32> to vector<24x128xf32>
    %208 = arith.addf %205, %207 : vector<24x128xf32>
    %209 = arith.addf %208, %185 : vector<24x128xf32>
    %cst_205 = arith.constant 0.000000e+00 : f32
    %210 = vector.broadcast %cst_205 : f32 to vector<24x128xf32>
    %211 = arith.maximumf %209, %210 : vector<24x128xf32>
    %c0_206 = arith.constant 0 : index
    %c0_207 = arith.constant 0 : index
    %c0_208 = arith.constant 0 : index
    %212 = vector.load %arg27[%c0_206, %c0_207, %c0_208] : memref<3x24x24xf32, #tpu.memory_space<vmem>>, vector<1x24x24xf32>
    %213 = vector.shape_cast %212 : vector<1x24x24xf32> to vector<24x24xf32>
    %cst_209 = arith.constant dense<0.000000e+00> : vector<24x128xf32>
    %214 = tpu.matmul %213, %211, %cst_209 {dimension_numbers = #tpu.dot_dimension_numbers<[1], [0], [0], [1], [0, 0, 1, 1], [], []>} : vector<24x24xf32>, vector<24x128xf32>, vector<24x128xf32> -> vector<24x128xf32>
    %c0_210 = arith.constant 0 : index
    %c0_211 = arith.constant 0 : index
    %c0_212 = arith.constant 0 : index
    %215 = vector.load %arg26[%c0_210, %c0_211, %c0_212] : memref<3x128x128xf32, #tpu.memory_space<vmem>>, vector<1x128x128xf32>
    %216 = vector.shape_cast %215 : vector<1x128x128xf32> to vector<128x128xf32>
    %cst_213 = arith.constant dense<0.000000e+00> : vector<24x128xf32>
    %217 = tpu.matmul %214, %216, %cst_213 {dimension_numbers = #tpu.dot_dimension_numbers<[1], [0], [0], [1], [0, 0, 1, 1], [], []>} : vector<24x128xf32>, vector<128x128xf32>, vector<24x128xf32> -> vector<24x128xf32>
    %c1_214 = arith.constant 1 : index
    %c0_215 = arith.constant 0 : index
    %c0_216 = arith.constant 0 : index
    %218 = vector.load %arg26[%c1_214, %c0_215, %c0_216] : memref<3x128x128xf32, #tpu.memory_space<vmem>>, vector<1x128x128xf32>
    %219 = vector.shape_cast %218 : vector<1x128x128xf32> to vector<128x128xf32>
    %cst_217 = arith.constant dense<0.000000e+00> : vector<24x128xf32>
    %220 = tpu.matmul %211, %219, %cst_217 {dimension_numbers = #tpu.dot_dimension_numbers<[1], [0], [0], [1], [0, 0, 1, 1], [], []>} : vector<24x128xf32>, vector<128x128xf32>, vector<24x128xf32> -> vector<24x128xf32>
    %221 = arith.addf %217, %220 : vector<24x128xf32>
    %c2_218 = arith.constant 2 : index
    %c0_219 = arith.constant 0 : index
    %c0_220 = arith.constant 0 : index
    %222 = vector.load %arg27[%c2_218, %c0_219, %c0_220] : memref<3x24x24xf32, #tpu.memory_space<vmem>>, vector<1x24x24xf32>
    %223 = vector.shape_cast %222 : vector<1x24x24xf32> to vector<24x24xf32>
    %cst_221 = arith.constant dense<0.000000e+00> : vector<24x128xf32>
    %224 = tpu.matmul %223, %211, %cst_221 {dimension_numbers = #tpu.dot_dimension_numbers<[1], [0], [0], [1], [0, 0, 1, 1], [], []>} : vector<24x24xf32>, vector<24x128xf32>, vector<24x128xf32> -> vector<24x128xf32>
    %c2_222 = arith.constant 2 : index
    %c0_223 = arith.constant 0 : index
    %c0_224 = arith.constant 0 : index
    %225 = vector.load %arg26[%c2_222, %c0_223, %c0_224] : memref<3x128x128xf32, #tpu.memory_space<vmem>>, vector<1x128x128xf32>
    %226 = vector.shape_cast %225 : vector<1x128x128xf32> to vector<128x128xf32>
    %cst_225 = arith.constant dense<0.000000e+00> : vector<24x128xf32>
    %227 = tpu.matmul %224, %226, %cst_225 {dimension_numbers = #tpu.dot_dimension_numbers<[1], [0], [0], [1], [0, 0, 1, 1], [], []>} : vector<24x128xf32>, vector<128x128xf32>, vector<24x128xf32> -> vector<24x128xf32>
    %228 = arith.addf %221, %227 : vector<24x128xf32>
    %c0_226 = arith.constant 0 : index
    %c0_227 = arith.constant 0 : index
    %229 = vector.load %arg28[%c0_226, %c0_227] : memref<2x128xf32, #tpu.memory_space<vmem>>, vector<1x128xf32>
    %230 = vector.broadcast %229 : vector<1x128xf32> to vector<24x128xf32>
    %231 = arith.mulf %228, %230 : vector<24x128xf32>
    %c1_228 = arith.constant 1 : index
    %c0_229 = arith.constant 0 : index
    %232 = vector.load %arg28[%c1_228, %c0_229] : memref<2x128xf32, #tpu.memory_space<vmem>>, vector<1x128xf32>
    %233 = vector.broadcast %232 : vector<1x128xf32> to vector<24x128xf32>
    %234 = arith.addf %231, %233 : vector<24x128xf32>
    %235 = arith.addf %234, %211 : vector<24x128xf32>
    %cst_230 = arith.constant 0.000000e+00 : f32
    %236 = vector.broadcast %cst_230 : f32 to vector<24x128xf32>
    %237 = arith.maximumf %235, %236 : vector<24x128xf32>
    %c0_231 = arith.constant 0 : index
    %c0_232 = arith.constant 0 : index
    %c0_233 = arith.constant 0 : index
    %238 = vector.load %arg30[%c0_231, %c0_232, %c0_233] : memref<3x8x24xf32, #tpu.memory_space<vmem>>, vector<1x8x24xf32>
    %239 = vector.shape_cast %238 : vector<1x8x24xf32> to vector<8x24xf32>
    %cst_234 = arith.constant dense<0.000000e+00> : vector<8x128xf32>
    %240 = tpu.matmul %239, %237, %cst_234 {dimension_numbers = #tpu.dot_dimension_numbers<[1], [0], [0], [1], [0, 0, 1, 1], [], []>} : vector<8x24xf32>, vector<24x128xf32>, vector<8x128xf32> -> vector<8x128xf32>
    %c0_235 = arith.constant 0 : index
    %c0_236 = arith.constant 0 : index
    %c0_237 = arith.constant 0 : index
    %241 = vector.load %arg29[%c0_235, %c0_236, %c0_237] : memref<3x128x128xf32, #tpu.memory_space<vmem>>, vector<1x128x128xf32>
    %242 = vector.shape_cast %241 : vector<1x128x128xf32> to vector<128x128xf32>
    %cst_238 = arith.constant dense<0.000000e+00> : vector<8x128xf32>
    %243 = tpu.matmul %240, %242, %cst_238 {dimension_numbers = #tpu.dot_dimension_numbers<[1], [0], [0], [1], [0, 0, 1, 1], [], []>} : vector<8x128xf32>, vector<128x128xf32>, vector<8x128xf32> -> vector<8x128xf32>
    %c1_239 = arith.constant 1 : index
    %c0_240 = arith.constant 0 : index
    %c0_241 = arith.constant 0 : index
    %244 = vector.load %arg30[%c1_239, %c0_240, %c0_241] : memref<3x8x24xf32, #tpu.memory_space<vmem>>, vector<1x8x24xf32>
    %245 = vector.shape_cast %244 : vector<1x8x24xf32> to vector<8x24xf32>
    %cst_242 = arith.constant dense<0.000000e+00> : vector<8x128xf32>
    %246 = tpu.matmul %245, %237, %cst_242 {dimension_numbers = #tpu.dot_dimension_numbers<[1], [0], [0], [1], [0, 0, 1, 1], [], []>} : vector<8x24xf32>, vector<24x128xf32>, vector<8x128xf32> -> vector<8x128xf32>
    %c1_243 = arith.constant 1 : index
    %c0_244 = arith.constant 0 : index
    %c0_245 = arith.constant 0 : index
    %247 = vector.load %arg29[%c1_243, %c0_244, %c0_245] : memref<3x128x128xf32, #tpu.memory_space<vmem>>, vector<1x128x128xf32>
    %248 = vector.shape_cast %247 : vector<1x128x128xf32> to vector<128x128xf32>
    %cst_246 = arith.constant dense<0.000000e+00> : vector<8x128xf32>
    %249 = tpu.matmul %246, %248, %cst_246 {dimension_numbers = #tpu.dot_dimension_numbers<[1], [0], [0], [1], [0, 0, 1, 1], [], []>} : vector<8x128xf32>, vector<128x128xf32>, vector<8x128xf32> -> vector<8x128xf32>
    %250 = arith.addf %243, %249 : vector<8x128xf32>
    %c2_247 = arith.constant 2 : index
    %c0_248 = arith.constant 0 : index
    %c0_249 = arith.constant 0 : index
    %251 = vector.load %arg30[%c2_247, %c0_248, %c0_249] : memref<3x8x24xf32, #tpu.memory_space<vmem>>, vector<1x8x24xf32>
    %252 = vector.shape_cast %251 : vector<1x8x24xf32> to vector<8x24xf32>
    %cst_250 = arith.constant dense<0.000000e+00> : vector<8x128xf32>
    %253 = tpu.matmul %252, %237, %cst_250 {dimension_numbers = #tpu.dot_dimension_numbers<[1], [0], [0], [1], [0, 0, 1, 1], [], []>} : vector<8x24xf32>, vector<24x128xf32>, vector<8x128xf32> -> vector<8x128xf32>
    %c2_251 = arith.constant 2 : index
    %c0_252 = arith.constant 0 : index
    %c0_253 = arith.constant 0 : index
    %254 = vector.load %arg29[%c2_251, %c0_252, %c0_253] : memref<3x128x128xf32, #tpu.memory_space<vmem>>, vector<1x128x128xf32>
    %255 = vector.shape_cast %254 : vector<1x128x128xf32> to vector<128x128xf32>
    %cst_254 = arith.constant dense<0.000000e+00> : vector<8x128xf32>
    %256 = tpu.matmul %253, %255, %cst_254 {dimension_numbers = #tpu.dot_dimension_numbers<[1], [0], [0], [1], [0, 0, 1, 1], [], []>} : vector<8x128xf32>, vector<128x128xf32>, vector<8x128xf32> -> vector<8x128xf32>
    %257 = arith.addf %250, %256 : vector<8x128xf32>
    %c0_255 = arith.constant 0 : index
    %c0_256 = arith.constant 0 : index
    %258 = vector.load %arg31[%c0_255, %c0_256] : memref<2x128xf32, #tpu.memory_space<vmem>>, vector<1x128xf32>
    %259 = vector.broadcast %258 : vector<1x128xf32> to vector<8x128xf32>
    %260 = arith.mulf %257, %259 : vector<8x128xf32>
    %c1_257 = arith.constant 1 : index
    %c0_258 = arith.constant 0 : index
    %261 = vector.load %arg31[%c1_257, %c0_258] : memref<2x128xf32, #tpu.memory_space<vmem>>, vector<1x128xf32>
    %262 = vector.broadcast %261 : vector<1x128xf32> to vector<8x128xf32>
    %263 = arith.addf %260, %262 : vector<8x128xf32>
    %cst_259 = arith.constant 0.000000e+00 : f32
    %264 = vector.broadcast %cst_259 : f32 to vector<8x128xf32>
    %265 = arith.maximumf %263, %264 : vector<8x128xf32>
    %c0_260 = arith.constant 0 : index
    %c0_261 = arith.constant 0 : index
    %c0_262 = arith.constant 0 : index
    %266 = vector.load %arg33[%c0_260, %c0_261, %c0_262] : memref<3x8x8xf32, #tpu.memory_space<vmem>>, vector<1x8x8xf32>
    %267 = vector.shape_cast %266 : vector<1x8x8xf32> to vector<8x8xf32>
    %cst_263 = arith.constant dense<0.000000e+00> : vector<8x128xf32>
    %268 = tpu.matmul %267, %265, %cst_263 {dimension_numbers = #tpu.dot_dimension_numbers<[1], [0], [0], [1], [0, 0, 1, 1], [], []>} : vector<8x8xf32>, vector<8x128xf32>, vector<8x128xf32> -> vector<8x128xf32>
    %c0_264 = arith.constant 0 : index
    %c0_265 = arith.constant 0 : index
    %c0_266 = arith.constant 0 : index
    %269 = vector.load %arg32[%c0_264, %c0_265, %c0_266] : memref<3x128x128xf32, #tpu.memory_space<vmem>>, vector<1x128x128xf32>
    %270 = vector.shape_cast %269 : vector<1x128x128xf32> to vector<128x128xf32>
    %cst_267 = arith.constant dense<0.000000e+00> : vector<8x128xf32>
    %271 = tpu.matmul %268, %270, %cst_267 {dimension_numbers = #tpu.dot_dimension_numbers<[1], [0], [0], [1], [0, 0, 1, 1], [], []>} : vector<8x128xf32>, vector<128x128xf32>, vector<8x128xf32> -> vector<8x128xf32>
    %c1_268 = arith.constant 1 : index
    %c0_269 = arith.constant 0 : index
    %c0_270 = arith.constant 0 : index
    %272 = vector.load %arg32[%c1_268, %c0_269, %c0_270] : memref<3x128x128xf32, #tpu.memory_space<vmem>>, vector<1x128x128xf32>
    %273 = vector.shape_cast %272 : vector<1x128x128xf32> to vector<128x128xf32>
    %cst_271 = arith.constant dense<0.000000e+00> : vector<8x128xf32>
    %274 = tpu.matmul %265, %273, %cst_271 {dimension_numbers = #tpu.dot_dimension_numbers<[1], [0], [0], [1], [0, 0, 1, 1], [], []>} : vector<8x128xf32>, vector<128x128xf32>, vector<8x128xf32> -> vector<8x128xf32>
    %275 = arith.addf %271, %274 : vector<8x128xf32>
    %c2_272 = arith.constant 2 : index
    %c0_273 = arith.constant 0 : index
    %c0_274 = arith.constant 0 : index
    %276 = vector.load %arg33[%c2_272, %c0_273, %c0_274] : memref<3x8x8xf32, #tpu.memory_space<vmem>>, vector<1x8x8xf32>
    %277 = vector.shape_cast %276 : vector<1x8x8xf32> to vector<8x8xf32>
    %cst_275 = arith.constant dense<0.000000e+00> : vector<8x128xf32>
    %278 = tpu.matmul %277, %265, %cst_275 {dimension_numbers = #tpu.dot_dimension_numbers<[1], [0], [0], [1], [0, 0, 1, 1], [], []>} : vector<8x8xf32>, vector<8x128xf32>, vector<8x128xf32> -> vector<8x128xf32>
    %c2_276 = arith.constant 2 : index
    %c0_277 = arith.constant 0 : index
    %c0_278 = arith.constant 0 : index
    %279 = vector.load %arg32[%c2_276, %c0_277, %c0_278] : memref<3x128x128xf32, #tpu.memory_space<vmem>>, vector<1x128x128xf32>
    %280 = vector.shape_cast %279 : vector<1x128x128xf32> to vector<128x128xf32>
    %cst_279 = arith.constant dense<0.000000e+00> : vector<8x128xf32>
    %281 = tpu.matmul %278, %280, %cst_279 {dimension_numbers = #tpu.dot_dimension_numbers<[1], [0], [0], [1], [0, 0, 1, 1], [], []>} : vector<8x128xf32>, vector<128x128xf32>, vector<8x128xf32> -> vector<8x128xf32>
    %282 = arith.addf %275, %281 : vector<8x128xf32>
    %c0_280 = arith.constant 0 : index
    %c0_281 = arith.constant 0 : index
    %283 = vector.load %arg34[%c0_280, %c0_281] : memref<2x128xf32, #tpu.memory_space<vmem>>, vector<1x128xf32>
    %284 = vector.broadcast %283 : vector<1x128xf32> to vector<8x128xf32>
    %285 = arith.mulf %282, %284 : vector<8x128xf32>
    %c1_282 = arith.constant 1 : index
    %c0_283 = arith.constant 0 : index
    %286 = vector.load %arg34[%c1_282, %c0_283] : memref<2x128xf32, #tpu.memory_space<vmem>>, vector<1x128xf32>
    %287 = vector.broadcast %286 : vector<1x128xf32> to vector<8x128xf32>
    %288 = arith.addf %285, %287 : vector<8x128xf32>
    %289 = arith.addf %288, %265 : vector<8x128xf32>
    %cst_284 = arith.constant 0.000000e+00 : f32
    %290 = vector.broadcast %cst_284 : f32 to vector<8x128xf32>
    %291 = arith.maximumf %289, %290 : vector<8x128xf32>
    %c0_285 = arith.constant 0 : index
    %c0_286 = arith.constant 0 : index
    %c0_287 = arith.constant 0 : index
    %292 = vector.load %arg36[%c0_285, %c0_286, %c0_287] : memref<3x8x8xf32, #tpu.memory_space<vmem>>, vector<1x8x8xf32>
    %293 = vector.shape_cast %292 : vector<1x8x8xf32> to vector<8x8xf32>
    %cst_288 = arith.constant dense<0.000000e+00> : vector<8x128xf32>
    %294 = tpu.matmul %293, %291, %cst_288 {dimension_numbers = #tpu.dot_dimension_numbers<[1], [0], [0], [1], [0, 0, 1, 1], [], []>} : vector<8x8xf32>, vector<8x128xf32>, vector<8x128xf32> -> vector<8x128xf32>
    %c0_289 = arith.constant 0 : index
    %c0_290 = arith.constant 0 : index
    %c0_291 = arith.constant 0 : index
    %295 = vector.load %arg35[%c0_289, %c0_290, %c0_291] : memref<3x128x128xf32, #tpu.memory_space<vmem>>, vector<1x128x128xf32>
    %296 = vector.shape_cast %295 : vector<1x128x128xf32> to vector<128x128xf32>
    %cst_292 = arith.constant dense<0.000000e+00> : vector<8x128xf32>
    %297 = tpu.matmul %294, %296, %cst_292 {dimension_numbers = #tpu.dot_dimension_numbers<[1], [0], [0], [1], [0, 0, 1, 1], [], []>} : vector<8x128xf32>, vector<128x128xf32>, vector<8x128xf32> -> vector<8x128xf32>
    %c1_293 = arith.constant 1 : index
    %c0_294 = arith.constant 0 : index
    %c0_295 = arith.constant 0 : index
    %298 = vector.load %arg35[%c1_293, %c0_294, %c0_295] : memref<3x128x128xf32, #tpu.memory_space<vmem>>, vector<1x128x128xf32>
    %299 = vector.shape_cast %298 : vector<1x128x128xf32> to vector<128x128xf32>
    %cst_296 = arith.constant dense<0.000000e+00> : vector<8x128xf32>
    %300 = tpu.matmul %291, %299, %cst_296 {dimension_numbers = #tpu.dot_dimension_numbers<[1], [0], [0], [1], [0, 0, 1, 1], [], []>} : vector<8x128xf32>, vector<128x128xf32>, vector<8x128xf32> -> vector<8x128xf32>
    %301 = arith.addf %297, %300 : vector<8x128xf32>
    %c2_297 = arith.constant 2 : index
    %c0_298 = arith.constant 0 : index
    %c0_299 = arith.constant 0 : index
    %302 = vector.load %arg36[%c2_297, %c0_298, %c0_299] : memref<3x8x8xf32, #tpu.memory_space<vmem>>, vector<1x8x8xf32>
    %303 = vector.shape_cast %302 : vector<1x8x8xf32> to vector<8x8xf32>
    %cst_300 = arith.constant dense<0.000000e+00> : vector<8x128xf32>
    %304 = tpu.matmul %303, %291, %cst_300 {dimension_numbers = #tpu.dot_dimension_numbers<[1], [0], [0], [1], [0, 0, 1, 1], [], []>} : vector<8x8xf32>, vector<8x128xf32>, vector<8x128xf32> -> vector<8x128xf32>
    %c2_301 = arith.constant 2 : index
    %c0_302 = arith.constant 0 : index
    %c0_303 = arith.constant 0 : index
    %305 = vector.load %arg35[%c2_301, %c0_302, %c0_303] : memref<3x128x128xf32, #tpu.memory_space<vmem>>, vector<1x128x128xf32>
    %306 = vector.shape_cast %305 : vector<1x128x128xf32> to vector<128x128xf32>
    %cst_304 = arith.constant dense<0.000000e+00> : vector<8x128xf32>
    %307 = tpu.matmul %304, %306, %cst_304 {dimension_numbers = #tpu.dot_dimension_numbers<[1], [0], [0], [1], [0, 0, 1, 1], [], []>} : vector<8x128xf32>, vector<128x128xf32>, vector<8x128xf32> -> vector<8x128xf32>
    %308 = arith.addf %301, %307 : vector<8x128xf32>
    %c0_305 = arith.constant 0 : index
    %c0_306 = arith.constant 0 : index
    %309 = vector.load %arg37[%c0_305, %c0_306] : memref<2x128xf32, #tpu.memory_space<vmem>>, vector<1x128xf32>
    %310 = vector.broadcast %309 : vector<1x128xf32> to vector<8x128xf32>
    %311 = arith.mulf %308, %310 : vector<8x128xf32>
    %c1_307 = arith.constant 1 : index
    %c0_308 = arith.constant 0 : index
    %312 = vector.load %arg37[%c1_307, %c0_308] : memref<2x128xf32, #tpu.memory_space<vmem>>, vector<1x128xf32>
    %313 = vector.broadcast %312 : vector<1x128xf32> to vector<8x128xf32>
    %314 = arith.addf %311, %313 : vector<8x128xf32>
    %315 = arith.addf %314, %291 : vector<8x128xf32>
    %cst_309 = arith.constant 0.000000e+00 : f32
    %316 = vector.broadcast %cst_309 : f32 to vector<8x128xf32>
    %317 = arith.maximumf %315, %316 : vector<8x128xf32>
    %c0_310 = arith.constant 0 : index
    %c0_311 = arith.constant 0 : index
    %c0_312 = arith.constant 0 : index
    %318 = vector.load %arg39[%c0_310, %c0_311, %c0_312] : memref<3x8x8xf32, #tpu.memory_space<vmem>>, vector<1x8x8xf32>
    %319 = vector.shape_cast %318 : vector<1x8x8xf32> to vector<8x8xf32>
    %cst_313 = arith.constant dense<0.000000e+00> : vector<8x128xf32>
    %320 = tpu.matmul %319, %317, %cst_313 {dimension_numbers = #tpu.dot_dimension_numbers<[1], [0], [0], [1], [0, 0, 1, 1], [], []>} : vector<8x8xf32>, vector<8x128xf32>, vector<8x128xf32> -> vector<8x128xf32>
    %c0_314 = arith.constant 0 : index
    %c0_315 = arith.constant 0 : index
    %c0_316 = arith.constant 0 : index
    %321 = vector.load %arg38[%c0_314, %c0_315, %c0_316] : memref<3x128x128xf32, #tpu.memory_space<vmem>>, vector<1x128x128xf32>
    %322 = vector.shape_cast %321 : vector<1x128x128xf32> to vector<128x128xf32>
    %cst_317 = arith.constant dense<0.000000e+00> : vector<8x128xf32>
    %323 = tpu.matmul %320, %322, %cst_317 {dimension_numbers = #tpu.dot_dimension_numbers<[1], [0], [0], [1], [0, 0, 1, 1], [], []>} : vector<8x128xf32>, vector<128x128xf32>, vector<8x128xf32> -> vector<8x128xf32>
    %c1_318 = arith.constant 1 : index
    %c0_319 = arith.constant 0 : index
    %c0_320 = arith.constant 0 : index
    %324 = vector.load %arg39[%c1_318, %c0_319, %c0_320] : memref<3x8x8xf32, #tpu.memory_space<vmem>>, vector<1x8x8xf32>
    %325 = vector.shape_cast %324 : vector<1x8x8xf32> to vector<8x8xf32>
    %cst_321 = arith.constant dense<0.000000e+00> : vector<8x128xf32>
    %326 = tpu.matmul %325, %317, %cst_321 {dimension_numbers = #tpu.dot_dimension_numbers<[1], [0], [0], [1], [0, 0, 1, 1], [], []>} : vector<8x8xf32>, vector<8x128xf32>, vector<8x128xf32> -> vector<8x128xf32>
    %c1_322 = arith.constant 1 : index
    %c0_323 = arith.constant 0 : index
    %c0_324 = arith.constant 0 : index
    %327 = vector.load %arg38[%c1_322, %c0_323, %c0_324] : memref<3x128x128xf32, #tpu.memory_space<vmem>>, vector<1x128x128xf32>
    %328 = vector.shape_cast %327 : vector<1x128x128xf32> to vector<128x128xf32>
    %cst_325 = arith.constant dense<0.000000e+00> : vector<8x128xf32>
    %329 = tpu.matmul %326, %328, %cst_325 {dimension_numbers = #tpu.dot_dimension_numbers<[1], [0], [0], [1], [0, 0, 1, 1], [], []>} : vector<8x128xf32>, vector<128x128xf32>, vector<8x128xf32> -> vector<8x128xf32>
    %330 = arith.addf %323, %329 : vector<8x128xf32>
    %c2_326 = arith.constant 2 : index
    %c0_327 = arith.constant 0 : index
    %c0_328 = arith.constant 0 : index
    %331 = vector.load %arg39[%c2_326, %c0_327, %c0_328] : memref<3x8x8xf32, #tpu.memory_space<vmem>>, vector<1x8x8xf32>
    %332 = vector.shape_cast %331 : vector<1x8x8xf32> to vector<8x8xf32>
    %cst_329 = arith.constant dense<0.000000e+00> : vector<8x128xf32>
    %333 = tpu.matmul %332, %317, %cst_329 {dimension_numbers = #tpu.dot_dimension_numbers<[1], [0], [0], [1], [0, 0, 1, 1], [], []>} : vector<8x8xf32>, vector<8x128xf32>, vector<8x128xf32> -> vector<8x128xf32>
    %c2_330 = arith.constant 2 : index
    %c0_331 = arith.constant 0 : index
    %c0_332 = arith.constant 0 : index
    %334 = vector.load %arg38[%c2_330, %c0_331, %c0_332] : memref<3x128x128xf32, #tpu.memory_space<vmem>>, vector<1x128x128xf32>
    %335 = vector.shape_cast %334 : vector<1x128x128xf32> to vector<128x128xf32>
    %cst_333 = arith.constant dense<0.000000e+00> : vector<8x128xf32>
    %336 = tpu.matmul %333, %335, %cst_333 {dimension_numbers = #tpu.dot_dimension_numbers<[1], [0], [0], [1], [0, 0, 1, 1], [], []>} : vector<8x128xf32>, vector<128x128xf32>, vector<8x128xf32> -> vector<8x128xf32>
    %337 = arith.addf %330, %336 : vector<8x128xf32>
    %c0_334 = arith.constant 0 : index
    %c0_335 = arith.constant 0 : index
    %338 = vector.load %arg40[%c0_334, %c0_335] : memref<2x128xf32, #tpu.memory_space<vmem>>, vector<1x128xf32>
    %339 = vector.broadcast %338 : vector<1x128xf32> to vector<8x128xf32>
    %340 = arith.mulf %337, %339 : vector<8x128xf32>
    %c1_336 = arith.constant 1 : index
    %c0_337 = arith.constant 0 : index
    %341 = vector.load %arg40[%c1_336, %c0_337] : memref<2x128xf32, #tpu.memory_space<vmem>>, vector<1x128xf32>
    %342 = vector.broadcast %341 : vector<1x128xf32> to vector<8x128xf32>
    %343 = arith.addf %340, %342 : vector<8x128xf32>
    %cst_338 = arith.constant 0.000000e+00 : f32
    %344 = vector.broadcast %cst_338 : f32 to vector<8x128xf32>
    %345 = arith.maximumf %343, %344 : vector<8x128xf32>
    %c0_339 = arith.constant 0 : index
    %c0_340 = arith.constant 0 : index
    %c0_341 = arith.constant 0 : index
    %346 = vector.load %arg41[%c0_339, %c0_340, %c0_341] : memref<1x128x128xf32, #tpu.memory_space<vmem>>, vector<1x128x128xf32>
    %347 = vector.shape_cast %346 : vector<1x128x128xf32> to vector<128x128xf32>
    %cst_342 = arith.constant dense<0.000000e+00> : vector<8x128xf32>
    %348 = tpu.matmul %345, %347, %cst_342 {dimension_numbers = #tpu.dot_dimension_numbers<[1], [0], [0], [1], [0, 0, 1, 1], [], []>} : vector<8x128xf32>, vector<128x128xf32>, vector<8x128xf32> -> vector<8x128xf32>
    %c0_343 = arith.constant 0 : index
    %c0_344 = arith.constant 0 : index
    %349 = vector.load %arg43[%c0_343, %c0_344] : memref<2x128xf32, #tpu.memory_space<vmem>>, vector<1x128xf32>
    %350 = vector.broadcast %349 : vector<1x128xf32> to vector<8x128xf32>
    %351 = arith.mulf %348, %350 : vector<8x128xf32>
    %c1_345 = arith.constant 1 : index
    %c0_346 = arith.constant 0 : index
    %352 = vector.load %arg43[%c1_345, %c0_346] : memref<2x128xf32, #tpu.memory_space<vmem>>, vector<1x128xf32>
    %353 = vector.broadcast %352 : vector<1x128xf32> to vector<8x128xf32>
    %354 = arith.addf %351, %353 : vector<8x128xf32>
    %cst_347 = arith.constant 0.000000e+00 : f32
    %355 = vector.broadcast %cst_347 : f32 to vector<8x128xf32>
    %356 = arith.maximumf %354, %355 : vector<8x128xf32>
    %cst_348 = arith.constant 0.000000e+00 : f32
    %357 = vector.broadcast %cst_348 : f32 to vector<8x128xf32>
    %358 = arith.subf %357, %356 : vector<8x128xf32>
    %359 = math.exp %358 : vector<8x128xf32>
    %cst_349 = arith.constant 1.000000e+00 : f32
    %360 = vector.broadcast %cst_349 : f32 to vector<8x128xf32>
    %361 = arith.addf %360, %359 : vector<8x128xf32>
    %cst_350 = arith.constant 1.000000e+00 : f32
    %362 = vector.broadcast %cst_350 : f32 to vector<8x128xf32>
    %363 = arith.divf %362, %361 : vector<8x128xf32>
    %c0_351 = arith.constant 0 : index
    %c0_352 = arith.constant 0 : index
    %364 = vector.load %arg44[%c0_351, %c0_352] : memref<8x128xf32, #tpu.memory_space<vmem>>, vector<8x128xf32>
    tpu.vector_store %arg44[%c0_351, %c0_352], %363 {strides = array<i32>} : memref<8x128xf32, #tpu.memory_space<vmem>>, vector<8x128xf32>,
    return
  }
  func.func @transform_0(%arg0: i32) -> (i32, i32) {
    %c0_i32 = arith.constant 0 : i32
    %c0_i32_0 = arith.constant 0 : i32
    %c0_i32_1 = arith.constant 0 : i32
    return %c0_i32, %c0_i32_0 : i32, i32
  }
  func.func @transform_1(%arg0: i32) -> (i32, i32, i32) {
    %c0_i32 = arith.constant 0 : i32
    %c0_i32_0 = arith.constant 0 : i32
    %c0_i32_1 = arith.constant 0 : i32
    %c0_i32_2 = arith.constant 0 : i32
    return %c0_i32, %c0_i32_0, %c0_i32_1 : i32, i32, i32
  }
  func.func @transform_2(%arg0: i32) -> (i32, i32, i32) {
    %c0_i32 = arith.constant 0 : i32
    %c0_i32_0 = arith.constant 0 : i32
    %c0_i32_1 = arith.constant 0 : i32
    %c0_i32_2 = arith.constant 0 : i32
    return %c0_i32, %c0_i32_0, %c0_i32_1 : i32, i32, i32
  }
  func.func @transform_3(%arg0: i32) -> (i32, i32) {
    %c0_i32 = arith.constant 0 : i32
    %c0_i32_0 = arith.constant 0 : i32
    %c0_i32_1 = arith.constant 0 : i32
    return %c0_i32, %c0_i32_0 : i32, i32
  }
  func.func @transform_4(%arg0: i32) -> (i32, i32, i32) {
    %c0_i32 = arith.constant 0 : i32
    %c0_i32_0 = arith.constant 0 : i32
    %c0_i32_1 = arith.constant 0 : i32
    %c0_i32_2 = arith.constant 0 : i32
    return %c0_i32, %c0_i32_0, %c0_i32_1 : i32, i32, i32
  }
  func.func @transform_5(%arg0: i32) -> (i32, i32, i32) {
    %c0_i32 = arith.constant 0 : i32
    %c0_i32_0 = arith.constant 0 : i32
    %c0_i32_1 = arith.constant 0 : i32
    %c0_i32_2 = arith.constant 0 : i32
    return %c0_i32, %c0_i32_0, %c0_i32_1 : i32, i32, i32
  }
  func.func @transform_6(%arg0: i32) -> (i32, i32) {
    %c0_i32 = arith.constant 0 : i32
    %c0_i32_0 = arith.constant 0 : i32
    %c0_i32_1 = arith.constant 0 : i32
    return %c0_i32, %c0_i32_0 : i32, i32
  }
  func.func @transform_7(%arg0: i32) -> (i32, i32, i32) {
    %c0_i32 = arith.constant 0 : i32
    %c0_i32_0 = arith.constant 0 : i32
    %c0_i32_1 = arith.constant 0 : i32
    %c0_i32_2 = arith.constant 0 : i32
    return %c0_i32, %c0_i32_0, %c0_i32_1 : i32, i32, i32
  }
  func.func @transform_8(%arg0: i32) -> (i32, i32, i32) {
    %c0_i32 = arith.constant 0 : i32
    %c0_i32_0 = arith.constant 0 : i32
    %c0_i32_1 = arith.constant 0 : i32
    %c0_i32_2 = arith.constant 0 : i32
    return %c0_i32, %c0_i32_0, %c0_i32_1 : i32, i32, i32
  }
  func.func @transform_9(%arg0: i32) -> (i32, i32) {
    %c0_i32 = arith.constant 0 : i32
    %c0_i32_0 = arith.constant 0 : i32
    %c0_i32_1 = arith.constant 0 : i32
    return %c0_i32, %c0_i32_0 : i32, i32
  }
  func.func @transform_10(%arg0: i32) -> (i32, i32, i32) {
    %c0_i32 = arith.constant 0 : i32
    %c0_i32_0 = arith.constant 0 : i32
    %c0_i32_1 = arith.constant 0 : i32
    %c0_i32_2 = arith.constant 0 : i32
    return %c0_i32, %c0_i32_0, %c0_i32_1 : i32, i32, i32
  }
  func.func @transform_11(%arg0: i32) -> (i32, i32, i32) {
    %c0_i32 = arith.constant 0 : i32
    %c0_i32_0 = arith.constant 0 : i32
    %c0_i32_1 = arith.constant 0 : i32
    %c0_i32_2 = arith.constant 0 : i32
    return %c0_i32, %c0_i32_0, %c0_i32_1 : i32, i32, i32
  }
  func.func @transform_12(%arg0: i32) -> (i32, i32) {
    %c0_i32 = arith.constant 0 : i32
    %c0_i32_0 = arith.constant 0 : i32
    %c0_i32_1 = arith.constant 0 : i32
    return %c0_i32, %c0_i32_0 : i32, i32
  }
  func.func @transform_13(%arg0: i32) -> (i32, i32, i32) {
    %c0_i32 = arith.constant 0 : i32
    %c0_i32_0 = arith.constant 0 : i32
    %c0_i32_1 = arith.constant 0 : i32
    %c0_i32_2 = arith.constant 0 : i32
    return %c0_i32, %c0_i32_0, %c0_i32_1 : i32, i32, i32
  }
  func.func @transform_14(%arg0: i32) -> (i32, i32, i32) {
    %c0_i32 = arith.constant 0 : i32
    %c0_i32_0 = arith.constant 0 : i32
    %c0_i32_1 = arith.constant 0 : i32
    %c0_i32_2 = arith.constant 0 : i32
    return %c0_i32, %c0_i32_0, %c0_i32_1 : i32, i32, i32
  }
  func.func @transform_15(%arg0: i32) -> (i32, i32) {
    %c0_i32 = arith.constant 0 : i32
    %c0_i32_0 = arith.constant 0 : i32
    %c0_i32_1 = arith.constant 0 : i32
    return %c0_i32, %c0_i32_0 : i32, i32
  }
  func.func @transform_16(%arg0: i32) -> (i32, i32, i32) {
    %c0_i32 = arith.constant 0 : i32
    %c0_i32_0 = arith.constant 0 : i32
    %c0_i32_1 = arith.constant 0 : i32
    %c0_i32_2 = arith.constant 0 : i32
    return %c0_i32, %c0_i32_0, %c0_i32_1 : i32, i32, i32
  }
  func.func @transform_17(%arg0: i32) -> (i32, i32, i32) {
    %c0_i32 = arith.constant 0 : i32
    %c0_i32_0 = arith.constant 0 : i32
    %c0_i32_1 = arith.constant 0 : i32
    %c0_i32_2 = arith.constant 0 : i32
    return %c0_i32, %c0_i32_0, %c0_i32_1 : i32, i32, i32
  }
  func.func @transform_18(%arg0: i32) -> (i32, i32) {
    %c0_i32 = arith.constant 0 : i32
    %c0_i32_0 = arith.constant 0 : i32
    %c0_i32_1 = arith.constant 0 : i32
    return %c0_i32, %c0_i32_0 : i32, i32
  }
  func.func @transform_19(%arg0: i32) -> (i32, i32, i32) {
    %c0_i32 = arith.constant 0 : i32
    %c0_i32_0 = arith.constant 0 : i32
    %c0_i32_1 = arith.constant 0 : i32
    %c0_i32_2 = arith.constant 0 : i32
    return %c0_i32, %c0_i32_0, %c0_i32_1 : i32, i32, i32
  }
  func.func @transform_20(%arg0: i32) -> (i32, i32, i32) {
    %c0_i32 = arith.constant 0 : i32
    %c0_i32_0 = arith.constant 0 : i32
    %c0_i32_1 = arith.constant 0 : i32
    %c0_i32_2 = arith.constant 0 : i32
    return %c0_i32, %c0_i32_0, %c0_i32_1 : i32, i32, i32
  }
  func.func @transform_21(%arg0: i32) -> (i32, i32) {
    %c0_i32 = arith.constant 0 : i32
    %c0_i32_0 = arith.constant 0 : i32
    %c0_i32_1 = arith.constant 0 : i32
    return %c0_i32, %c0_i32_0 : i32, i32
  }
  func.func @transform_22(%arg0: i32) -> (i32, i32, i32) {
    %c0_i32 = arith.constant 0 : i32
    %c0_i32_0 = arith.constant 0 : i32
    %c0_i32_1 = arith.constant 0 : i32
    %c0_i32_2 = arith.constant 0 : i32
    return %c0_i32, %c0_i32_0, %c0_i32_1 : i32, i32, i32
  }
  func.func @transform_23(%arg0: i32) -> (i32, i32, i32) {
    %c0_i32 = arith.constant 0 : i32
    %c0_i32_0 = arith.constant 0 : i32
    %c0_i32_1 = arith.constant 0 : i32
    %c0_i32_2 = arith.constant 0 : i32
    return %c0_i32, %c0_i32_0, %c0_i32_1 : i32, i32, i32
  }
  func.func @transform_24(%arg0: i32) -> (i32, i32) {
    %c0_i32 = arith.constant 0 : i32
    %c0_i32_0 = arith.constant 0 : i32
    %c0_i32_1 = arith.constant 0 : i32
    return %c0_i32, %c0_i32_0 : i32, i32
  }
  func.func @transform_25(%arg0: i32) -> (i32, i32, i32) {
    %c0_i32 = arith.constant 0 : i32
    %c0_i32_0 = arith.constant 0 : i32
    %c0_i32_1 = arith.constant 0 : i32
    %c0_i32_2 = arith.constant 0 : i32
    return %c0_i32, %c0_i32_0, %c0_i32_1 : i32, i32, i32
  }
  func.func @transform_26(%arg0: i32) -> (i32, i32, i32) {
    %c0_i32 = arith.constant 0 : i32
    %c0_i32_0 = arith.constant 0 : i32
    %c0_i32_1 = arith.constant 0 : i32
    %c0_i32_2 = arith.constant 0 : i32
    return %c0_i32, %c0_i32_0, %c0_i32_1 : i32, i32, i32
  }
  func.func @transform_27(%arg0: i32) -> (i32, i32) {
    %c0_i32 = arith.constant 0 : i32
    %c0_i32_0 = arith.constant 0 : i32
    %c0_i32_1 = arith.constant 0 : i32
    return %c0_i32, %c0_i32_0 : i32, i32
  }
  func.func @transform_28(%arg0: i32) -> (i32, i32, i32) {
    %c0_i32 = arith.constant 0 : i32
    %c0_i32_0 = arith.constant 0 : i32
    %c0_i32_1 = arith.constant 0 : i32
    %c0_i32_2 = arith.constant 0 : i32
    return %c0_i32, %c0_i32_0, %c0_i32_1 : i32, i32, i32
  }
  func.func @transform_29(%arg0: i32) -> (i32, i32, i32) {
    %c0_i32 = arith.constant 0 : i32
    %c0_i32_0 = arith.constant 0 : i32
    %c0_i32_1 = arith.constant 0 : i32
    %c0_i32_2 = arith.constant 0 : i32
    return %c0_i32, %c0_i32_0, %c0_i32_1 : i32, i32, i32
  }
  func.func @transform_30(%arg0: i32) -> (i32, i32) {
    %c0_i32 = arith.constant 0 : i32
    %c0_i32_0 = arith.constant 0 : i32
    %c0_i32_1 = arith.constant 0 : i32
    return %c0_i32, %c0_i32_0 : i32, i32
  }
  func.func @transform_31(%arg0: i32) -> (i32, i32, i32) {
    %c0_i32 = arith.constant 0 : i32
    %c0_i32_0 = arith.constant 0 : i32
    %c0_i32_1 = arith.constant 0 : i32
    %c0_i32_2 = arith.constant 0 : i32
    return %c0_i32, %c0_i32_0, %c0_i32_1 : i32, i32, i32
  }
  func.func @transform_32(%arg0: i32) -> (i32, i32, i32) {
    %c0_i32 = arith.constant 0 : i32
    %c0_i32_0 = arith.constant 0 : i32
    %c0_i32_1 = arith.constant 0 : i32
    %c0_i32_2 = arith.constant 0 : i32
    return %c0_i32, %c0_i32_0, %c0_i32_1 : i32, i32, i32
  }
  func.func @transform_33(%arg0: i32) -> (i32, i32) {
    %c0_i32 = arith.constant 0 : i32
    %c0_i32_0 = arith.constant 0 : i32
    %c0_i32_1 = arith.constant 0 : i32
    return %c0_i32, %c0_i32_0 : i32, i32
  }
  func.func @transform_34(%arg0: i32) -> (i32, i32, i32) {
    %c0_i32 = arith.constant 0 : i32
    %c0_i32_0 = arith.constant 0 : i32
    %c0_i32_1 = arith.constant 0 : i32
    %c0_i32_2 = arith.constant 0 : i32
    return %c0_i32, %c0_i32_0, %c0_i32_1 : i32, i32, i32
  }
  func.func @transform_35(%arg0: i32) -> (i32, i32, i32) {
    %c0_i32 = arith.constant 0 : i32
    %c0_i32_0 = arith.constant 0 : i32
    %c0_i32_1 = arith.constant 0 : i32
    %c0_i32_2 = arith.constant 0 : i32
    return %c0_i32, %c0_i32_0, %c0_i32_1 : i32, i32, i32
  }
  func.func @transform_36(%arg0: i32) -> (i32, i32) {
    %c0_i32 = arith.constant 0 : i32
    %c0_i32_0 = arith.constant 0 : i32
    %c0_i32_1 = arith.constant 0 : i32
    return %c0_i32, %c0_i32_0 : i32, i32
  }
  func.func @transform_37(%arg0: i32) -> (i32, i32, i32) {
    %c0_i32 = arith.constant 0 : i32
    %c0_i32_0 = arith.constant 0 : i32
    %c0_i32_1 = arith.constant 0 : i32
    %c0_i32_2 = arith.constant 0 : i32
    return %c0_i32, %c0_i32_0, %c0_i32_1 : i32, i32, i32
  }
  func.func @transform_38(%arg0: i32) -> (i32, i32, i32) {
    %c0_i32 = arith.constant 0 : i32
    %c0_i32_0 = arith.constant 0 : i32
    %c0_i32_1 = arith.constant 0 : i32
    %c0_i32_2 = arith.constant 0 : i32
    return %c0_i32, %c0_i32_0, %c0_i32_1 : i32, i32, i32
  }
  func.func @transform_39(%arg0: i32) -> (i32, i32) {
    %c0_i32 = arith.constant 0 : i32
    %c0_i32_0 = arith.constant 0 : i32
    %c0_i32_1 = arith.constant 0 : i32
    return %c0_i32, %c0_i32_0 : i32, i32
  }
  func.func @transform_40(%arg0: i32) -> (i32, i32, i32) {
    %c0_i32 = arith.constant 0 : i32
    %c0_i32_0 = arith.constant 0 : i32
    %c0_i32_1 = arith.constant 0 : i32
    %c0_i32_2 = arith.constant 0 : i32
    return %c0_i32, %c0_i32_0, %c0_i32_1 : i32, i32, i32
  }
  func.func @transform_41(%arg0: i32) -> (i32, i32, i32) {
    %c0_i32 = arith.constant 0 : i32
    %c0_i32_0 = arith.constant 0 : i32
    %c0_i32_1 = arith.constant 0 : i32
    %c0_i32_2 = arith.constant 0 : i32
    return %c0_i32, %c0_i32_0, %c0_i32_1 : i32, i32, i32
  }
  func.func @transform_42(%arg0: i32) -> (i32, i32) {
    %c0_i32 = arith.constant 0 : i32
    %c0_i32_0 = arith.constant 0 : i32
    %c0_i32_1 = arith.constant 0 : i32
    return %c0_i32, %c0_i32_0 : i32, i32
  }
  func.func @transform_43(%arg0: i32) -> (i32, i32) {
    %c0_i32 = arith.constant 0 : i32
    %c0_i32_0 = arith.constant 0 : i32
    %c0_i32_1 = arith.constant 0 : i32
    return %c0_i32, %c0_i32_0 : i32, i32
  }
}

</mosaic_0001>

<bundles_post_ra>
// kernel: au_extractor_forward.1
= control target key start
LH: loop header
LB: loop body
LE: loop exit
PB: predicated region body
PF: predicated region fallthrough
CT: control target
= control target key end

     0   :  { %s15722_s6 = smov 1   ;;  %s15723_s10 = smov 2   ;;  %s18046_s0 = inlined_call_operand.smem [shape: u32[44], index: -1, kind: input, shape index: {}] }
   0x1   :  { %s15811_s5 = sld [smem:[%s18046_s0]]   ;;  %s15724_s14 = smov 3  }
   0x2   :  { %s15816_s9 = sld [smem:[%s18046_s0 + %s15722_s6]]   ;;  %s15725_s18 = smov 4  }
   0x3   :  { %s15821_s13 = sld [smem:[%s18046_s0 + %s15723_s10]]   ;;  %s15726_s22 = smov 5  }
   0x4   :  { %s15826_s17 = sld [smem:[%s18046_s0 + %s15724_s14]]   ;;  %s15727_s26 = smov 6  }
   0x5   :  { %s15831_s21 = sld [smem:[%s18046_s0 + %s15725_s18]]   ;;  %s15728_s30 = smov 7  }
   0x6   :  { %s15836_s25 = sld [smem:[%s18046_s0 + %s15726_s22]]   ;;  %s15729_s4 = smov 8  }
   0x7   :  { %18072 = sst [smem:[#allocation68_spill]] %s15811_s5  ;;  %s15730_s10 = smov 9  }
   0x8   :  { %18073 = sst [smem:[#allocation69_spill]] %s15816_s9  ;;  %s15731_s15 = smov 10  }
   0x9   :  { %18074 = sst [smem:[#allocation70_spill]] %s15821_s13  ;;  %s15732_s20 = smov 11  }
   0xa   :  { %s15841_s29 = sld [smem:[%s18046_s0 + %s15727_s26]]   ;;  %s15733_s26 = smov 12  }
   0xb   :  { %18075 = sst [smem:[#allocation71_spill]] %s15831_s21  ;;  %s15734_s1 = smov 13  }
   0xc   :  { %s15846_s3 = sld [smem:[%s18046_s0 + %s15728_s30]]   ;;  %s15735_s7 = smov 14  }
   0xd   :  { %s15851_s8 = sld [smem:[%s18046_s0 + %s15729_s4]]   ;;  %s15737_s22 = smov 16  }
   0xe   :  { %s15856_s14 = sld [smem:[%s18046_s0 + %s15730_s10]]   ;;  %s15738_s28 = smov 17  }
   0xf   :  { %s15861_s19 = sld [smem:[%s18046_s0 + %s15731_s15]]   ;;  %s15736_s15 = smov 15  }
  0x10   :  { %18076 = sst [smem:[#allocation72_spill]] %s15841_s29 }
  0x11   :  { %s15866_s24 = sld [smem:[%s18046_s0 + %s15732_s20]]  }
  0x12   :  { %s15871_s30 = sld [smem:[%s18046_s0 + %s15733_s26]]  }
  0x13   :  { %18077 = sst [smem:[#allocation73_spill]] %s15851_s8 }
  0x14   :  { %s15876_s6 = sld [smem:[%s18046_s0 + %s15734_s1]]  }
  0x15   :  { %18078 = sst [smem:[#allocation74_spill]] %s15861_s19 }
  0x16   :  { %s15881_s12 = sld [smem:[%s18046_s0 + %s15735_s7]]   ;;  %s15739_s7 = smov 18  }
  0x17   :  { %s15886_s20 = sld [smem:[%s18046_s0 + %s15736_s15]]   ;;  %s15740_s15 = smov 19  }
  0x18   :  { %18079 = sst [smem:[#allocation75_spill]] %s15871_s30 }
  0x19   :  { %s15891_s27 = sld [smem:[%s18046_s0 + %s15737_s22]]   ;;  %s15741_s22 = smov 20  }
  0x1a   :  { %s15896_s4 = sld [smem:[%s18046_s0 + %s15738_s28]]   ;;  %s15742_s28 = smov 21  }
  0x1b   :  { %s15906_s9 = sld [smem:[%s18046_s0 + %s15740_s15]]   ;;  %s15744_s15 = smov 23  }
  0x1c   :  { %18080 = sst [smem:[#allocation76_spill]] %s15881_s12 }
  0x1d   :  { %18081 = sst [smem:[#allocation77_spill]] %s15886_s20 }
  0x1e   :  { %s15901_s12 = sld [smem:[%s18046_s0 + %s15739_s7]]   ;;  %s15743_s7 = smov 22  }
  0x1f   :  { %s15911_s5 = sld [smem:[%s18046_s0 + %s15741_s22]]   ;;  %s15745_s22 = smov 24  }
  0x20   :  { %18082 = sst [smem:[#allocation78_spill]] %s15896_s4 }
  0x21   :  { %18083 = sst [smem:[#allocation79_spill]] %s15906_s9 }
  0x22   :  { %s15916_s4 = sld [smem:[%s18046_s0 + %s15742_s28]]   ;;  %s15746_s28 = smov 25  }
  0x23   :  { %s15921_s20 = sld [smem:[%s18046_s0 + %s15743_s7]]   ;;  %s15747_s7 = smov 26  }
  0x24   :  { %s15926_s9 = sld [smem:[%s18046_s0 + %s15744_s15]]   ;;  %s15748_s15 = smov 27  }
  0x25   :  { %s15931_s30 = sld [smem:[%s18046_s0 + %s15745_s22]]   ;;  %s15749_s22 = smov 28  }
  0x26   :  { %s15941_s19 = sld [smem:[%s18046_s0 + %s15747_s7]]   ;;  %s15751_s7 = smov 30  }
  0x28   :  { %18084 = sst [smem:[#allocation80_spill]] %s15916_s4 }
  0x29   :  { %s15936_s4 = sld [smem:[%s18046_s0 + %s15746_s28]]   ;;  %s15750_s28 = smov 29  }
  0x2a   :  { %18085 = sst [smem:[#allocation81_spill]] %s15926_s9 }
  0x2b   :  { %18086 = sst [smem:[#allocation82_spill]] %s15931_s30 }
  0x2c   :  { %18087 = sst [smem:[#allocation83_spill]] %s15941_s19 }
  0x2d   :  { %s15946_s9 = sld [smem:[%s18046_s0 + %s15748_s15]]   ;;  %s15752_s15 = smov 31  }
  0x2e   :  { %s15951_s30 = sld [smem:[%s18046_s0 + %s15749_s22]]   ;;  %s15753_s22 = smov 32  }
  0x2f   :  { %s15956_s8 = sld [smem:[%s18046_s0 + %s15750_s28]]   ;;  %s15754_s28 = smov 33  }
  0x30   :  { %s15961_s19 = sld [smem:[%s18046_s0 + %s15751_s7]]   ;;  %s15755_s7 = smov 34  }
  0x31   :  { %s15971_s29 = sld [smem:[%s18046_s0 + %s15753_s22]]   ;;  %s15757_s22 = smov 36  }
  0x33   :  { %18088 = sst [smem:[#allocation84_spill]] %s15946_s9 }
  0x34   :  { %s15966_s9 = sld [smem:[%s18046_s0 + %s15752_s15]]   ;;  %s15756_s15 = smov 35  }
  0x35   :  { %18089 = sst [smem:[#allocation85_spill]] %s15956_s8 }
  0x36   :  { %18090 = sst [smem:[#allocation86_spill]] %s15961_s19 }
  0x37   :  { %18091 = sst [smem:[#allocation87_spill]] %s15971_s29 }
  0x38   :  { %s15976_s8 = sld [smem:[%s18046_s0 + %s15754_s28]]   ;;  %s15758_s28 = smov 37  }
  0x39   :  { %s15981_s19 = sld [smem:[%s18046_s0 + %s15755_s7]]   ;;  %s15759_s7 = smov 38  }
  0x3a   :  { %s15986_s21 = sld [smem:[%s18046_s0 + %s15756_s15]]   ;;  %s15760_s15 = smov 39  }
  0x3b   :  { %s15991_s29 = sld [smem:[%s18046_s0 + %s15757_s22]]   ;;  %s15761_s22 = smov 40  }
  0x3c   :  { %s16001_s13 = sld [smem:[%s18046_s0 + %s15759_s7]]   ;;  %s15763_s7 = smov 43  }
  0x3e   :  { %18092 = sst [smem:[#allocation88_spill]] %s15976_s8 }
  0x3f   :  { %s15996_s8 = sld [smem:[%s18046_s0 + %s15758_s28]]   ;;  %s15762_s28 = smov 42  }
  0x40   :  { %18093 = sst [smem:[#allocation89_spill]] %s15986_s21 }
  0x41   :  { %18094 = sst [smem:[#allocation90_spill]] %s15991_s29 }
  0x42   :  { %18096 = sst [smem:[#allocation92_spill]] %s16001_s13 }
  0x43   :  { %s16006_s21 = sld [smem:[%s18046_s0 + %s15760_s15]]  }
  0x44   :  { %s16011_s29 = sld [smem:[%s18046_s0 + %s15761_s22]]  }
  0x45   :  { %18095 = sst [smem:[#allocation91_spill]] %s15996_s8 }
  0x46   :  { %s16016_s8 = sld [smem:[%s18046_s0 + %s15762_s28]]  }
  0x47   :  { %s16021_s13 = sld [smem:[%s18046_s0 + %s15763_s7]]  }
  0x48   :  { %92 = vsyncpa [#allocation3], 0 }
  0x49   :  { %93 = vsyncpa [#allocation5], 0 }
  0x4a   :  { %94 = vsyncpa [#allocation8], 0 }
  0x4b   :  { %95 = vsyncpa [#allocation11], 0 }
  0x4c   :  { %96 = vsyncpa [#allocation14], 0 }
  0x4d   :  { %97 = vsyncpa [#allocation17], 0 }
  0x4e   :  { %98 = vsyncpa [#allocation20], 0 }
  0x4f   :  { %99 = vsyncpa [#allocation23], 0 }
  0x50   :  { %100 = vsyncpa [#allocation26], 0 }
  0x51   :  { %101 = vsyncpa [#allocation29], 0 }
  0x52   :  { %102 = vsyncpa [#allocation32], 0 }
  0x53   :  { %103 = vsyncpa [#allocation35], 0 }
  0x54   :  { %104 = vsyncpa [#allocation38], 0 }
  0x55   :  { %105 = vsyncpa [#allocation41], 0 }
  0x56   :  { %106 = vsyncpa [#allocation44], 0 }
  0x57   :  { %107 = vsyncpa [#allocation47], 0 }
  0x58   :  { %108 = vsyncpa [#allocation50], 0  ;;  %s15764_s0 = smov [#allocation4]   ;;  %s14984_s16 = scalar_lea.hbm %s15826_s17, 32 }
  0x59   :  { %s131_s15 = sshll.u32 %s15764_s0, 4  ;;  %p14985_p0 = scmp.ne.s32.totalorder %s15826_s17, %s14984_s16  ;;  %s132_s15 = int_to_ptr.vmem [resolvable:$true] %s131_s15 }
  0x5a   :  { %p14988_p1 = scmp.lt.u32.totalorder %s14984_s16, %s15826_s17 }
  0x5c   :  { %p14990_p2 = pnand %p14988_p1, %p14985_p0 }
  0x5e   :  { %14993 = shalt.err (!%p14990_p2)
}
  0x5f   :  { %s14994_s18 = scalar_lea.vmem %s132_s15, 32  ;;  %p14999_p4 = scmp.lt.s32.totalorder %s132_s15, %s132_s15 }
  0x60   :  { %p14995_p3 = scmp.ne.s32.totalorder %s132_s15, %s14994_s18  ;;  %p15000_p5 = scmp.lt.s32.totalorder %s14994_s18, %s14994_s18 }
  0x62   :  { %p15001_p6 = por %p15000_p5, %p14999_p4 }
  0x64   :  { %p15002_p7 = pnand %p15001_p6, %p14995_p3 }
  0x66   :  { %15005 = shalt.err (!%p15002_p7)
}
  0x67   :  { %134 = dma.hbm_to_vmem [thread:$0]  %s15826_s17, 32, %s132_s15, [#allocation5]  }
  0x68   :  { %s15765_s22 = smov [#allocation7]   ;;  %s15006_s26 = scalar_lea.hbm %s15836_s25, 15360 }
  0x69   :  { %s152_s23 = sshll.u32 %s15765_s22, 4  ;;  %p15007_p8 = scmp.ne.s32.totalorder %s15836_s25, %s15006_s26  ;;  %s153_s23 = int_to_ptr.vmem [resolvable:$true] %s152_s23 }
  0x6a   :  { %p15010_p9 = scmp.lt.u32.totalorder %s15006_s26, %s15836_s25 }
  0x6c   :  { %p15012_p10 = pnand %p15010_p9, %p15007_p8 }
  0x6e   :  { %15015 = shalt.err (!%p15012_p10)
}
  0x6f   :  { %s15016_s28 = scalar_lea.vmem %s153_s23, 15360  ;;  %p15021_p12 = scmp.lt.s32.totalorder %s153_s23, %s153_s23 }
  0x70   :  { %p15017_p11 = scmp.ne.s32.totalorder %s153_s23, %s15016_s28  ;;  %p15022_p13 = scmp.lt.s32.totalorder %s15016_s28, %s15016_s28 }
  0x72   :  { %p15023_p0 = por %p15022_p13, %p15021_p12 }
  0x74   :  { %p15024_p1 = pnand %p15023_p0, %p15017_p11 }
  0x76   :  { %15027 = shalt.err (!%p15024_p1)
}
  0x77   :  { %s15766_s1 = smov 256   ;;  %s15767_s17 = smov 16  }
  0x78   :  { %158 = dma.hbm_to_vmem [thread:$0]  %s15836_s25, 15360, %s153_s23, [#allocation8], %s15766_s1, %s15766_s1, %s15767_s17  }
  0x79   :  { %s15768_s2 = smov [#allocation10]   ;;  %s15769_s10 = smov [#allocation13]  }
  0x7a   :  { %s174_s7 = sshll.u32 %s15768_s2, 4  ;;  %s199_s11 = sshll.u32 %s15769_s10, 4  ;;  %s175_s7 = int_to_ptr.vmem [resolvable:$true] %s174_s7  ;;  %s200_s11 = int_to_ptr.vmem [resolvable:$true] %s199_s11 }
  0x7b   :  { %s15028_s0 = scalar_lea.hbm %s15846_s3, 6144 }
  0x7c   :  { %p15029_p2 = scmp.ne.s32.totalorder %s15846_s3, %s15028_s0  ;;  %p15032_p3 = scmp.lt.u32.totalorder %s15028_s0, %s15846_s3 }
  0x7e   :  { %p15034_p4 = pnand %p15032_p3, %p15029_p2 }
  0x80   :  { %15037 = shalt.err (!%p15034_p4)
}
  0x81   :  { %s15038_s15 = scalar_lea.vmem %s175_s7, 6144  ;;  %p15043_p6 = scmp.lt.s32.totalorder %s175_s7, %s175_s7 }
  0x82   :  { %p15039_p5 = scmp.ne.s32.totalorder %s175_s7, %s15038_s15  ;;  %p15044_p7 = scmp.lt.s32.totalorder %s15038_s15, %s15038_s15 }
  0x84   :  { %p15045_p8 = por %p15044_p7, %p15043_p6 }
  0x86   :  { %p15046_p9 = pnand %p15045_p8, %p15039_p5 }
  0x88   :  { %15049 = shalt.err (!%p15046_p9)
}
  0x89   :  { %s15770_s16 = smov 128   ;;  %s15771_s25 = smov 8  }
  0x8a   :  { %180 = dma.hbm_to_vmem [thread:$0]  %s15846_s3, 6144, %s175_s7, [#allocation11], %s15770_s16, %s15770_s16, %s15771_s25  }
  0x8b   :  { %s15050_s18 = scalar_lea.hbm %s15856_s14, 32 }
  0x8c   :  { %p15051_p10 = scmp.ne.s32.totalorder %s15856_s14, %s15050_s18  ;;  %p15054_p11 = scmp.lt.u32.totalorder %s15050_s18, %s15856_s14 }
  0x8e   :  { %p15056_p12 = pnand %p15054_p11, %p15051_p10 }
  0x90   :  { %15059 = shalt.err (!%p15056_p12)
}
  0x91   :  { %s15060_s22 = scalar_lea.vmem %s200_s11, 32  ;;  %p15065_p0 = scmp.lt.s32.totalorder %s200_s11, %s200_s11 }
  0x92   :  { %p15061_p13 = scmp.ne.s32.totalorder %s200_s11, %s15060_s22  ;;  %p15066_p1 = scmp.lt.s32.totalorder %s15060_s22, %s15060_s22 }
  0x94   :  { %p15067_p2 = por %p15066_p1, %p15065_p0 }
  0x96   :  { %p15068_p3 = pnand %p15067_p2, %p15061_p13 }
  0x98   :  { %15071 = shalt.err (!%p15068_p3)
}
  0x99   :  { %202 = dma.hbm_to_vmem [thread:$0]  %s15856_s14, 32, %s200_s11, [#allocation14]  }
  0x9a   :  { %s15772_s23 = smov [#allocation16]   ;;  %s15773_s3 = smov [#allocation19]  }
  0x9b   :  { %s220_s26 = sshll.u32 %s15772_s23, 4  ;;  %s242_s28 = sshll.u32 %s15773_s3, 4  ;;  %s221_s26 = int_to_ptr.vmem [resolvable:$true] %s220_s26  ;;  %s16045_s28 = int_to_ptr.vmem [resolvable:$true] %s242_s28 }
  0x9c   :  { %s15072_s2 = scalar_lea.hbm %s15866_s24, 5376 }
  0x9d   :  { %p15073_p4 = scmp.ne.s32.totalorder %s15866_s24, %s15072_s2  ;;  %p15076_p5 = scmp.lt.u32.totalorder %s15072_s2, %s15866_s24 }
  0x9f   :  { %p15078_p6 = pnand %p15076_p5, %p15073_p4 }
  0xa1   :  { %15081 = shalt.err (!%p15078_p6)
}
  0xa2   :  { %s15082_s7 = scalar_lea.vmem %s221_s26, 5376  ;;  %p15087_p8 = scmp.lt.s32.totalorder %s221_s26, %s221_s26 }
  0xa3   :  { %p15083_p7 = scmp.ne.s32.totalorder %s221_s26, %s15082_s7  ;;  %p15088_p9 = scmp.lt.s32.totalorder %s15082_s7, %s15082_s7 }
  0xa5   :  { %p15089_p10 = por %p15088_p9, %p15087_p8 }
  0xa7   :  { %p15090_p11 = pnand %p15089_p10, %p15083_p7 }
  0xa9   :  { %15093 = shalt.err (!%p15090_p11)
}
  0xaa   :  { %226 = dma.hbm_to_vmem [thread:$0]  %s15866_s24, 5376, %s221_s26, [#allocation17], %s15766_s1, %s15766_s1, %s15767_s17  }
  0xab   :  { %s15094_s14 = scalar_lea.hbm %s15876_s6, 24576 }
  0xac   :  { %p15095_p12 = scmp.ne.s32.totalorder %s15876_s6, %s15094_s14  ;;  %p15098_p13 = scmp.lt.u32.totalorder %s15094_s14, %s15876_s6 }
  0xae   :  { %p15100_p0 = pnand %p15098_p13, %p15095_p12 }
  0xb0   :  { %15103 = shalt.err (!%p15100_p0)
}
  0xb1   :  { %s15104_s10 = scalar_lea.vmem %s16045_s28, 24576  ;;  %p15109_p2 = scmp.lt.s32.totalorder %s16045_s28, %s16045_s28 }
  0xb2   :  { %p15105_p1 = scmp.ne.s32.totalorder %s16045_s28, %s15104_s10  ;;  %p15110_p3 = scmp.lt.s32.totalorder %s15104_s10, %s15104_s10 }
  0xb4   :  { %p15111_p4 = por %p15110_p3, %p15109_p2 }
  0xb6   :  { %p15112_p5 = pnand %p15111_p4, %p15105_p1 }
  0xb8   :  { %15115 = shalt.err (!%p15112_p5)
}
  0xb9   :  { %248 = dma.hbm_to_vmem [thread:$0]  %s15876_s6, 24576, %s16045_s28, [#allocation20], %s15766_s1, %s15766_s1, %s15767_s17  }
  0xba   :  { %s15774_s24 = smov [#allocation22]   ;;  %s15775_s0 = smov [#allocation25]  }
  0xbb   :  { %s266_s11 = sshll.u32 %s15774_s24, 4  ;;  %s291_s15 = sshll.u32 %s15775_s0, 4  ;;  %s267_s11 = int_to_ptr.vmem [resolvable:$true] %s266_s11  ;;  %s292_s15 = int_to_ptr.vmem [resolvable:$true] %s291_s15 }
  0xbc   :  { %s15116_s18 = scalar_lea.hbm %s15891_s27, 24576 }
  0xbd   :  { %p15117_p6 = scmp.ne.s32.totalorder %s15891_s27, %s15116_s18  ;;  %p15120_p7 = scmp.lt.u32.totalorder %s15116_s18, %s15891_s27 }
  0xbf   :  { %p15122_p8 = pnand %p15120_p7, %p15117_p6 }
  0xc1   :  { %15125 = shalt.err (!%p15122_p8)
}
  0xc2   :  { %s15126_s22 = scalar_lea.vmem %s267_s11, 24576  ;;  %p15131_p10 = scmp.lt.s32.totalorder %s267_s11, %s267_s11 }
  0xc3   :  { %p15127_p9 = scmp.ne.s32.totalorder %s267_s11, %s15126_s22  ;;  %p15132_p11 = scmp.lt.s32.totalorder %s15126_s22, %s15126_s22 }
  0xc5   :  { %p15133_p12 = por %p15132_p11, %p15131_p10 }
  0xc7   :  { %p15134_p13 = pnand %p15133_p12, %p15127_p9 }
  0xc9   :  { %15137 = shalt.err (!%p15134_p13)
}
  0xca   :  { %272 = dma.hbm_to_vmem [thread:$0]  %s15891_s27, 24576, %s267_s11, [#allocation23], %s15766_s1, %s15766_s1, %s15767_s17  }
  0xcb   :  { %s15138_s6 = scalar_lea.hbm %s15901_s12, 64 }
  0xcc   :  { %p15139_p0 = scmp.ne.s32.totalorder %s15901_s12, %s15138_s6  ;;  %p15142_p1 = scmp.lt.u32.totalorder %s15138_s6, %s15901_s12 }
  0xce   :  { %p15144_p2 = pnand %p15142_p1, %p15139_p0 }
  0xd0   :  { %15147 = shalt.err (!%p15144_p2)
}
  0xd1   :  { %s15148_s23 = scalar_lea.vmem %s292_s15, 64  ;;  %p15153_p4 = scmp.lt.s32.totalorder %s292_s15, %s292_s15 }
  0xd2   :  { %p15149_p3 = scmp.ne.s32.totalorder %s292_s15, %s15148_s23  ;;  %p15154_p5 = scmp.lt.s32.totalorder %s15148_s23, %s15148_s23 }
  0xd4   :  { %p15155_p6 = por %p15154_p5, %p15153_p4 }
  0xd6   :  { %p15156_p7 = pnand %p15155_p6, %p15149_p3 }
  0xd8   :  { %15159 = shalt.err (!%p15156_p7)
}
  0xd9   :  { %294 = dma.hbm_to_vmem [thread:$0]  %s15901_s12, 64, %s292_s15, [#allocation26]  }
  0xda   :  { %s15776_s26 = smov [#allocation28]   ;;  %s15777_s27 = smov [#allocation31]  }
  0xdb   :  { %s312_s3 = sshll.u32 %s15776_s26, 4  ;;  %s334_s28 = sshll.u32 %s15777_s27, 4  ;;  %s313_s3 = int_to_ptr.vmem [resolvable:$true] %s312_s3  ;;  %s16077_s28 = int_to_ptr.vmem [resolvable:$true] %s334_s28 }
  0xdc   :  { %s15160_s2 = scalar_lea.hbm %s15911_s5, 1152 }
  0xdd   :  { %p15161_p8 = scmp.ne.s32.totalorder %s15911_s5, %s15160_s2  ;;  %p15164_p9 = scmp.lt.u32.totalorder %s15160_s2, %s15911_s5 }
  0xdf   :  { %p15166_p10 = pnand %p15164_p9, %p15161_p8 }
  0xe1   :  { %15169 = shalt.err (!%p15166_p10)
}
  0xe2   :  { %s15170_s7 = scalar_lea.vmem %s313_s3, 1152  ;;  %p15175_p12 = scmp.lt.s32.totalorder %s313_s3, %s313_s3 }
  0xe3   :  { %p15171_p11 = scmp.ne.s32.totalorder %s313_s3, %s15170_s7  ;;  %p15176_p13 = scmp.lt.s32.totalorder %s15170_s7, %s15170_s7 }
  0xe5   :  { %p15177_p0 = por %p15176_p13, %p15175_p12 }
  0xe7   :  { %p15178_p1 = pnand %p15177_p0, %p15171_p11 }
  0xe9   :  { %15181 = shalt.err (!%p15178_p1)
}
  0xea   :  { %318 = dma.hbm_to_vmem [thread:$0]  %s15911_s5, 1152, %s313_s3, [#allocation29], %s15770_s16, %s15770_s16, %s15771_s25  }
  0xeb   :  { %s15182_s12 = scalar_lea.hbm %s15921_s20, 6144 }
  0xec   :  { %p15183_p2 = scmp.ne.s32.totalorder %s15921_s20, %s15182_s12  ;;  %p15186_p3 = scmp.lt.u32.totalorder %s15182_s12, %s15921_s20 }
  0xee   :  { %p15188_p4 = pnand %p15186_p3, %p15183_p2 }
  0xf0   :  { %15191 = shalt.err (!%p15188_p4)
}
  0xf1   :  { %s15192_s14 = scalar_lea.vmem %s16077_s28, 6144  ;;  %p15197_p6 = scmp.lt.s32.totalorder %s16077_s28, %s16077_s28 }
  0xf2   :  { %p15193_p5 = scmp.ne.s32.totalorder %s16077_s28, %s15192_s14  ;;  %p15198_p7 = scmp.lt.s32.totalorder %s15192_s14, %s15192_s14 }
  0xf4   :  { %p15199_p8 = por %p15198_p7, %p15197_p6 }
  0xf6   :  { %p15200_p9 = pnand %p15199_p8, %p15193_p5 }
  0xf8   :  { %15203 = shalt.err (!%p15200_p9)
}
  0xf9   :  { %340 = dma.hbm_to_vmem [thread:$0]  %s15921_s20, 6144, %s16077_s28, [#allocation32], %s15770_s16, %s15770_s16, %s15771_s25  }
  0xfa   :  { %s15778_s5 = smov [#allocation34]   ;;  %s15779_s24 = smov [#allocation37]  }
  0xfb   :  { %s360_s10 = sshll.u32 %s15778_s5, 4  ;;  %s386_s11 = sshll.u32 %s15779_s24, 4  ;;  %s361_s10 = int_to_ptr.vmem [resolvable:$true] %s360_s10  ;;  %s16098_s11 = int_to_ptr.vmem [resolvable:$true] %s386_s11 }
  0xfc   :  { %s15204_s0 = scalar_lea.hbm %s15936_s4, 6144 }
  0xfd   :  { %p15205_p10 = scmp.ne.s32.totalorder %s15936_s4, %s15204_s0  ;;  %p15208_p11 = scmp.lt.u32.totalorder %s15204_s0, %s15936_s4 }
  0xff   :  { %p15210_p12 = pnand %p15208_p11, %p15205_p10 }
 0x101   :  { %15213 = shalt.err (!%p15210_p12)
}
 0x102   :  { %s15214_s15 = scalar_lea.vmem %s361_s10, 6144  ;;  %p15219_p0 = scmp.lt.s32.totalorder %s361_s10, %s361_s10 }
 0x103   :  { %p15215_p13 = scmp.ne.s32.totalorder %s361_s10, %s15214_s15  ;;  %p15220_p1 = scmp.lt.s32.totalorder %s15214_s15, %s15214_s15 }
 0x105   :  { %p15221_p2 = por %p15220_p1, %p15219_p0 }
 0x107   :  { %p15222_p3 = pnand %p15221_p2, %p15215_p13 }
 0x109   :  { %15225 = shalt.err (!%p15222_p3)
}
 0x10a   :  { %366 = dma.hbm_to_vmem [thread:$0]  %s15936_s4, 6144, %s361_s10, [#allocation35], %s15770_s16, %s15770_s16, %s15771_s25  }
 0x10b   :  { %s15226_s20 = scalar_lea.hbm %s15951_s30, 6144 }
 0x10c   :  { %p15227_p4 = scmp.ne.s32.totalorder %s15951_s30, %s15226_s20  ;;  %p15230_p5 = scmp.lt.u32.totalorder %s15226_s20, %s15951_s30 }
 0x10e   :  { %p15232_p6 = pnand %p15230_p5, %p15227_p4 }
 0x110   :  { %15235 = shalt.err (!%p15232_p6)
}
 0x111   :  { %s15236_s18 = scalar_lea.vmem %s16098_s11, 6144  ;;  %p15241_p8 = scmp.lt.s32.totalorder %s16098_s11, %s16098_s11 }
 0x112   :  { %p15237_p7 = scmp.ne.s32.totalorder %s16098_s11, %s15236_s18  ;;  %p15242_p9 = scmp.lt.s32.totalorder %s15236_s18, %s15236_s18 }
 0x114   :  { %p15243_p10 = por %p15242_p9, %p15241_p8 }
 0x116   :  { %p15244_p11 = pnand %p15243_p10, %p15237_p7 }
 0x118   :  { %15247 = shalt.err (!%p15244_p11)
}
 0x119   :  { %392 = dma.hbm_to_vmem [thread:$0]  %s15951_s30, 6144, %s16098_s11, [#allocation38], %s15770_s16, %s15770_s16, %s15771_s25  }
 0x11a   :  { %s15780_s4 = smov [#allocation40]   ;;  %s15781_s6 = smov [#allocation43]  }
 0x11b   :  { %s410_s22 = sshll.u32 %s15780_s4, 4  ;;  %s434_s23 = sshll.u32 %s15781_s6, 4  ;;  %s411_s22 = int_to_ptr.vmem [resolvable:$true] %s410_s22  ;;  %s16119_s23 = int_to_ptr.vmem [resolvable:$true] %s434_s23 }
 0x11c   :  { %s15248_s26 = scalar_lea.hbm %s15966_s9, 6144 }
 0x11d   :  { %p15249_p12 = scmp.ne.s32.totalorder %s15966_s9, %s15248_s26  ;;  %p15252_p13 = scmp.lt.u32.totalorder %s15248_s26, %s15966_s9 }
 0x11f   :  { %p15254_p0 = pnand %p15252_p13, %p15249_p12 }
 0x121   :  { %15257 = shalt.err (!%p15254_p0)
}
 0x122   :  { %s15258_s3 = scalar_lea.vmem %s411_s22, 6144  ;;  %p15263_p2 = scmp.lt.s32.totalorder %s411_s22, %s411_s22 }
 0x123   :  { %p15259_p1 = scmp.ne.s32.totalorder %s411_s22, %s15258_s3  ;;  %p15264_p3 = scmp.lt.s32.totalorder %s15258_s3, %s15258_s3 }
 0x125   :  { %p15265_p4 = por %p15264_p3, %p15263_p2 }
 0x127   :  { %p15266_p5 = pnand %p15265_p4, %p15259_p1 }
 0x129   :  { %15269 = shalt.err (!%p15266_p5)
}
 0x12a   :  { %416 = dma.hbm_to_vmem [thread:$0]  %s15966_s9, 6144, %s411_s22, [#allocation41], %s15770_s16, %s15770_s16, %s15771_s25  }
 0x12b   :  { %s15270_s30 = scalar_lea.hbm %s15981_s19, 6144 }
 0x12c   :  { %p15271_p6 = scmp.ne.s32.totalorder %s15981_s19, %s15270_s30  ;;  %p15274_p7 = scmp.lt.u32.totalorder %s15270_s30, %s15981_s19 }
 0x12e   :  { %p15276_p8 = pnand %p15274_p7, %p15271_p6 }
 0x130   :  { %15279 = shalt.err (!%p15276_p8)
}
 0x131   :  { %s15280_s27 = scalar_lea.vmem %s16119_s23, 6144  ;;  %p15285_p10 = scmp.lt.s32.totalorder %s16119_s23, %s16119_s23 }
 0x132   :  { %p15281_p9 = scmp.ne.s32.totalorder %s16119_s23, %s15280_s27  ;;  %p15286_p11 = scmp.lt.s32.totalorder %s15280_s27, %s15280_s27 }
 0x134   :  { %p15287_p12 = por %p15286_p11, %p15285_p10 }
 0x136   :  { %p15288_p13 = pnand %p15287_p12, %p15281_p9 }
 0x138   :  { %15291 = shalt.err (!%p15288_p13)
}
 0x139   :  { %s18097_s9 = sld [smem:[#allocation91_spill]]  ;;  %s15782_s28 = smov [#allocation46]  }
 0x13a   :  { %440 = dma.hbm_to_vmem [thread:$0]  %s15981_s19, 6144, %s16119_s23, [#allocation44], %s15770_s16, %s15770_s16, %s15771_s25  }
 0x13b   :  { %s458_s2 = sshll.u32 %s15782_s28, 4  ;;  %s15783_s7 = smov [#allocation2]   ;;  %s459_s2 = int_to_ptr.vmem [resolvable:$true] %s458_s2 }
 0x13c   :  { %s118_s12 = sshll.u32 %s15783_s7, 4  ;;  %s16140_s12 = int_to_ptr.vmem [resolvable:$true] %s118_s12 }
 0x13f   :  { %s15292_s14 = scalar_lea.hbm %s18097_s9, 6144 }
 0x140   :  { %p15293_p0 = scmp.ne.s32.totalorder %s18097_s9, %s15292_s14  ;;  %p15296_p1 = scmp.lt.u32.totalorder %s15292_s14, %s18097_s9 }
 0x142   :  { %p15298_p2 = pnand %p15296_p1, %p15293_p0 }
 0x144   :  { %15301 = shalt.err (!%p15298_p2)
}
 0x145   :  { %s15302_s5 = scalar_lea.vmem %s459_s2, 6144  ;;  %p15307_p4 = scmp.lt.s32.totalorder %s459_s2, %s459_s2 }
 0x146   :  { %p15303_p3 = scmp.ne.s32.totalorder %s459_s2, %s15302_s5  ;;  %p15308_p5 = scmp.lt.s32.totalorder %s15302_s5, %s15302_s5 }
 0x148   :  { %p15309_p6 = por %p15308_p5, %p15307_p4 }
 0x14a   :  { %p15310_p7 = pnand %p15309_p6, %p15303_p3 }
 0x14c   :  { %15313 = shalt.err (!%p15310_p7)
}
 0x14d   :  { %s18098_s19 = sld [smem:[#allocation70_spill]] }
 0x14e   :  { %464 = dma.hbm_to_vmem [thread:$0]  %s18097_s9, 6144, %s459_s2, [#allocation47], %s15770_s16, %s15770_s16, %s15771_s25  }
 0x153   :  { %s15314_s10 = scalar_lea.hbm %s18098_s19, 15360 }
 0x154   :  { %p15315_p8 = scmp.ne.s32.totalorder %s18098_s19, %s15314_s10  ;;  %p15318_p9 = scmp.lt.u32.totalorder %s15314_s10, %s18098_s19 }
 0x156   :  { %p15320_p10 = pnand %p15318_p9, %p15315_p8 }
 0x158   :  { %15323 = shalt.err (!%p15320_p10)
}
 0x159   :  { %s15324_s24 = scalar_lea.vmem %s16140_s12, 15360  ;;  %p15329_p12 = scmp.lt.s32.totalorder %s16140_s12, %s16140_s12 }
 0x15a   :  { %p15325_p11 = scmp.ne.s32.totalorder %s16140_s12, %s15324_s24  ;;  %p15330_p13 = scmp.lt.s32.totalorder %s15324_s24, %s15324_s24 }
 0x15c   :  { %p15331_p0 = por %p15330_p13, %p15329_p12 }
 0x15e   :  { %p15332_p1 = pnand %p15331_p0, %p15325_p11 }
 0x160   :  { %15335 = shalt.err (!%p15332_p1)
}
 0x161   :  { %s18099_s11 = sld [smem:[#allocation71_spill]]  ;;  %s15784_s0 = smov [#allocation6]  }
 0x162   :  { %124 = dma.hbm_to_vmem [thread:$0]  %s18098_s19, 15360, %s16140_s12, [#allocation3], %s15766_s1, %s15766_s1, %s15767_s17  }
 0x163   :  { %s140_s15 = sshll.u32 %s15784_s0, 4  ;;  %s15785_s20 = smov [#allocation9]   ;;  %s141_s15 = int_to_ptr.vmem [resolvable:$true] %s140_s15 }
 0x164   :  { %s165_s18 = sshll.u32 %s15785_s20, 4  ;;  %s166_s18 = int_to_ptr.vmem [resolvable:$true] %s165_s18 }
 0x167   :  { %s15336_s4 = scalar_lea.hbm %s18099_s11, 6144 }
 0x168   :  { %p15337_p2 = scmp.ne.s32.totalorder %s18099_s11, %s15336_s4  ;;  %p15340_p3 = scmp.lt.u32.totalorder %s15336_s4, %s18099_s11 }
 0x16a   :  { %p15342_p4 = pnand %p15340_p3, %p15337_p2 }
 0x16c   :  { %15345 = shalt.err (!%p15342_p4)
}
 0x16d   :  { %s15346_s22 = scalar_lea.vmem %s141_s15, 6144  ;;  %p15351_p6 = scmp.lt.s32.totalorder %s141_s15, %s141_s15 }
 0x16e   :  { %p15347_p5 = scmp.ne.s32.totalorder %s141_s15, %s15346_s22  ;;  %p15352_p7 = scmp.lt.s32.totalorder %s15346_s22, %s15346_s22 }
 0x170   :  { %p15353_p8 = por %p15352_p7, %p15351_p6 }
 0x172   :  { %p15354_p9 = pnand %p15353_p8, %p15347_p5 }
 0x174   :  { %15357 = shalt.err (!%p15354_p9)
}
 0x175   :  { %s18100_s6 = sld [smem:[#allocation72_spill]] }
 0x176   :  { %146 = dma.hbm_to_vmem [thread:$0]  %s18099_s11, 6144, %s141_s15, [#allocation5], %s15770_s16, %s15770_s16, %s15771_s25  }
 0x17b   :  { %s15358_s23 = scalar_lea.hbm %s18100_s6, 32 }
 0x17c   :  { %p15359_p10 = scmp.ne.s32.totalorder %s18100_s6, %s15358_s23  ;;  %p15362_p11 = scmp.lt.u32.totalorder %s15358_s23, %s18100_s6 }
 0x17e   :  { %p15364_p12 = pnand %p15362_p11, %p15359_p10 }
 0x180   :  { %15367 = shalt.err (!%p15364_p12)
}
 0x181   :  { %s15368_s26 = scalar_lea.vmem %s166_s18, 32  ;;  %p15373_p0 = scmp.lt.s32.totalorder %s166_s18, %s166_s18 }
 0x182   :  { %p15369_p13 = scmp.ne.s32.totalorder %s166_s18, %s15368_s26  ;;  %p15374_p1 = scmp.lt.s32.totalorder %s15368_s26, %s15368_s26 }
 0x184   :  { %p15375_p2 = por %p15374_p1, %p15373_p0 }
 0x186   :  { %p15376_p3 = pnand %p15375_p2, %p15369_p13 }
 0x188   :  { %15379 = shalt.err (!%p15376_p3)
}
 0x189   :  { %s18101_s3 = sld [smem:[#allocation73_spill]]  ;;  %s15786_s30 = smov [#allocation12]  }
 0x18a   :  { %168 = dma.hbm_to_vmem [thread:$0]  %s18100_s6, 32, %s166_s18, [#allocation8]  }
 0x18b   :  { %s186_s27 = sshll.u32 %s15786_s30, 4  ;;  %s15787_s9 = smov [#allocation15]   ;;  %s187_s27 = int_to_ptr.vmem [resolvable:$true] %s186_s27 }
 0x18c   :  { %s208_s28 = sshll.u32 %s15787_s9, 4  ;;  %s16172_s28 = int_to_ptr.vmem [resolvable:$true] %s208_s28 }
 0x18f   :  { %s15380_s2 = scalar_lea.hbm %s18101_s3, 15360 }
 0x190   :  { %p15381_p4 = scmp.ne.s32.totalorder %s18101_s3, %s15380_s2  ;;  %p15384_p5 = scmp.lt.u32.totalorder %s15380_s2, %s18101_s3 }
 0x192   :  { %p15386_p6 = pnand %p15384_p5, %p15381_p4 }
 0x194   :  { %15389 = shalt.err (!%p15386_p6)
}
 0x195   :  { %s15390_s7 = scalar_lea.vmem %s187_s27, 15360  ;;  %p15395_p8 = scmp.lt.s32.totalorder %s187_s27, %s187_s27 }
 0x196   :  { %p15391_p7 = scmp.ne.s32.totalorder %s187_s27, %s15390_s7  ;;  %p15396_p9 = scmp.lt.s32.totalorder %s15390_s7, %s15390_s7 }
 0x198   :  { %p15397_p10 = por %p15396_p9, %p15395_p8 }
 0x19a   :  { %p15398_p11 = pnand %p15397_p10, %p15391_p7 }
 0x19c   :  { %15401 = shalt.err (!%p15398_p11)
}
 0x19d   :  { %s18102_s12 = sld [smem:[#allocation74_spill]] }
 0x19e   :  { %192 = dma.hbm_to_vmem [thread:$0]  %s18101_s3, 15360, %s187_s27, [#allocation11], %s15766_s1, %s15766_s1, %s15767_s17  }
 0x1a3   :  { %s15402_s14 = scalar_lea.hbm %s18102_s12, 12288 }
 0x1a4   :  { %p15403_p12 = scmp.ne.s32.totalorder %s18102_s12, %s15402_s14  ;;  %p15406_p13 = scmp.lt.u32.totalorder %s15402_s14, %s18102_s12 }
 0x1a6   :  { %p15408_p0 = pnand %p15406_p13, %p15403_p12 }
 0x1a8   :  { %15411 = shalt.err (!%p15408_p0)
}
 0x1a9   :  { %s15412_s5 = scalar_lea.vmem %s16172_s28, 12288  ;;  %p15417_p2 = scmp.lt.s32.totalorder %s16172_s28, %s16172_s28 }
 0x1aa   :  { %p15413_p1 = scmp.ne.s32.totalorder %s16172_s28, %s15412_s5  ;;  %p15418_p3 = scmp.lt.s32.totalorder %s15412_s5, %s15412_s5 }
 0x1ac   :  { %p15419_p4 = por %p15418_p3, %p15417_p2 }
 0x1ae   :  { %p15420_p5 = pnand %p15419_p4, %p15413_p1 }
 0x1b0   :  { %15423 = shalt.err (!%p15420_p5)
}
 0x1b1   :  { %s18103_s19 = sld [smem:[#allocation75_spill]]  ;;  %s15788_s10 = smov [#allocation18]  }
 0x1b2   :  { %214 = dma.hbm_to_vmem [thread:$0]  %s18102_s12, 12288, %s16172_s28, [#allocation14], %s15766_s1, %s15766_s1, %s15767_s17  }
 0x1b3   :  { %s233_s24 = sshll.u32 %s15788_s10, 4  ;;  %s15789_s11 = smov [#allocation21]   ;;  %s234_s24 = int_to_ptr.vmem [resolvable:$true] %s233_s24 }
 0x1b4   :  { %s257_s0 = sshll.u32 %s15789_s11, 4  ;;  %s258_s0 = int_to_ptr.vmem [resolvable:$true] %s257_s0 }
 0x1b7   :  { %s15424_s15 = scalar_lea.hbm %s18103_s19, 64 }
 0x1b8   :  { %p15425_p6 = scmp.ne.s32.totalorder %s18103_s19, %s15424_s15  ;;  %p15428_p7 = scmp.lt.u32.totalorder %s15424_s15, %s18103_s19 }
 0x1ba   :  { %p15430_p8 = pnand %p15428_p7, %p15425_p6 }
 0x1bc   :  { %15433 = shalt.err (!%p15430_p8)
}
 0x1bd   :  { %s15434_s20 = scalar_lea.vmem %s234_s24, 64  ;;  %p15439_p10 = scmp.lt.s32.totalorder %s234_s24, %s234_s24 }
 0x1be   :  { %p15435_p9 = scmp.ne.s32.totalorder %s234_s24, %s15434_s20  ;;  %p15440_p11 = scmp.lt.s32.totalorder %s15434_s20, %s15434_s20 }
 0x1c0   :  { %p15441_p12 = por %p15440_p11, %p15439_p10 }
 0x1c2   :  { %p15442_p13 = pnand %p15441_p12, %p15435_p9 }
 0x1c4   :  { %15445 = shalt.err (!%p15442_p13)
}
 0x1c5   :  { %s18104_s1 = sld [smem:[#allocation77_spill]] }
 0x1c6   :  { %236 = dma.hbm_to_vmem [thread:$0]  %s18103_s19, 64, %s234_s24, [#allocation17]  }
 0x1cb   :  { %s15446_s17 = scalar_lea.hbm %s18104_s1, 64 }
 0x1cc   :  { %p15447_p0 = scmp.ne.s32.totalorder %s18104_s1, %s15446_s17  ;;  %p15450_p1 = scmp.lt.u32.totalorder %s15446_s17, %s18104_s1 }
 0x1ce   :  { %p15452_p2 = pnand %p15450_p1, %p15447_p0 }
 0x1d0   :  { %15455 = shalt.err (!%p15452_p2)
}
 0x1d1   :  { %s15456_s18 = scalar_lea.vmem %s258_s0, 64  ;;  %p15461_p4 = scmp.lt.s32.totalorder %s258_s0, %s258_s0 }
 0x1d2   :  { %p15457_p3 = scmp.ne.s32.totalorder %s258_s0, %s15456_s18  ;;  %p15462_p5 = scmp.lt.s32.totalorder %s15456_s18, %s15456_s18 }
 0x1d4   :  { %p15463_p6 = por %p15462_p5, %p15461_p4 }
 0x1d6   :  { %p15464_p7 = pnand %p15463_p6, %p15457_p3 }
 0x1d8   :  { %15467 = shalt.err (!%p15464_p7)
}
 0x1d9   :  { %s18105_s4 = sld [smem:[#allocation78_spill]]  ;;  %s15790_s22 = smov [#allocation24]  }
 0x1da   :  { %260 = dma.hbm_to_vmem [thread:$0]  %s18104_s1, 64, %s258_s0, [#allocation20]  }
 0x1db   :  { %s278_s6 = sshll.u32 %s15790_s22, 4  ;;  %s15791_s23 = smov [#allocation27]   ;;  %s279_s6 = int_to_ptr.vmem [resolvable:$true] %s278_s6 }
 0x1dc   :  { %s300_s26 = sshll.u32 %s15791_s23, 4  ;;  %s16201_s26 = int_to_ptr.vmem [resolvable:$true] %s300_s26 }
 0x1df   :  { %s15468_s3 = scalar_lea.hbm %s18105_s4, 2688 }
 0x1e0   :  { %p15469_p8 = scmp.ne.s32.totalorder %s18105_s4, %s15468_s3  ;;  %p15472_p9 = scmp.lt.u32.totalorder %s15468_s3, %s18105_s4 }
 0x1e2   :  { %p15474_p10 = pnand %p15472_p9, %p15469_p8 }
 0x1e4   :  { %15477 = shalt.err (!%p15474_p10)
}
 0x1e5   :  { %s15478_s30 = scalar_lea.vmem %s279_s6, 2688  ;;  %p15483_p12 = scmp.lt.s32.totalorder %s279_s6, %s279_s6 }
 0x1e6   :  { %p15479_p11 = scmp.ne.s32.totalorder %s279_s6, %s15478_s30  ;;  %p15484_p13 = scmp.lt.s32.totalorder %s15478_s30, %s15478_s30 }
 0x1e8   :  { %p15485_p0 = por %p15484_p13, %p15483_p12 }
 0x1ea   :  { %p15486_p1 = pnand %p15485_p0, %p15479_p11 }
 0x1ec   :  { %15489 = shalt.err (!%p15486_p1)
}
 0x1ed   :  { %s18106_s27 = sld [smem:[#allocation79_spill]] }
 0x1ee   :  { %284 = dma.hbm_to_vmem [thread:$0]  %s18105_s4, 2688, %s279_s6, [#allocation23], %s15770_s16, %s15770_s16, %s15771_s25  }
 0x1f3   :  { %s15490_s9 = scalar_lea.hbm %s18106_s27, 12288 }
 0x1f4   :  { %p15491_p2 = scmp.ne.s32.totalorder %s18106_s27, %s15490_s9  ;;  %p15494_p3 = scmp.lt.u32.totalorder %s15490_s9, %s18106_s27 }
 0x1f6   :  { %p15496_p4 = pnand %p15494_p3, %p15491_p2 }
 0x1f8   :  { %15499 = shalt.err (!%p15496_p4)
}
 0x1f9   :  { %s15500_s28 = scalar_lea.vmem %s16201_s26, 12288  ;;  %p15505_p6 = scmp.lt.s32.totalorder %s16201_s26, %s16201_s26 }
 0x1fa   :  { %p15501_p5 = scmp.ne.s32.totalorder %s16201_s26, %s15500_s28  ;;  %p15506_p7 = scmp.lt.s32.totalorder %s15500_s28, %s15500_s28 }
 0x1fc   :  { %p15507_p8 = por %p15506_p7, %p15505_p6 }
 0x1fe   :  { %p15508_p9 = pnand %p15507_p8, %p15501_p5 }
 0x200   :  { %15511 = shalt.err (!%p15508_p9)
}
 0x201   :  { %s18107_s2 = sld [smem:[#allocation80_spill]]  ;;  %s15792_s7 = smov [#allocation30]  }
 0x202   :  { %306 = dma.hbm_to_vmem [thread:$0]  %s18106_s27, 12288, %s16201_s26, [#allocation26], %s15770_s16, %s15770_s16, %s15771_s25  }
 0x203   :  { %s325_s12 = sshll.u32 %s15792_s7, 4  ;;  %s15793_s14 = smov [#allocation33]   ;;  %s326_s12 = int_to_ptr.vmem [resolvable:$true] %s325_s12 }
 0x204   :  { %s346_s5 = sshll.u32 %s15793_s14, 4  ;;  %s16222_s5 = int_to_ptr.vmem [resolvable:$true] %s346_s5 }
 0x207   :  { %s15512_s19 = scalar_lea.hbm %s18107_s2, 32 }
 0x208   :  { %p15513_p10 = scmp.ne.s32.totalorder %s18107_s2, %s15512_s19  ;;  %p15516_p11 = scmp.lt.u32.totalorder %s15512_s19, %s18107_s2 }
 0x20a   :  { %p15518_p12 = pnand %p15516_p11, %p15513_p10 }
 0x20c   :  { %15521 = shalt.err (!%p15518_p12)
}
 0x20d   :  { %s15522_s10 = scalar_lea.vmem %s326_s12, 32  ;;  %p15527_p0 = scmp.lt.s32.totalorder %s326_s12, %s326_s12 }
 0x20e   :  { %p15523_p13 = scmp.ne.s32.totalorder %s326_s12, %s15522_s10  ;;  %p15528_p1 = scmp.lt.s32.totalorder %s15522_s10, %s15522_s10 }
 0x210   :  { %p15529_p2 = por %p15528_p1, %p15527_p0 }
 0x212   :  { %p15530_p3 = pnand %p15529_p2, %p15523_p13 }
 0x214   :  { %15533 = shalt.err (!%p15530_p3)
}
 0x215   :  { %s18108_s24 = sld [smem:[#allocation81_spill]] }
 0x216   :  { %328 = dma.hbm_to_vmem [thread:$0]  %s18107_s2, 32, %s326_s12, [#allocation29]  }
 0x21b   :  { %s15534_s11 = scalar_lea.hbm %s18108_s24, 1152 }
 0x21c   :  { %p15535_p4 = scmp.ne.s32.totalorder %s18108_s24, %s15534_s11  ;;  %p15538_p5 = scmp.lt.u32.totalorder %s15534_s11, %s18108_s24 }
 0x21e   :  { %p15540_p6 = pnand %p15538_p5, %p15535_p4 }
 0x220   :  { %15543 = shalt.err (!%p15540_p6)
}
 0x221   :  { %s15544_s0 = scalar_lea.vmem %s16222_s5, 1152  ;;  %p15549_p8 = scmp.lt.s32.totalorder %s16222_s5, %s16222_s5 }
 0x222   :  { %p15545_p7 = scmp.ne.s32.totalorder %s16222_s5, %s15544_s0  ;;  %p15550_p9 = scmp.lt.s32.totalorder %s15544_s0, %s15544_s0 }
 0x224   :  { %p15551_p10 = por %p15550_p9, %p15549_p8 }
 0x226   :  { %p15552_p11 = pnand %p15551_p10, %p15545_p7 }
 0x228   :  { %15555 = shalt.err (!%p15552_p11)
}
 0x229   :  { %s18109_s15 = sld [smem:[#allocation83_spill]]  ;;  %s15794_s20 = smov [#allocation36]  }
 0x22a   :  { %352 = dma.hbm_to_vmem [thread:$0]  %s18108_s24, 1152, %s16222_s5, [#allocation32], %s15770_s16, %s15770_s16, %s15771_s25  }
 0x22b   :  { %s372_s1 = sshll.u32 %s15794_s20, 4  ;;  %s15795_s17 = smov [#allocation39]   ;;  %s373_s1 = int_to_ptr.vmem [resolvable:$true] %s372_s1 }
 0x22c   :  { %s401_s18 = sshll.u32 %s15795_s17, 4  ;;  %s402_s18 = int_to_ptr.vmem [resolvable:$true] %s401_s18 }
 0x22f   :  { %s15556_s4 = scalar_lea.hbm %s18109_s15, 1152 }
 0x230   :  { %p15557_p12 = scmp.ne.s32.totalorder %s18109_s15, %s15556_s4  ;;  %p15560_p13 = scmp.lt.u32.totalorder %s15556_s4, %s18109_s15 }
 0x232   :  { %p15562_p0 = pnand %p15560_p13, %p15557_p12 }
 0x234   :  { %15565 = shalt.err (!%p15562_p0)
}
 0x235   :  { %s15566_s22 = scalar_lea.vmem %s373_s1, 1152  ;;  %p15571_p2 = scmp.lt.s32.totalorder %s373_s1, %s373_s1 }
 0x236   :  { %p15567_p1 = scmp.ne.s32.totalorder %s373_s1, %s15566_s22  ;;  %p15572_p3 = scmp.lt.s32.totalorder %s15566_s22, %s15566_s22 }
 0x238   :  { %p15573_p4 = por %p15572_p3, %p15571_p2 }
 0x23a   :  { %p15574_p5 = pnand %p15573_p4, %p15567_p1 }
 0x23c   :  { %15577 = shalt.err (!%p15574_p5)
}
 0x23d   :  { %s18110_s6 = sld [smem:[#allocation86_spill]] }
 0x23e   :  { %378 = dma.hbm_to_vmem [thread:$0]  %s18109_s15, 1152, %s373_s1, [#allocation35], %s15770_s16, %s15770_s16, %s15771_s25  }
 0x243   :  { %s15578_s23 = scalar_lea.hbm %s18110_s6, 32 }
 0x244   :  { %p15579_p6 = scmp.ne.s32.totalorder %s18110_s6, %s15578_s23  ;;  %p15582_p7 = scmp.lt.u32.totalorder %s15578_s23, %s18110_s6 }
 0x246   :  { %p15584_p8 = pnand %p15582_p7, %p15579_p6 }
 0x248   :  { %15587 = shalt.err (!%p15584_p8)
}
 0x249   :  { %s15588_s26 = scalar_lea.vmem %s402_s18, 32  ;;  %p15593_p10 = scmp.lt.s32.totalorder %s402_s18, %s402_s18 }
 0x24a   :  { %p15589_p9 = scmp.ne.s32.totalorder %s402_s18, %s15588_s26  ;;  %p15594_p11 = scmp.lt.s32.totalorder %s15588_s26, %s15588_s26 }
 0x24c   :  { %p15595_p12 = por %p15594_p11, %p15593_p10 }
 0x24e   :  { %p15596_p13 = pnand %p15595_p12, %p15589_p9 }
 0x250   :  { %15599 = shalt.err (!%p15596_p13)
}
 0x251   :  { %s18111_s3 = sld [smem:[#allocation88_spill]]  ;;  %s15796_s30 = smov [#allocation42]  }
 0x252   :  { %404 = dma.hbm_to_vmem [thread:$0]  %s18110_s6, 32, %s402_s18, [#allocation38]  }
 0x253   :  { %s425_s27 = sshll.u32 %s15796_s30, 4  ;;  %s15797_s9 = smov [#allocation45]   ;;  %s426_s27 = int_to_ptr.vmem [resolvable:$true] %s425_s27 }
 0x254   :  { %s449_s28 = sshll.u32 %s15797_s9, 4  ;;  %s450_s28 = int_to_ptr.vmem [resolvable:$true] %s449_s28 }
 0x257   :  { %s15600_s2 = scalar_lea.hbm %s18111_s3, 32 }
 0x258   :  { %p15601_p0 = scmp.ne.s32.totalorder %s18111_s3, %s15600_s2  ;;  %p15604_p1 = scmp.lt.u32.totalorder %s15600_s2, %s18111_s3 }
 0x25a   :  { %p15606_p2 = pnand %p15604_p1, %p15601_p0 }
 0x25c   :  { %15609 = shalt.err (!%p15606_p2)
}
 0x25d   :  { %s15610_s7 = scalar_lea.vmem %s426_s27, 32  ;;  %p15615_p4 = scmp.lt.s32.totalorder %s426_s27, %s426_s27 }
 0x25e   :  { %p15611_p3 = scmp.ne.s32.totalorder %s426_s27, %s15610_s7  ;;  %p15616_p5 = scmp.lt.s32.totalorder %s15610_s7, %s15610_s7 }
 0x260   :  { %p15617_p6 = por %p15616_p5, %p15615_p4 }
 0x262   :  { %p15618_p7 = pnand %p15617_p6, %p15611_p3 }
 0x264   :  { %15621 = shalt.err (!%p15618_p7)
}
 0x265   :  { %s18112_s12 = sld [smem:[#allocation90_spill]] }
 0x266   :  { %428 = dma.hbm_to_vmem [thread:$0]  %s18111_s3, 32, %s426_s27, [#allocation41]  }
 0x26b   :  { %s15622_s14 = scalar_lea.hbm %s18112_s12, 32 }
 0x26c   :  { %p15623_p8 = scmp.ne.s32.totalorder %s18112_s12, %s15622_s14  ;;  %p15626_p9 = scmp.lt.u32.totalorder %s15622_s14, %s18112_s12 }
 0x26e   :  { %p15628_p10 = pnand %p15626_p9, %p15623_p8 }
 0x270   :  { %15631 = shalt.err (!%p15628_p10)
}
 0x271   :  { %s15632_s5 = scalar_lea.vmem %s450_s28, 32  ;;  %p15637_p12 = scmp.lt.s32.totalorder %s450_s28, %s450_s28 }
 0x272   :  { %p15633_p11 = scmp.ne.s32.totalorder %s450_s28, %s15632_s5  ;;  %p15638_p13 = scmp.lt.s32.totalorder %s15632_s5, %s15632_s5 }
 0x274   :  { %p15639_p0 = por %p15638_p13, %p15637_p12 }
 0x276   :  { %p15640_p1 = pnand %p15639_p0, %p15633_p11 }
 0x278   :  { %15643 = shalt.err (!%p15640_p1)
}
 0x279   :  { %452 = dma.hbm_to_vmem [thread:$0]  %s18112_s12, 32, %s450_s28, [#allocation44]  }
 0x27a   :  { %s15798_s19 = smov [#allocation48]   ;;  %s15799_s24 = smov [#allocation49]  }
 0x27b   :  { %s473_s10 = sshll.u32 %s15798_s19, 4  ;;  %s482_s11 = sshll.u32 %s15799_s24, 4  ;;  %s474_s10 = int_to_ptr.vmem [resolvable:$true] %s473_s10  ;;  %s16259_s11 = int_to_ptr.vmem [resolvable:$true] %s482_s11 }
 0x27c   :  { %s15644_s0 = scalar_lea.hbm %s16006_s21, 32 }
 0x27d   :  { %p15645_p2 = scmp.ne.s32.totalorder %s16006_s21, %s15644_s0  ;;  %p15648_p3 = scmp.lt.u32.totalorder %s15644_s0, %s16006_s21 }
 0x27f   :  { %p15650_p4 = pnand %p15648_p3, %p15645_p2 }
 0x281   :  { %15653 = shalt.err (!%p15650_p4)
}
 0x282   :  { %s15654_s15 = scalar_lea.vmem %s474_s10, 32  ;;  %p15659_p6 = scmp.lt.s32.totalorder %s474_s10, %s474_s10 }
 0x283   :  { %p15655_p5 = scmp.ne.s32.totalorder %s474_s10, %s15654_s15  ;;  %p15660_p7 = scmp.lt.s32.totalorder %s15654_s15, %s15654_s15 }
 0x285   :  { %p15661_p8 = por %p15660_p7, %p15659_p6 }
 0x287   :  { %p15662_p9 = pnand %p15661_p8, %p15655_p5 }
 0x289   :  { %15665 = shalt.err (!%p15662_p9)
}
 0x28a   :  { %476 = dma.hbm_to_vmem [thread:$0]  %s16006_s21, 32, %s474_s10, [#allocation47]  }
 0x28b   :  { %s15666_s20 = scalar_lea.hbm %s16011_s29, 2048 }
 0x28c   :  { %p15667_p10 = scmp.ne.s32.totalorder %s16011_s29, %s15666_s20  ;;  %p15670_p11 = scmp.lt.u32.totalorder %s15666_s20, %s16011_s29 }
 0x28e   :  { %p15672_p12 = pnand %p15670_p11, %p15667_p10 }
 0x290   :  { %15675 = shalt.err (!%p15672_p12)
}
 0x291   :  { %s15676_s1 = scalar_lea.vmem %s16259_s11, 2048  ;;  %p15681_p0 = scmp.lt.s32.totalorder %s16259_s11, %s16259_s11 }
 0x292   :  { %p15677_p13 = scmp.ne.s32.totalorder %s16259_s11, %s15676_s1  ;;  %p15682_p1 = scmp.lt.s32.totalorder %s15676_s1, %s15676_s1 }
 0x294   :  { %p15683_p2 = por %p15682_p1, %p15681_p0 }
 0x296   :  { %p15684_p3 = pnand %p15683_p2, %p15677_p13 }
 0x298   :  { %15687 = shalt.err (!%p15684_p3)
}
 0x299   :  { %488 = dma.hbm_to_vmem [thread:$0]  %s16011_s29, 2048, %s16259_s11, [#allocation50], %s15770_s16, %s15770_s16, %s15771_s25  }
 0x29a   :  { %15688 = dma.done.wait [#allocation3], 15360  }
 0x29b   :  { %15689 = vsyncadd [#allocation3], 4294951936 }
 0x29c   :  { %15690 = dma.done.wait [#allocation5], 6176  }
 0x29d   :  { %15691 = vsyncadd [#allocation5], 4294961120 }
 0x29e   :  { %15692 = dma.done.wait [#allocation8], 15392  }
 0x29f   :  { %15693 = vsyncadd [#allocation8], 4294951904 }
 0x2a0   :  { %15694 = dma.done.wait [#allocation11], 21504  }
 0x2a1   :  { %15695 = vsyncadd [#allocation11], 4294945792 }
 0x2a2   :  { %15696 = dma.done.wait [#allocation14], 12320  }
 0x2a3   :  { %15697 = vsyncadd [#allocation14], 4294954976 }
 0x2a4   :  { %15698 = dma.done.wait [#allocation17], 5440  }
 0x2a5   :  { %15699 = vsyncadd [#allocation17], 4294961856 }
 0x2a6   :  { %15700 = dma.done.wait [#allocation20], 24640  }
 0x2a7   :  { %15701 = vsyncadd [#allocation20], 4294942656 }
 0x2a8   :  { %15702 = dma.done.wait [#allocation23], 27264  }
 0x2a9   :  { %15703 = vsyncadd [#allocation23], 4294940032 }
 0x2aa   :  { %15704 = dma.done.wait [#allocation26], 12352  }
 0x2ab   :  { %15705 = vsyncadd [#allocation26], 4294954944 }
 0x2ac   :  { %15706 = dma.done.wait [#allocation29], 1184  }
 0x2ad   :  { %15707 = vsyncadd [#allocation29], 4294966112 }
 0x2ae   :  { %15708 = dma.done.wait [#allocation32], 7296  }
 0x2af   :  { %15709 = vsyncadd [#allocation32], 4294960000 }
 0x2b0   :  { %15710 = dma.done.wait [#allocation35], 7296  }
 0x2b1   :  { %15711 = vsyncadd [#allocation35], 4294960000 }
 0x2b2   :  { %15712 = dma.done.wait [#allocation38], 6176  }
 0x2b3   :  { %15713 = vsyncadd [#allocation38], 4294961120 }
 0x2b4   :  { %15714 = dma.done.wait [#allocation41], 6176  }
 0x2b5   :  { %15715 = vsyncadd [#allocation41], 4294961120 }
 0x2b6   :  { %15716 = dma.done.wait [#allocation44], 6176  }
 0x2b7   :  { %15717 = vsyncadd [#allocation44], 4294961120 }
 0x2b8   :  { %15718 = dma.done.wait [#allocation47], 6176  }
 0x2b9   :  { %15719 = vsyncadd [#allocation47], 4294961120 }
 0x2ba   :  { %15720 = dma.done.wait [#allocation50], 2048  }
 0x2bb   :  { %15721 = vsyncadd [#allocation50], 4294965248  ;;  %s18113_s21 = sld [smem:[#allocation68_spill]]  ;;  %v15800_v0 = vmov 0.0|0.0   ;;  %vm649_vm0 = vcmask 261120   ;;  %v610_v9 = vld [vmem:[#allocation2 + $0x8] sm:$0xff] }
 0x2bc   :  { %12960 = vmatprep.subr.bf16.mxu0 %v15800_v0  ;;  %10480 = vmatprep.mubr.msk.f32.mxu0 %vm649_vm0, %v610_v9  ;;  %s18114_s29 = sld [smem:[#allocation69_spill]]  ;;  %v609_v52 = vld [vmem:[#allocation2] sm:$0xff]  ;;  %v612_v53 = vld [vmem:[#allocation2 + $0x18] sm:$0xff]  ;;  %v611_v57 = vld [vmem:[#allocation2 + $0x10] sm:$0xff]  ;;  %s18115_s16 = sld [smem:[#allocation76_spill]]  ;;  %vm5062_vm1 = vcmask 457728  }
 0x2bd   :  { %v614_v58 = vld [vmem:[#allocation2 + $0x28] sm:$0xff]  ;;  %v613_v62 = vld [vmem:[#allocation2 + $0x20] sm:$0xff]  ;;  %v616_v63 = vld [vmem:[#allocation2 + $0x38] sm:$0xff]  ;;  %vm15802_vm2 = vmmov 0   ;;  %vm7468_vm3 = vcmask 195584   ;;  %s18116_s25 = sld [smem:[#allocation82_spill]] }
 0x2be   :  { %s18117_s17 = sld [smem:[#allocation84_spill]]  ;;  %s18118_s18 = sld [smem:[#allocation85_spill]]  ;;  %vm8965_vm4 = vcmask 64512  }
 0x2bf   :  { %s18119_s4 = sld [smem:[#allocation87_spill]]  ;;  %s18120_s22 = sld [smem:[#allocation89_spill]] }
 0x2c0   :  { %s18121_s6 = sld [smem:[#allocation92_spill]] }
 0x2c1   :  { %v589_v1 = vld [vmem:[%s18113_s21] sm:$0xff]  ;;  %v16280_v2 = vld [vmem:[%s18113_s21 + $0x8] sm:$0xff]  ;;  %v16283_v3 = vld [vmem:[%s18113_s21 + $0x10] sm:$0xff] }
 0x2c2   :  { %v16286_v4 = vpack.c.bf16 %v16280_v2, %v589_v1  ;;  %v16289_v5 = vld [vmem:[%s18113_s21 + $0x18] sm:$0xff]  ;;  %11611 = vmatprep.mubr.f32.mxu1 %v589_v1  ;;  %v16298_v7 = vld [vmem:[%s18113_s21 + $0x20] sm:$0xff]  ;;  %v16301_v8 = vld [vmem:[%s18113_s21 + $0x28] sm:$0xff] }
 0x2c3   :  { %v16294_v6 = vpack.c.bf16 %v16289_v5, %v16283_v3  ;;  %v16306_v10 = vpack.c.bf16 %v16301_v8, %v16298_v7  ;;  %v16311_v11 = vld [vmem:[%s18113_s21 + $0x30] sm:$0xff]  ;;  %v16314_v12 = vld [vmem:[%s18113_s21 + $0x38] sm:$0xff]  ;;  %v16323_v14 = vld [vmem:[%s18113_s21 + $0x40] sm:$0xff] }
 0x2c4   :  { %12962 = vmatpush1.bf16.msra.mxu0 %v16286_v4  ;;  %v16319_v13 = vpack.c.bf16 %v16314_v12, %v16311_v11  ;;  %v16326_v15 = vld [vmem:[%s18113_s21 + $0x48] sm:$0xff]  ;;  %v16335_v17 = vld [vmem:[%s18113_s21 + $0x50] sm:$0xff]  ;;  %v16338_v18 = vld [vmem:[%s18113_s21 + $0x58] sm:$0xff] }
 0x2c5   :  { %12963 = vmatprep.subr.bf16.mxu0 %v15800_v0  ;;  %v16331_v16 = vpack.c.bf16 %v16326_v15, %v16323_v14  ;;  %v16343_v19 = vpack.c.bf16 %v16338_v18, %v16335_v17  ;;  %v16346_v20 = vld [vmem:[%s18113_s21 + $0x60] sm:$0xff]  ;;  %v16349_v21 = vld [vmem:[%s18113_s21 + $0x68] sm:$0xff]  ;;  %v10502_v24 = vld [vmem:[%s18114_s29 + $0x90] sm:$0xff] }
 0x2c6   :  { %v10500_v22 = vld [vmem:[%s18114_s29 + $0x80] sm:$0xff]  ;;  %v10501_v23 = vld [vmem:[%s18114_s29 + $0x88] sm:$0xff]  ;;  %v10503_v26 = vld [vmem:[%s18114_s29 + $0x98] sm:$0xff]  ;;  %v16361_v30 = vpack.c.bf16 %v16349_v21, %v16346_v20 }
 0x2c7   :  { %v12990_v25 = vpack.c.bf16 %v10501_v23, %v10500_v22  ;;  %v12994_v27 = vpack.c.bf16 %v10503_v26, %v10502_v24  ;;  %v10504_v28 = vld [vmem:[%s18114_s29 + $0xa0] sm:$0xff]  ;;  %v10505_v29 = vld [vmem:[%s18114_s29 + $0xa8] sm:$0xff]  ;;  %v16365_v31 = vld [vmem:[%s18113_s21 + $0x70] sm:$0xff] }
 0x2c8   :  { %12965 = vmatpush1.bf16.msra.mxu0 %v16294_v6  ;;  %v16368_v32 = vld [vmem:[%s18113_s21 + $0x78] sm:$0xff]  ;;  %v12998_v33 = vpack.c.bf16 %v10505_v29, %v10504_v28  ;;  %v10506_v34 = vld [vmem:[%s18114_s29 + $0xb0] sm:$0xff]  ;;  %v16379_v37 = vld [vmem:[%s18113_s21 + $0x80] sm:$0xff] }
 0x2c9   :  { %12966 = vmatprep.subr.bf16.mxu0 %v15800_v0  ;;  %12991 = vmatprep.subr.bf16.mxu1 %v12990_v25  ;;  %v10507_v35 = vld [vmem:[%s18114_s29 + $0xb8] sm:$0xff]  ;;  %v16375_v36 = vpack.c.bf16 %v16368_v32, %v16365_v31  ;;  %v16382_v38 = vld [vmem:[%s18113_s21 + $0x88] sm:$0xff]  ;;  %v10508_v40 = vld [vmem:[%s18114_s29 + $0xc0] sm:$0xff] }
 0x2ca   :  { %12993 = vmatpush3.bf16.msra.mxu1 %v12990_v25  ;;  %v13002_v39 = vpack.c.bf16 %v10507_v35, %v10506_v34  ;;  %v10509_v41 = vld [vmem:[%s18114_s29 + $0xc8] sm:$0xff]  ;;  %v16389_v42 = vpack.c.bf16 %v16382_v38, %v16379_v37  ;;  %v16393_v43 = vld [vmem:[%s18113_s21 + $0x90] sm:$0xff]  ;;  %v16396_v44 = vld [vmem:[%s18113_s21 + $0x98] sm:$0xff] }
 0x2cb   :  { %12995 = vmatprep.subr.bf16.mxu1 %v12994_v27  ;;  %v13006_v45 = vpack.c.bf16 %v10509_v41, %v10508_v40  ;;  %v10510_v46 = vld [vmem:[%s18114_s29 + $0xd0] sm:$0xff]  ;;  %v10511_v47 = vld [vmem:[%s18114_s29 + $0xd8] sm:$0xff]  ;;  %v16403_v48 = vpack.c.bf16 %v16396_v44, %v16393_v43  ;;  %v10512_v50 = vld [vmem:[%s18114_s29 + $0xe0] sm:$0xff] }
 0x2cc   :  { %12968 = vmatpush1.bf16.msra.mxu0 %v16306_v10  ;;  %v13010_v49 = vpack.c.bf16 %v10511_v47, %v10510_v46  ;;  %v10513_v51 = vld [vmem:[%s18114_s29 + $0xe8] sm:$0xff]  ;;  %v10514_v55 = vld [vmem:[%s18114_s29 + $0xf0] sm:$0xff]  ;;  %v10515_v56 = vld [vmem:[%s18114_s29 + $0xf8] sm:$0xff] }
 0x2cd   :  { %12969 = vmatprep.subr.bf16.mxu0 %v15800_v0  ;;  %v13014_v54 = vpack.c.bf16 %v10513_v51, %v10512_v50  ;;  %v13018_v59 = vpack.c.bf16 %v10515_v56, %v10514_v55  ;;  %v875_v60 = vld [vmem:[%s18114_s29] sm:$0xff]  ;;  %v876_v61 = vld [vmem:[%s18114_s29 + $0x8] sm:$0xff]  ;;  %v877_v9 = vld [vmem:[%s18114_s29 + $0x10] sm:$0xff] }
 0x2ce   :  { %12997 = vmatpush3.bf16.msra.mxu1 %v12994_v27  ;;  %v13022_v1 = vpack.c.bf16 %v876_v61, %v875_v60  ;;  %v878_v22 = vld [vmem:[%s18114_s29 + $0x18] sm:$0xff]  ;;  %v618_v24 = vld [vmem:[#allocation2 + $0x48] sm:$0xff]  ;;  %v879_v26 = vld [vmem:[%s18114_s29 + $0x20] sm:$0xff] }
 0x2cf   :  { %12999 = vmatprep.subr.bf16.mxu1 %v12998_v33  ;;  %v615_v23 = vld [vmem:[#allocation2 + $0x30] sm:$0xff]  ;;  %v13026_v25 = vpack.c.bf16 %v878_v22, %v877_v9  ;;  %v880_v27 = vld [vmem:[%s18114_s29 + $0x28] sm:$0xff]  ;;  %v620_v29 = vld [vmem:[#allocation2 + $0x58] sm:$0xff] }
 0x2d0   :  { %12971 = vmatpush1.bf16.msra.mxu0 %v16319_v13  ;;  %v617_v28 = vld [vmem:[#allocation2 + $0x40] sm:$0xff]  ;;  %v881_v34 = vld [vmem:[%s18114_s29 + $0x30] sm:$0xff]  ;;  %v882_v35 = vld [vmem:[%s18114_s29 + $0x38] sm:$0xff] }
 0x2d1   :  { %12972 = vmatprep.subr.bf16.mxu0 %v15800_v0  ;;  %v622_v40 = vld [vmem:[#allocation2 + $0x68] sm:$0xff]  ;;  %v884_v41 = vld [vmem:[%s18114_s29 + $0x48] sm:$0xff]  ;;  %v624_v46 = vld [vmem:[#allocation2 + $0x78] sm:$0xff] }
 0x2d2   :  { %13001 = vmatpush3.bf16.msra.mxu1 %v12998_v33  ;;  %v13030_v33 = vpack.c.bf16 %v880_v27, %v879_v26  ;;  %v886_v47 = vld [vmem:[%s18114_s29 + $0x58] sm:$0xff]  ;;  %v626_v50 = vld [vmem:[#allocation2 + $0x88] sm:$0xff]  ;;  %v888_v51 = vld [vmem:[%s18114_s29 + $0x68] sm:$0xff] }
 0x2d3   :  { %13003 = vmatprep.subr.bf16.mxu1 %v13002_v39  ;;  %v631_v55 = vld [vmem:[#allocation2 + $0xb0] sm:$0xff]  ;;  %v638_v56 = vld [vmem:[#allocation2 + $0xe8] sm:$0xff]  ;;  %v645_v60 = vld [vmem:[#allocation2 + $0x120] sm:$0xff] }
 0x2d4   :  { %12974 = vmatpush1.bf16.msra.mxu0 %v16331_v16  ;;  %v648_v61 = vld [vmem:[#allocation2 + $0x138] sm:$0xff] }
 0x2d5   :  { %12975 = vmatprep.subr.bf16.mxu0 %v15800_v0 }
 0x2d6   :  { %13005 = vmatpush3.bf16.msra.mxu1 %v13002_v39  ;;  %v619_v39 = vld [vmem:[#allocation2 + $0x50] sm:$0xff] }
 0x2d7   :  { %13007 = vmatprep.subr.bf16.mxu1 %v13006_v45 }
 0x2d8   :  { %12977 = vmatpush1.bf16.msra.mxu0 %v16343_v19 }
 0x2d9   :  { %12978 = vmatprep.subr.bf16.mxu0 %v15800_v0 }
 0x2da   :  { %13009 = vmatpush3.bf16.msra.mxu1 %v13006_v45  ;;  %v621_v45 = vld [vmem:[#allocation2 + $0x60] sm:$0xff] }
 0x2db   :  { %13011 = vmatprep.subr.bf16.mxu1 %v13010_v49 }
 0x2dc   :  { %12980 = vmatpush1.bf16.msra.mxu0 %v16361_v30 }
 0x2dd   :  { %12981 = vmatprep.subr.bf16.mxu0 %v15800_v0 }
 0x2de   :  { %13013 = vmatpush3.bf16.msra.mxu1 %v13010_v49  ;;  %v623_v49 = vld [vmem:[#allocation2 + $0x70] sm:$0xff] }
 0x2df   :  { %13015 = vmatprep.subr.bf16.mxu1 %v13014_v54 }
 0x2e0   :  { %12983 = vmatpush1.bf16.msra.mxu0 %v16375_v36 }
 0x2e1   :  { %12984 = vmatprep.subr.bf16.mxu0 %v15800_v0 }
 0x2e2   :  { %13017 = vmatpush3.bf16.msra.mxu1 %v13014_v54  ;;  %v630_v54 = vld [vmem:[#allocation2 + $0xa8] sm:$0xff] }
 0x2e3   :  { %13019 = vmatprep.subr.bf16.mxu1 %v13018_v59 }
 0x2e4   :  { %12986 = vmatpush1.bf16.msra.mxu0 %v16389_v42 }
 0x2e5   :  { %12987 = vmatprep.subr.bf16.mxu0 %v15800_v0 }
 0x2e6   :  { %13021 = vmatpush3.bf16.msra.mxu1 %v13018_v59  ;;  %v646_v59 = vld [vmem:[#allocation2 + $0x128] sm:$0xff] }
 0x2e7   :  { %13023 = vmatprep.subr.bf16.mxu1 %v13022_v1 }
 0x2e8   :  { %12989 = vmatpush1.bf16.msra.mxu0 %v16403_v48 }
 0x2e9   :  { %13116 = vmatprep.subr.bf16.mxu0 %v15800_v0  ;;  %11612 = vmatmul.mubr.f32.vlgmr.msra.gmra.mrb[0].mxu1 %v16280_v2  ;;  %v13034_v2 = vpack.c.bf16 %v882_v35, %v881_v34 }
 0x2ea   :  { %11614 = vmatprep.mubr.f32.mxu1 %v16283_v3  ;;  %13025 = vmatpush3.bf16.msra.mxu1 %v13022_v1  ;;  %v883_v3 = vld [vmem:[%s18114_s29 + $0x40] sm:$0xff]  ;;  %v890_v1 = vld [vmem:[%s18114_s29 + $0x78] sm:$0xff] }
 0x2eb   :  { %775 = vmatmul.mubr.f32.vlgmr.msra.gmra.mrb[0].mxu0 %v609_v52  ;;  %13027 = vmatprep.subr.bf16.mxu1 %v13026_v25  ;;  %v625_v52 = vld [vmem:[#allocation2 + $0x80] sm:$0xff] }
 0x2ec   :  { %10481 = vmatprep.mubr.msk.f32.mxu0 %vm649_vm0, %v612_v53  ;;  %v628_v53 = vld [vmem:[#allocation2 + $0x98] sm:$0xff] }
 0x2ed   :  { %11615 = vmatmul.mubr.f32.gmra.mrb[2].mxu1 %v16289_v5  ;;  %v13038_v5 = vpack.c.bf16 %v884_v41, %v883_v3  ;;  %v10536_v3 = vld [vmem:[%s18114_s29 + $0x100] sm:$0xff]  ;;  %v10537_v41 = vld [vmem:[%s18114_s29 + $0x108] sm:$0xff] }
 0x2ee   :  { %11617 = vmatprep.mubr.f32.mxu1 %v16298_v7  ;;  %13029 = vmatpush3.bf16.msra.mxu1 %v13026_v25  ;;  %v885_v7 = vld [vmem:[%s18114_s29 + $0x50] sm:$0xff] }
 0x2ef   :  { %780 = vmatmul.mubr.f32.gmra.mrb[2].mxu0 %v611_v57  ;;  %13031 = vmatprep.subr.bf16.mxu1 %v13030_v33  ;;  %v639_v57 = vld [vmem:[#allocation2 + $0xf0] sm:$0xff] }
 0x2f0   :  { %10482 = vmatprep.mubr.msk.f32.mxu0 %vm649_vm0, %v614_v58  ;;  %v644_v58 = vld [vmem:[#allocation2 + $0x118] sm:$0xff] }
 0x2f1   :  { %11618 = vmatmul.mubr.f32.gmra.mrb[4].mxu1 %v16301_v8  ;;  %v13042_v8 = vpack.c.bf16 %v886_v47, %v885_v7 }
 0x2f2   :  { %11620 = vmatprep.mubr.f32.mxu1 %v16311_v11  ;;  %13033 = vmatpush3.bf16.msra.mxu1 %v13030_v33  ;;  %v887_v11 = vld [vmem:[%s18114_s29 + $0x60] sm:$0xff] }
 0x2f3   :  { %785 = vmatmul.mubr.f32.gmra.mrb[4].mxu0 %v613_v62  ;;  %13035 = vmatprep.subr.bf16.mxu1 %v13034_v2  ;;  %v647_v62 = vld [vmem:[#allocation2 + $0x130] sm:$0xff] }
 0x2f4   :  { %10483 = vmatprep.mubr.msk.f32.mxu0 %vm649_vm0, %v616_v63  ;;  %v889_v63 = vld [vmem:[%s18114_s29 + $0x70] sm:$0xff] }
 0x2f5   :  { %11621 = vmatmul.mubr.f32.gmra.mrb[6].mxu1 %v16314_v12  ;;  %v13046_v12 = vpack.c.bf16 %v888_v51, %v887_v11  ;;  %v13050_v9 = vpack.c.bf16 %v890_v1, %v889_v63  ;;  %v10545_v63 = vld [vmem:[%s18114_s29 + $0x148] sm:$0xff]  ;;  %v1245_v1 = vld [vmem:[#allocation2 + $0x2b0] sm:$0xff] }
 0x2f6   :  { %11623 = vmatprep.mubr.f32.mxu1 %v16323_v14  ;;  %13037 = vmatpush3.bf16.msra.mxu1 %v13034_v2  ;;  %v627_v14 = vld [vmem:[#allocation2 + $0x90] sm:$0xff] }
 0x2f7   :  { %790 = vmatmul.mubr.f32.gmra.mrb[6].mxu0 %v615_v23  ;;  %13039 = vmatprep.subr.bf16.mxu1 %v13038_v5 }
 0x2f8   :  { %10484 = vmatprep.mubr.msk.f32.mxu0 %vm649_vm0, %v618_v24 }
 0x2f9   :  { %11624 = vmatmul.mubr.f32.gmra.mrb[8].mxu1 %v16326_v15  ;;  %v629_v15 = vld [vmem:[#allocation2 + $0xa0] sm:$0xff] }
 0x2fa   :  { %11626 = vmatprep.mubr.f32.mxu1 %v16335_v17  ;;  %13041 = vmatpush3.bf16.msra.mxu1 %v13038_v5  ;;  %v632_v17 = vld [vmem:[#allocation2 + $0xb8] sm:$0xff] }
 0x2fb   :  { %795 = vmatmul.mubr.f32.gmra.mrb[8].mxu0 %v617_v28  ;;  %13043 = vmatprep.subr.bf16.mxu1 %v13042_v8 }
 0x2fc   :  { %10485 = vmatprep.mubr.msk.f32.mxu0 %vm649_vm0, %v620_v29 }
 0x2fd   :  { %11627 = vmatmul.mubr.f32.gmra.mrb[10].mxu1 %v16338_v18  ;;  %v634_v18 = vld [vmem:[#allocation2 + $0xc8] sm:$0xff] }
 0x2fe   :  { %11629 = vmatprep.mubr.f32.mxu1 %v16346_v20  ;;  %13045 = vmatpush3.bf16.msra.mxu1 %v13042_v8  ;;  %v633_v20 = vld [vmem:[#allocation2 + $0xc0] sm:$0xff] }
 0x2ff   :  { %800 = vmatmul.mubr.f32.gmra.mrb[10].mxu0 %v619_v39  ;;  %13047 = vmatprep.subr.bf16.mxu1 %v13046_v12 }
 0x300   :  { %10486 = vmatprep.mubr.msk.f32.mxu0 %vm649_vm0, %v622_v40 }
 0x301   :  { %11630 = vmatmul.mubr.f32.gmra.mrb[12].mxu1 %v16349_v21  ;;  %v636_v21 = vld [vmem:[#allocation2 + $0xd8] sm:$0xff] }
 0x302   :  { %11632 = vmatprep.mubr.f32.mxu1 %v16365_v31  ;;  %13049 = vmatpush3.bf16.msra.mxu1 %v13046_v12  ;;  %v635_v31 = vld [vmem:[#allocation2 + $0xd0] sm:$0xff] }
 0x303   :  { %805 = vmatmul.mubr.f32.gmra.mrb[12].mxu0 %v621_v45  ;;  %13051 = vmatprep.subr.bf16.mxu1 %v13050_v9  ;;  %v13084_v45 = vpack.c.bf16 %v10537_v41, %v10536_v3  ;;  %v1259_v3 = vld [vmem:[#allocation2 + $0x320] sm:$0xff]  ;;  %v1262_v41 = vld [vmem:[#allocation2 + $0x338] sm:$0xff] }
 0x304   :  { %10487 = vmatprep.mubr.msk.f32.mxu0 %vm649_vm0, %v624_v46 }
 0x305   :  { %11633 = vmatmul.mubr.f32.gmra.mrb[14].mxu1 %v16368_v32  ;;  %v637_v32 = vld [vmem:[#allocation2 + $0xe0] sm:$0xff] }
 0x306   :  { %11635 = vmatprep.mubr.f32.mxu1 %v16379_v37  ;;  %v640_v37 = vld [vmem:[#allocation2 + $0xf8] sm:$0xff]  ;;  %13053 = vmatpush3.bf16.msra.mxu1 %v13050_v9  ;;  %v1248_v9 = vld [vmem:[#allocation2 + $0x2c8] sm:$0xff] }
 0x307   :  { %810 = vmatmul.mubr.f32.gmra.mrb[14].mxu0 %v623_v49  ;;  %13054 = vmatprep.subr.bf16.mxu1 %v15800_v0 }
 0x308   :  { %10488 = vmatprep.mubr.msk.f32.mxu0 %vm649_vm0, %v626_v50 }
 0x309   :  { %11636 = vmatmul.mubr.f32.gmra.mrb[16].mxu1 %v16382_v38  ;;  %v642_v38 = vld [vmem:[#allocation2 + $0x108] sm:$0xff] }
 0x30a   :  { %11638 = vmatprep.mubr.f32.mxu1 %v16393_v43  ;;  %v641_v43 = vld [vmem:[#allocation2 + $0x100] sm:$0xff] }
 0x30b   :  { %815 = vmatmul.mubr.f32.gmra.mrb[16].mxu0 %v625_v52 }
 0x30c   :  { %10489 = vmatprep.mubr.msk.f32.mxu0 %vm649_vm0, %v628_v53 }
 0x30d   :  { %11639 = vmatmul.mubr.f32.gmra.mrb[18].mxu1 %v16396_v44  ;;  %v643_v44 = vld [vmem:[#allocation2 + $0x110] sm:$0xff] }
 0x30f   :  { %820 = vmatmul.mubr.f32.gmra.mrb[18].mxu0 %v627_v14 }
 0x310   :  { %10490 = vmatprep.mubr.msk.f32.mxu0 %vm649_vm0, %v630_v54 }
 0x313   :  { %825 = vmatmul.mubr.f32.gmra.mrb[20].mxu0 %v629_v15  ;;  %v1240_v15 = vld [vmem:[#allocation2 + $0x288] sm:$0xff] }
 0x314   :  { %10491 = vmatprep.mubr.msk.f32.mxu0 %vm649_vm0, %v632_v17 }
 0x317   :  { %830 = vmatmul.mubr.f32.gmra.mrb[22].mxu0 %v631_v55  ;;  %v10538_v55 = vld [vmem:[%s18114_s29 + $0x110] sm:$0xff] }
 0x318   :  { %10492 = vmatprep.mubr.msk.f32.mxu0 %vm649_vm0, %v634_v18  ;;  %v10539_v18 = vld [vmem:[%s18114_s29 + $0x118] sm:$0xff] }
 0x31b   :  { %835 = vmatmul.mubr.f32.gmra.mrb[24].mxu0 %v633_v20 }
 0x31c   :  { %10493 = vmatprep.mubr.msk.f32.mxu0 %vm649_vm0, %v636_v21  ;;  %v1239_v21 = vld [vmem:[#allocation2 + $0x280] sm:$0xff] }
 0x31f   :  { %840 = vmatmul.mubr.f32.gmra.mrb[26].mxu0 %v635_v31  ;;  %v1242_v31 = vld [vmem:[#allocation2 + $0x298] sm:$0xff] }
 0x320   :  { %10494 = vmatprep.mubr.msk.f32.mxu0 %vm649_vm0, %v638_v56  ;;  %v13088_v56 = vpack.c.bf16 %v10539_v18, %v10538_v55 }
 0x323   :  { %845 = vmatmul.mubr.f32.gmra.mrb[28].mxu0 %v637_v32  ;;  %v10540_v32 = vld [vmem:[%s18114_s29 + $0x120] sm:$0xff] }
 0x324   :  { %10495 = vmatprep.mubr.msk.f32.mxu0 %vm649_vm0, %v640_v37  ;;  %v10541_v37 = vld [vmem:[%s18114_s29 + $0x128] sm:$0xff] }
 0x327   :  { %850 = vmatmul.mubr.f32.gmra.mrb[30].mxu0 %v639_v57  ;;  %v1241_v57 = vld [vmem:[#allocation2 + $0x290] sm:$0xff] }
 0x328   :  { %10496 = vmatprep.mubr.msk.f32.mxu0 %vm649_vm0, %v642_v38  ;;  %v1244_v38 = vld [vmem:[#allocation2 + $0x2a8] sm:$0xff] }
 0x32b   :  { %855 = vmatmul.mubr.f32.gmra.mrb[32].mxu0 %v641_v43  ;;  %v13092_v43 = vpack.c.bf16 %v10541_v37, %v10540_v32 }
 0x32c   :  { %10497 = vmatprep.mubr.msk.f32.mxu0 %vm649_vm0, %v644_v58  ;;  %v10542_v58 = vld [vmem:[%s18114_s29 + $0x130] sm:$0xff] }
 0x32f   :  { %860 = vmatmul.mubr.f32.gmra.mrb[34].mxu0 %v643_v44  ;;  %v10543_v44 = vld [vmem:[%s18114_s29 + $0x138] sm:$0xff] }
 0x330   :  { %10498 = vmatprep.mubr.msk.f32.mxu0 %vm649_vm0, %v646_v59  ;;  %v1243_v59 = vld [vmem:[#allocation2 + $0x2a0] sm:$0xff] }
 0x333   :  { %865 = vmatmul.mubr.f32.gmra.mrb[36].mxu0 %v645_v60  ;;  %v1246_v60 = vld [vmem:[#allocation2 + $0x2b8] sm:$0xff] }
 0x334   :  { %10499 = vmatprep.mubr.msk.f32.mxu0 %vm649_vm0, %v648_v61  ;;  %v13096_v61 = vpack.c.bf16 %v10543_v44, %v10542_v58 }
 0x337   :  { %870 = vmatmul.mubr.f32.gmra.mrb[38].mxu0 %v647_v62  ;;  %v10544_v62 = vld [vmem:[%s18114_s29 + $0x140] sm:$0xff] }
 0x3be   :  { %v776_v22 = vpop.f32.mrb[0].mxu0 }
 0x3bf   :  { %v778_v23 = vpop.f32.mrb[1].mxu0  ;;  %11673 = vmatprep.mubr.f32.mxu1 %v776_v22  ;;  %v13100_v22 = vpack.c.bf16 %v10545_v63, %v10544_v62 }
 0x3c0   :  { %v10546_v23 = vld [vmem:[%s18114_s29 + $0x150] sm:$0xff] }
 0x3c2   :  { %v781_v24 = vpop.f32.mrb[2].mxu0 }
 0x3c3   :  { %v783_v25 = vpop.f32.mrb[3].mxu0  ;;  %11674 = vmatmul.mubr.f32.vlgmr.msra.gmra.mrb[0].mxu1 %v781_v24  ;;  %v10547_v24 = vld [vmem:[%s18114_s29 + $0x158] sm:$0xff] }
 0x3c4   :  { %13056 = vmatpush1.bf16.msra.mxu1 %v16286_v4  ;;  %v1247_v25 = vld [vmem:[#allocation2 + $0x2c0] sm:$0xff] }
 0x3c5   :  { %13057 = vmatprep.subr.bf16.mxu1 %v15800_v0 }
 0x3c6   :  { %v786_v26 = vpop.f32.mrb[4].mxu0 }
 0x3c7   :  { %v788_v27 = vpop.f32.mrb[5].mxu0  ;;  %11676 = vmatprep.mubr.f32.mxu1 %v786_v26  ;;  %v1250_v26 = vld [vmem:[#allocation2 + $0x2d8] sm:$0xff] }
 0x3c8   :  { %13059 = vmatpush1.bf16.msra.mxu1 %v16294_v6  ;;  %v13104_v27 = vpack.c.bf16 %v10547_v24, %v10546_v23 }
 0x3c9   :  { %13060 = vmatprep.subr.bf16.mxu1 %v15800_v0 }
 0x3ca   :  { %v791_v28 = vpop.f32.mrb[6].mxu0 }
 0x3cb   :  { %v793_v29 = vpop.f32.mrb[7].mxu0  ;;  %11677 = vmatmul.mubr.f32.gmra.mrb[2].mxu1 %v791_v28  ;;  %v10548_v28 = vld [vmem:[%s18114_s29 + $0x160] sm:$0xff] }
 0x3cc   :  { %13062 = vmatpush1.bf16.msra.mxu1 %v16306_v10  ;;  %v10549_v29 = vld [vmem:[%s18114_s29 + $0x168] sm:$0xff] }
 0x3cd   :  { %13063 = vmatprep.subr.bf16.mxu1 %v15800_v0 }
 0x3ce   :  { %v796_v33 = vpop.f32.mrb[8].mxu0 }
 0x3cf   :  { %v798_v34 = vpop.f32.mrb[9].mxu0  ;;  %11679 = vmatprep.mubr.f32.mxu1 %v796_v33  ;;  %v1249_v33 = vld [vmem:[#allocation2 + $0x2d0] sm:$0xff] }
 0x3d0   :  { %13065 = vmatpush1.bf16.msra.mxu1 %v16319_v13  ;;  %v1252_v34 = vld [vmem:[#allocation2 + $0x2e8] sm:$0xff] }
 0x3d1   :  { %13066 = vmatprep.subr.bf16.mxu1 %v15800_v0 }
 0x3d2   :  { %v801_v4 = vpop.f32.mrb[10].mxu0 }
 0x3d3   :  { %v803_v35 = vpop.f32.mrb[11].mxu0  ;;  %11680 = vmatmul.mubr.f32.gmra.mrb[4].mxu1 %v801_v4  ;;  %v13108_v4 = vpack.c.bf16 %v10549_v29, %v10548_v28 }
 0x3d4   :  { %13068 = vmatpush1.bf16.msra.mxu1 %v16331_v16  ;;  %v1251_v35 = vld [vmem:[#allocation2 + $0x2e0] sm:$0xff] }
 0x3d5   :  { %13069 = vmatprep.subr.bf16.mxu1 %v15800_v0 }
 0x3d6   :  { %v806_v6 = vpop.f32.mrb[12].mxu0 }
 0x3d7   :  { %v808_v39 = vpop.f32.mrb[13].mxu0  ;;  %11682 = vmatprep.mubr.f32.mxu1 %v806_v6  ;;  %v1254_v6 = vld [vmem:[#allocation2 + $0x2f8] sm:$0xff] }
 0x3d8   :  { %13071 = vmatpush1.bf16.msra.mxu1 %v16343_v19  ;;  %v1253_v39 = vld [vmem:[#allocation2 + $0x2f0] sm:$0xff] }
 0x3d9   :  { %13072 = vmatprep.subr.bf16.mxu1 %v15800_v0 }
 0x3da   :  { %v811_v10 = vpop.f32.mrb[14].mxu0 }
 0x3db   :  { %v813_v13 = vpop.f32.mrb[15].mxu0  ;;  %11683 = vmatmul.mubr.f32.gmra.mrb[6].mxu1 %v811_v10  ;;  %v1256_v10 = vld [vmem:[#allocation2 + $0x308] sm:$0xff] }
 0x3dc   :  { %13074 = vmatpush1.bf16.msra.mxu1 %v16361_v30  ;;  %v1255_v13 = vld [vmem:[#allocation2 + $0x300] sm:$0xff] }
 0x3dd   :  { %13075 = vmatprep.subr.bf16.mxu1 %v15800_v0 }
 0x3de   :  { %v816_v40 = vpop.f32.mrb[16].mxu0 }
 0x3df   :  { %v818_v16 = vpop.f32.mrb[17].mxu0  ;;  %11685 = vmatprep.mubr.f32.mxu1 %v816_v40  ;;  %v1258_v40 = vld [vmem:[#allocation2 + $0x318] sm:$0xff] }
 0x3e0   :  { %13077 = vmatpush1.bf16.msra.mxu1 %v16375_v36  ;;  %v1257_v16 = vld [vmem:[#allocation2 + $0x310] sm:$0xff] }
 0x3e1   :  { %13078 = vmatprep.subr.bf16.mxu1 %v15800_v0 }
 0x3e2   :  { %v821_v2 = vpop.f32.mrb[18].mxu0 }
 0x3e3   :  { %v823_v19 = vpop.f32.mrb[19].mxu0  ;;  %11686 = vmatmul.mubr.f32.gmra.mrb[8].mxu1 %v821_v2  ;;  %v1260_v2 = vld [vmem:[#allocation2 + $0x328] sm:$0xff] }
 0x3e4   :  { %13080 = vmatpush1.bf16.msra.mxu1 %v16389_v42  ;;  %v1261_v19 = vld [vmem:[#allocation2 + $0x330] sm:$0xff] }
 0x3e5   :  { %13081 = vmatprep.subr.bf16.mxu1 %v15800_v0 }
 0x3e6   :  { %v826_v30 = vpop.f32.mrb[20].mxu0 }
 0x3e7   :  { %v828_v46 = vpop.f32.mrb[21].mxu0  ;;  %11688 = vmatprep.mubr.f32.mxu1 %v826_v30  ;;  %v1263_v30 = vld [vmem:[#allocation2 + $0x340] sm:$0xff] }
 0x3e8   :  { %13083 = vmatpush1.bf16.msra.mxu1 %v16403_v48  ;;  %v1266_v46 = vld [vmem:[#allocation2 + $0x358] sm:$0xff] }
 0x3e9   :  { %13085 = vmatprep.subr.bf16.mxu1 %v13084_v45 }
 0x3ea   :  { %v831_v5 = vpop.f32.mrb[22].mxu0 }
 0x3eb   :  { %v833_v36 = vpop.f32.mrb[23].mxu0  ;;  %11689 = vmatmul.mubr.f32.gmra.mrb[10].mxu1 %v831_v5  ;;  %v1265_v5 = vld [vmem:[#allocation2 + $0x350] sm:$0xff] }
 0x3ec   :  { %v1268_v36 = vld [vmem:[#allocation2 + $0x368] sm:$0xff] }
 0x3ee   :  { %v836_v7 = vpop.f32.mrb[24].mxu0 }
 0x3ef   :  { %v838_v47 = vpop.f32.mrb[25].mxu0  ;;  %11691 = vmatprep.mubr.f32.mxu1 %v836_v7  ;;  %v1267_v7 = vld [vmem:[#allocation2 + $0x360] sm:$0xff] }
 0x3f0   :  { %v1270_v47 = vld [vmem:[#allocation2 + $0x378] sm:$0xff] }
 0x3f2   :  { %v841_v49 = vpop.f32.mrb[26].mxu0 }
 0x3f3   :  { %v843_v50 = vpop.f32.mrb[27].mxu0  ;;  %11692 = vmatmul.mubr.f32.gmra.mrb[12].mxu1 %v841_v49  ;;  %v1269_v49 = vld [vmem:[#allocation2 + $0x370] sm:$0xff] }
 0x3f4   :  { %v1272_v50 = vld [vmem:[#allocation2 + $0x388] sm:$0xff] }
 0x3f6   :  { %v846_v8 = vpop.f32.mrb[28].mxu0 }
 0x3f7   :  { %v848_v42 = vpop.f32.mrb[29].mxu0  ;;  %11694 = vmatprep.mubr.f32.mxu1 %v846_v8  ;;  %v1271_v8 = vld [vmem:[#allocation2 + $0x380] sm:$0xff] }
 0x3f8   :  { %v1274_v42 = vld [vmem:[#allocation2 + $0x398] sm:$0xff] }
 0x3fa   :  { %v851_v11 = vpop.f32.mrb[30].mxu0 }
 0x3fb   :  { %v853_v51 = vpop.f32.mrb[31].mxu0  ;;  %11695 = vmatmul.mubr.f32.gmra.mrb[14].mxu1 %v851_v11  ;;  %v1273_v11 = vld [vmem:[#allocation2 + $0x390] sm:$0xff] }
 0x3fc   :  { %v1276_v51 = vld [vmem:[#allocation2 + $0x3a8] sm:$0xff] }
 0x3fe   :  { %v856_v52 = vpop.f32.mrb[32].mxu0 }
 0x3ff   :  { %v858_v48 = vpop.f32.mrb[33].mxu0  ;;  %11697 = vmatprep.mubr.f32.mxu1 %v856_v52  ;;  %v1275_v52 = vld [vmem:[#allocation2 + $0x3a0] sm:$0xff] }
 0x400   :  { %v1278_v48 = vld [vmem:[#allocation2 + $0x3b8] sm:$0xff] }
 0x402   :  { %v861_v53 = vpop.f32.mrb[34].mxu0 }
 0x403   :  { %v863_v12 = vpop.f32.mrb[35].mxu0  ;;  %11698 = vmatmul.mubr.f32.gmra.mrb[16].mxu1 %v861_v53  ;;  %v1277_v53 = vld [vmem:[#allocation2 + $0x3b0] sm:$0xff] }
 0x404   :  { %v10550_v12 = vld [vmem:[%s18114_s29 + $0x170] sm:$0xff] }
 0x406   :  { %v866_v14 = vpop.f32.mrb[36].mxu0 }
 0x407   :  { %v868_v54 = vpop.f32.mrb[37].mxu0  ;;  %11700 = vmatprep.mubr.f32.mxu1 %v866_v14  ;;  %v10551_v14 = vld [vmem:[%s18114_s29 + $0x178] sm:$0xff] }
 0x408   :  { %v13112_v54 = vpack.c.bf16 %v10551_v14, %v10550_v12 }
 0x40a   :  { %v871_v17 = vpop.f32.mrb[38].mxu0 }
 0x40b   :  { %v873_v20 = vpop.f32.mrb[39].mxu0  ;;  %11701 = vmatmul.mubr.f32.gmra.mrb[18].mxu1 %v871_v17 }
 0x40c   :  { %10516 = vmatprep.mubr.msk.f32.mxu1 %vm649_vm0, %v1240_v15 }
 0x40f   :  { %1404 = vmatmul.mubr.f32.vlgmr.msra.gmra.mrb[20].mxu1 %v1239_v21 }
 0x410   :  { %10517 = vmatprep.mubr.msk.f32.mxu1 %vm649_vm0, %v1242_v31  ;;  %13087 = vmatpush3.bf16.msra.mxu1 %v13084_v45  ;;  %v1264_v45 = vld [vmem:[#allocation2 + $0x348] sm:$0xff] }
 0x411   :  { %13089 = vmatprep.subr.bf16.mxu1 %v13088_v56 }
 0x413   :  { %1409 = vmatmul.mubr.f32.gmra.mrb[22].mxu1 %v1241_v57 }
 0x414   :  { %10518 = vmatprep.mubr.msk.f32.mxu1 %vm649_vm0, %v1244_v38  ;;  %13091 = vmatpush3.bf16.msra.mxu1 %v13088_v56 }
 0x415   :  { %13093 = vmatprep.subr.bf16.mxu1 %v13092_v43 }
 0x417   :  { %1414 = vmatmul.mubr.f32.gmra.mrb[24].mxu1 %v1243_v59 }
 0x418   :  { %10519 = vmatprep.mubr.msk.f32.mxu1 %vm649_vm0, %v1246_v60  ;;  %13095 = vmatpush3.bf16.msra.mxu1 %v13092_v43 }
 0x419   :  { %13097 = vmatprep.subr.bf16.mxu1 %v13096_v61 }
 0x41b   :  { %1419 = vmatmul.mubr.f32.gmra.mrb[26].mxu1 %v1245_v1 }
 0x41c   :  { %10520 = vmatprep.mubr.msk.f32.mxu1 %vm649_vm0, %v1248_v9  ;;  %13099 = vmatpush3.bf16.msra.mxu1 %v13096_v61 }
 0x41d   :  { %13101 = vmatprep.subr.bf16.mxu1 %v13100_v22 }
 0x41f   :  { %1424 = vmatmul.mubr.f32.gmra.mrb[28].mxu1 %v1247_v25 }
 0x420   :  { %10521 = vmatprep.mubr.msk.f32.mxu1 %vm649_vm0, %v1250_v26  ;;  %13103 = vmatpush3.bf16.msra.mxu1 %v13100_v22 }
 0x421   :  { %13105 = vmatprep.subr.bf16.mxu1 %v13104_v27 }
 0x423   :  { %1429 = vmatmul.mubr.f32.gmra.mrb[30].mxu1 %v1249_v33 }
 0x424   :  { %10522 = vmatprep.mubr.msk.f32.mxu1 %vm649_vm0, %v1252_v34  ;;  %13107 = vmatpush3.bf16.msra.mxu1 %v13104_v27 }
 0x425   :  { %13109 = vmatprep.subr.bf16.mxu1 %v13108_v4 }
 0x427   :  { %1434 = vmatmul.mubr.f32.gmra.mrb[32].mxu1 %v1251_v35 }
 0x428   :  { %10523 = vmatprep.mubr.msk.f32.mxu1 %vm649_vm0, %v1254_v6  ;;  %13111 = vmatpush3.bf16.msra.mxu1 %v13108_v4 }
 0x429   :  { %13113 = vmatprep.subr.bf16.mxu1 %v13112_v54 }
 0x42b   :  { %1439 = vmatmul.mubr.f32.gmra.mrb[34].mxu1 %v1253_v39 }
 0x42c   :  { %10524 = vmatprep.mubr.msk.f32.mxu1 %vm649_vm0, %v1256_v10  ;;  %13115 = vmatpush3.bf16.msra.mxu1 %v13112_v54 }
 0x42d   :  { %13210 = vmatprep.subr.bf16.mxu1 %v15800_v0 }
 0x42f   :  { %1444 = vmatmul.mubr.f32.gmra.mrb[36].mxu1 %v1255_v13 }
 0x430   :  { %10525 = vmatprep.mubr.msk.f32.mxu1 %vm649_vm0, %v1258_v40 }
 0x433   :  { %1449 = vmatmul.mubr.f32.gmra.mrb[38].mxu1 %v1257_v16 }
 0x434   :  { %10526 = vmatprep.mubr.msk.f32.mxu1 %vm649_vm0, %v1260_v2  ;;  %v1777_v2 = vld [vmem:[#allocation7 + $0x8] sm:$0xff] }
 0x435   :  { %10554 = vmatprep.mubr.msk.f32.mxu0 %vm649_vm0, %v1777_v2 }
 0x437   :  { %1454 = vmatmul.mubr.f32.gmra.mrb[40].mxu1 %v1259_v3  ;;  %v2406_v3 = vld [vmem:[#allocation7 + $0x288] sm:$0xff] }
 0x438   :  { %10527 = vmatprep.mubr.msk.f32.mxu1 %vm649_vm0, %v1262_v41  ;;  %v16525_v41 = vld [vmem:[#allocation4] ss:$0 sm:$0xff] }
 0x43b   :  { %1459 = vmatmul.mubr.f32.gmra.mrb[42].mxu1 %v1261_v19 }
 0x43c   :  { %10528 = vmatprep.mubr.msk.f32.mxu1 %vm649_vm0, %v1264_v45  ;;  %v16527_v45 = vld [vmem:[#allocation4 + $0x1] ss:$0 sm:$0xff] }
 0x43f   :  { %1464 = vmatmul.mubr.f32.gmra.mrb[44].mxu1 %v1263_v30 }
 0x440   :  { %10529 = vmatprep.mubr.msk.f32.mxu1 %vm649_vm0, %v1266_v46 }
 0x443   :  { %1469 = vmatmul.mubr.f32.gmra.mrb[46].mxu1 %v1265_v5 }
 0x444   :  { %10530 = vmatprep.mubr.msk.f32.mxu1 %vm649_vm0, %v1268_v36 }
 0x447   :  { %1474 = vmatmul.mubr.f32.gmra.mrb[48].mxu1 %v1267_v7 }
 0x448   :  { %10531 = vmatprep.mubr.msk.f32.mxu1 %vm649_vm0, %v1270_v47 }
 0x44b   :  { %1479 = vmatmul.mubr.f32.gmra.mrb[50].mxu1 %v1269_v49 }
 0x44c   :  { %10532 = vmatprep.mubr.msk.f32.mxu1 %vm649_vm0, %v1272_v50 }
 0x44f   :  { %1484 = vmatmul.mubr.f32.gmra.mrb[52].mxu1 %v1271_v8 }
 0x450   :  { %10533 = vmatprep.mubr.msk.f32.mxu1 %vm649_vm0, %v1274_v42 }
 0x453   :  { %1489 = vmatmul.mubr.f32.gmra.mrb[54].mxu1 %v1273_v11 }
 0x454   :  { %10534 = vmatprep.mubr.msk.f32.mxu1 %vm649_vm0, %v1276_v51 }
 0x457   :  { %1494 = vmatmul.mubr.f32.gmra.mrb[56].mxu1 %v1275_v52 }
 0x458   :  { %10535 = vmatprep.mubr.msk.f32.mxu1 %vm649_vm0, %v1278_v48 }
 0x45b   :  { %1499 = vmatmul.mubr.f32.gmra.mrb[58].mxu1 %v1277_v53 }
 0x4e2   :  { %v1405_v15 = vpop.f32.mrb[20].mxu1 }
 0x4e3   :  { %v1407_v17 = vpop.f32.mrb[21].mxu1  ;;  %11735 = vmatprep.mubr.f32.mxu1 %v1405_v15 }
 0x4e6   :  { %v1410_v55 = vpop.f32.mrb[22].mxu1 }
 0x4e7   :  { %v1412_v18 = vpop.f32.mrb[23].mxu1  ;;  %11736 = vmatmul.mubr.f32.vlgmr.msra.gmra.mrb[0].mxu1 %v1410_v55 }
 0x4ea   :  { %v1415_v20 = vpop.f32.mrb[24].mxu1 }
 0x4eb   :  { %v1417_v21 = vpop.f32.mrb[25].mxu1  ;;  %11738 = vmatprep.mubr.f32.mxu1 %v1415_v20 }
 0x4ee   :  { %v1420_v31 = vpop.f32.mrb[26].mxu1 }
 0x4ef   :  { %v1422_v56 = vpop.f32.mrb[27].mxu1  ;;  %11739 = vmatmul.mubr.f32.gmra.mrb[2].mxu1 %v1420_v31 }
 0x4f2   :  { %v1425_v32 = vpop.f32.mrb[28].mxu1 }
 0x4f3   :  { %v1427_v37 = vpop.f32.mrb[29].mxu1  ;;  %11741 = vmatprep.mubr.f32.mxu1 %v1425_v32 }
 0x4f6   :  { %v1430_v57 = vpop.f32.mrb[30].mxu1 }
 0x4f7   :  { %v1432_v38 = vpop.f32.mrb[31].mxu1  ;;  %11742 = vmatmul.mubr.f32.gmra.mrb[4].mxu1 %v1430_v57 }
 0x4fa   :  { %v1435_v43 = vpop.f32.mrb[32].mxu1 }
 0x4fb   :  { %v1437_v58 = vpop.f32.mrb[33].mxu1  ;;  %11744 = vmatprep.mubr.f32.mxu1 %v1435_v43 }
 0x4fe   :  { %v1440_v44 = vpop.f32.mrb[34].mxu1 }
 0x4ff   :  { %v1442_v59 = vpop.f32.mrb[35].mxu1  ;;  %11745 = vmatmul.mubr.f32.gmra.mrb[6].mxu1 %v1440_v44 }
 0x502   :  { %v1445_v60 = vpop.f32.mrb[36].mxu1 }
 0x503   :  { %v1447_v61 = vpop.f32.mrb[37].mxu1  ;;  %11747 = vmatprep.mubr.f32.mxu1 %v1445_v60 }
 0x506   :  { %v1450_v62 = vpop.f32.mrb[38].mxu1 }
 0x507   :  { %v1452_v63 = vpop.f32.mrb[39].mxu1  ;;  %11748 = vmatmul.mubr.f32.gmra.mrb[8].mxu1 %v1450_v62 }
 0x50a   :  { %v1455_v1 = vpop.f32.mrb[40].mxu1 }
 0x50b   :  { %v1457_v9 = vpop.f32.mrb[41].mxu1  ;;  %11750 = vmatprep.mubr.f32.mxu1 %v1455_v1 }
 0x50e   :  { %v1460_v22 = vpop.f32.mrb[42].mxu1 }
 0x50f   :  { %v1462_v23 = vpop.f32.mrb[43].mxu1  ;;  %11751 = vmatmul.mubr.f32.gmra.mrb[10].mxu1 %v1460_v22 }
 0x512   :  { %v1465_v24 = vpop.f32.mrb[44].mxu1 }
 0x513   :  { %v1467_v25 = vpop.f32.mrb[45].mxu1  ;;  %11753 = vmatprep.mubr.f32.mxu1 %v1465_v24 }
 0x516   :  { %v1470_v26 = vpop.f32.mrb[46].mxu1 }
 0x517   :  { %v1472_v27 = vpop.f32.mrb[47].mxu1  ;;  %11754 = vmatmul.mubr.f32.gmra.mrb[12].mxu1 %v1470_v26 }
 0x51a   :  { %v1475_v28 = vpop.f32.mrb[48].mxu1 }
 0x51b   :  { %v1477_v29 = vpop.f32.mrb[49].mxu1  ;;  %11756 = vmatprep.mubr.f32.mxu1 %v1475_v28 }
 0x51e   :  { %v1480_v33 = vpop.f32.mrb[50].mxu1 }
 0x51f   :  { %v1482_v34 = vpop.f32.mrb[51].mxu1  ;;  %11757 = vmatmul.mubr.f32.gmra.mrb[14].mxu1 %v1480_v33 }
 0x522   :  { %v1485_v4 = vpop.f32.mrb[52].mxu1 }
 0x523   :  { %v1487_v35 = vpop.f32.mrb[53].mxu1  ;;  %11759 = vmatprep.mubr.f32.mxu1 %v1485_v4 }
 0x526   :  { %v1490_v6 = vpop.f32.mrb[54].mxu1 }
 0x527   :  { %v1492_v39 = vpop.f32.mrb[55].mxu1  ;;  %11760 = vmatmul.mubr.f32.gmra.mrb[16].mxu1 %v1490_v6 }
 0x52a   :  { %v1495_v10 = vpop.f32.mrb[56].mxu1 }
 0x52b   :  { %v1497_v13 = vpop.f32.mrb[57].mxu1  ;;  %11762 = vmatprep.mubr.f32.mxu1 %v1495_v10 }
 0x52e   :  { %v1500_v40 = vpop.f32.mrb[58].mxu1 }
 0x52f   :  { %v1502_v16 = vpop.f32.mrb[59].mxu1  ;;  %11763 = vmatmul.mubr.f32.gmra.mrb[18].mxu1 %v1500_v40 }
 0x530   :  { %10574 = vmatprep.mubr.msk.f32.mxu1 %vm649_vm0, %v2406_v3 }
 0x5ba   :  { %v11737_v19 = vpop.f32.mrb[0].mxu1 }
 0x5bb   :  { %v1712_v30 = vmul.f32 %v11737_v19, %v16525_v41  ;;  %v1587_v46 = vpop.f32.mrb[1].mxu1 }
 0x5bc   :  { %v1711_v5 = vmul.f32 %v16525_v41, %v1587_v46 }
 0x5bd   :  { %v1737_v36 = vadd.f32 %v16527_v45, %v1712_v30 }
 0x5be   :  { %v1736_v7 = vadd.f32 %v16527_v45, %v1711_v5 }
 0x5bf   :  { %v16533_v47 = vmax.f32 %v1737_v36, 0.0 }
 0x5c0   :  { %v16535_v49 = vmax.f32 %v1736_v7, 0.0 }
 0x5c2   :  { %v11740_v50 = vpop.f32.mrb[2].mxu1  ;;  %v13117_v8 = vpack.c.bf16 %v16533_v47, %v16535_v49 }
 0x5c3   :  { %v1714_v42 = vmul.f32 %v11740_v50, %v16525_v41  ;;  %v1597_v11 = vpop.f32.mrb[3].mxu1 }
 0x5c4   :  { %v1713_v51 = vmul.f32 %v16525_v41, %v1597_v11  ;;  %13118 = vmatpush1.bf16.msra.mxu0 %v13117_v8  ;;  %13212 = vmatpush1.bf16.msra.mxu1 %v13117_v8 }
 0x5c5   :  { %v1739_v52 = vadd.f32 %v16527_v45, %v1714_v42  ;;  %13119 = vmatprep.subr.bf16.mxu0 %v15800_v0  ;;  %13213 = vmatprep.subr.bf16.mxu1 %v15800_v0 }
 0x5c6   :  { %v1738_v48 = vadd.f32 %v16527_v45, %v1713_v51 }
 0x5c7   :  { %v16545_v53 = vmax.f32 %v1739_v52, 0.0 }
 0x5c8   :  { %v16547_v12 = vmax.f32 %v1738_v48, 0.0 }
 0x5ca   :  { %v11743_v14 = vpop.f32.mrb[4].mxu1  ;;  %v13120_v54 = vpack.c.bf16 %v16545_v53, %v16547_v12 }
 0x5cb   :  { %v1716_v15 = vmul.f32 %v11743_v14, %v16525_v41  ;;  %v1607_v17 = vpop.f32.mrb[5].mxu1 }
 0x5cc   :  { %v1715_v55 = vmul.f32 %v16525_v41, %v1607_v17  ;;  %13121 = vmatpush1.bf16.msra.mxu0 %v13120_v54  ;;  %13215 = vmatpush1.bf16.msra.mxu1 %v13120_v54 }
 0x5cd   :  { %v1741_v18 = vadd.f32 %v16527_v45, %v1716_v15  ;;  %13122 = vmatprep.subr.bf16.mxu0 %v15800_v0  ;;  %13216 = vmatprep.subr.bf16.mxu1 %v15800_v0 }
 0x5ce   :  { %v1740_v20 = vadd.f32 %v16527_v45, %v1715_v55 }
 0x5cf   :  { %v16557_v21 = vmax.f32 %v1741_v18, 0.0 }
 0x5d0   :  { %v16559_v31 = vmax.f32 %v1740_v20, 0.0 }
 0x5d2   :  { %v11746_v56 = vpop.f32.mrb[6].mxu1  ;;  %v13123_v32 = vpack.c.bf16 %v16557_v21, %v16559_v31 }
 0x5d3   :  { %v1718_v37 = vmul.f32 %v11746_v56, %v16525_v41  ;;  %v1617_v57 = vpop.f32.mrb[7].mxu1 }
 0x5d4   :  { %v1717_v38 = vmul.f32 %v16525_v41, %v1617_v57  ;;  %13124 = vmatpush1.bf16.msra.mxu0 %v13123_v32  ;;  %13218 = vmatpush1.bf16.msra.mxu1 %v13123_v32 }
 0x5d5   :  { %v1743_v43 = vadd.f32 %v16527_v45, %v1718_v37  ;;  %13125 = vmatprep.subr.bf16.mxu0 %v15800_v0  ;;  %13219 = vmatprep.subr.bf16.mxu1 %v15800_v0 }
 0x5d6   :  { %v1742_v58 = vadd.f32 %v16527_v45, %v1717_v38 }
 0x5d7   :  { %v16569_v44 = vmax.f32 %v1743_v43, 0.0 }
 0x5d8   :  { %v16571_v59 = vmax.f32 %v1742_v58, 0.0  ;;  %v2058_v58 = vld [vmem:[#allocation6 + $0x80] sm:$0xff] }
 0x5da   :  { %v11749_v60 = vpop.f32.mrb[8].mxu1  ;;  %v13126_v61 = vpack.c.bf16 %v16569_v44, %v16571_v59 }
 0x5db   :  { %v1720_v62 = vmul.f32 %v11749_v60, %v16525_v41  ;;  %v1627_v63 = vpop.f32.mrb[9].mxu1  ;;  %v2059_v60 = vld [vmem:[#allocation6 + $0x88] sm:$0xff] }
 0x5dc   :  { %v1719_v1 = vmul.f32 %v16525_v41, %v1627_v63  ;;  %13127 = vmatpush1.bf16.msra.mxu0 %v13126_v61  ;;  %13221 = vmatpush1.bf16.msra.mxu1 %v13126_v61  ;;  %v13146_v63 = vpack.c.bf16 %v2059_v60, %v2058_v58  ;;  %v1789_v58 = vld [vmem:[#allocation7 + $0x68] sm:$0xff] }
 0x5dd   :  { %v1745_v9 = vadd.f32 %v16527_v45, %v1720_v62  ;;  %13128 = vmatprep.subr.bf16.mxu0 %v15800_v0  ;;  %13222 = vmatprep.subr.bf16.mxu1 %v15800_v0  ;;  %v2418_v60 = vld [vmem:[#allocation7 + $0x2e8] sm:$0xff] }
 0x5de   :  { %v1744_v22 = vadd.f32 %v16527_v45, %v1719_v1  ;;  %v2060_v1 = vld [vmem:[#allocation6 + $0x90] sm:$0xff] }
 0x5df   :  { %v16581_v23 = vmax.f32 %v1745_v9, 0.0  ;;  %v2061_v9 = vld [vmem:[#allocation6 + $0x98] sm:$0xff] }
 0x5e0   :  { %v16583_v24 = vmax.f32 %v1744_v22, 0.0  ;;  %v1776_v22 = vld [vmem:[#allocation7] sm:$0xff] }
 0x5e2   :  { %v11752_v25 = vpop.f32.mrb[10].mxu1  ;;  %v13129_v26 = vpack.c.bf16 %v16581_v23, %v16583_v24 }
 0x5e3   :  { %v1722_v27 = vmul.f32 %v11752_v25, %v16525_v41  ;;  %v1637_v28 = vpop.f32.mrb[11].mxu1  ;;  %v2405_v25 = vld [vmem:[#allocation7 + $0x280] sm:$0xff] }
 0x5e4   :  { %v1721_v29 = vmul.f32 %v16525_v41, %v1637_v28  ;;  %13130 = vmatpush1.bf16.msra.mxu0 %v13129_v26  ;;  %13224 = vmatpush1.bf16.msra.mxu1 %v13129_v26  ;;  %v1779_v26 = vld [vmem:[#allocation7 + $0x18] sm:$0xff]  ;;  %v2062_v28 = vld [vmem:[#allocation6 + $0xa0] sm:$0xff] }
 0x5e5   :  { %v1747_v33 = vadd.f32 %v16527_v45, %v1722_v27  ;;  %13131 = vmatprep.subr.bf16.mxu0 %v15800_v0  ;;  %13225 = vmatprep.subr.bf16.mxu1 %v15800_v0  ;;  %v2408_v27 = vld [vmem:[#allocation7 + $0x298] sm:$0xff] }
 0x5e6   :  { %v1746_v34 = vadd.f32 %v16527_v45, %v1721_v29  ;;  %v2063_v29 = vld [vmem:[#allocation6 + $0xa8] sm:$0xff] }
 0x5e7   :  { %v16593_v4 = vmax.f32 %v1747_v33, 0.0  ;;  %v1778_v33 = vld [vmem:[#allocation7 + $0x10] sm:$0xff] }
 0x5e8   :  { %v16595_v35 = vmax.f32 %v1746_v34, 0.0  ;;  %v2407_v34 = vld [vmem:[#allocation7 + $0x290] sm:$0xff] }
 0x5ea   :  { %v11755_v6 = vpop.f32.mrb[12].mxu1  ;;  %v13132_v39 = vpack.c.bf16 %v16593_v4, %v16595_v35 }
 0x5eb   :  { %v1724_v10 = vmul.f32 %v11755_v6, %v16525_v41  ;;  %v1647_v13 = vpop.f32.mrb[13].mxu1  ;;  %v1781_v6 = vld [vmem:[#allocation7 + $0x28] sm:$0xff] }
 0x5ec   :  { %v1723_v40 = vmul.f32 %v16525_v41, %v1647_v13  ;;  %13133 = vmatpush1.bf16.msra.mxu0 %v13132_v39  ;;  %13227 = vmatpush1.bf16.msra.mxu1 %v13132_v39  ;;  %v2410_v39 = vld [vmem:[#allocation7 + $0x2a8] sm:$0xff]  ;;  %v2064_v13 = vld [vmem:[#allocation6 + $0xb0] sm:$0xff] }
 0x5ed   :  { %v1749_v16 = vadd.f32 %v16527_v45, %v1724_v10  ;;  %13134 = vmatprep.subr.bf16.mxu0 %v15800_v0  ;;  %13228 = vmatprep.subr.bf16.mxu1 %v15800_v0  ;;  %v13154_v10 = vpack.c.bf16 %v2063_v29, %v2062_v28  ;;  %v2042_v28 = vld [vmem:[#allocation6 + $0x8] sm:$0xff]  ;;  %v1790_v29 = vld [vmem:[#allocation7 + $0x70] sm:$0xff] }
 0x5ee   :  { %v1748_v2 = vadd.f32 %v16527_v45, %v1723_v40  ;;  %v2065_v40 = vld [vmem:[#allocation6 + $0xb8] sm:$0xff] }
 0x5ef   :  { %v16605_v3 = vmax.f32 %v1749_v16, 0.0  ;;  %v1780_v16 = vld [vmem:[#allocation7 + $0x20] sm:$0xff] }
 0x5f0   :  { %v16607_v19 = vmax.f32 %v1748_v2, 0.0  ;;  %v2409_v2 = vld [vmem:[#allocation7 + $0x2a0] sm:$0xff] }
 0x5f2   :  { %v11758_v30 = vpop.f32.mrb[14].mxu1  ;;  %v13135_v46 = vpack.c.bf16 %v16605_v3, %v16607_v19 }
 0x5f3   :  { %v1726_v5 = vmul.f32 %v11758_v30, %v16525_v41  ;;  %v1657_v36 = vpop.f32.mrb[15].mxu1  ;;  %v1783_v30 = vld [vmem:[#allocation7 + $0x38] sm:$0xff] }
 0x5f4   :  { %v1725_v7 = vmul.f32 %v16525_v41, %v1657_v36  ;;  %13136 = vmatpush1.bf16.msra.mxu0 %v13135_v46  ;;  %13230 = vmatpush1.bf16.msra.mxu1 %v13135_v46  ;;  %v2412_v46 = vld [vmem:[#allocation7 + $0x2b8] sm:$0xff]  ;;  %v2066_v36 = vld [vmem:[#allocation6 + $0xc0] sm:$0xff] }
 0x5f5   :  { %v1751_v50 = vadd.f32 %v16527_v45, %v1726_v5  ;;  %13137 = vmatprep.subr.bf16.mxu0 %v15800_v0  ;;  %13231 = vmatprep.subr.bf16.mxu1 %v15800_v0  ;;  %v13158_v5 = vpack.c.bf16 %v2065_v40, %v2064_v13  ;;  %v2421_v13 = vld [vmem:[#allocation7 + $0x300] sm:$0xff]  ;;  %v1795_v40 = vld [vmem:[#allocation7 + $0x98] sm:$0xff] }
 0x5f6   :  { %v1750_v8 = vadd.f32 %v16527_v45, %v1725_v7  ;;  %v2067_v7 = vld [vmem:[#allocation6 + $0xc8] sm:$0xff] }
 0x5f7   :  { %v16617_v42 = vmax.f32 %v1751_v50, 0.0  ;;  %v1782_v50 = vld [vmem:[#allocation7 + $0x30] sm:$0xff] }
 0x5f8   :  { %v16619_v11 = vmax.f32 %v1750_v8, 0.0  ;;  %v2411_v8 = vld [vmem:[#allocation7 + $0x2b0] sm:$0xff] }
 0x5fa   :  { %v11761_v51 = vpop.f32.mrb[16].mxu1  ;;  %v13138_v52 = vpack.c.bf16 %v16617_v42, %v16619_v11 }
 0x5fb   :  { %v1728_v48 = vmul.f32 %v11761_v51, %v16525_v41  ;;  %v1667_v14 = vpop.f32.mrb[17].mxu1  ;;  %v1785_v51 = vld [vmem:[#allocation7 + $0x48] sm:$0xff] }
 0x5fc   :  { %v1727_v54 = vmul.f32 %v16525_v41, %v1667_v14  ;;  %13139 = vmatpush1.bf16.msra.mxu0 %v13138_v52  ;;  %13233 = vmatpush1.bf16.msra.mxu1 %v13138_v52  ;;  %v2414_v52 = vld [vmem:[#allocation7 + $0x2c8] sm:$0xff]  ;;  %v2068_v14 = vld [vmem:[#allocation6 + $0xd0] sm:$0xff] }
 0x5fd   :  { %v1753_v15 = vadd.f32 %v16527_v45, %v1728_v48  ;;  %13140 = vmatprep.subr.bf16.mxu0 %v15800_v0  ;;  %13234 = vmatprep.subr.bf16.mxu1 %v15800_v0  ;;  %v13162_v48 = vpack.c.bf16 %v2067_v7, %v2066_v36  ;;  %v1796_v36 = vld [vmem:[#allocation7 + $0xa0] sm:$0xff] }
 0x5fe   :  { %v1752_v17 = vadd.f32 %v16527_v45, %v1727_v54  ;;  %v2069_v54 = vld [vmem:[#allocation6 + $0xd8] sm:$0xff]  ;;  %v2425_v7 = vld [vmem:[#allocation7 + $0x320] sm:$0xff] }
 0x5ff   :  { %v16629_v55 = vmax.f32 %v1753_v15, 0.0  ;;  %v1784_v15 = vld [vmem:[#allocation7 + $0x40] sm:$0xff] }
 0x600   :  { %v16631_v18 = vmax.f32 %v1752_v17, 0.0  ;;  %v2413_v17 = vld [vmem:[#allocation7 + $0x2c0] sm:$0xff] }
 0x602   :  { %v11764_v20 = vpop.f32.mrb[18].mxu1  ;;  %v13141_v56 = vpack.c.bf16 %v16629_v55, %v16631_v18 }
 0x603   :  { %v1730_v32 = vmul.f32 %v11764_v20, %v16525_v41  ;;  %v1677_v37 = vpop.f32.mrb[19].mxu1  ;;  %v1787_v20 = vld [vmem:[#allocation7 + $0x58] sm:$0xff] }
 0x604   :  { %v1729_v57 = vmul.f32 %v16525_v41, %v1677_v37  ;;  %13142 = vmatpush1.bf16.msra.mxu0 %v13141_v56  ;;  %13236 = vmatpush1.bf16.msra.mxu1 %v13141_v56  ;;  %v2416_v56 = vld [vmem:[#allocation7 + $0x2d8] sm:$0xff]  ;;  %v2070_v37 = vld [vmem:[#allocation6 + $0xe0] sm:$0xff] }
 0x605   :  { %v1755_v38 = vadd.f32 %v16527_v45, %v1730_v32  ;;  %13143 = vmatprep.subr.bf16.mxu0 %v15800_v0  ;;  %13237 = vmatprep.subr.bf16.mxu1 %v15800_v0  ;;  %v13166_v32 = vpack.c.bf16 %v2069_v54, %v2068_v14  ;;  %v2430_v14 = vld [vmem:[#allocation7 + $0x348] sm:$0xff]  ;;  %v1800_v54 = vld [vmem:[#allocation7 + $0xc0] sm:$0xff] }
 0x606   :  { %v1754_v43 = vadd.f32 %v16527_v45, %v1729_v57  ;;  %v13150_v45 = vpack.c.bf16 %v2061_v9, %v2060_v1  ;;  %v2071_v57 = vld [vmem:[#allocation6 + $0xe8] sm:$0xff]  ;;  %v2073_v1 = vld [vmem:[#allocation6 + $0xf8] sm:$0xff]  ;;  %v1788_v9 = vld [vmem:[#allocation7 + $0x60] sm:$0xff] }
 0x607   :  { %v16641_v61 = vmax.f32 %v1755_v38, 0.0  ;;  %v1786_v38 = vld [vmem:[#allocation7 + $0x50] sm:$0xff] }
 0x608   :  { %v16643_v62 = vmax.f32 %v1754_v43, 0.0  ;;  %v2415_v43 = vld [vmem:[#allocation7 + $0x2d0] sm:$0xff] }
 0x60a   :  { %v13144_v41 = vpack.c.bf16 %v16641_v61, %v16643_v62 }
 0x60c   :  { %13145 = vmatpush1.bf16.msra.mxu0 %v13144_v41  ;;  %13239 = vmatpush1.bf16.msra.mxu1 %v13144_v41  ;;  %v2072_v41 = vld [vmem:[#allocation6 + $0xf0] sm:$0xff] }
 0x60d   :  { %13147 = vmatprep.subr.bf16.mxu0 %v13146_v63  ;;  %13272 = vmatprep.subr.bf16.mxu1 %v15800_v0 }
 0x60f   :  { %1941 = vmatmul.mubr.f32.vlgmr.msra.gmra.mrb[40].mxu0 %v1776_v22  ;;  %2570 = vmatmul.mubr.f32.vlgmr.msra.gmra.mrb[60].mxu1 %v2405_v25  ;;  %v2417_v22 = vld [vmem:[#allocation7 + $0x2e0] sm:$0xff]  ;;  %v1791_v25 = vld [vmem:[#allocation7 + $0x78] sm:$0xff] }
 0x610   :  { %10555 = vmatprep.mubr.msk.f32.mxu0 %vm649_vm0, %v1779_v26  ;;  %10575 = vmatprep.mubr.msk.f32.mxu1 %vm649_vm0, %v2408_v27  ;;  %v2420_v26 = vld [vmem:[#allocation7 + $0x2f8] sm:$0xff]  ;;  %v13174_v27 = vpack.c.bf16 %v2073_v1, %v2072_v41  ;;  %v2435_v41 = vld [vmem:[#allocation7 + $0x370] sm:$0xff]  ;;  %v1809_v1 = vld [vmem:[#allocation7 + $0x108] sm:$0xff] }
 0x611   :  { %13149 = vmatpush3.bf16.msra.mxu0 %v13146_v63  ;;  %v13170_v63 = vpack.c.bf16 %v2071_v57, %v2070_v37  ;;  %v1805_v37 = vld [vmem:[#allocation7 + $0xe8] sm:$0xff] }
 0x612   :  { %13151 = vmatprep.subr.bf16.mxu0 %v13150_v45  ;;  %v2434_v57 = vld [vmem:[#allocation7 + $0x368] sm:$0xff] }
 0x613   :  { %1946 = vmatmul.mubr.f32.gmra.mrb[42].mxu0 %v1778_v33  ;;  %2575 = vmatmul.mubr.f32.gmra.mrb[62].mxu1 %v2407_v34  ;;  %v2419_v33 = vld [vmem:[#allocation7 + $0x2f0] sm:$0xff]  ;;  %v1793_v34 = vld [vmem:[#allocation7 + $0x88] sm:$0xff] }
 0x614   :  { %10556 = vmatprep.mubr.msk.f32.mxu0 %vm649_vm0, %v1781_v6  ;;  %10576 = vmatprep.mubr.msk.f32.mxu1 %vm649_vm0, %v2410_v39  ;;  %v2422_v6 = vld [vmem:[#allocation7 + $0x308] sm:$0xff] }
 0x615   :  { %13153 = vmatpush3.bf16.msra.mxu0 %v13150_v45  ;;  %v2041_v45 = vld [vmem:[#allocation6] sm:$0xff] }
 0x616   :  { %13155 = vmatprep.subr.bf16.mxu0 %v13154_v10  ;;  %v16662_v39 = vpack.c.bf16 %v2042_v28, %v2041_v45  ;;  %v1810_v45 = vld [vmem:[#allocation7 + $0x110] sm:$0xff] }
 0x617   :  { %1951 = vmatmul.mubr.f32.gmra.mrb[44].mxu0 %v1780_v16  ;;  %2580 = vmatmul.mubr.f32.gmra.mrb[64].mxu1 %v2409_v2  ;;  %v2424_v16 = vld [vmem:[#allocation7 + $0x318] sm:$0xff]  ;;  %v1794_v2 = vld [vmem:[#allocation7 + $0x90] sm:$0xff] }
 0x618   :  { %10557 = vmatprep.mubr.msk.f32.mxu0 %vm649_vm0, %v1783_v30  ;;  %10577 = vmatprep.mubr.msk.f32.mxu1 %vm649_vm0, %v2412_v46  ;;  %v2423_v30 = vld [vmem:[#allocation7 + $0x310] sm:$0xff]  ;;  %v1797_v46 = vld [vmem:[#allocation7 + $0xa8] sm:$0xff] }
 0x619   :  { %13157 = vmatpush3.bf16.msra.mxu0 %v13154_v10  ;;  %v1792_v10 = vld [vmem:[#allocation7 + $0x80] sm:$0xff]  ;;  %v2439_v28 = vld [vmem:[#allocation7 + $0x390] sm:$0xff] }
 0x61a   :  { %13159 = vmatprep.subr.bf16.mxu0 %v13158_v5 }
 0x61b   :  { %1956 = vmatmul.mubr.f32.gmra.mrb[46].mxu0 %v1782_v50  ;;  %2585 = vmatmul.mubr.f32.gmra.mrb[66].mxu1 %v2411_v8  ;;  %v1799_v50 = vld [vmem:[#allocation7 + $0xb8] sm:$0xff] }
 0x61c   :  { %10558 = vmatprep.mubr.msk.f32.mxu0 %vm649_vm0, %v1785_v51  ;;  %10578 = vmatprep.mubr.msk.f32.mxu1 %vm649_vm0, %v2414_v52  ;;  %v2428_v8 = vld [vmem:[#allocation7 + $0x338] sm:$0xff]  ;;  %v1798_v51 = vld [vmem:[#allocation7 + $0xb0] sm:$0xff] }
 0x61d   :  { %13161 = vmatpush3.bf16.msra.mxu0 %v13158_v5  ;;  %v2426_v5 = vld [vmem:[#allocation7 + $0x328] sm:$0xff]  ;;  %v2427_v52 = vld [vmem:[#allocation7 + $0x330] sm:$0xff] }
 0x61e   :  { %13163 = vmatprep.subr.bf16.mxu0 %v13162_v48 }
 0x61f   :  { %1961 = vmatmul.mubr.f32.gmra.mrb[48].mxu0 %v1784_v15  ;;  %2590 = vmatmul.mubr.f32.gmra.mrb[68].mxu1 %v2413_v17  ;;  %v2429_v15 = vld [vmem:[#allocation7 + $0x340] sm:$0xff]  ;;  %v1803_v17 = vld [vmem:[#allocation7 + $0xd8] sm:$0xff] }
 0x620   :  { %10559 = vmatprep.mubr.msk.f32.mxu0 %vm649_vm0, %v1787_v20  ;;  %10579 = vmatprep.mubr.msk.f32.mxu1 %vm649_vm0, %v2416_v56  ;;  %v2432_v20 = vld [vmem:[#allocation7 + $0x358] sm:$0xff]  ;;  %v1802_v56 = vld [vmem:[#allocation7 + $0xd0] sm:$0xff] }
 0x621   :  { %13165 = vmatpush3.bf16.msra.mxu0 %v13162_v48  ;;  %v1801_v48 = vld [vmem:[#allocation7 + $0xc8] sm:$0xff] }
 0x622   :  { %13167 = vmatprep.subr.bf16.mxu0 %v13166_v32 }
 0x623   :  { %1966 = vmatmul.mubr.f32.gmra.mrb[50].mxu0 %v1786_v38  ;;  %2595 = vmatmul.mubr.f32.gmra.mrb[70].mxu1 %v2415_v43  ;;  %v1804_v38 = vld [vmem:[#allocation7 + $0xe0] sm:$0xff] }
 0x624   :  { %10560 = vmatprep.mubr.msk.f32.mxu0 %vm649_vm0, %v1789_v58  ;;  %10580 = vmatprep.mubr.msk.f32.mxu1 %vm649_vm0, %v2418_v60  ;;  %v2433_v43 = vld [vmem:[#allocation7 + $0x360] sm:$0xff]  ;;  %v1807_v58 = vld [vmem:[#allocation7 + $0xf8] sm:$0xff] }
 0x625   :  { %13169 = vmatpush3.bf16.msra.mxu0 %v13166_v32  ;;  %v2431_v32 = vld [vmem:[#allocation7 + $0x350] sm:$0xff]  ;;  %v2436_v60 = vld [vmem:[#allocation7 + $0x378] sm:$0xff] }
 0x626   :  { %13171 = vmatprep.subr.bf16.mxu0 %v13170_v63 }
 0x627   :  { %1971 = vmatmul.mubr.f32.gmra.mrb[52].mxu0 %v1788_v9  ;;  %2600 = vmatmul.mubr.f32.gmra.mrb[72].mxu1 %v2417_v22  ;;  %v2438_v9 = vld [vmem:[#allocation7 + $0x388] sm:$0xff]  ;;  %v1808_v22 = vld [vmem:[#allocation7 + $0x100] sm:$0xff] }
 0x628   :  { %10561 = vmatprep.mubr.msk.f32.mxu0 %vm649_vm0, %v1791_v25  ;;  %10581 = vmatprep.mubr.msk.f32.mxu1 %vm649_vm0, %v2420_v26  ;;  %v2437_v25 = vld [vmem:[#allocation7 + $0x380] sm:$0xff]  ;;  %v1811_v26 = vld [vmem:[#allocation7 + $0x118] sm:$0xff] }
 0x629   :  { %13173 = vmatpush3.bf16.msra.mxu0 %v13170_v63  ;;  %v1806_v63 = vld [vmem:[#allocation7 + $0xf0] sm:$0xff] }
 0x62a   :  { %13175 = vmatprep.subr.bf16.mxu0 %v13174_v27 }
 0x62b   :  { %1976 = vmatmul.mubr.f32.gmra.mrb[54].mxu0 %v1790_v29  ;;  %2605 = vmatmul.mubr.f32.gmra.mrb[74].mxu1 %v2419_v33  ;;  %v1813_v29 = vld [vmem:[#allocation7 + $0x128] sm:$0xff] }
 0x62c   :  { %10562 = vmatprep.mubr.msk.f32.mxu0 %vm649_vm0, %v1793_v34  ;;  %10582 = vmatprep.mubr.msk.f32.mxu1 %vm649_vm0, %v2422_v6  ;;  %v2442_v33 = vld [vmem:[#allocation7 + $0x3a8] sm:$0xff]  ;;  %v1812_v34 = vld [vmem:[#allocation7 + $0x120] sm:$0xff] }
 0x62d   :  { %13177 = vmatpush3.bf16.msra.mxu0 %v13174_v27  ;;  %v2440_v27 = vld [vmem:[#allocation7 + $0x398] sm:$0xff]  ;;  %v2441_v6 = vld [vmem:[#allocation7 + $0x3a0] sm:$0xff] }
 0x62e   :  { %13179 = vmatprep.subr.bf16.mxu0 %v16662_v39 }
 0x62f   :  { %1981 = vmatmul.mubr.f32.gmra.mrb[56].mxu0 %v1792_v10  ;;  %2610 = vmatmul.mubr.f32.gmra.mrb[76].mxu1 %v2421_v13  ;;  %v1815_v10 = vld [vmem:[#allocation7 + $0x138] sm:$0xff] }
 0x630   :  { %10563 = vmatprep.mubr.msk.f32.mxu0 %vm649_vm0, %v1795_v40  ;;  %10583 = vmatprep.mubr.msk.f32.mxu1 %vm649_vm0, %v2424_v16  ;;  %v2444_v13 = vld [vmem:[#allocation7 + $0x3b8] sm:$0xff]  ;;  %v1814_v40 = vld [vmem:[#allocation7 + $0x130] sm:$0xff] }
 0x631   :  { %v2443_v16 = vld [vmem:[#allocation7 + $0x3b0] sm:$0xff] }
 0x633   :  { %1986 = vmatmul.mubr.f32.gmra.mrb[58].mxu0 %v1794_v2  ;;  %2615 = vmatmul.mubr.f32.gmra.mrb[78].mxu1 %v2423_v30  ;;  %v2043_v2 = vld [vmem:[#allocation6 + $0x10] sm:$0xff]  ;;  %v2044_v30 = vld [vmem:[#allocation6 + $0x18] sm:$0xff] }
 0x634   :  { %10564 = vmatprep.mubr.msk.f32.mxu0 %vm649_vm0, %v1797_v46  ;;  %10584 = vmatprep.mubr.msk.f32.mxu1 %vm649_vm0, %v2426_v5  ;;  %v13182_v46 = vpack.c.bf16 %v2044_v30, %v2043_v2  ;;  %v2045_v5 = vld [vmem:[#allocation6 + $0x20] sm:$0xff] }
 0x637   :  { %1991 = vmatmul.mubr.f32.gmra.mrb[60].mxu0 %v1796_v36  ;;  %2620 = vmatmul.mubr.f32.gmra.mrb[80].mxu1 %v2425_v7  ;;  %v2046_v36 = vld [vmem:[#allocation6 + $0x28] sm:$0xff] }
 0x638   :  { %10565 = vmatprep.mubr.msk.f32.mxu0 %vm649_vm0, %v1799_v50  ;;  %10585 = vmatprep.mubr.msk.f32.mxu1 %vm649_vm0, %v2428_v8  ;;  %v13186_v7 = vpack.c.bf16 %v2046_v36, %v2045_v5  ;;  %v2047_v50 = vld [vmem:[#allocation6 + $0x30] sm:$0xff]  ;;  %v2048_v8 = vld [vmem:[#allocation6 + $0x38] sm:$0xff]  ;;  %v2679_v5 = vld [vmem:[#allocation6 + $0x140] sm:$0xff] }
 0x639   :  { %v2680_v36 = vld [vmem:[#allocation6 + $0x148] sm:$0xff] }
 0x63b   :  { %1996 = vmatmul.mubr.f32.gmra.mrb[62].mxu0 %v1798_v51  ;;  %2625 = vmatmul.mubr.f32.gmra.mrb[82].mxu1 %v2427_v52  ;;  %v13190_v51 = vpack.c.bf16 %v2048_v8, %v2047_v50  ;;  %v2049_v52 = vld [vmem:[#allocation6 + $0x40] sm:$0xff] }
 0x63c   :  { %10566 = vmatprep.mubr.msk.f32.mxu0 %vm649_vm0, %v1801_v48  ;;  %10586 = vmatprep.mubr.msk.f32.mxu1 %vm649_vm0, %v2430_v14  ;;  %v2050_v48 = vld [vmem:[#allocation6 + $0x48] sm:$0xff]  ;;  %v2051_v14 = vld [vmem:[#allocation6 + $0x50] sm:$0xff] }
 0x63f   :  { %2001 = vmatmul.mubr.f32.gmra.mrb[64].mxu0 %v1800_v54  ;;  %2630 = vmatmul.mubr.f32.gmra.mrb[84].mxu1 %v2429_v15  ;;  %v2052_v54 = vld [vmem:[#allocation6 + $0x58] sm:$0xff] }
 0x640   :  { %10567 = vmatprep.mubr.msk.f32.mxu0 %vm649_vm0, %v1803_v17  ;;  %10587 = vmatprep.mubr.msk.f32.mxu1 %vm649_vm0, %v2432_v20  ;;  %v13198_v15 = vpack.c.bf16 %v2052_v54, %v2051_v14  ;;  %v2053_v17 = vld [vmem:[#allocation6 + $0x60] sm:$0xff]  ;;  %v2054_v20 = vld [vmem:[#allocation6 + $0x68] sm:$0xff] }
 0x643   :  { %2006 = vmatmul.mubr.f32.gmra.mrb[66].mxu0 %v1802_v56  ;;  %2635 = vmatmul.mubr.f32.gmra.mrb[86].mxu1 %v2431_v32  ;;  %v13202_v56 = vpack.c.bf16 %v2054_v20, %v2053_v17  ;;  %v2055_v32 = vld [vmem:[#allocation6 + $0x70] sm:$0xff] }
 0x644   :  { %10568 = vmatprep.mubr.msk.f32.mxu0 %vm649_vm0, %v1805_v37  ;;  %10588 = vmatprep.mubr.msk.f32.mxu1 %vm649_vm0, %v2434_v57  ;;  %v2056_v37 = vld [vmem:[#allocation6 + $0x78] sm:$0xff] }
 0x645   :  { %v13206_v57 = vpack.c.bf16 %v2056_v37, %v2055_v32  ;;  %v2684_v32 = vld [vmem:[#allocation6 + $0x168] sm:$0xff] }
 0x647   :  { %2011 = vmatmul.mubr.f32.gmra.mrb[68].mxu0 %v1804_v38  ;;  %2640 = vmatmul.mubr.f32.gmra.mrb[88].mxu1 %v2433_v43  ;;  %v2671_v38 = vld [vmem:[#allocation6 + $0x100] sm:$0xff]  ;;  %v2672_v43 = vld [vmem:[#allocation6 + $0x108] sm:$0xff] }
 0x648   :  { %10569 = vmatprep.mubr.msk.f32.mxu0 %vm649_vm0, %v1807_v58  ;;  %10589 = vmatprep.mubr.msk.f32.mxu1 %vm649_vm0, %v2436_v60  ;;  %v13240_v58 = vpack.c.bf16 %v2672_v43, %v2671_v38 }
 0x64b   :  { %2016 = vmatmul.mubr.f32.gmra.mrb[70].mxu0 %v1806_v63  ;;  %2645 = vmatmul.mubr.f32.gmra.mrb[90].mxu1 %v2435_v41  ;;  %v2673_v63 = vld [vmem:[#allocation6 + $0x110] sm:$0xff]  ;;  %v2674_v41 = vld [vmem:[#allocation6 + $0x118] sm:$0xff] }
 0x64c   :  { %10570 = vmatprep.mubr.msk.f32.mxu0 %vm649_vm0, %v1809_v1  ;;  %10590 = vmatprep.mubr.msk.f32.mxu1 %vm649_vm0, %v2438_v9 }
 0x64f   :  { %2021 = vmatmul.mubr.f32.gmra.mrb[72].mxu0 %v1808_v22  ;;  %2650 = vmatmul.mubr.f32.gmra.mrb[92].mxu1 %v2437_v25  ;;  %v13244_v25 = vpack.c.bf16 %v2674_v41, %v2673_v63  ;;  %v2686_v63 = vld [vmem:[#allocation6 + $0x178] sm:$0xff] }
 0x650   :  { %10571 = vmatprep.mubr.msk.f32.mxu0 %vm649_vm0, %v1811_v26  ;;  %10591 = vmatprep.mubr.msk.f32.mxu1 %vm649_vm0, %v2440_v27  ;;  %v2675_v27 = vld [vmem:[#allocation6 + $0x120] sm:$0xff] }
 0x653   :  { %2026 = vmatmul.mubr.f32.gmra.mrb[74].mxu0 %v1810_v45  ;;  %2655 = vmatmul.mubr.f32.gmra.mrb[94].mxu1 %v2439_v28  ;;  %v2676_v45 = vld [vmem:[#allocation6 + $0x128] sm:$0xff] }
 0x654   :  { %10572 = vmatprep.mubr.msk.f32.mxu0 %vm649_vm0, %v1813_v29  ;;  %10592 = vmatprep.mubr.msk.f32.mxu1 %vm649_vm0, %v2442_v33 }
 0x657   :  { %2031 = vmatmul.mubr.f32.gmra.mrb[76].mxu0 %v1812_v34  ;;  %2660 = vmatmul.mubr.f32.gmra.mrb[96].mxu1 %v2441_v6  ;;  %v13248_v34 = vpack.c.bf16 %v2676_v45, %v2675_v27  ;;  %v3244_v45 = vld [vmem:[#allocation10 + $0x80] sm:$0xff] }
 0x658   :  { %10573 = vmatprep.mubr.msk.f32.mxu0 %vm649_vm0, %v1815_v10  ;;  %10593 = vmatprep.mubr.msk.f32.mxu1 %vm649_vm0, %v2444_v13  ;;  %v2677_v10 = vld [vmem:[#allocation6 + $0x130] sm:$0xff]  ;;  %v2678_v13 = vld [vmem:[#allocation6 + $0x138] sm:$0xff] }
 0x659   :  { %v13252_v30 = vpack.c.bf16 %v2678_v13, %v2677_v10 }
 0x65b   :  { %2036 = vmatmul.mubr.f32.gmra.mrb[78].mxu0 %v1814_v40  ;;  %2665 = vmatmul.mubr.f32.gmra.mrb[98].mxu1 %v2443_v16 }
 0x65c   :  { %11797 = vmatprep.mubr.f32.mxu0 %v16535_v49 }
 0x65f   :  { %11798 = vmatmul.mubr.f32.vlgmr.msra.gmra.mrb[80].mxu0 %v16533_v47 }
 0x660   :  { %11800 = vmatprep.mubr.f32.mxu0 %v16547_v12  ;;  %13181 = vmatpush3.bf16.msra.mxu0 %v16662_v39  ;;  %v13194_v39 = vpack.c.bf16 %v2050_v48, %v2049_v52  ;;  %v2681_v48 = vld [vmem:[#allocation6 + $0x150] sm:$0xff] }
 0x661   :  { %13183 = vmatprep.subr.bf16.mxu0 %v13182_v46 }
 0x663   :  { %11801 = vmatmul.mubr.f32.gmra.mrb[82].mxu0 %v16545_v53 }
 0x664   :  { %11803 = vmatprep.mubr.f32.mxu0 %v16559_v31  ;;  %13185 = vmatpush3.bf16.msra.mxu0 %v13182_v46 }
 0x665   :  { %13187 = vmatprep.subr.bf16.mxu0 %v13186_v7 }
 0x667   :  { %11804 = vmatmul.mubr.f32.gmra.mrb[84].mxu0 %v16557_v21 }
 0x668   :  { %11806 = vmatprep.mubr.f32.mxu0 %v16571_v59  ;;  %13189 = vmatpush3.bf16.msra.mxu0 %v13186_v7 }
 0x669   :  { %13191 = vmatprep.subr.bf16.mxu0 %v13190_v51 }
 0x66b   :  { %11807 = vmatmul.mubr.f32.gmra.mrb[86].mxu0 %v16569_v44 }
 0x66c   :  { %11809 = vmatprep.mubr.f32.mxu0 %v16583_v24  ;;  %13193 = vmatpush3.bf16.msra.mxu0 %v13190_v51  ;;  %v13256_v51 = vpack.c.bf16 %v2680_v36, %v2679_v5 }
 0x66d   :  { %13195 = vmatprep.subr.bf16.mxu0 %v13194_v39 }
 0x66f   :  { %11810 = vmatmul.mubr.f32.gmra.mrb[88].mxu0 %v16581_v23 }
 0x670   :  { %11812 = vmatprep.mubr.f32.mxu0 %v16595_v35  ;;  %13197 = vmatpush3.bf16.msra.mxu0 %v13194_v39  ;;  %v2682_v39 = vld [vmem:[#allocation6 + $0x158] sm:$0xff] }
 0x671   :  { %13199 = vmatprep.subr.bf16.mxu0 %v13198_v15  ;;  %v13260_v17 = vpack.c.bf16 %v2682_v39, %v2681_v48 }
 0x673   :  { %11813 = vmatmul.mubr.f32.gmra.mrb[90].mxu0 %v16593_v4 }
 0x674   :  { %11815 = vmatprep.mubr.f32.mxu0 %v16607_v19  ;;  %13201 = vmatpush3.bf16.msra.mxu0 %v13198_v15 }
 0x675   :  { %13203 = vmatprep.subr.bf16.mxu0 %v13202_v56 }
 0x677   :  { %11816 = vmatmul.mubr.f32.gmra.mrb[92].mxu0 %v16605_v3 }
 0x678   :  { %11818 = vmatprep.mubr.f32.mxu0 %v16619_v11  ;;  %13205 = vmatpush3.bf16.msra.mxu0 %v13202_v56  ;;  %v2683_v56 = vld [vmem:[#allocation6 + $0x160] sm:$0xff] }
 0x679   :  { %13207 = vmatprep.subr.bf16.mxu0 %v13206_v57  ;;  %v13264_v43 = vpack.c.bf16 %v2684_v32, %v2683_v56 }
 0x67b   :  { %11819 = vmatmul.mubr.f32.gmra.mrb[94].mxu0 %v16617_v42 }
 0x67c   :  { %11821 = vmatprep.mubr.f32.mxu0 %v16631_v18  ;;  %13209 = vmatpush3.bf16.msra.mxu0 %v13206_v57 }
 0x67d   :  { %13241 = vmatprep.subr.bf16.mxu0 %v13240_v58 }
 0x67f   :  { %11822 = vmatmul.mubr.f32.gmra.mrb[96].mxu0 %v16629_v55 }
 0x680   :  { %11824 = vmatprep.mubr.f32.mxu0 %v16643_v62 }
 0x683   :  { %11825 = vmatmul.mubr.f32.gmra.mrb[98].mxu0 %v16641_v61 }
 0x6e2   :  { %v1942_v60 = vpop.f32.mrb[40].mxu0  ;;  %v16710_v1 = vpop.f32.mrb[60].mxu1 }
 0x6e3   :  { %v1944_v9 = vpop.f32.mrb[41].mxu0  ;;  %11859 = vmatprep.mubr.f32.mxu0 %v1942_v60  ;;  %v2573_v22 = vpop.f32.mrb[61].mxu1  ;;  %v2685_v60 = vld [vmem:[#allocation6 + $0x170] sm:$0xff] }
 0x6e6   :  { %v1947_v26 = vpop.f32.mrb[42].mxu0  ;;  %v16712_v28 = vpop.f32.mrb[62].mxu1 }
 0x6e7   :  { %v1949_v29 = vpop.f32.mrb[43].mxu0  ;;  %11860 = vmatmul.mubr.f32.vlgmr.msra.gmra.mrb[80].mxu0 %v1947_v26  ;;  %v2578_v33 = vpop.f32.mrb[63].mxu1 }
 0x6e8   :  { %13243 = vmatpush3.bf16.msra.mxu0 %v13240_v58  ;;  %v3245_v29 = vld [vmem:[#allocation10 + $0x88] sm:$0xff] }
 0x6e9   :  { %13245 = vmatprep.subr.bf16.mxu0 %v13244_v25 }
 0x6ea   :  { %v1952_v6 = vpop.f32.mrb[44].mxu0  ;;  %v16714_v40 = vpop.f32.mrb[64].mxu1 }
 0x6eb   :  { %v1954_v16 = vpop.f32.mrb[45].mxu0  ;;  %11862 = vmatprep.mubr.f32.mxu0 %v1952_v6  ;;  %v2583_v2 = vpop.f32.mrb[65].mxu1  ;;  %v16726_v6 = vpack.c.bf16 %v3245_v29, %v3244_v45 }
 0x6ec   :  { %13247 = vmatpush3.bf16.msra.mxu0 %v13244_v25  ;;  %v13268_v25 = vpack.c.bf16 %v2686_v63, %v2685_v60 }
 0x6ed   :  { %13249 = vmatprep.subr.bf16.mxu0 %v13248_v34 }
 0x6ee   :  { %v1957_v46 = vpop.f32.mrb[46].mxu0  ;;  %v16716_v7 = vpop.f32.mrb[66].mxu1 }
 0x6ef   :  { %v1959_v50 = vpop.f32.mrb[47].mxu0  ;;  %11863 = vmatmul.mubr.f32.gmra.mrb[82].mxu0 %v1957_v46  ;;  %v2588_v8 = vpop.f32.mrb[67].mxu1 }
 0x6f0   :  { %13251 = vmatpush3.bf16.msra.mxu0 %v13248_v34 }
 0x6f1   :  { %13253 = vmatprep.subr.bf16.mxu0 %v13252_v30 }
 0x6f2   :  { %v1962_v52 = vpop.f32.mrb[48].mxu0  ;;  %v16718_v14 = vpop.f32.mrb[68].mxu1 }
 0x6f3   :  { %v1964_v54 = vpop.f32.mrb[49].mxu0  ;;  %11865 = vmatprep.mubr.f32.mxu0 %v1962_v52  ;;  %v2593_v15 = vpop.f32.mrb[69].mxu1 }
 0x6f4   :  { %13255 = vmatpush3.bf16.msra.mxu0 %v13252_v30 }
 0x6f5   :  { %13257 = vmatprep.subr.bf16.mxu0 %v13256_v51 }
 0x6f6   :  { %v1967_v20 = vpop.f32.mrb[50].mxu0  ;;  %v16720_v37 = vpop.f32.mrb[70].mxu1 }
 0x6f7   :  { %v1969_v57 = vpop.f32.mrb[51].mxu0  ;;  %11866 = vmatmul.mubr.f32.gmra.mrb[84].mxu0 %v1967_v20  ;;  %v2598_v38 = vpop.f32.mrb[71].mxu1 }
 0x6f8   :  { %13259 = vmatpush3.bf16.msra.mxu0 %v13256_v51 }
 0x6f9   :  { %13261 = vmatprep.subr.bf16.mxu0 %v13260_v17 }
 0x6fa   :  { %v1972_v58 = vpop.f32.mrb[52].mxu0  ;;  %v16722_v41 = vpop.f32.mrb[72].mxu1 }
 0x6fb   :  { %v1974_v9 = vpop.f32.mrb[53].mxu0  ;;  %11868 = vmatprep.mubr.f32.mxu0 %v1972_v58  ;;  %v2603_v22 = vpop.f32.mrb[73].mxu1 }
 0x6fc   :  { %13263 = vmatpush3.bf16.msra.mxu0 %v13260_v17 }
 0x6fd   :  { %13265 = vmatprep.subr.bf16.mxu0 %v13264_v43 }
 0x6fe   :  { %v1977_v26 = vpop.f32.mrb[54].mxu0  ;;  %v16724_v27 = vpop.f32.mrb[74].mxu1 }
 0x6ff   :  { %v1979_v33 = vpop.f32.mrb[55].mxu0  ;;  %11869 = vmatmul.mubr.f32.gmra.mrb[86].mxu0 %v1977_v26  ;;  %v2608_v34 = vpop.f32.mrb[75].mxu1 }
 0x700   :  { %13267 = vmatpush3.bf16.msra.mxu0 %v13264_v43 }
 0x701   :  { %13269 = vmatprep.subr.bf16.mxu0 %v13268_v25 }
 0x702   :  { %v1982_v10 = vpop.f32.mrb[56].mxu0  ;;  %v16728_v13 = vpop.f32.mrb[76].mxu1 }
 0x703   :  { %v1984_v16 = vpop.f32.mrb[57].mxu0  ;;  %11871 = vmatprep.mubr.f32.mxu0 %v1982_v10  ;;  %v2613_v2 = vpop.f32.mrb[77].mxu1 }
 0x704   :  { %13271 = vmatpush3.bf16.msra.mxu0 %v13268_v25 }
 0x705   :  { %13303 = vmatprep.subr.bf16.mxu0 %v16726_v6 }
 0x706   :  { %v1987_v30 = vpop.f32.mrb[58].mxu0  ;;  %v16731_v46 = vpop.f32.mrb[78].mxu1 }
 0x707   :  { %v1989_v5 = vpop.f32.mrb[59].mxu0  ;;  %11872 = vmatmul.mubr.f32.gmra.mrb[88].mxu0 %v1987_v30  ;;  %v2618_v36 = vpop.f32.mrb[79].mxu1 }
 0x70a   :  { %v1992_v50 = vpop.f32.mrb[60].mxu0  ;;  %v16733_v8 = vpop.f32.mrb[80].mxu1 }
 0x70b   :  { %v1994_v51 = vpop.f32.mrb[61].mxu0  ;;  %11874 = vmatprep.mubr.f32.mxu0 %v1992_v50  ;;  %v2623_v52 = vpop.f32.mrb[81].mxu1 }
 0x70e   :  { %v1997_v48 = vpop.f32.mrb[62].mxu0  ;;  %v16735_v39 = vpop.f32.mrb[82].mxu1 }
 0x70f   :  { %v1999_v54 = vpop.f32.mrb[63].mxu0  ;;  %11875 = vmatmul.mubr.f32.gmra.mrb[90].mxu0 %v1997_v48  ;;  %v2628_v15 = vpop.f32.mrb[83].mxu1 }
 0x712   :  { %v2002_v17 = vpop.f32.mrb[64].mxu0  ;;  %v16737_v20 = vpop.f32.mrb[84].mxu1 }
 0x713   :  { %v2004_v56 = vpop.f32.mrb[65].mxu0  ;;  %11877 = vmatprep.mubr.f32.mxu0 %v2002_v17  ;;  %v2633_v32 = vpop.f32.mrb[85].mxu1  ;;  %v3246_v17 = vld [vmem:[#allocation10 + $0x90] sm:$0xff] }
 0x714   :  { %v3247_v56 = vld [vmem:[#allocation10 + $0x98] sm:$0xff] }
 0x716   :  { %v2007_v57 = vpop.f32.mrb[66].mxu0  ;;  %v16739_v38 = vpop.f32.mrb[86].mxu1 }
 0x717   :  { %v2009_v43 = vpop.f32.mrb[67].mxu0  ;;  %11878 = vmatmul.mubr.f32.gmra.mrb[92].mxu0 %v2007_v57  ;;  %v2638_v58 = vpop.f32.mrb[87].mxu1 }
 0x718   :  { %v13306_v43 = vpack.c.bf16 %v3247_v56, %v3246_v17  ;;  %v3248_v58 = vld [vmem:[#allocation10 + $0xa0] sm:$0xff] }
 0x71a   :  { %v2012_v60 = vpop.f32.mrb[68].mxu0  ;;  %v16741_v63 = vpop.f32.mrb[88].mxu1 }
 0x71b   :  { %v2014_v9 = vpop.f32.mrb[69].mxu0  ;;  %11880 = vmatprep.mubr.f32.mxu0 %v2012_v60  ;;  %v2643_v22 = vpop.f32.mrb[89].mxu1  ;;  %v3249_v60 = vld [vmem:[#allocation10 + $0xa8] sm:$0xff] }
 0x71c   :  { %v13310_v9 = vpack.c.bf16 %v3249_v60, %v3248_v58  ;;  %v3250_v22 = vld [vmem:[#allocation10 + $0xb0] sm:$0xff] }
 0x71e   :  { %v2017_v25 = vpop.f32.mrb[70].mxu0  ;;  %v16743_v26 = vpop.f32.mrb[90].mxu1 }
 0x71f   :  { %v2019_v45 = vpop.f32.mrb[71].mxu0  ;;  %11881 = vmatmul.mubr.f32.gmra.mrb[94].mxu0 %v2017_v25  ;;  %v2648_v29 = vpop.f32.mrb[91].mxu1  ;;  %v3251_v25 = vld [vmem:[#allocation10 + $0xb8] sm:$0xff] }
 0x720   :  { %v3252_v45 = vld [vmem:[#allocation10 + $0xc0] sm:$0xff]  ;;  %v3253_v29 = vld [vmem:[#allocation10 + $0xc8] sm:$0xff] }
 0x722   :  { %v2022_v33 = vpop.f32.mrb[72].mxu0  ;;  %v2651_v34 = vpop.f32.mrb[92].mxu1 }
 0x723   :  { %v2024_v10 = vpop.f32.mrb[73].mxu0  ;;  %11883 = vmatprep.mubr.f32.mxu0 %v2022_v33  ;;  %v2653_v16 = vpop.f32.mrb[93].mxu1 }
 0x726   :  { %v2027_v2 = vpop.f32.mrb[74].mxu0  ;;  %v2656_v30 = vpop.f32.mrb[94].mxu1 }
 0x727   :  { %v2029_v5 = vpop.f32.mrb[75].mxu0  ;;  %11884 = vmatmul.mubr.f32.gmra.mrb[96].mxu0 %v2027_v2  ;;  %v2658_v36 = vpop.f32.mrb[95].mxu1 }
 0x72a   :  { %v2032_v50 = vpop.f32.mrb[76].mxu0  ;;  %v2661_v51 = vpop.f32.mrb[96].mxu1 }
 0x72b   :  { %v2034_v52 = vpop.f32.mrb[77].mxu0  ;;  %11886 = vmatprep.mubr.f32.mxu0 %v2032_v50  ;;  %v2663_v48 = vpop.f32.mrb[97].mxu1 }
 0x72e   :  { %v2037_v54 = vpop.f32.mrb[78].mxu0  ;;  %v2666_v15 = vpop.f32.mrb[98].mxu1 }
 0x72f   :  { %v2039_v32 = vpop.f32.mrb[79].mxu0  ;;  %11887 = vmatmul.mubr.f32.gmra.mrb[98].mxu0 %v2037_v54  ;;  %v2668_v57 = vpop.f32.mrb[99].mxu1 }
 0x730   :  { %11921 = vmatprep.mubr.f32.mxu0 %v16710_v1  ;;  %v13314_v1 = vpack.c.bf16 %v3251_v25, %v3250_v22 }
 0x733   :  { %11922 = vmatmul.mubr.f32.vlgmr.msra.gmra.mrb[80].mxu0 %v16712_v28  ;;  %v13318_v28 = vpack.c.bf16 %v3253_v29, %v3252_v45 }
 0x734   :  { %11924 = vmatprep.mubr.f32.mxu0 %v16714_v40  ;;  %13305 = vmatpush3.bf16.msra.mxu0 %v16726_v6  ;;  %v3254_v40 = vld [vmem:[#allocation10 + $0xd0] sm:$0xff]  ;;  %v3255_v6 = vld [vmem:[#allocation10 + $0xd8] sm:$0xff] }
 0x735   :  { %13307 = vmatprep.subr.bf16.mxu0 %v13306_v43 }
 0x737   :  { %11925 = vmatmul.mubr.f32.gmra.mrb[82].mxu0 %v16716_v7  ;;  %v13322_v7 = vpack.c.bf16 %v3255_v6, %v3254_v40 }
 0x738   :  { %11927 = vmatprep.mubr.f32.mxu0 %v16718_v14  ;;  %13309 = vmatpush3.bf16.msra.mxu0 %v13306_v43  ;;  %v3256_v14 = vld [vmem:[#allocation10 + $0xe0] sm:$0xff] }
 0x739   :  { %13311 = vmatprep.subr.bf16.mxu0 %v13310_v9 }
 0x73b   :  { %11928 = vmatmul.mubr.f32.gmra.mrb[84].mxu0 %v16720_v37  ;;  %v3257_v37 = vld [vmem:[#allocation10 + $0xe8] sm:$0xff] }
 0x73c   :  { %11930 = vmatprep.mubr.f32.mxu0 %v16722_v41  ;;  %13313 = vmatpush3.bf16.msra.mxu0 %v13310_v9  ;;  %v13326_v41 = vpack.c.bf16 %v3257_v37, %v3256_v14 }
 0x73d   :  { %13315 = vmatprep.subr.bf16.mxu0 %v13314_v1 }
 0x73f   :  { %11931 = vmatmul.mubr.f32.gmra.mrb[86].mxu0 %v16724_v27  ;;  %v3258_v27 = vld [vmem:[#allocation10 + $0xf0] sm:$0xff] }
 0x740   :  { %11933 = vmatprep.mubr.f32.mxu0 %v16728_v13  ;;  %13317 = vmatpush3.bf16.msra.mxu0 %v13314_v1  ;;  %v3259_v13 = vld [vmem:[#allocation10 + $0xf8] sm:$0xff] }
 0x741   :  { %13319 = vmatprep.subr.bf16.mxu0 %v13318_v28 }
 0x743   :  { %11934 = vmatmul.mubr.f32.gmra.mrb[88].mxu0 %v16731_v46  ;;  %v13330_v46 = vpack.c.bf16 %v3259_v13, %v3258_v27 }
 0x744   :  { %11936 = vmatprep.mubr.f32.mxu0 %v16733_v8  ;;  %13321 = vmatpush3.bf16.msra.mxu0 %v13318_v28  ;;  %v2963_v8 = vld [vmem:[#allocation12 + $0x8] sm:$0xff] }
 0x745   :  { %13323 = vmatprep.subr.bf16.mxu0 %v13322_v7  ;;  %10596 = vmatprep.mubr.msk.f32.mxu1 %vm649_vm0, %v2963_v8 }
 0x747   :  { %11937 = vmatmul.mubr.f32.gmra.mrb[90].mxu0 %v16735_v39  ;;  %v16763_v39 = vld [vmem:[#allocation9] ss:$0 sm:$0xff] }
 0x748   :  { %11939 = vmatprep.mubr.f32.mxu0 %v16737_v20  ;;  %13325 = vmatpush3.bf16.msra.mxu0 %v13322_v7 }
 0x749   :  { %13327 = vmatprep.subr.bf16.mxu0 %v13326_v41 }
 0x74b   :  { %11940 = vmatmul.mubr.f32.gmra.mrb[92].mxu0 %v16739_v38  ;;  %v16765_v38 = vld [vmem:[#allocation9 + $0x1] ss:$0 sm:$0xff] }
 0x74c   :  { %11942 = vmatprep.mubr.f32.mxu0 %v16741_v63  ;;  %13329 = vmatpush3.bf16.msra.mxu0 %v13326_v41 }
 0x74d   :  { %13331 = vmatprep.subr.bf16.mxu0 %v13330_v46 }
 0x74f   :  { %11943 = vmatmul.mubr.f32.gmra.mrb[94].mxu0 %v16743_v26 }
 0x750   :  { %11945 = vmatprep.mubr.f32.mxu0 %v2651_v34  ;;  %13333 = vmatpush3.bf16.msra.mxu0 %v13330_v46 }
 0x753   :  { %11946 = vmatmul.mubr.f32.gmra.mrb[96].mxu0 %v2656_v30 }
 0x754   :  { %11948 = vmatprep.mubr.f32.mxu0 %v2661_v51 }
 0x757   :  { %11949 = vmatmul.mubr.f32.gmra.mrb[98].mxu0 %v2666_v15 }
 0x806   :  { %v11923_v20 = vpop.f32.mrb[80].mxu0 }
 0x807   :  { %v2878_v63 = vmul.f32 %v11923_v20, %v16763_v39  ;;  %v2753_v26 = vpop.f32.mrb[81].mxu0 }
 0x808   :  { %v2877_v33 = vmul.f32 %v16763_v39, %v2753_v26 }
 0x809   :  { %v2903_v34 = vadd.f32 %v16765_v38, %v2878_v63 }
 0x80a   :  { %v2902_v10 = vadd.f32 %v16765_v38, %v2877_v33  ;;  %v11926_v16 = vpop.f32.mrb[82].mxu0 }
 0x80b   :  { %v2923_v2 = vadd.f32 %v2903_v34, %v16533_v47  ;;  %v2880_v30 = vmul.f32 %v11926_v16, %v16763_v39  ;;  %v2763_v5 = vpop.f32.mrb[83].mxu0 }
 0x80c   :  { %v2879_v36 = vmul.f32 %v16763_v39, %v2763_v5  ;;  %v2922_v50 = vadd.f32 %v2902_v10, %v16535_v49 }
 0x80d   :  { %v16775_v51 = vmax.f32 %v2923_v2, 0.0  ;;  %v2905_v52 = vadd.f32 %v16765_v38, %v2880_v30 }
 0x80e   :  { %v2904_v48 = vadd.f32 %v16765_v38, %v2879_v36  ;;  %v11929_v54 = vpop.f32.mrb[84].mxu0  ;;  %v16779_v15 = vmax.f32 %v2922_v50, 0.0 }
 0x80f   :  { %v2882_v17 = vmul.f32 %v11929_v54, %v16763_v39  ;;  %v2773_v56 = vpop.f32.mrb[85].mxu0  ;;  %v2925_v47 = vadd.f32 %v2905_v52, %v16545_v53 }
 0x810   :  { %v2881_v32 = vmul.f32 %v16763_v39, %v2773_v56  ;;  %11983 = vmatprep.mubr.f32.mxu0 %v16779_v15  ;;  %v16787_v49 = vpack.c.bf16 %v16775_v51, %v16779_v15  ;;  %v2924_v57 = vadd.f32 %v2904_v48, %v16547_v12 }
 0x811   :  { %v2907_v43 = vadd.f32 %v16765_v38, %v2882_v17  ;;  %11984 = vmatmul.mubr.f32.vlgmr.msra.gmra.mrb[100].mxu0 %v16775_v51  ;;  %v16792_v58 = vmax.f32 %v2925_v47, 0.0 }
 0x812   :  { %v2906_v60 = vadd.f32 %v16765_v38, %v2881_v32  ;;  %v11932_v9 = vpop.f32.mrb[86].mxu0  ;;  %13274 = vmatpush1.bf16.msra.mxu1 %v16787_v49  ;;  %v16796_v53 = vmax.f32 %v2924_v57, 0.0 }
 0x813   :  { %v2884_v22 = vmul.f32 %v11932_v9, %v16763_v39  ;;  %v2783_v25 = vpop.f32.mrb[87].mxu0  ;;  %13275 = vmatprep.subr.bf16.mxu1 %v15800_v0  ;;  %v2927_v12 = vadd.f32 %v2907_v43, %v16557_v21 }
 0x814   :  { %v2883_v1 = vmul.f32 %v16763_v39, %v2783_v25  ;;  %11986 = vmatprep.mubr.f32.mxu0 %v16796_v53  ;;  %v16805_v45 = vpack.c.bf16 %v16792_v58, %v16796_v53  ;;  %v2926_v29 = vadd.f32 %v2906_v60, %v16559_v31 }
 0x815   :  { %v2909_v28 = vadd.f32 %v16765_v38, %v2884_v22  ;;  %11987 = vmatmul.mubr.f32.gmra.mrb[102].mxu0 %v16792_v58  ;;  %v16810_v40 = vmax.f32 %v2927_v12, 0.0 }
 0x816   :  { %v2908_v6 = vadd.f32 %v16765_v38, %v2883_v1  ;;  %v11935_v7 = vpop.f32.mrb[88].mxu0  ;;  %13277 = vmatpush1.bf16.msra.mxu1 %v16805_v45  ;;  %v16814_v21 = vmax.f32 %v2926_v29, 0.0 }
 0x817   :  { %v2886_v14 = vmul.f32 %v11935_v7, %v16763_v39  ;;  %v2793_v37 = vpop.f32.mrb[89].mxu0  ;;  %13278 = vmatprep.subr.bf16.mxu1 %v15800_v0  ;;  %v2929_v31 = vadd.f32 %v2909_v28, %v16569_v44 }
 0x818   :  { %v2885_v41 = vmul.f32 %v16763_v39, %v2793_v37  ;;  %11989 = vmatprep.mubr.f32.mxu0 %v16814_v21  ;;  %v16823_v27 = vpack.c.bf16 %v16810_v40, %v16814_v21  ;;  %v2928_v13 = vadd.f32 %v2908_v6, %v16571_v59 }
 0x819   :  { %v2911_v46 = vadd.f32 %v16765_v38, %v2886_v14  ;;  %11990 = vmatmul.mubr.f32.gmra.mrb[104].mxu0 %v16810_v40  ;;  %v16828_v8 = vmax.f32 %v2929_v31, 0.0 }
 0x81a   :  { %v2910_v20 = vadd.f32 %v16765_v38, %v2885_v41  ;;  %v11938_v63 = vpop.f32.mrb[90].mxu0  ;;  %13280 = vmatpush1.bf16.msra.mxu1 %v16823_v27  ;;  %v16832_v44 = vmax.f32 %v2928_v13, 0.0 }
 0x81b   :  { %v2888_v26 = vmul.f32 %v11938_v63, %v16763_v39  ;;  %v2803_v33 = vpop.f32.mrb[91].mxu0  ;;  %13281 = vmatprep.subr.bf16.mxu1 %v15800_v0  ;;  %v2931_v59 = vadd.f32 %v2911_v46, %v16581_v23 }
 0x81c   :  { %v2887_v34 = vmul.f32 %v16763_v39, %v2803_v33  ;;  %11992 = vmatprep.mubr.f32.mxu0 %v16832_v44  ;;  %v16841_v10 = vpack.c.bf16 %v16828_v8, %v16832_v44  ;;  %v2930_v16 = vadd.f32 %v2910_v20, %v16583_v24 }
 0x81d   :  { %v2913_v2 = vadd.f32 %v16765_v38, %v2888_v26  ;;  %11993 = vmatmul.mubr.f32.gmra.mrb[106].mxu0 %v16828_v8  ;;  %v16846_v30 = vmax.f32 %v2931_v59, 0.0 }
 0x81e   :  { %v2912_v5 = vadd.f32 %v16765_v38, %v2887_v34  ;;  %v11941_v36 = vpop.f32.mrb[92].mxu0  ;;  %13283 = vmatpush1.bf16.msra.mxu1 %v16841_v10  ;;  %v16850_v23 = vmax.f32 %v2930_v16, 0.0 }
 0x81f   :  { %v2890_v50 = vmul.f32 %v11941_v36, %v16763_v39  ;;  %v2813_v52 = vpop.f32.mrb[93].mxu0  ;;  %13284 = vmatprep.subr.bf16.mxu1 %v15800_v0  ;;  %v2933_v24 = vadd.f32 %v2913_v2, %v16593_v4 }
 0x820   :  { %v2889_v48 = vmul.f32 %v16763_v39, %v2813_v52  ;;  %11995 = vmatprep.mubr.f32.mxu0 %v16850_v23  ;;  %v16859_v54 = vpack.c.bf16 %v16846_v30, %v16850_v23  ;;  %v2932_v17 = vadd.f32 %v2912_v5, %v16595_v35  ;;  %v2965_v52 = vld [vmem:[#allocation12 + $0x18] sm:$0xff] }
 0x821   :  { %v2915_v56 = vadd.f32 %v16765_v38, %v2890_v50  ;;  %11996 = vmatmul.mubr.f32.gmra.mrb[108].mxu0 %v16846_v30  ;;  %v16864_v47 = vmax.f32 %v2933_v24, 0.0  ;;  %v2964_v24 = vld [vmem:[#allocation12 + $0x10] sm:$0xff] }
 0x822   :  { %v2914_v32 = vadd.f32 %v16765_v38, %v2889_v48  ;;  %v11944_v57 = vpop.f32.mrb[94].mxu0  ;;  %13286 = vmatpush1.bf16.msra.mxu1 %v16859_v54  ;;  %v16868_v4 = vmax.f32 %v2932_v17, 0.0  ;;  %v2967_v48 = vld [vmem:[#allocation12 + $0x28] sm:$0xff]  ;;  %v2966_v17 = vld [vmem:[#allocation12 + $0x20] sm:$0xff] }
 0x823   :  { %v2892_v43 = vmul.f32 %v11944_v57, %v16763_v39  ;;  %v2823_v60 = vpop.f32.mrb[95].mxu0  ;;  %13287 = vmatprep.subr.bf16.mxu1 %v15800_v0  ;;  %v2935_v35 = vadd.f32 %v2915_v56, %v16605_v3  ;;  %v2969_v56 = vld [vmem:[#allocation12 + $0x38] sm:$0xff] }
 0x824   :  { %v2891_v9 = vmul.f32 %v16763_v39, %v2823_v60  ;;  %11998 = vmatprep.mubr.f32.mxu0 %v16868_v4  ;;  %v16877_v22 = vpack.c.bf16 %v16864_v47, %v16868_v4  ;;  %v2934_v25 = vadd.f32 %v2914_v32, %v16607_v19  ;;  %v2971_v32 = vld [vmem:[#allocation12 + $0x48] sm:$0xff]  ;;  %v2973_v57 = vld [vmem:[#allocation12 + $0x58] sm:$0xff] }
 0x825   :  { %v2917_v12 = vadd.f32 %v16765_v38, %v2892_v43  ;;  %11999 = vmatmul.mubr.f32.gmra.mrb[110].mxu0 %v16864_v47  ;;  %v16882_v1 = vmax.f32 %v2935_v35, 0.0  ;;  %v2975_v43 = vld [vmem:[#allocation12 + $0x68] sm:$0xff]  ;;  %v2977_v60 = vld [vmem:[#allocation12 + $0x78] sm:$0xff] }
 0x826   :  { %v2916_v29 = vadd.f32 %v16765_v38, %v2891_v9  ;;  %v11947_v28 = vpop.f32.mrb[96].mxu0  ;;  %13289 = vmatpush1.bf16.msra.mxu1 %v16877_v22  ;;  %v16886_v3 = vmax.f32 %v2934_v25, 0.0  ;;  %v2979_v35 = vld [vmem:[#allocation12 + $0x88] sm:$0xff]  ;;  %v3227_v9 = vld [vmem:[#allocation10] sm:$0xff] }
 0x827   :  { %v2894_v6 = vmul.f32 %v11947_v28, %v16763_v39  ;;  %v2833_v7 = vpop.f32.mrb[97].mxu0  ;;  %13290 = vmatprep.subr.bf16.mxu1 %v15800_v0  ;;  %v2937_v19 = vadd.f32 %v2917_v12, %v16617_v42  ;;  %v3228_v25 = vld [vmem:[#allocation10 + $0x8] sm:$0xff]  ;;  %v3229_v12 = vld [vmem:[#allocation10 + $0x10] sm:$0xff]  ;;  %v3230_v28 = vld [vmem:[#allocation10 + $0x18] sm:$0xff] }
 0x828   :  { %v2893_v14 = vmul.f32 %v16763_v39, %v2833_v7  ;;  %12001 = vmatprep.mubr.f32.mxu0 %v16886_v3  ;;  %v16895_v37 = vpack.c.bf16 %v16882_v1, %v16886_v3  ;;  %v2936_v31 = vadd.f32 %v2916_v29, %v16619_v11  ;;  %v13334_v29 = vpack.c.bf16 %v3228_v25, %v3227_v9  ;;  %v3000_v9 = vld [vmem:[#allocation12 + $0x130] sm:$0xff]  ;;  %v3592_v25 = vld [vmem:[#allocation12 + $0x288] sm:$0xff] }
 0x829   :  { %v2919_v41 = vadd.f32 %v16765_v38, %v2894_v6  ;;  %12002 = vmatmul.mubr.f32.gmra.mrb[112].mxu0 %v16882_v1  ;;  %v16900_v13 = vmax.f32 %v2937_v19, 0.0  ;;  %v2981_v6 = vld [vmem:[#allocation12 + $0x98] sm:$0xff]  ;;  %v13338_v7 = vpack.c.bf16 %v3230_v28, %v3229_v12  ;;  %v3231_v19 = vld [vmem:[#allocation10 + $0x20] sm:$0xff]  ;;  %v3241_v28 = vld [vmem:[#allocation10 + $0x70] sm:$0xff] }
 0x82a   :  { %v2918_v46 = vadd.f32 %v16765_v38, %v2893_v14  ;;  %v11950_v20 = vpop.f32.mrb[98].mxu0  ;;  %13292 = vmatpush1.bf16.msra.mxu1 %v16895_v37  ;;  %v16904_v42 = vmax.f32 %v2936_v31, 0.0  ;;  %13335 = vmatprep.subr.bf16.mxu0 %v13334_v29  ;;  %v3232_v14 = vld [vmem:[#allocation10 + $0x28] sm:$0xff]  ;;  %v3591_v12 = vld [vmem:[#allocation12 + $0x280] sm:$0xff] }
 0x82b   :  { %v2896_v63 = vmul.f32 %v11950_v20, %v16763_v39  ;;  %v2843_v26 = vpop.f32.mrb[99].mxu0  ;;  %13293 = vmatprep.subr.bf16.mxu1 %v15800_v0  ;;  %v2939_v11 = vadd.f32 %v2919_v41, %v16629_v55  ;;  %13337 = vmatpush3.bf16.msra.mxu0 %v13334_v29  ;;  %v2983_v31 = vld [vmem:[#allocation12 + $0xa8] sm:$0xff]  ;;  %v13342_v41 = vpack.c.bf16 %v3232_v14, %v3231_v19  ;;  %v3234_v20 = vld [vmem:[#allocation10 + $0x38] sm:$0xff]  ;;  %v3593_v29 = vld [vmem:[#allocation12 + $0x290] sm:$0xff] }
 0x82c   :  { %v2895_v33 = vmul.f32 %v16763_v39, %v2843_v26  ;;  %12004 = vmatprep.mubr.f32.mxu0 %v16904_v42  ;;  %v16913_v59 = vpack.c.bf16 %v16900_v13, %v16904_v42  ;;  %v2938_v34 = vadd.f32 %v2918_v46, %v16631_v18  ;;  %13339 = vmatprep.subr.bf16.mxu0 %v13338_v7  ;;  %v3233_v46 = vld [vmem:[#allocation10 + $0x30] sm:$0xff]  ;;  %v3595_v14 = vld [vmem:[#allocation12 + $0x2a0] sm:$0xff] }
 0x82d   :  { %v2921_v16 = vadd.f32 %v16765_v38, %v2896_v63  ;;  %12005 = vmatmul.mubr.f32.gmra.mrb[114].mxu0 %v16900_v13  ;;  %v16918_v2 = vmax.f32 %v2939_v11, 0.0  ;;  %v2982_v63 = vld [vmem:[#allocation12 + $0xa0] sm:$0xff]  ;;  %v13346_v26 = vpack.c.bf16 %v3234_v20, %v3233_v46  ;;  %v2985_v11 = vld [vmem:[#allocation12 + $0xb8] sm:$0xff] }
 0x82e   :  { %v2920_v5 = vadd.f32 %v16765_v38, %v2895_v33  ;;  %13295 = vmatpush1.bf16.msra.mxu1 %v16913_v59  ;;  %v16922_v55 = vmax.f32 %v2938_v34, 0.0  ;;  %v3235_v33 = vld [vmem:[#allocation10 + $0x40] sm:$0xff]  ;;  %v2984_v34 = vld [vmem:[#allocation12 + $0xb0] sm:$0xff]  ;;  %v3602_v20 = vld [vmem:[#allocation12 + $0x2d8] sm:$0xff] }
 0x82f   :  { %13296 = vmatprep.subr.bf16.mxu1 %v15800_v0  ;;  %v2941_v39 = vadd.f32 %v2921_v16, %v16641_v61  ;;  %13341 = vmatpush3.bf16.msra.mxu0 %v13338_v7  ;;  %v3596_v7 = vld [vmem:[#allocation12 + $0x2a8] sm:$0xff]  ;;  %v3599_v46 = vld [vmem:[#allocation12 + $0x2c0] sm:$0xff] }
 0x830   :  { %12007 = vmatprep.mubr.f32.mxu0 %v16922_v55  ;;  %v16929_v18 = vpack.c.bf16 %v16918_v2, %v16922_v55  ;;  %v2940_v36 = vadd.f32 %v2920_v5, %v16643_v62  ;;  %v2962_v62 = vld [vmem:[#allocation12] sm:$0xff]  ;;  %13343 = vmatprep.subr.bf16.mxu0 %v13342_v41  ;;  %v2987_v5 = vld [vmem:[#allocation12 + $0xc8] sm:$0xff] }
 0x831   :  { %12008 = vmatmul.mubr.f32.gmra.mrb[116].mxu0 %v16918_v2  ;;  %v16933_v50 = vmax.f32 %v2941_v39, 0.0  ;;  %v3237_v39 = vld [vmem:[#allocation10 + $0x50] sm:$0xff] }
 0x832   :  { %13298 = vmatpush1.bf16.msra.mxu1 %v16929_v18  ;;  %v16936_v38 = vmax.f32 %v2940_v36, 0.0  ;;  %v2986_v36 = vld [vmem:[#allocation12 + $0xc0] sm:$0xff] }
 0x833   :  { %13299 = vmatprep.subr.bf16.mxu1 %v15800_v0  ;;  %13345 = vmatpush3.bf16.msra.mxu0 %v13342_v41  ;;  %v3600_v41 = vld [vmem:[#allocation12 + $0x2c8] sm:$0xff] }
 0x834   :  { %12010 = vmatprep.mubr.f32.mxu0 %v16936_v38  ;;  %v16942_v61 = vpack.c.bf16 %v16933_v50, %v16936_v38  ;;  %13347 = vmatprep.subr.bf16.mxu0 %v13346_v26 }
 0x835   :  { %12011 = vmatmul.mubr.f32.gmra.mrb[118].mxu0 %v16933_v50 }
 0x836   :  { %13301 = vmatpush1.bf16.msra.mxu1 %v16942_v61 }
 0x837   :  { %13366 = vmatprep.subr.bf16.mxu1 %v15800_v0  ;;  %13349 = vmatpush3.bf16.msra.mxu0 %v13346_v26  ;;  %v3604_v26 = vld [vmem:[#allocation12 + $0x2e8] sm:$0xff] }
 0x839   :  { %3127 = vmatmul.mubr.f32.vlgmr.msra.gmra.mrb[100].mxu1 %v2962_v62  ;;  %v2989_v62 = vld [vmem:[#allocation12 + $0xd8] sm:$0xff] }
 0x83a   :  { %13368 = vmatpush1.bf16.msra.mxu1 %v16787_v49  ;;  %10597 = vmatprep.mubr.msk.f32.mxu1 %vm649_vm0, %v2965_v52  ;;  %v2968_v49 = vld [vmem:[#allocation12 + $0x30] sm:$0xff]  ;;  %v3239_v52 = vld [vmem:[#allocation10 + $0x60] sm:$0xff] }
 0x83b   :  { %13369 = vmatprep.subr.bf16.mxu1 %v15800_v0 }
 0x83d   :  { %3132 = vmatmul.mubr.f32.gmra.mrb[102].mxu1 %v2964_v24  ;;  %v3240_v24 = vld [vmem:[#allocation10 + $0x68] sm:$0xff] }
 0x83e   :  { %13371 = vmatpush1.bf16.msra.mxu1 %v16805_v45  ;;  %10598 = vmatprep.mubr.msk.f32.mxu1 %vm649_vm0, %v2967_v48  ;;  %v2970_v45 = vld [vmem:[#allocation12 + $0x40] sm:$0xff]  ;;  %v2988_v48 = vld [vmem:[#allocation12 + $0xd0] sm:$0xff] }
 0x83f   :  { %13372 = vmatprep.subr.bf16.mxu1 %v15800_v0 }
 0x841   :  { %3137 = vmatmul.mubr.f32.gmra.mrb[104].mxu1 %v2966_v17  ;;  %v13358_v17 = vpack.c.bf16 %v3240_v24, %v3239_v52  ;;  %v3611_v52 = vld [vmem:[#allocation12 + $0x320] sm:$0xff]  ;;  %v3614_v24 = vld [vmem:[#allocation12 + $0x338] sm:$0xff] }
 0x842   :  { %13374 = vmatpush1.bf16.msra.mxu1 %v16823_v27  ;;  %10599 = vmatprep.mubr.msk.f32.mxu1 %vm649_vm0, %v2969_v56  ;;  %v2972_v27 = vld [vmem:[#allocation12 + $0x50] sm:$0xff]  ;;  %v2991_v56 = vld [vmem:[#allocation12 + $0xe8] sm:$0xff] }
 0x843   :  { %13375 = vmatprep.subr.bf16.mxu1 %v15800_v0 }
 0x845   :  { %3142 = vmatmul.mubr.f32.gmra.mrb[106].mxu1 %v2968_v49  ;;  %v2990_v49 = vld [vmem:[#allocation12 + $0xe0] sm:$0xff] }
 0x846   :  { %13377 = vmatpush1.bf16.msra.mxu1 %v16841_v10  ;;  %10600 = vmatprep.mubr.msk.f32.mxu1 %vm649_vm0, %v2971_v32  ;;  %v2974_v10 = vld [vmem:[#allocation12 + $0x60] sm:$0xff]  ;;  %v2993_v32 = vld [vmem:[#allocation12 + $0xf8] sm:$0xff] }
 0x847   :  { %13378 = vmatprep.subr.bf16.mxu1 %v15800_v0 }
 0x849   :  { %3147 = vmatmul.mubr.f32.gmra.mrb[108].mxu1 %v2970_v45  ;;  %v2992_v45 = vld [vmem:[#allocation12 + $0xf0] sm:$0xff] }
 0x84a   :  { %13380 = vmatpush1.bf16.msra.mxu1 %v16859_v54  ;;  %10601 = vmatprep.mubr.msk.f32.mxu1 %vm649_vm0, %v2973_v57  ;;  %v2976_v54 = vld [vmem:[#allocation12 + $0x70] sm:$0xff]  ;;  %v2995_v57 = vld [vmem:[#allocation12 + $0x108] sm:$0xff] }
 0x84b   :  { %13381 = vmatprep.subr.bf16.mxu1 %v15800_v0 }
 0x84d   :  { %3152 = vmatmul.mubr.f32.gmra.mrb[110].mxu1 %v2972_v27  ;;  %v2994_v27 = vld [vmem:[#allocation12 + $0x100] sm:$0xff] }
 0x84e   :  { %13383 = vmatpush1.bf16.msra.mxu1 %v16877_v22  ;;  %10602 = vmatprep.mubr.msk.f32.mxu1 %vm649_vm0, %v2975_v43  ;;  %v2978_v22 = vld [vmem:[#allocation12 + $0x80] sm:$0xff]  ;;  %v2997_v43 = vld [vmem:[#allocation12 + $0x118] sm:$0xff] }
 0x84f   :  { %13384 = vmatprep.subr.bf16.mxu1 %v15800_v0 }
 0x851   :  { %3157 = vmatmul.mubr.f32.gmra.mrb[112].mxu1 %v2974_v10  ;;  %v2996_v10 = vld [vmem:[#allocation12 + $0x110] sm:$0xff] }
 0x852   :  { %13386 = vmatpush1.bf16.msra.mxu1 %v16895_v37  ;;  %10603 = vmatprep.mubr.msk.f32.mxu1 %vm649_vm0, %v2977_v60  ;;  %v2980_v37 = vld [vmem:[#allocation12 + $0x90] sm:$0xff]  ;;  %v2999_v60 = vld [vmem:[#allocation12 + $0x128] sm:$0xff] }
 0x853   :  { %13387 = vmatprep.subr.bf16.mxu1 %v15800_v0 }
 0x855   :  { %3162 = vmatmul.mubr.f32.gmra.mrb[114].mxu1 %v2976_v54  ;;  %v2998_v54 = vld [vmem:[#allocation12 + $0x120] sm:$0xff] }
 0x856   :  { %13389 = vmatpush1.bf16.msra.mxu1 %v16913_v59  ;;  %10604 = vmatprep.mubr.msk.f32.mxu1 %vm649_vm0, %v2979_v35  ;;  %v3236_v59 = vld [vmem:[#allocation10 + $0x48] sm:$0xff]  ;;  %v3001_v35 = vld [vmem:[#allocation12 + $0x138] sm:$0xff] }
 0x857   :  { %13390 = vmatprep.subr.bf16.mxu1 %v15800_v0  ;;  %v13350_v16 = vpack.c.bf16 %v3236_v59, %v3235_v33  ;;  %v3606_v33 = vld [vmem:[#allocation12 + $0x2f8] sm:$0xff]  ;;  %v3857_v59 = vld [vmem:[#allocation10 + $0x100] sm:$0xff] }
 0x859   :  { %3167 = vmatmul.mubr.f32.gmra.mrb[116].mxu1 %v2978_v22  ;;  %13351 = vmatprep.subr.bf16.mxu0 %v13350_v16  ;;  %v3594_v22 = vld [vmem:[#allocation12 + $0x298] sm:$0xff] }
 0x85a   :  { %13392 = vmatpush1.bf16.msra.mxu1 %v16929_v18  ;;  %10605 = vmatprep.mubr.msk.f32.mxu1 %vm649_vm0, %v2981_v6  ;;  %v3238_v18 = vld [vmem:[#allocation10 + $0x58] sm:$0xff] }
 0x85b   :  { %13393 = vmatprep.subr.bf16.mxu1 %v15800_v0  ;;  %13353 = vmatpush3.bf16.msra.mxu0 %v13350_v16  ;;  %v3242_v6 = vld [vmem:[#allocation10 + $0x78] sm:$0xff]  ;;  %v3605_v16 = vld [vmem:[#allocation12 + $0x2f0] sm:$0xff] }
 0x85c   :  { %v13362_v19 = vpack.c.bf16 %v3242_v6, %v3241_v28  ;;  %v3859_v28 = vld [vmem:[#allocation10 + $0x110] sm:$0xff]  ;;  %v3860_v6 = vld [vmem:[#allocation10 + $0x118] sm:$0xff] }
 0x85d   :  { %3172 = vmatmul.mubr.f32.gmra.mrb[118].mxu1 %v2980_v37  ;;  %v3598_v37 = vld [vmem:[#allocation12 + $0x2b8] sm:$0xff] }
 0x85e   :  { %13395 = vmatpush1.bf16.msra.mxu1 %v16942_v61  ;;  %10606 = vmatprep.mubr.msk.f32.mxu1 %vm649_vm0, %v2983_v31  ;;  %v13354_v61 = vpack.c.bf16 %v3238_v18, %v3237_v39  ;;  %v3597_v31 = vld [vmem:[#allocation12 + $0x2b0] sm:$0xff]  ;;  %v3608_v39 = vld [vmem:[#allocation12 + $0x308] sm:$0xff]  ;;  %v3607_v18 = vld [vmem:[#allocation12 + $0x300] sm:$0xff] }
 0x85f   :  { %13458 = vmatprep.subr.bf16.mxu1 %v15800_v0 }
 0x860   :  { %13355 = vmatprep.subr.bf16.mxu0 %v13354_v61 }
 0x861   :  { %3177 = vmatmul.mubr.f32.gmra.mrb[120].mxu1 %v2982_v63  ;;  %13357 = vmatpush3.bf16.msra.mxu0 %v13354_v61  ;;  %v3601_v63 = vld [vmem:[#allocation12 + $0x2d0] sm:$0xff] }
 0x862   :  { %10607 = vmatprep.mubr.msk.f32.mxu1 %vm649_vm0, %v2985_v11  ;;  %13359 = vmatprep.subr.bf16.mxu0 %v13358_v17  ;;  %v3603_v11 = vld [vmem:[#allocation12 + $0x2e0] sm:$0xff]  ;;  %v3609_v61 = vld [vmem:[#allocation12 + $0x310] sm:$0xff] }
 0x865   :  { %3182 = vmatmul.mubr.f32.gmra.mrb[122].mxu1 %v2984_v34  ;;  %13361 = vmatpush3.bf16.msra.mxu0 %v13358_v17  ;;  %v3858_v34 = vld [vmem:[#allocation10 + $0x108] sm:$0xff] }
 0x866   :  { %10608 = vmatprep.mubr.msk.f32.mxu1 %vm649_vm0, %v2987_v5  ;;  %13363 = vmatprep.subr.bf16.mxu0 %v13362_v19  ;;  %v13396_v5 = vpack.c.bf16 %v3858_v34, %v3857_v59  ;;  %v3616_v17 = vld [vmem:[#allocation12 + $0x348] sm:$0xff]  ;;  %v3865_v34 = vld [vmem:[#allocation10 + $0x140] sm:$0xff] }
 0x869   :  { %3187 = vmatmul.mubr.f32.gmra.mrb[124].mxu1 %v2986_v36  ;;  %13365 = vmatpush3.bf16.msra.mxu0 %v13362_v19  ;;  %v3610_v36 = vld [vmem:[#allocation12 + $0x318] sm:$0xff]  ;;  %v13400_v19 = vpack.c.bf16 %v3860_v6, %v3859_v28 }
 0x86a   :  { %10609 = vmatprep.mubr.msk.f32.mxu1 %vm649_vm0, %v2989_v62  ;;  %13397 = vmatprep.subr.bf16.mxu0 %v13396_v5  ;;  %v3612_v62 = vld [vmem:[#allocation12 + $0x328] sm:$0xff] }
 0x86d   :  { %3192 = vmatmul.mubr.f32.gmra.mrb[126].mxu1 %v2988_v48  ;;  %v3613_v48 = vld [vmem:[#allocation12 + $0x330] sm:$0xff] }
 0x86e   :  { %10610 = vmatprep.mubr.msk.f32.mxu1 %vm649_vm0, %v2991_v56  ;;  %v3615_v56 = vld [vmem:[#allocation12 + $0x340] sm:$0xff] }
 0x871   :  { %3197 = vmatmul.mubr.f32.gmra.mrb[128].mxu1 %v2990_v49  ;;  %v3618_v49 = vld [vmem:[#allocation12 + $0x358] sm:$0xff] }
 0x872   :  { %10611 = vmatprep.mubr.msk.f32.mxu1 %vm649_vm0, %v2993_v32  ;;  %v3617_v32 = vld [vmem:[#allocation12 + $0x350] sm:$0xff] }
 0x875   :  { %3202 = vmatmul.mubr.f32.gmra.mrb[130].mxu1 %v2992_v45  ;;  %v3620_v45 = vld [vmem:[#allocation12 + $0x368] sm:$0xff] }
 0x876   :  { %10612 = vmatprep.mubr.msk.f32.mxu1 %vm649_vm0, %v2995_v57  ;;  %v3619_v57 = vld [vmem:[#allocation12 + $0x360] sm:$0xff] }
 0x879   :  { %3207 = vmatmul.mubr.f32.gmra.mrb[132].mxu1 %v2994_v27  ;;  %v3622_v27 = vld [vmem:[#allocation12 + $0x378] sm:$0xff] }
 0x87a   :  { %10613 = vmatprep.mubr.msk.f32.mxu1 %vm649_vm0, %v2997_v43  ;;  %v3621_v43 = vld [vmem:[#allocation12 + $0x370] sm:$0xff] }
 0x87d   :  { %3212 = vmatmul.mubr.f32.gmra.mrb[134].mxu1 %v2996_v10  ;;  %v3624_v10 = vld [vmem:[#allocation12 + $0x388] sm:$0xff] }
 0x87e   :  { %10614 = vmatprep.mubr.msk.f32.mxu1 %vm649_vm0, %v2999_v60  ;;  %v3623_v60 = vld [vmem:[#allocation12 + $0x380] sm:$0xff] }
 0x881   :  { %3217 = vmatmul.mubr.f32.gmra.mrb[136].mxu1 %v2998_v54  ;;  %v3626_v54 = vld [vmem:[#allocation12 + $0x398] sm:$0xff] }
 0x882   :  { %10615 = vmatprep.mubr.msk.f32.mxu1 %vm649_vm0, %v3001_v35  ;;  %v3625_v35 = vld [vmem:[#allocation12 + $0x390] sm:$0xff] }
 0x885   :  { %3222 = vmatmul.mubr.f32.gmra.mrb[138].mxu1 %v3000_v9  ;;  %v3628_v9 = vld [vmem:[#allocation12 + $0x3a8] sm:$0xff] }
 0x886   :  { %10616 = vmatprep.mubr.msk.f32.mxu1 %vm649_vm0, %v3592_v25  ;;  %v3627_v25 = vld [vmem:[#allocation12 + $0x3a0] sm:$0xff] }
 0x889   :  { %3756 = vmatmul.mubr.f32.vlgmr.msra.gmra.mrb[140].mxu1 %v3591_v12  ;;  %v3630_v12 = vld [vmem:[#allocation12 + $0x3b8] sm:$0xff] }
 0x88a   :  { %10617 = vmatprep.mubr.msk.f32.mxu1 %vm649_vm0, %v3594_v22  ;;  %v3629_v22 = vld [vmem:[#allocation12 + $0x3b0] sm:$0xff] }
 0x88d   :  { %3761 = vmatmul.mubr.f32.gmra.mrb[142].mxu1 %v3593_v29 }
 0x88e   :  { %10618 = vmatprep.mubr.msk.f32.mxu1 %vm649_vm0, %v3596_v7 }
 0x891   :  { %3766 = vmatmul.mubr.f32.gmra.mrb[144].mxu1 %v3595_v14 }
 0x892   :  { %10619 = vmatprep.mubr.msk.f32.mxu1 %vm649_vm0, %v3598_v37  ;;  %v3861_v37 = vld [vmem:[#allocation10 + $0x120] sm:$0xff] }
 0x895   :  { %3771 = vmatmul.mubr.f32.gmra.mrb[146].mxu1 %v3597_v31  ;;  %v3862_v31 = vld [vmem:[#allocation10 + $0x128] sm:$0xff] }
 0x896   :  { %10620 = vmatprep.mubr.msk.f32.mxu1 %vm649_vm0, %v3600_v41 }
 0x899   :  { %3776 = vmatmul.mubr.f32.gmra.mrb[148].mxu1 %v3599_v46  ;;  %v13404_v46 = vpack.c.bf16 %v3862_v31, %v3861_v37 }
 0x89a   :  { %10621 = vmatprep.mubr.msk.f32.mxu1 %vm649_vm0, %v3602_v20 }
 0x89d   :  { %3781 = vmatmul.mubr.f32.gmra.mrb[150].mxu1 %v3601_v63  ;;  %v3863_v63 = vld [vmem:[#allocation10 + $0x130] sm:$0xff] }
 0x89e   :  { %10622 = vmatprep.mubr.msk.f32.mxu1 %vm649_vm0, %v3604_v26  ;;  %v3864_v26 = vld [vmem:[#allocation10 + $0x138] sm:$0xff] }
 0x8a1   :  { %3786 = vmatmul.mubr.f32.gmra.mrb[152].mxu1 %v3603_v11 }
 0x8a2   :  { %10623 = vmatprep.mubr.msk.f32.mxu1 %vm649_vm0, %v3606_v33  ;;  %v13408_v33 = vpack.c.bf16 %v3864_v26, %v3863_v63 }
 0x8a5   :  { %3791 = vmatmul.mubr.f32.gmra.mrb[154].mxu1 %v3605_v16  ;;  %v3866_v16 = vld [vmem:[#allocation10 + $0x148] sm:$0xff] }
 0x8a6   :  { %10624 = vmatprep.mubr.msk.f32.mxu1 %vm649_vm0, %v3608_v39 }
 0x8a9   :  { %3796 = vmatmul.mubr.f32.gmra.mrb[156].mxu1 %v3607_v18  ;;  %v13412_v18 = vpack.c.bf16 %v3866_v16, %v3865_v34 }
 0x8aa   :  { %10625 = vmatprep.mubr.msk.f32.mxu1 %vm649_vm0, %v3610_v36 }
 0x8ad   :  { %3801 = vmatmul.mubr.f32.gmra.mrb[158].mxu1 %v3609_v61  ;;  %v3868_v61 = vld [vmem:[#allocation10 + $0x158] sm:$0xff] }
 0x8ae   :  { %10626 = vmatprep.mubr.msk.f32.mxu1 %vm649_vm0, %v3612_v62 }
 0x8b1   :  { %3806 = vmatmul.mubr.f32.gmra.mrb[160].mxu1 %v3611_v52 }
 0x8b2   :  { %10627 = vmatprep.mubr.msk.f32.mxu1 %vm649_vm0, %v3614_v24 }
 0x8b5   :  { %3811 = vmatmul.mubr.f32.gmra.mrb[162].mxu1 %v3613_v48  ;;  %v3869_v48 = vld [vmem:[#allocation10 + $0x160] sm:$0xff] }
 0x8b6   :  { %10628 = vmatprep.mubr.msk.f32.mxu1 %vm649_vm0, %v3616_v17  ;;  %v3870_v17 = vld [vmem:[#allocation10 + $0x168] sm:$0xff] }
 0x8b9   :  { %3816 = vmatmul.mubr.f32.gmra.mrb[164].mxu1 %v3615_v56 }
 0x8ba   :  { %10629 = vmatprep.mubr.msk.f32.mxu1 %vm649_vm0, %v3618_v49  ;;  %v13420_v49 = vpack.c.bf16 %v3870_v17, %v3869_v48 }
 0x8bd   :  { %3821 = vmatmul.mubr.f32.gmra.mrb[166].mxu1 %v3617_v32 }
 0x8be   :  { %10630 = vmatprep.mubr.msk.f32.mxu1 %vm649_vm0, %v3620_v45  ;;  %v3871_v45 = vld [vmem:[#allocation10 + $0x170] sm:$0xff] }
 0x8c1   :  { %3826 = vmatmul.mubr.f32.gmra.mrb[168].mxu1 %v3619_v57  ;;  %v3872_v57 = vld [vmem:[#allocation10 + $0x178] sm:$0xff] }
 0x8c2   :  { %10631 = vmatprep.mubr.msk.f32.mxu1 %vm649_vm0, %v3622_v27 }
 0x8c5   :  { %3831 = vmatmul.mubr.f32.gmra.mrb[170].mxu1 %v3621_v43  ;;  %v13424_v43 = vpack.c.bf16 %v3872_v57, %v3871_v45 }
 0x8c6   :  { %10632 = vmatprep.mubr.msk.f32.mxu1 %vm649_vm0, %v3624_v10 }
 0x8c9   :  { %3836 = vmatmul.mubr.f32.gmra.mrb[172].mxu1 %v3623_v60 }
 0x8ca   :  { %10633 = vmatprep.mubr.msk.f32.mxu1 %vm649_vm0, %v3626_v54 }
 0x8cd   :  { %3841 = vmatmul.mubr.f32.gmra.mrb[174].mxu1 %v3625_v35 }
 0x8ce   :  { %10634 = vmatprep.mubr.msk.f32.mxu1 %vm649_vm0, %v3628_v9 }
 0x8d1   :  { %3846 = vmatmul.mubr.f32.gmra.mrb[176].mxu1 %v3627_v25 }
 0x8d2   :  { %10635 = vmatprep.mubr.msk.f32.mxu1 %vm649_vm0, %v3630_v12 }
 0x8d5   :  { %3851 = vmatmul.mubr.f32.gmra.mrb[178].mxu1 %v3629_v22 }
 0x90c   :  { %v3128_v29 = vpop.f32.mrb[100].mxu1 }
 0x90d   :  { %v3130_v7 = vpop.f32.mrb[101].mxu1  ;;  %12045 = vmatprep.mubr.f32.mxu0 %v3128_v29 }
 0x910   :  { %v3133_v14 = vpop.f32.mrb[102].mxu1 }
 0x911   :  { %v3135_v41 = vpop.f32.mrb[103].mxu1  ;;  %12046 = vmatmul.mubr.f32.vlgmr.msra.gmra.mrb[100].mxu0 %v3133_v14 }
 0x912   :  { %13399 = vmatpush3.bf16.msra.mxu0 %v13396_v5  ;;  %v3867_v5 = vld [vmem:[#allocation10 + $0x150] sm:$0xff] }
 0x913   :  { %13401 = vmatprep.subr.bf16.mxu0 %v13400_v19  ;;  %v13416_v52 = vpack.c.bf16 %v3868_v61, %v3867_v5 }
 0x914   :  { %v3138_v20 = vpop.f32.mrb[104].mxu1 }
 0x915   :  { %v3140_v11 = vpop.f32.mrb[105].mxu1  ;;  %12048 = vmatprep.mubr.f32.mxu0 %v3138_v20 }
 0x916   :  { %13403 = vmatpush3.bf16.msra.mxu0 %v13400_v19 }
 0x917   :  { %13405 = vmatprep.subr.bf16.mxu0 %v13404_v46 }
 0x918   :  { %v3143_v59 = vpop.f32.mrb[106].mxu1 }
 0x919   :  { %v3145_v39 = vpop.f32.mrb[107].mxu1  ;;  %12049 = vmatmul.mubr.f32.gmra.mrb[102].mxu0 %v3143_v59 }
 0x91a   :  { %13407 = vmatpush3.bf16.msra.mxu0 %v13404_v46 }
 0x91b   :  { %13409 = vmatprep.subr.bf16.mxu0 %v13408_v33 }
 0x91c   :  { %v3148_v36 = vpop.f32.mrb[108].mxu1 }
 0x91d   :  { %v3150_v62 = vpop.f32.mrb[109].mxu1  ;;  %12051 = vmatprep.mubr.f32.mxu0 %v3148_v36 }
 0x91e   :  { %13411 = vmatpush3.bf16.msra.mxu0 %v13408_v33 }
 0x91f   :  { %13413 = vmatprep.subr.bf16.mxu0 %v13412_v18 }
 0x920   :  { %v3153_v24 = vpop.f32.mrb[110].mxu1 }
 0x921   :  { %v3155_v56 = vpop.f32.mrb[111].mxu1  ;;  %12052 = vmatmul.mubr.f32.gmra.mrb[104].mxu0 %v3153_v24 }
 0x922   :  { %13415 = vmatpush3.bf16.msra.mxu0 %v13412_v18 }
 0x923   :  { %13417 = vmatprep.subr.bf16.mxu0 %v13416_v52 }
 0x924   :  { %v3158_v32 = vpop.f32.mrb[112].mxu1 }
 0x925   :  { %v3160_v27 = vpop.f32.mrb[113].mxu1  ;;  %12054 = vmatprep.mubr.f32.mxu0 %v3158_v32 }
 0x926   :  { %13419 = vmatpush3.bf16.msra.mxu0 %v13416_v52 }
 0x927   :  { %13421 = vmatprep.subr.bf16.mxu0 %v13420_v49 }
 0x928   :  { %v3163_v10 = vpop.f32.mrb[114].mxu1 }
 0x929   :  { %v3165_v60 = vpop.f32.mrb[115].mxu1  ;;  %12055 = vmatmul.mubr.f32.gmra.mrb[106].mxu0 %v3163_v10 }
 0x92a   :  { %13423 = vmatpush3.bf16.msra.mxu0 %v13420_v49 }
 0x92b   :  { %13425 = vmatprep.subr.bf16.mxu0 %v13424_v43 }
 0x92c   :  { %v3168_v54 = vpop.f32.mrb[116].mxu1 }
 0x92d   :  { %v3170_v35 = vpop.f32.mrb[117].mxu1  ;;  %12057 = vmatprep.mubr.f32.mxu0 %v3168_v54 }
 0x92e   :  { %13427 = vmatpush3.bf16.msra.mxu0 %v13424_v43 }
 0x92f   :  { %13428 = vmatprep.subr.bf16.mxu0 %v15800_v0 }
 0x930   :  { %v3173_v9 = vpop.f32.mrb[118].mxu1 }
 0x931   :  { %v3175_v25 = vpop.f32.mrb[119].mxu1  ;;  %12058 = vmatmul.mubr.f32.gmra.mrb[108].mxu0 %v3173_v9 }
 0x934   :  { %v3178_v12 = vpop.f32.mrb[120].mxu1 }
 0x935   :  { %v3180_v22 = vpop.f32.mrb[121].mxu1  ;;  %12060 = vmatprep.mubr.f32.mxu0 %v3178_v12 }
 0x938   :  { %v3183_v29 = vpop.f32.mrb[122].mxu1 }
 0x939   :  { %v3185_v28 = vpop.f32.mrb[123].mxu1  ;;  %12061 = vmatmul.mubr.f32.gmra.mrb[110].mxu0 %v3183_v29 }
 0x93c   :  { %v3188_v6 = vpop.f32.mrb[124].mxu1 }
 0x93d   :  { %v3190_v7 = vpop.f32.mrb[125].mxu1  ;;  %12063 = vmatprep.mubr.f32.mxu0 %v3188_v6 }
 0x940   :  { %v3193_v19 = vpop.f32.mrb[126].mxu1 }
 0x941   :  { %v3195_v14 = vpop.f32.mrb[127].mxu1  ;;  %12064 = vmatmul.mubr.f32.gmra.mrb[112].mxu0 %v3193_v19 }
 0x944   :  { %v3198_v37 = vpop.f32.mrb[128].mxu1 }
 0x945   :  { %v3200_v31 = vpop.f32.mrb[129].mxu1  ;;  %12066 = vmatprep.mubr.f32.mxu0 %v3198_v37 }
 0x948   :  { %v3203_v41 = vpop.f32.mrb[130].mxu1 }
 0x949   :  { %v3205_v46 = vpop.f32.mrb[131].mxu1  ;;  %12067 = vmatmul.mubr.f32.gmra.mrb[114].mxu0 %v3203_v41 }
 0x94c   :  { %v3208_v20 = vpop.f32.mrb[132].mxu1 }
 0x94d   :  { %v3210_v63 = vpop.f32.mrb[133].mxu1  ;;  %12069 = vmatprep.mubr.f32.mxu0 %v3208_v20 }
 0x950   :  { %v3213_v26 = vpop.f32.mrb[134].mxu1 }
 0x951   :  { %v3215_v11 = vpop.f32.mrb[135].mxu1  ;;  %12070 = vmatmul.mubr.f32.gmra.mrb[116].mxu0 %v3213_v26 }
 0x954   :  { %v3218_v33 = vpop.f32.mrb[136].mxu1 }
 0x955   :  { %v3220_v59 = vpop.f32.mrb[137].mxu1  ;;  %12072 = vmatprep.mubr.f32.mxu0 %v3218_v33 }
 0x956   :  { %v4317_v59 = vld [vmem:[#allocation16 + $0x78] sm:$0xff] }
 0x957   :  { %10645 = vmatprep.mubr.msk.f32.mxu1 %vm649_vm0, %v4317_v59 }
 0x958   :  { %v3223_v34 = vpop.f32.mrb[138].mxu1 }
 0x959   :  { %v3225_v16 = vpop.f32.mrb[139].mxu1  ;;  %12073 = vmatmul.mubr.f32.gmra.mrb[118].mxu0 %v3223_v34  ;;  %v4149_v34 = vld [vmem:[#allocation16 + $0x8] sm:$0xff] }
 0x95a   :  { %v17009_v16 = vld [vmem:[#allocation13] ss:$0 sm:$0xff] }
 0x95c   :  { %v3757_v39 = vpop.f32.mrb[140].mxu1 }
 0x95d   :  { %v3759_v18 = vpop.f32.mrb[141].mxu1  ;;  %12107 = vmatprep.mubr.f32.mxu0 %v3757_v39 }
 0x95e   :  { %v17011_v18 = vld [vmem:[#allocation13 + $0x1] ss:$0 sm:$0xff] }
 0x960   :  { %v3762_v36 = vpop.f32.mrb[142].mxu1 }
 0x961   :  { %12108 = vmatmul.mubr.f32.vlgmr.msra.gmra.mrb[100].mxu0 %v3762_v36  ;;  %v3764_v5 = vpop.f32.mrb[143].mxu1 }
 0x964   :  { %v3767_v61 = vpop.f32.mrb[144].mxu1 }
 0x965   :  { %v3769_v62 = vpop.f32.mrb[145].mxu1  ;;  %12110 = vmatprep.mubr.f32.mxu0 %v3767_v61 }
 0x968   :  { %v3772_v52 = vpop.f32.mrb[146].mxu1 }
 0x969   :  { %12111 = vmatmul.mubr.f32.gmra.mrb[102].mxu0 %v3772_v52  ;;  %v3774_v24 = vpop.f32.mrb[147].mxu1 }
 0x96c   :  { %v3777_v48 = vpop.f32.mrb[148].mxu1 }
 0x96d   :  { %v3779_v17 = vpop.f32.mrb[149].mxu1  ;;  %12113 = vmatprep.mubr.f32.mxu0 %v3777_v48 }
 0x970   :  { %v3782_v56 = vpop.f32.mrb[150].mxu1 }
 0x971   :  { %12114 = vmatmul.mubr.f32.gmra.mrb[104].mxu0 %v3782_v56  ;;  %v3784_v49 = vpop.f32.mrb[151].mxu1 }
 0x974   :  { %v3787_v32 = vpop.f32.mrb[152].mxu1 }
 0x975   :  { %v3789_v45 = vpop.f32.mrb[153].mxu1  ;;  %12116 = vmatprep.mubr.f32.mxu0 %v3787_v32 }
 0x978   :  { %v3792_v57 = vpop.f32.mrb[154].mxu1 }
 0x979   :  { %12117 = vmatmul.mubr.f32.gmra.mrb[106].mxu0 %v3792_v57  ;;  %v3794_v27 = vpop.f32.mrb[155].mxu1 }
 0x97c   :  { %v3797_v43 = vpop.f32.mrb[156].mxu1 }
 0x97d   :  { %v3799_v10 = vpop.f32.mrb[157].mxu1  ;;  %12119 = vmatprep.mubr.f32.mxu0 %v3797_v43 }
 0x980   :  { %v3802_v60 = vpop.f32.mrb[158].mxu1 }
 0x981   :  { %12120 = vmatmul.mubr.f32.gmra.mrb[108].mxu0 %v3802_v60  ;;  %v3804_v54 = vpop.f32.mrb[159].mxu1 }
 0x984   :  { %v3807_v35 = vpop.f32.mrb[160].mxu1 }
 0x985   :  { %v3809_v9 = vpop.f32.mrb[161].mxu1  ;;  %12122 = vmatprep.mubr.f32.mxu0 %v3807_v35 }
 0x988   :  { %v3812_v25 = vpop.f32.mrb[162].mxu1 }
 0x989   :  { %12123 = vmatmul.mubr.f32.gmra.mrb[110].mxu0 %v3812_v25  ;;  %v3814_v12 = vpop.f32.mrb[163].mxu1 }
 0x98c   :  { %v3817_v22 = vpop.f32.mrb[164].mxu1 }
 0x98d   :  { %v3819_v29 = vpop.f32.mrb[165].mxu1  ;;  %12125 = vmatprep.mubr.f32.mxu0 %v3817_v22 }
 0x990   :  { %v3822_v28 = vpop.f32.mrb[166].mxu1 }
 0x991   :  { %12126 = vmatmul.mubr.f32.gmra.mrb[112].mxu0 %v3822_v28  ;;  %v3824_v6 = vpop.f32.mrb[167].mxu1 }
 0x994   :  { %v3827_v7 = vpop.f32.mrb[168].mxu1 }
 0x995   :  { %v3829_v19 = vpop.f32.mrb[169].mxu1  ;;  %12128 = vmatprep.mubr.f32.mxu0 %v3827_v7 }
 0x998   :  { %v3832_v14 = vpop.f32.mrb[170].mxu1 }
 0x999   :  { %12129 = vmatmul.mubr.f32.gmra.mrb[114].mxu0 %v3832_v14  ;;  %v3834_v37 = vpop.f32.mrb[171].mxu1 }
 0x99c   :  { %v3837_v31 = vpop.f32.mrb[172].mxu1 }
 0x99d   :  { %v3839_v41 = vpop.f32.mrb[173].mxu1  ;;  %12131 = vmatprep.mubr.f32.mxu0 %v3837_v31 }
 0x9a0   :  { %v3842_v46 = vpop.f32.mrb[174].mxu1 }
 0x9a1   :  { %12132 = vmatmul.mubr.f32.gmra.mrb[116].mxu0 %v3842_v46  ;;  %v3844_v20 = vpop.f32.mrb[175].mxu1 }
 0x9a4   :  { %v3847_v63 = vpop.f32.mrb[176].mxu1 }
 0x9a5   :  { %v3849_v26 = vpop.f32.mrb[177].mxu1  ;;  %12134 = vmatprep.mubr.f32.mxu0 %v3847_v63 }
 0x9a8   :  { %v3852_v11 = vpop.f32.mrb[178].mxu1 }
 0x9a9   :  { %12135 = vmatmul.mubr.f32.gmra.mrb[118].mxu0 %v3852_v11  ;;  %v3854_v33 = vpop.f32.mrb[179].mxu1 }
 0x9aa   :  { %10638 = vmatprep.mubr.msk.f32.mxu0 %vm649_vm0, %v4149_v34 }
 0xa34   :  { %v12109_v39 = vpop.f32.mrb[100].mxu0 }
 0xa35   :  { %v4064_v36 = vmul.f32 %v12109_v39, %v17009_v16  ;;  %v3939_v5 = vpop.f32.mrb[101].mxu0 }
 0xa36   :  { %v4063_v61 = vmul.f32 %v17009_v16, %v3939_v5 }
 0xa37   :  { %v4089_v62 = vadd.f32 %v17011_v18, %v4064_v36 }
 0xa38   :  { %v4088_v52 = vadd.f32 %v17011_v18, %v4063_v61 }
 0xa39   :  { %v4109_v24 = vadd.f32 %v4089_v62, %v16775_v51 }
 0xa3a   :  { %v4108_v48 = vadd.f32 %v4088_v52, %v16779_v15 }
 0xa3b   :  { %v4129_v17 = vmax.f32 %v4109_v24, 0.0 }
 0xa3c   :  { %v4128_v56 = vmax.f32 %v4108_v48, 0.0  ;;  %v12112_v49 = vpop.f32.mrb[102].mxu0 }
 0xa3d   :  { %v4066_v32 = vmul.f32 %v12112_v49, %v17009_v16  ;;  %v3949_v45 = vpop.f32.mrb[103].mxu0 }
 0xa3e   :  { %v17020_v57 = vpack.c.bf16 %v4129_v17, %v4128_v56  ;;  %v4065_v27 = vmul.f32 %v17009_v16, %v3949_v45 }
 0xa3f   :  { %v4091_v43 = vadd.f32 %v17011_v18, %v4066_v32 }
 0xa40   :  { %v4090_v10 = vadd.f32 %v17011_v18, %v4065_v27  ;;  %13430 = vmatpush1.bf16.msra.mxu0 %v17020_v57  ;;  %13460 = vmatpush1.bf16.msra.mxu1 %v17020_v57 }
 0xa41   :  { %v4111_v51 = vadd.f32 %v4091_v43, %v16792_v58  ;;  %13431 = vmatprep.subr.bf16.mxu0 %v15800_v0  ;;  %13461 = vmatprep.subr.bf16.mxu1 %v15800_v0 }
 0xa42   :  { %v4110_v15 = vadd.f32 %v4090_v10, %v16796_v53 }
 0xa43   :  { %v4131_v60 = vmax.f32 %v4111_v51, 0.0 }
 0xa44   :  { %v4130_v54 = vmax.f32 %v4110_v15, 0.0  ;;  %v12115_v35 = vpop.f32.mrb[104].mxu0 }
 0xa45   :  { %v4068_v9 = vmul.f32 %v12115_v35, %v17009_v16  ;;  %v3959_v25 = vpop.f32.mrb[105].mxu0 }
 0xa46   :  { %v17032_v12 = vpack.c.bf16 %v4131_v60, %v4130_v54  ;;  %v4067_v22 = vmul.f32 %v17009_v16, %v3959_v25 }
 0xa47   :  { %v4093_v29 = vadd.f32 %v17011_v18, %v4068_v9 }
 0xa48   :  { %v4092_v58 = vadd.f32 %v17011_v18, %v4067_v22  ;;  %13433 = vmatpush1.bf16.msra.mxu0 %v17032_v12  ;;  %13463 = vmatpush1.bf16.msra.mxu1 %v17032_v12 }
 0xa49   :  { %v4113_v53 = vadd.f32 %v4093_v29, %v16810_v40  ;;  %13434 = vmatprep.subr.bf16.mxu0 %v15800_v0  ;;  %13464 = vmatprep.subr.bf16.mxu1 %v15800_v0 }
 0xa4a   :  { %v4112_v28 = vadd.f32 %v4092_v58, %v16814_v21 }
 0xa4b   :  { %v4133_v6 = vmax.f32 %v4113_v53, 0.0 }
 0xa4c   :  { %v4132_v7 = vmax.f32 %v4112_v28, 0.0  ;;  %v12118_v19 = vpop.f32.mrb[106].mxu0 }
 0xa4d   :  { %v4070_v14 = vmul.f32 %v12118_v19, %v17009_v16  ;;  %v3969_v37 = vpop.f32.mrb[107].mxu0 }
 0xa4e   :  { %v17044_v31 = vpack.c.bf16 %v4133_v6, %v4132_v7  ;;  %v4069_v41 = vmul.f32 %v17009_v16, %v3969_v37 }
 0xa4f   :  { %v4095_v46 = vadd.f32 %v17011_v18, %v4070_v14 }
 0xa50   :  { %v4094_v40 = vadd.f32 %v17011_v18, %v4069_v41  ;;  %13436 = vmatpush1.bf16.msra.mxu0 %v17044_v31  ;;  %13466 = vmatpush1.bf16.msra.mxu1 %v17044_v31 }
 0xa51   :  { %v4115_v21 = vadd.f32 %v4095_v46, %v16828_v8  ;;  %13437 = vmatprep.subr.bf16.mxu0 %v15800_v0  ;;  %13467 = vmatprep.subr.bf16.mxu1 %v15800_v0 }
 0xa52   :  { %v4114_v20 = vadd.f32 %v4094_v40, %v16832_v44 }
 0xa53   :  { %v4135_v63 = vmax.f32 %v4115_v21, 0.0 }
 0xa54   :  { %v4134_v26 = vmax.f32 %v4114_v20, 0.0  ;;  %v12121_v11 = vpop.f32.mrb[108].mxu0 }
 0xa55   :  { %v4072_v33 = vmul.f32 %v12121_v11, %v17009_v16  ;;  %v3979_v59 = vpop.f32.mrb[109].mxu0 }
 0xa56   :  { %v17056_v34 = vpack.c.bf16 %v4135_v63, %v4134_v26  ;;  %v4071_v39 = vmul.f32 %v17009_v16, %v3979_v59 }
 0xa57   :  { %v4097_v36 = vadd.f32 %v17011_v18, %v4072_v33 }
 0xa58   :  { %v4096_v8 = vadd.f32 %v17011_v18, %v4071_v39  ;;  %13439 = vmatpush1.bf16.msra.mxu0 %v17056_v34  ;;  %13469 = vmatpush1.bf16.msra.mxu1 %v17056_v34 }
 0xa59   :  { %v4117_v44 = vadd.f32 %v4097_v36, %v16846_v30  ;;  %13440 = vmatprep.subr.bf16.mxu0 %v15800_v0  ;;  %13470 = vmatprep.subr.bf16.mxu1 %v15800_v0 }
 0xa5a   :  { %v4116_v5 = vadd.f32 %v4096_v8, %v16850_v23 }
 0xa5b   :  { %v4137_v61 = vmax.f32 %v4117_v44, 0.0 }
 0xa5c   :  { %v4136_v62 = vmax.f32 %v4116_v5, 0.0  ;;  %v12124_v52 = vpop.f32.mrb[110].mxu0 }
 0xa5d   :  { %v4074_v24 = vmul.f32 %v12124_v52, %v17009_v16  ;;  %v3989_v48 = vpop.f32.mrb[111].mxu0 }
 0xa5e   :  { %v17068_v17 = vpack.c.bf16 %v4137_v61, %v4136_v62  ;;  %v4073_v56 = vmul.f32 %v17009_v16, %v3989_v48  ;;  %v4453_v61 = vld [vmem:[#allocation15 + $0x108] sm:$0xff]  ;;  %v4455_v62 = vld [vmem:[#allocation15 + $0x118] sm:$0xff] }
 0xa5f   :  { %v4099_v49 = vadd.f32 %v17011_v18, %v4074_v24  ;;  %v13488_v24 = vpack.c.bf16 %v4455_v62, %v4453_v61  ;;  %v4473_v61 = vld [vmem:[#allocation15 + $0x1a8] sm:$0xff]  ;;  %v4475_v62 = vld [vmem:[#allocation15 + $0x1b8] sm:$0xff] }
 0xa60   :  { %v4098_v30 = vadd.f32 %v17011_v18, %v4073_v56  ;;  %13442 = vmatpush1.bf16.msra.mxu0 %v17068_v17  ;;  %13472 = vmatpush1.bf16.msra.mxu1 %v17068_v17  ;;  %v4454_v56 = vld [vmem:[#allocation15 + $0x110] sm:$0xff] }
 0xa61   :  { %v4119_v23 = vadd.f32 %v4099_v49, %v16864_v47  ;;  %13443 = vmatprep.subr.bf16.mxu0 %v15800_v0  ;;  %13473 = vmatprep.subr.bf16.mxu1 %v15800_v0  ;;  %v4148_v49 = vld [vmem:[#allocation16] sm:$0xff] }
 0xa62   :  { %v4118_v32 = vadd.f32 %v4098_v30, %v16868_v4  ;;  %v4319_v30 = vld [vmem:[#allocation16 + $0x88] sm:$0xff] }
 0xa63   :  { %v4139_v45 = vmax.f32 %v4119_v23, 0.0 }
 0xa64   :  { %v4138_v27 = vmax.f32 %v4118_v32, 0.0  ;;  %v12127_v43 = vpop.f32.mrb[112].mxu0  ;;  %v4457_v32 = vld [vmem:[#allocation15 + $0x128] sm:$0xff] }
 0xa65   :  { %v4076_v10 = vmul.f32 %v12127_v43, %v17009_v16  ;;  %v3999_v51 = vpop.f32.mrb[113].mxu0  ;;  %v4150_v43 = vld [vmem:[#allocation16 + $0x10] sm:$0xff] }
 0xa66   :  { %v17080_v15 = vpack.c.bf16 %v4139_v45, %v4138_v27  ;;  %v4075_v60 = vmul.f32 %v17009_v16, %v3999_v51  ;;  %v4459_v45 = vld [vmem:[#allocation15 + $0x138] sm:$0xff]  ;;  %v4318_v27 = vld [vmem:[#allocation16 + $0x80] sm:$0xff]  ;;  %v4153_v51 = vld [vmem:[#allocation16 + $0x28] sm:$0xff] }
 0xa67   :  { %v4101_v54 = vadd.f32 %v17011_v18, %v4076_v10  ;;  %v4321_v10 = vld [vmem:[#allocation16 + $0x98] sm:$0xff] }
 0xa68   :  { %v4100_v47 = vadd.f32 %v17011_v18, %v4075_v60  ;;  %13445 = vmatpush1.bf16.msra.mxu0 %v17080_v15  ;;  %13475 = vmatpush1.bf16.msra.mxu1 %v17080_v15  ;;  %v13492_v60 = vpack.c.bf16 %v4459_v45, %v4457_v32 }
 0xa69   :  { %v4121_v4 = vadd.f32 %v4101_v54, %v16882_v1  ;;  %13446 = vmatprep.subr.bf16.mxu0 %v15800_v0  ;;  %13476 = vmatprep.subr.bf16.mxu1 %v15800_v0  ;;  %v4456_v54 = vld [vmem:[#allocation15 + $0x120] sm:$0xff] }
 0xa6a   :  { %v4120_v35 = vadd.f32 %v4100_v47, %v16886_v3  ;;  %v4458_v47 = vld [vmem:[#allocation15 + $0x130] sm:$0xff] }
 0xa6b   :  { %v4141_v9 = vmax.f32 %v4121_v4, 0.0  ;;  %v4152_v4 = vld [vmem:[#allocation16 + $0x20] sm:$0xff] }
 0xa6c   :  { %v4140_v25 = vmax.f32 %v4120_v35, 0.0  ;;  %v12130_v22 = vpop.f32.mrb[114].mxu0  ;;  %v4323_v35 = vld [vmem:[#allocation16 + $0xa8] sm:$0xff] }
 0xa6d   :  { %v4078_v29 = vmul.f32 %v12130_v22, %v17009_v16  ;;  %v4009_v58 = vpop.f32.mrb[115].mxu0  ;;  %v4461_v22 = vld [vmem:[#allocation15 + $0x148] sm:$0xff] }
 0xa6e   :  { %v17092_v53 = vpack.c.bf16 %v4141_v9, %v4140_v25  ;;  %v4077_v28 = vmul.f32 %v17009_v16, %v4009_v58  ;;  %v4155_v9 = vld [vmem:[#allocation16 + $0x38] sm:$0xff]  ;;  %v13494_v25 = vpack.c.bf16 %v4458_v47, %v4456_v54  ;;  %v4154_v58 = vld [vmem:[#allocation16 + $0x30] sm:$0xff]  ;;  %v4703_v54 = vld [vmem:[#allocation16 + $0x100] sm:$0xff] }
 0xa6f   :  { %v4103_v6 = vadd.f32 %v17011_v18, %v4078_v29  ;;  %v4463_v29 = vld [vmem:[#allocation15 + $0x158] sm:$0xff] }
 0xa70   :  { %v4102_v1 = vadd.f32 %v17011_v18, %v4077_v28  ;;  %13448 = vmatpush1.bf16.msra.mxu0 %v17092_v53  ;;  %13478 = vmatpush1.bf16.msra.mxu1 %v17092_v53  ;;  %v4325_v28 = vld [vmem:[#allocation16 + $0xb8] sm:$0xff] }
 0xa71   :  { %v4123_v3 = vadd.f32 %v4103_v6, %v16900_v13  ;;  %13449 = vmatprep.subr.bf16.mxu0 %v15800_v0  ;;  %13479 = vmatprep.subr.bf16.mxu1 %v15800_v0  ;;  %v4157_v6 = vld [vmem:[#allocation16 + $0x48] sm:$0xff]  ;;  %v4706_v47 = vld [vmem:[#allocation16 + $0x118] sm:$0xff] }
 0xa72   :  { %v4122_v7 = vadd.f32 %v4102_v1, %v16904_v42  ;;  %v13496_v1 = vpack.c.bf16 %v4463_v29, %v4461_v22  ;;  %v4711_v22 = vld [vmem:[#allocation16 + $0x140] sm:$0xff]  ;;  %v4284_v29 = vld [vmem:[#allocation15 + $0x8] sm:$0xff] }
 0xa73   :  { %v4143_v19 = vmax.f32 %v4123_v3, 0.0  ;;  %v4460_v3 = vld [vmem:[#allocation15 + $0x140] sm:$0xff] }
 0xa74   :  { %v4142_v14 = vmax.f32 %v4122_v7, 0.0  ;;  %v12133_v37 = vpop.f32.mrb[116].mxu0  ;;  %v4462_v7 = vld [vmem:[#allocation15 + $0x150] sm:$0xff] }
 0xa75   :  { %v4080_v41 = vmul.f32 %v12133_v37, %v17009_v16  ;;  %v4019_v46 = vpop.f32.mrb[117].mxu0  ;;  %v4159_v37 = vld [vmem:[#allocation16 + $0x58] sm:$0xff] }
 0xa76   :  { %v17104_v40 = vpack.c.bf16 %v4143_v19, %v4142_v14  ;;  %v4079_v21 = vmul.f32 %v17009_v16, %v4019_v46  ;;  %v4156_v19 = vld [vmem:[#allocation16 + $0x40] sm:$0xff]  ;;  %v4327_v14 = vld [vmem:[#allocation16 + $0xc8] sm:$0xff] }
 0xa77   :  { %v4105_v20 = vadd.f32 %v17011_v18, %v4080_v41  ;;  %v13498_v41 = vpack.c.bf16 %v4462_v7, %v4460_v3  ;;  %v4465_v46 = vld [vmem:[#allocation15 + $0x168] sm:$0xff]  ;;  %v4290_v7 = vld [vmem:[#allocation15 + $0x38] sm:$0xff] }
 0xa78   :  { %v4104_v13 = vadd.f32 %v17011_v18, %v4079_v21  ;;  %13451 = vmatpush1.bf16.msra.mxu0 %v17104_v40  ;;  %13481 = vmatpush1.bf16.msra.mxu1 %v17104_v40  ;;  %v4467_v21 = vld [vmem:[#allocation15 + $0x178] sm:$0xff]  ;;  %v4288_v3 = vld [vmem:[#allocation15 + $0x28] sm:$0xff] }
 0xa79   :  { %v4125_v42 = vadd.f32 %v4105_v20, %v16918_v2  ;;  %13452 = vmatprep.subr.bf16.mxu0 %v15800_v0  ;;  %13482 = vmatprep.subr.bf16.mxu1 %v15800_v0  ;;  %v4158_v20 = vld [vmem:[#allocation16 + $0x50] sm:$0xff] }
 0xa7a   :  { %v4124_v63 = vadd.f32 %v4104_v13, %v16922_v55  ;;  %v4329_v13 = vld [vmem:[#allocation16 + $0xd8] sm:$0xff] }
 0xa7b   :  { %v4145_v26 = vmax.f32 %v4125_v42, 0.0  ;;  %v4161_v42 = vld [vmem:[#allocation16 + $0x68] sm:$0xff] }
 0xa7c   :  { %v4144_v11 = vmax.f32 %v4124_v63, 0.0  ;;  %v12136_v33 = vpop.f32.mrb[118].mxu0  ;;  %v13500_v63 = vpack.c.bf16 %v4467_v21, %v4465_v46  ;;  %v4292_v46 = vld [vmem:[#allocation15 + $0x48] sm:$0xff]  ;;  %v4294_v21 = vld [vmem:[#allocation15 + $0x58] sm:$0xff] }
 0xa7d   :  { %v4082_v59 = vmul.f32 %v12136_v33, %v17009_v16  ;;  %v4029_v39 = vpop.f32.mrb[119].mxu0  ;;  %v4469_v33 = vld [vmem:[#allocation15 + $0x188] sm:$0xff] }
 0xa7e   :  { %v17116_v36 = vpack.c.bf16 %v4145_v26, %v4144_v11  ;;  %v4081_v8 = vmul.f32 %v17009_v16, %v4029_v39  ;;  %v4464_v26 = vld [vmem:[#allocation15 + $0x160] sm:$0xff]  ;;  %v4466_v11 = vld [vmem:[#allocation15 + $0x170] sm:$0xff] }
 0xa7f   :  { %v4107_v44 = vadd.f32 %v17011_v18, %v4082_v59  ;;  %v4471_v59 = vld [vmem:[#allocation15 + $0x198] sm:$0xff]  ;;  %v4160_v39 = vld [vmem:[#allocation16 + $0x60] sm:$0xff] }
 0xa80   :  { %v4106_v2 = vadd.f32 %v17011_v18, %v4081_v8  ;;  %13454 = vmatpush1.bf16.msra.mxu0 %v17116_v36  ;;  %13484 = vmatpush1.bf16.msra.mxu1 %v17116_v36  ;;  %v4452_v18 = vld [vmem:[#allocation15 + $0x100] sm:$0xff]  ;;  %v4700_v8 = vld [vmem:[#allocation16 + $0xe8] sm:$0xff] }
 0xa81   :  { %v4127_v55 = vadd.f32 %v4107_v44, %v16933_v50  ;;  %13455 = vmatprep.subr.bf16.mxu0 %v15800_v0  ;;  %13485 = vmatprep.subr.bf16.mxu1 %v15800_v0  ;;  %v4316_v50 = vld [vmem:[#allocation16 + $0x70] sm:$0xff]  ;;  %v13490_v23 = vpack.c.bf16 %v4454_v56, %v4452_v18  ;;  %v13502_v44 = vpack.c.bf16 %v4466_v11, %v4464_v26  ;;  %v4477_v18 = vld [vmem:[#allocation15 + $0x1c8] sm:$0xff]  ;;  %v4479_v56 = vld [vmem:[#allocation15 + $0x1d8] sm:$0xff] }
 0xa82   :  { %v4126_v5 = vadd.f32 %v4106_v2, %v16936_v38  ;;  %v4151_v38 = vld [vmem:[#allocation16 + $0x18] sm:$0xff]  ;;  %v13504_v2 = vpack.c.bf16 %v4471_v59, %v4469_v33  ;;  %v4291_v26 = vld [vmem:[#allocation15 + $0x40] sm:$0xff]  ;;  %v4293_v11 = vld [vmem:[#allocation15 + $0x50] sm:$0xff] }
 0xa83   :  { %v4147_v52 = vmax.f32 %v4127_v55, 0.0  ;;  %v4468_v55 = vld [vmem:[#allocation15 + $0x180] sm:$0xff]  ;;  %v4296_v59 = vld [vmem:[#allocation15 + $0x68] sm:$0xff] }
 0xa84   :  { %v4146_v16 = vmax.f32 %v4126_v5, 0.0  ;;  %v4470_v5 = vld [vmem:[#allocation15 + $0x190] sm:$0xff] }
 0xa86   :  { %v17127_v48 = vpack.c.bf16 %v4147_v52, %v4146_v16  ;;  %v13508_v52 = vpack.c.bf16 %v4475_v62, %v4473_v61  ;;  %v4472_v16 = vld [vmem:[#allocation15 + $0x1a0] sm:$0xff]  ;;  %v4297_v61 = vld [vmem:[#allocation15 + $0x70] sm:$0xff] }
 0xa88   :  { %13457 = vmatpush1.bf16.msra.mxu0 %v17127_v48  ;;  %13487 = vmatpush1.bf16.msra.mxu1 %v17127_v48 }
 0xa89   :  { %13552 = vmatprep.subr.bf16.mxu1 %v15800_v0  ;;  %13489 = vmatprep.subr.bf16.mxu0 %v13488_v24  ;;  %v4474_v24 = vld [vmem:[#allocation15 + $0x1b0] sm:$0xff] }
 0xa8b   :  { %4416 = vmatmul.mubr.f32.vlgmr.msra.gmra.mrb[180].mxu1 %v4316_v50  ;;  %4248 = vmatmul.mubr.f32.vlgmr.msra.gmra.mrb[120].mxu0 %v4148_v49  ;;  %v13510_v50 = vpack.c.bf16 %v4474_v24, %v4472_v16  ;;  %v4476_v49 = vld [vmem:[#allocation15 + $0x1c0] sm:$0xff] }
 0xa8c   :  { %13554 = vmatpush1.bf16.msra.mxu1 %v17020_v57  ;;  %10646 = vmatprep.mubr.msk.f32.mxu1 %vm649_vm0, %v4319_v30  ;;  %v4320_v57 = vld [vmem:[#allocation16 + $0x90] sm:$0xff] }
 0xa8d   :  { %13555 = vmatprep.subr.bf16.mxu1 %v15800_v0  ;;  %10639 = vmatprep.mubr.msk.f32.mxu0 %vm649_vm0, %v4151_v38  ;;  %v4478_v30 = vld [vmem:[#allocation15 + $0x1d0] sm:$0xff]  ;;  %v4481_v38 = vld [vmem:[#allocation15 + $0x1e8] sm:$0xff] }
 0xa8e   :  { %13491 = vmatpush1.bf16.msra.mxu0 %v13490_v23  ;;  %v4483_v23 = vld [vmem:[#allocation15 + $0x1f8] sm:$0xff]  ;;  %v13514_v32 = vpack.c.bf16 %v4478_v30, %v4476_v49  ;;  %v4301_v49 = vld [vmem:[#allocation15 + $0x90] sm:$0xff] }
 0xa8f   :  { %4421 = vmatmul.mubr.f32.gmra.mrb[182].mxu1 %v4318_v27  ;;  %4253 = vmatmul.mubr.f32.gmra.mrb[122].mxu0 %v4150_v43  ;;  %v13516_v45 = vpack.c.bf16 %v4483_v23, %v4481_v38  ;;  %v4480_v27 = vld [vmem:[#allocation15 + $0x1e0] sm:$0xff]  ;;  %v4304_v38 = vld [vmem:[#allocation15 + $0xa8] sm:$0xff]  ;;  %v4306_v23 = vld [vmem:[#allocation15 + $0xb8] sm:$0xff] }
 0xa90   :  { %13557 = vmatpush1.bf16.msra.mxu1 %v17032_v12  ;;  %10647 = vmatprep.mubr.msk.f32.mxu1 %vm649_vm0, %v4321_v10  ;;  %v4322_v12 = vld [vmem:[#allocation16 + $0xa0] sm:$0xff]  ;;  %v4702_v10 = vld [vmem:[#allocation16 + $0xf8] sm:$0xff] }
 0xa91   :  { %13558 = vmatprep.subr.bf16.mxu1 %v15800_v0  ;;  %10640 = vmatprep.mubr.msk.f32.mxu0 %vm649_vm0, %v4153_v51  ;;  %v4699_v43 = vld [vmem:[#allocation16 + $0xe0] sm:$0xff] }
 0xa92   :  { %13493 = vmatprep.subr.bf16.mxu0 %v13492_v60  ;;  %v4701_v60 = vld [vmem:[#allocation16 + $0xf0] sm:$0xff] }
 0xa93   :  { %4426 = vmatmul.mubr.f32.gmra.mrb[184].mxu1 %v4320_v57  ;;  %4258 = vmatmul.mubr.f32.gmra.mrb[124].mxu0 %v4152_v4  ;;  %v4708_v57 = vld [vmem:[#allocation16 + $0x128] sm:$0xff]  ;;  %v4707_v4 = vld [vmem:[#allocation16 + $0x120] sm:$0xff] }
 0xa94   :  { %13560 = vmatpush1.bf16.msra.mxu1 %v17044_v31  ;;  %10648 = vmatprep.mubr.msk.f32.mxu1 %vm649_vm0, %v4323_v35  ;;  %v4324_v31 = vld [vmem:[#allocation16 + $0xb0] sm:$0xff]  ;;  %v4710_v35 = vld [vmem:[#allocation16 + $0x138] sm:$0xff] }
 0xa95   :  { %13561 = vmatprep.subr.bf16.mxu1 %v15800_v0  ;;  %10641 = vmatprep.mubr.msk.f32.mxu0 %vm649_vm0, %v4155_v9  ;;  %v4709_v9 = vld [vmem:[#allocation16 + $0x130] sm:$0xff] }
 0xa96   :  { %13495 = vmatpush1.bf16.msra.mxu0 %v13494_v25  ;;  %v4712_v25 = vld [vmem:[#allocation16 + $0x148] sm:$0xff] }
 0xa97   :  { %4431 = vmatmul.mubr.f32.gmra.mrb[186].mxu1 %v4322_v12  ;;  %4263 = vmatmul.mubr.f32.gmra.mrb[126].mxu0 %v4154_v58  ;;  %v4286_v12 = vld [vmem:[#allocation15 + $0x18] sm:$0xff] }
 0xa98   :  { %13563 = vmatpush1.bf16.msra.mxu1 %v17056_v34  ;;  %10649 = vmatprep.mubr.msk.f32.mxu1 %vm649_vm0, %v4325_v28  ;;  %v4326_v34 = vld [vmem:[#allocation16 + $0xc0] sm:$0xff]  ;;  %v13520_v58 = vpack.c.bf16 %v4286_v12, %v4284_v29  ;;  %v15801_v28 = vmov 0.0   ;;  %v4312_v29 = vld [vmem:[#allocation15 + $0xe8] sm:$0xff]  ;;  %v4314_v12 = vld [vmem:[#allocation15 + $0xf8] sm:$0xff] }
 0xa99   :  { %13564 = vmatprep.subr.bf16.mxu1 %v15800_v0  ;;  %10642 = vmatprep.mubr.msk.f32.mxu0 %vm649_vm0, %v4157_v6  ;;  %v4283_v6 = vld [vmem:[#allocation15] sm:$0xff] }
 0xa9a   :  { %13497 = vmatprep.subr.bf16.mxu0 %v13496_v1  ;;  %v4285_v1 = vld [vmem:[#allocation15 + $0x10] sm:$0xff] }
 0xa9b   :  { %4436 = vmatmul.mubr.f32.gmra.mrb[188].mxu1 %v4324_v31  ;;  %4268 = vmatmul.mubr.f32.gmra.mrb[128].mxu0 %v4156_v19  ;;  %v13522_v31 = vpack.c.bf16 %v4285_v1, %v4283_v6  ;;  %v13524_v19 = vpack.c.bf16 %v4290_v7, %v4288_v3  ;;  %v13548_v7 = vpack.c.bf16 %v4314_v12, %v4312_v29  ;;  %v4864_v29 = vld [vmem:[#allocation15 + $0x2e8] sm:$0xff]  ;;  %v4866_v12 = vld [vmem:[#allocation15 + $0x2f8] sm:$0xff] }
 0xa9c   :  { %13566 = vmatpush1.bf16.msra.mxu1 %v17068_v17  ;;  %10650 = vmatprep.mubr.msk.f32.mxu1 %vm649_vm0, %v4327_v14  ;;  %v4328_v17 = vld [vmem:[#allocation16 + $0xd0] sm:$0xff]  ;;  %v4287_v14 = vld [vmem:[#allocation15 + $0x20] sm:$0xff] }
 0xa9d   :  { %13567 = vmatprep.subr.bf16.mxu1 %v15800_v0  ;;  %10643 = vmatprep.mubr.msk.f32.mxu0 %vm649_vm0, %v4159_v37  ;;  %v4289_v37 = vld [vmem:[#allocation15 + $0x30] sm:$0xff] }
 0xa9e   :  { %13499 = vmatpush1.bf16.msra.mxu0 %v13498_v41 }
 0xa9f   :  { %4441 = vmatmul.mubr.f32.gmra.mrb[190].mxu1 %v4326_v34  ;;  %4273 = vmatmul.mubr.f32.gmra.mrb[130].mxu0 %v4158_v20 }
 0xaa0   :  { %13569 = vmatpush1.bf16.msra.mxu1 %v17080_v15  ;;  %10651 = vmatprep.mubr.msk.f32.mxu1 %vm649_vm0, %v4329_v13  ;;  %v13506_v15 = vpack.c.bf16 %v4470_v5, %v4468_v55  ;;  %v4295_v5 = vld [vmem:[#allocation15 + $0x60] sm:$0xff] }
 0xaa1   :  { %13570 = vmatprep.subr.bf16.mxu1 %v15800_v0  ;;  %10644 = vmatprep.mubr.msk.f32.mxu0 %vm649_vm0, %v4161_v42  ;;  %v13526_v42 = vpack.c.bf16 %v4289_v37, %v4287_v14  ;;  %v4836_v37 = vld [vmem:[#allocation15 + $0x208] sm:$0xff] }
 0xaa2   :  { %13501 = vmatprep.subr.bf16.mxu0 %v13500_v63  ;;  %v13528_v63 = vpack.c.bf16 %v4294_v21, %v4292_v46 }
 0xaa3   :  { %4446 = vmatmul.mubr.f32.gmra.mrb[192].mxu1 %v4328_v17  ;;  %4278 = vmatmul.mubr.f32.gmra.mrb[132].mxu0 %v4160_v39  ;;  %v4298_v17 = vld [vmem:[#allocation15 + $0x78] sm:$0xff] }
 0xaa4   :  { %13572 = vmatpush1.bf16.msra.mxu1 %v17092_v53  ;;  %10652 = vmatprep.mubr.msk.f32.mxu1 %vm649_vm0, %v4700_v8  ;;  %v13512_v53 = vpack.c.bf16 %v4479_v56, %v4477_v18  ;;  %v13532_v55 = vpack.c.bf16 %v4298_v17, %v4296_v59  ;;  %v13534_v56 = vpack.c.bf16 %v4297_v61, %v4295_v5 }
 0xaa5   :  { %13573 = vmatprep.subr.bf16.mxu1 %v15800_v0  ;;  %13503 = vmatpush1.bf16.msra.mxu0 %v13502_v44 }
 0xaa6   :  { %13505 = vmatprep.subr.bf16.mxu0 %v13504_v2  ;;  %4548 = vmatprep.mubr.f32.mxu0 %v15801_v28  ;;  %v13530_v2 = vpack.c.bf16 %v4293_v11, %v4291_v26  ;;  %v4837_v26 = vld [vmem:[#allocation15 + $0x210] sm:$0xff]  ;;  %v4840_v11 = vld [vmem:[#allocation15 + $0x228] sm:$0xff] }
 0xaa8   :  { %13575 = vmatpush1.bf16.msra.mxu1 %v17104_v40  ;;  %v4482_v40 = vld [vmem:[#allocation15 + $0x1f0] sm:$0xff] }
 0xaa9   :  { %13576 = vmatprep.subr.bf16.mxu1 %v15800_v0  ;;  %13507 = vmatpush1.bf16.msra.mxu0 %v13506_v15  ;;  %v13518_v51 = vpack.c.bf16 %v4482_v40, %v4480_v27  ;;  %v4300_v15 = vld [vmem:[#allocation15 + $0x88] sm:$0xff] }
 0xaaa   :  { %13509 = vmatprep.subr.bf16.mxu0 %v13508_v52  ;;  %v4302_v52 = vld [vmem:[#allocation15 + $0x98] sm:$0xff] }
 0xaac   :  { %13578 = vmatpush1.bf16.msra.mxu1 %v17116_v36  ;;  %v4704_v36 = vld [vmem:[#allocation16 + $0x108] sm:$0xff] }
 0xaad   :  { %13579 = vmatprep.subr.bf16.mxu1 %v15800_v0  ;;  %13511 = vmatpush1.bf16.msra.mxu0 %v13510_v50  ;;  %v13536_v50 = vpack.c.bf16 %v4302_v52, %v4300_v15  ;;  %v4845_v15 = vld [vmem:[#allocation15 + $0x250] sm:$0xff]  ;;  %v4848_v52 = vld [vmem:[#allocation15 + $0x268] sm:$0xff] }
 0xaae   :  { %13513 = vmatprep.subr.bf16.mxu0 %v13512_v53  ;;  %v4299_v53 = vld [vmem:[#allocation15 + $0x80] sm:$0xff] }
 0xaaf   :  { %v13538_v40 = vpack.c.bf16 %v4301_v49, %v4299_v53  ;;  %v4852_v53 = vld [vmem:[#allocation15 + $0x288] sm:$0xff]  ;;  %v4854_v49 = vld [vmem:[#allocation15 + $0x298] sm:$0xff] }
 0xab0   :  { %13581 = vmatpush1.bf16.msra.mxu1 %v17127_v48  ;;  %v4705_v48 = vld [vmem:[#allocation16 + $0x110] sm:$0xff] }
 0xab1   :  { %13515 = vmatpush1.bf16.msra.mxu0 %v13514_v32 }
 0xab2   :  { %13517 = vmatprep.subr.bf16.mxu0 %v13516_v45 }
 0xab3   :  { %4799 = vmatmul.mubr.f32.vlgmr.msra.gmra.mrb[194].mxu1 %v4699_v43  ;;  %v13540_v43 = vpack.c.bf16 %v4306_v23, %v4304_v38 }
 0xab4   :  { %10653 = vmatprep.mubr.msk.f32.mxu1 %vm649_vm0, %v4702_v10  ;;  %v4303_v10 = vld [vmem:[#allocation15 + $0xa0] sm:$0xff] }
 0xab5   :  { %13519 = vmatpush1.bf16.msra.mxu0 %v13518_v51  ;;  %v4305_v51 = vld [vmem:[#allocation15 + $0xb0] sm:$0xff] }
 0xab6   :  { %13521 = vmatprep.subr.bf16.mxu0 %v13520_v58 }
 0xab7   :  { %4804 = vmatmul.mubr.f32.gmra.mrb[196].mxu1 %v4701_v60 }
 0xab8   :  { %10654 = vmatprep.mubr.msk.f32.mxu1 %vm649_vm0, %v4704_v36  ;;  %v4308_v36 = vld [vmem:[#allocation15 + $0xc8] sm:$0xff] }
 0xabb   :  { %4809 = vmatmul.mubr.f32.gmra.mrb[198].mxu1 %v4703_v54  ;;  %v4310_v54 = vld [vmem:[#allocation15 + $0xd8] sm:$0xff] }
 0xabc   :  { %10655 = vmatprep.mubr.msk.f32.mxu1 %vm649_vm0, %v4706_v47 }
 0xabf   :  { %4814 = vmatmul.mubr.f32.gmra.mrb[200].mxu1 %v4705_v48 }
 0xac0   :  { %10656 = vmatprep.mubr.msk.f32.mxu1 %vm649_vm0, %v4708_v57 }
 0xac3   :  { %4819 = vmatmul.mubr.f32.gmra.mrb[202].mxu1 %v4707_v4  ;;  %v13542_v4 = vpack.c.bf16 %v4305_v51, %v4303_v10 }
 0xac4   :  { %10657 = vmatprep.mubr.msk.f32.mxu1 %vm649_vm0, %v4710_v35  ;;  %v13544_v35 = vpack.c.bf16 %v4310_v54, %v4308_v36  ;;  %v4855_v36 = vld [vmem:[#allocation15 + $0x2a0] sm:$0xff]  ;;  %v4857_v54 = vld [vmem:[#allocation15 + $0x2b0] sm:$0xff] }
 0xac7   :  { %4824 = vmatmul.mubr.f32.gmra.mrb[204].mxu1 %v4709_v9  ;;  %v4307_v9 = vld [vmem:[#allocation15 + $0xc0] sm:$0xff] }
 0xac8   :  { %10658 = vmatprep.mubr.msk.f32.mxu1 %vm649_vm0, %v4712_v25  ;;  %v4309_v25 = vld [vmem:[#allocation15 + $0xd0] sm:$0xff] }
 0xac9   :  { %v13546_v3 = vpack.c.bf16 %v4309_v25, %v4307_v9  ;;  %v13604_v9 = vpack.c.bf16 %v4857_v54, %v4855_v36  ;;  %v4859_v25 = vld [vmem:[#allocation15 + $0x2c0] sm:$0xff] }
 0xacb   :  { %4829 = vmatmul.mubr.f32.gmra.mrb[206].mxu1 %v4711_v22 }
 0xacc   :  { %5148 = vmatprep.mubr.f32.mxu1 %v15801_v28 }
 0xb5e   :  { %v4417_v41 = vpop.f32.mrb[180].mxu1  ;;  %v17172_v34 = vpop.f32.mrb[120].mxu0 }
 0xb5f   :  { %4549 = vmatmul.mubr.f32.vlgmr.msra.gmra.mrb[134].mxu0 %v4417_v41  ;;  %v4419_v20 = vpop.f32.mrb[181].mxu1  ;;  %v4251_v13 = vpop.f32.mrb[121].mxu0  ;;  %v4838_v41 = vld [vmem:[#allocation15 + $0x218] sm:$0xff] }
 0xb60   :  { %13523 = vmatpush1.bf16.msra.mxu0 %v13522_v31  ;;  %4554 = vmatprep.mubr.f32.mxu0 %v15801_v28  ;;  %v4311_v31 = vld [vmem:[#allocation15 + $0xe0] sm:$0xff] }
 0xb61   :  { %13525 = vmatprep.subr.bf16.mxu0 %v13524_v19  ;;  %v4313_v19 = vld [vmem:[#allocation15 + $0xf0] sm:$0xff] }
 0xb62   :  { %v4422_v33 = vpop.f32.mrb[182].mxu1  ;;  %v17175_v39 = vpop.f32.mrb[122].mxu0  ;;  %v13550_v13 = vpack.c.bf16 %v4313_v19, %v4311_v31  ;;  %v4865_v31 = vld [vmem:[#allocation15 + $0x2f0] sm:$0xff] }
 0xb63   :  { %4555 = vmatmul.mubr.f32.gmra.mrb[136].mxu0 %v4422_v33  ;;  %v4424_v8 = vpop.f32.mrb[183].mxu1  ;;  %v4256_v44 = vpop.f32.mrb[123].mxu0  ;;  %v4842_v33 = vld [vmem:[#allocation15 + $0x238] sm:$0xff] }
 0xb64   :  { %13527 = vmatpush1.bf16.msra.mxu0 %v13526_v42  ;;  %4560 = vmatprep.mubr.f32.mxu0 %v15801_v28  ;;  %v13582_v42 = vpack.c.bf16 %v4838_v41, %v4836_v37  ;;  %v13586_v17 = vpack.c.bf16 %v4842_v33, %v4840_v11  ;;  %v4839_v8 = vld [vmem:[#allocation15 + $0x220] sm:$0xff]  ;;  %v4841_v44 = vld [vmem:[#allocation15 + $0x230] sm:$0xff] }
 0xb65   :  { %13529 = vmatprep.subr.bf16.mxu0 %v13528_v63  ;;  %v4835_v63 = vld [vmem:[#allocation15 + $0x200] sm:$0xff]  ;;  %v13588_v5 = vpack.c.bf16 %v4841_v44, %v4839_v8  ;;  %v5259_v37 = vld [vmem:[#allocation19 + $0x218] sm:$0xff] }
 0xb66   :  { %v4427_v62 = vpop.f32.mrb[184].mxu1  ;;  %v17178_v16 = vpop.f32.mrb[124].mxu0  ;;  %v13584_v59 = vpack.c.bf16 %v4837_v26, %v4835_v63  ;;  %v5261_v63 = vld [vmem:[#allocation19 + $0x228] sm:$0xff]  ;;  %v5263_v26 = vld [vmem:[#allocation19 + $0x238] sm:$0xff] }
 0xb67   :  { %4561 = vmatmul.mubr.f32.gmra.mrb[138].mxu0 %v4427_v62  ;;  %v4429_v24 = vpop.f32.mrb[185].mxu1  ;;  %v4261_v18 = vpop.f32.mrb[125].mxu0  ;;  %v4843_v62 = vld [vmem:[#allocation15 + $0x240] sm:$0xff] }
 0xb68   :  { %13531 = vmatpush1.bf16.msra.mxu0 %v13530_v2  ;;  %4566 = vmatprep.mubr.f32.mxu0 %v15801_v28  ;;  %v4844_v2 = vld [vmem:[#allocation15 + $0x248] sm:$0xff]  ;;  %v4850_v24 = vld [vmem:[#allocation15 + $0x278] sm:$0xff]  ;;  %v13592_v18 = vpack.c.bf16 %v4845_v15, %v4843_v62 }
 0xb69   :  { %13533 = vmatprep.subr.bf16.mxu0 %v13532_v55  ;;  %v4846_v55 = vld [vmem:[#allocation15 + $0x258] sm:$0xff]  ;;  %v5266_v15 = vld [vmem:[#allocation19 + $0x250] sm:$0xff] }
 0xb6a   :  { %v4432_v30 = vpop.f32.mrb[186].mxu1  ;;  %v17181_v32 = vpop.f32.mrb[126].mxu0  ;;  %v13590_v61 = vpack.c.bf16 %v4846_v55, %v4844_v2  ;;  %v5265_v44 = vld [vmem:[#allocation19 + $0x248] sm:$0xff]  ;;  %v5267_v2 = vld [vmem:[#allocation19 + $0x258] sm:$0xff]  ;;  %v5264_v62 = vld [vmem:[#allocation19 + $0x240] sm:$0xff] }
 0xb6b   :  { %4567 = vmatmul.mubr.f32.gmra.mrb[140].mxu0 %v4432_v30  ;;  %v4434_v45 = vpop.f32.mrb[187].mxu1  ;;  %v4266_v27 = vpop.f32.mrb[127].mxu0 }
 0xb6c   :  { %13535 = vmatpush1.bf16.msra.mxu0 %v13534_v56  ;;  %4572 = vmatprep.mubr.f32.mxu0 %v15801_v28  ;;  %v13594_v56 = vpack.c.bf16 %v4850_v24, %v4848_v52  ;;  %v4851_v45 = vld [vmem:[#allocation15 + $0x280] sm:$0xff]  ;;  %v4853_v27 = vld [vmem:[#allocation15 + $0x290] sm:$0xff] }
 0xb6d   :  { %13537 = vmatprep.subr.bf16.mxu0 %v13536_v50  ;;  %v4847_v50 = vld [vmem:[#allocation15 + $0x260] sm:$0xff]  ;;  %v5271_v24 = vld [vmem:[#allocation19 + $0x278] sm:$0xff] }
 0xb6e   :  { %v4437_v60 = vpop.f32.mrb[188].mxu1  ;;  %v17184_v47 = vpop.f32.mrb[128].mxu0  ;;  %v5269_v52 = vld [vmem:[#allocation19 + $0x268] sm:$0xff] }
 0xb6f   :  { %4573 = vmatmul.mubr.f32.gmra.mrb[142].mxu0 %v4437_v60  ;;  %v4439_v48 = vpop.f32.mrb[189].mxu1  ;;  %v4271_v57 = vpop.f32.mrb[129].mxu0  ;;  %v13600_v60 = vpack.c.bf16 %v4853_v27, %v4851_v45  ;;  %v5277_v45 = vld [vmem:[#allocation19 + $0x2a8] sm:$0xff]  ;;  %v5279_v27 = vld [vmem:[#allocation19 + $0x2b8] sm:$0xff] }
 0xb70   :  { %13539 = vmatpush1.bf16.msra.mxu0 %v13538_v40  ;;  %4578 = vmatprep.mubr.f32.mxu0 %v15801_v28  ;;  %v4856_v40 = vld [vmem:[#allocation15 + $0x2a8] sm:$0xff]  ;;  %v4862_v57 = vld [vmem:[#allocation15 + $0x2d8] sm:$0xff] }
 0xb71   :  { %13541 = vmatprep.subr.bf16.mxu0 %v13540_v43  ;;  %v4858_v43 = vld [vmem:[#allocation15 + $0x2b8] sm:$0xff]  ;;  %v4860_v48 = vld [vmem:[#allocation15 + $0x2c8] sm:$0xff] }
 0xb72   :  { %v4442_v22 = vpop.f32.mrb[190].mxu1  ;;  %v17187_v58 = vpop.f32.mrb[130].mxu0 }
 0xb73   :  { %4579 = vmatmul.mubr.f32.gmra.mrb[144].mxu0 %v4442_v22  ;;  %v4444_v6 = vpop.f32.mrb[191].mxu1  ;;  %v4276_v1 = vpop.f32.mrb[131].mxu0  ;;  %v4861_v22 = vld [vmem:[#allocation15 + $0x2d0] sm:$0xff] }
 0xb74   :  { %13543 = vmatpush1.bf16.msra.mxu0 %v13542_v4  ;;  %4584 = vmatprep.mubr.f32.mxu0 %v15801_v28 }
 0xb75   :  { %13545 = vmatprep.subr.bf16.mxu0 %v13544_v35 }
 0xb76   :  { %v4447_v14 = vpop.f32.mrb[192].mxu1  ;;  %v17190_v46 = vpop.f32.mrb[132].mxu0 }
 0xb77   :  { %4585 = vmatmul.mubr.f32.gmra.mrb[146].mxu0 %v4447_v14  ;;  %v4449_v21 = vpop.f32.mrb[193].mxu1  ;;  %v4281_v20 = vpop.f32.mrb[133].mxu0  ;;  %v5257_v14 = vld [vmem:[#allocation19 + $0x208] sm:$0xff] }
 0xb78   :  { %13547 = vmatpush1.bf16.msra.mxu0 %v13546_v3  ;;  %4655 = vmatprep.mubr.f32.mxu0 %v15801_v28  ;;  %v13608_v3 = vpack.c.bf16 %v4861_v22, %v4859_v25  ;;  %v5256_v20 = vld [vmem:[#allocation19 + $0x200] sm:$0xff]  ;;  %v5286_v22 = vld [vmem:[#allocation19 + $0x2f0] sm:$0xff] }
 0xb79   :  { %13549 = vmatprep.subr.bf16.mxu0 %v13548_v7  ;;  %v4863_v7 = vld [vmem:[#allocation15 + $0x2e0] sm:$0xff]  ;;  %v5284_v25 = vld [vmem:[#allocation19 + $0x2e0] sm:$0xff] }
 0xb7a   :  { %v13612_v21 = vpack.c.bf16 %v4865_v31, %v4863_v7  ;;  %v5293_v7 = vld [vmem:[#allocation19 + $0x328] sm:$0xff]  ;;  %v5295_v31 = vld [vmem:[#allocation19 + $0x338] sm:$0xff] }
 0xb7c   :  { %13551 = vmatpush1.bf16.msra.mxu0 %v13550_v13  ;;  %v5258_v13 = vld [vmem:[#allocation19 + $0x210] sm:$0xff] }
 0xb7d   :  { %13583 = vmatprep.subr.bf16.mxu0 %v13582_v42  ;;  %v13628_v33 = vpack.c.bf16 %v5258_v13, %v5256_v20 }
 0xb7f   :  { %4656 = vmatmul.mubr.f32.vlgmr.msra.gmra.mrb[134].mxu0 %v17172_v34  ;;  %v4849_v34 = vld [vmem:[#allocation15 + $0x270] sm:$0xff] }
 0xb80   :  { %13585 = vmatpush1.bf16.msra.mxu0 %v13584_v59  ;;  %4661 = vmatprep.mubr.f32.mxu0 %v15801_v28  ;;  %v13596_v23 = vpack.c.bf16 %v4849_v34, %v4847_v50  ;;  %v13630_v59 = vpack.c.bf16 %v5263_v26, %v5261_v63  ;;  %v5268_v50 = vld [vmem:[#allocation19 + $0x260] sm:$0xff]  ;;  %v5270_v34 = vld [vmem:[#allocation19 + $0x270] sm:$0xff]  ;;  %v5301_v26 = vld [vmem:[#allocation19 + $0x368] sm:$0xff] }
 0xb81   :  { %13587 = vmatprep.subr.bf16.mxu0 %v13586_v17  ;;  %v5260_v17 = vld [vmem:[#allocation19 + $0x220] sm:$0xff]  ;;  %v5298_v63 = vld [vmem:[#allocation19 + $0x350] sm:$0xff] }
 0xb83   :  { %4662 = vmatmul.mubr.f32.gmra.mrb[136].mxu0 %v17175_v39  ;;  %v13598_v39 = vpack.c.bf16 %v4854_v49, %v4852_v53  ;;  %v5273_v53 = vld [vmem:[#allocation19 + $0x288] sm:$0xff]  ;;  %v5275_v49 = vld [vmem:[#allocation19 + $0x298] sm:$0xff] }
 0xb84   :  { %13589 = vmatpush1.bf16.msra.mxu0 %v13588_v5  ;;  %4667 = vmatprep.mubr.f32.mxu0 %v15801_v28 }
 0xb85   :  { %13591 = vmatprep.subr.bf16.mxu0 %v13590_v61  ;;  %v13634_v61 = vpack.c.bf16 %v5267_v2, %v5265_v44  ;;  %v5307_v44 = vld [vmem:[#allocation19 + $0x398] sm:$0xff] }
 0xb86   :  { %v17197_v30 = vpop.f32.mrb[194].mxu1 }
 0xb87   :  { %4668 = vmatmul.mubr.f32.gmra.mrb[138].mxu0 %v17178_v16  ;;  %v4802_v38 = vpop.f32.mrb[195].mxu1  ;;  %v13602_v16 = vpack.c.bf16 %v4858_v43, %v4856_v40  ;;  %v13646_v43 = vpack.c.bf16 %v5279_v27, %v5277_v45  ;;  %v5319_v45 = vld [vmem:[#allocation19 + $0x3f8] sm:$0xff] }
 0xb88   :  { %13593 = vmatpush1.bf16.msra.mxu0 %v13592_v18  ;;  %4673 = vmatprep.mubr.f32.mxu0 %v15801_v28  ;;  %v13636_v18 = vpack.c.bf16 %v5266_v15, %v5264_v62  ;;  %v13642_v38 = vpack.c.bf16 %v5275_v49, %v5273_v53  ;;  %v5309_v62 = vld [vmem:[#allocation19 + $0x3a8] sm:$0xff]  ;;  %v5311_v15 = vld [vmem:[#allocation19 + $0x3b8] sm:$0xff] }
 0xb89   :  { %13595 = vmatprep.subr.bf16.mxu0 %v13594_v56  ;;  %v13638_v56 = vpack.c.bf16 %v5271_v24, %v5269_v52  ;;  %v13678_v24 = vpack.c.bf16 %v5311_v15, %v5309_v62  ;;  %v5315_v53 = vld [vmem:[#allocation19 + $0x3d8] sm:$0xff] }
 0xb8a   :  { %v17201_v10 = vpop.f32.mrb[196].mxu1 }
 0xb8b   :  { %4674 = vmatmul.mubr.f32.gmra.mrb[140].mxu0 %v17181_v32  ;;  %v4807_v51 = vpop.f32.mrb[197].mxu1  ;;  %v13606_v32 = vpack.c.bf16 %v4862_v57, %v4860_v48  ;;  %v5280_v48 = vld [vmem:[#allocation19 + $0x2c0] sm:$0xff]  ;;  %v5282_v57 = vld [vmem:[#allocation19 + $0x2d0] sm:$0xff] }
 0xb8c   :  { %13597 = vmatpush1.bf16.msra.mxu0 %v13596_v23  ;;  %4679 = vmatprep.mubr.f32.mxu0 %v15801_v28  ;;  %v5272_v23 = vld [vmem:[#allocation19 + $0x280] sm:$0xff]  ;;  %v5278_v51 = vld [vmem:[#allocation19 + $0x2b0] sm:$0xff] }
 0xb8d   :  { %13599 = vmatprep.subr.bf16.mxu0 %v13598_v39  ;;  %v5274_v39 = vld [vmem:[#allocation19 + $0x290] sm:$0xff] }
 0xb8e   :  { %v17205_v4 = vpop.f32.mrb[198].mxu1  ;;  %v13644_v40 = vpack.c.bf16 %v5274_v39, %v5272_v23  ;;  %v5317_v39 = vld [vmem:[#allocation19 + $0x3e8] sm:$0xff] }
 0xb8f   :  { %4680 = vmatmul.mubr.f32.gmra.mrb[142].mxu0 %v17184_v47  ;;  %v4812_v35 = vpop.f32.mrb[199].mxu1  ;;  %v13610_v47 = vpack.c.bf16 %v4866_v12, %v4864_v29  ;;  %v5289_v29 = vld [vmem:[#allocation19 + $0x308] sm:$0xff]  ;;  %v5291_v12 = vld [vmem:[#allocation19 + $0x318] sm:$0xff]  ;;  %v13686_v27 = vpack.c.bf16 %v5319_v45, %v5317_v39 }
 0xb90   :  { %13601 = vmatpush1.bf16.msra.mxu0 %v13600_v60  ;;  %4685 = vmatprep.mubr.f32.mxu0 %v15801_v28  ;;  %v5281_v60 = vld [vmem:[#allocation19 + $0x2c8] sm:$0xff]  ;;  %v5287_v35 = vld [vmem:[#allocation19 + $0x2f8] sm:$0xff] }
 0xb91   :  { %13603 = vmatprep.subr.bf16.mxu0 %v13602_v16  ;;  %v5283_v16 = vld [vmem:[#allocation19 + $0x2d8] sm:$0xff] }
 0xb92   :  { %v17209_v6 = vpop.f32.mrb[200].mxu1  ;;  %v13650_v54 = vpack.c.bf16 %v5283_v16, %v5281_v60  ;;  %v5194_v60 = vld [vmem:[#allocation19 + $0x18] sm:$0xff] }
 0xb93   :  { %4686 = vmatmul.mubr.f32.gmra.mrb[144].mxu0 %v17187_v58  ;;  %v4817_v1 = vpop.f32.mrb[201].mxu1  ;;  %v13626_v58 = vpack.c.bf16 %v5259_v37, %v5257_v14  ;;  %v13662_v14 = vpack.c.bf16 %v5295_v31, %v5293_v7  ;;  %v5292_v37 = vld [vmem:[#allocation19 + $0x320] sm:$0xff]  ;;  %v5193_v7 = vld [vmem:[#allocation19 + $0x10] sm:$0xff] }
 0xb94   :  { %13605 = vmatpush1.bf16.msra.mxu0 %v13604_v9  ;;  %4691 = vmatprep.mubr.f32.mxu0 %v15801_v28  ;;  %v13652_v9 = vpack.c.bf16 %v5282_v57, %v5280_v48  ;;  %v13658_v1 = vpack.c.bf16 %v5291_v12, %v5289_v29  ;;  %v4988_v57 = vld [vmem:[#allocation18] ss:$2 sm:$0x3] }
 0xb95   :  { %13607 = vmatprep.subr.bf16.mxu0 %v13606_v32 }
 0xb96   :  { %v17213_v19 = vpop.f32.mrb[202].mxu1 }
 0xb97   :  { %4692 = vmatmul.mubr.f32.gmra.mrb[146].mxu0 %v17190_v46  ;;  %v4822_v41 = vpop.f32.mrb[203].mxu1  ;;  %v5262_v46 = vld [vmem:[#allocation19 + $0x230] sm:$0xff] }
 0xb98   :  { %13609 = vmatpush1.bf16.msra.mxu0 %v13608_v3  ;;  %4931 = vmatprep.mubr.f32.mxu0 %v15801_v28  ;;  %v13632_v5 = vpack.c.bf16 %v5262_v46, %v5260_v17  ;;  %v5288_v3 = vld [vmem:[#allocation19 + $0x300] sm:$0xff]  ;;  %v5294_v41 = vld [vmem:[#allocation19 + $0x330] sm:$0xff] }
 0xb99   :  { %13611 = vmatprep.subr.bf16.mxu0 %v13610_v47  ;;  %v5290_v47 = vld [vmem:[#allocation19 + $0x310] sm:$0xff]  ;;  %v13664_v20 = vpack.c.bf16 %v5294_v41, %v5292_v37  ;;  %v5300_v17 = vld [vmem:[#allocation19 + $0x360] sm:$0xff]  ;;  %v5198_v37 = vld [vmem:[#allocation19 + $0x38] sm:$0xff] }
 0xb9a   :  { %v17217_v42 = vpop.f32.mrb[204].mxu1  ;;  %v5302_v46 = vld [vmem:[#allocation19 + $0x370] sm:$0xff] }
 0xb9b   :  { %v4827_v11 = vpop.f32.mrb[205].mxu1  ;;  %v13672_v2 = vpack.c.bf16 %v5302_v46, %v5300_v17  ;;  %v5200_v46 = vld [vmem:[#allocation19 + $0x48] sm:$0xff] }
 0xb9c   :  { %13613 = vmatpush1.bf16.msra.mxu0 %v13612_v21  ;;  %v5297_v21 = vld [vmem:[#allocation19 + $0x348] sm:$0xff]  ;;  %v5303_v11 = vld [vmem:[#allocation19 + $0x378] sm:$0xff] }
 0xb9d   :  { %13627 = vmatprep.subr.bf16.mxu0 %v13626_v58  ;;  %v5299_v58 = vld [vmem:[#allocation19 + $0x358] sm:$0xff] }
 0xb9e   :  { %v17219_v8 = vpop.f32.mrb[206].mxu1  ;;  %v13666_v13 = vpack.c.bf16 %v5299_v58, %v5297_v21 }
 0xb9f   :  { %4932 = vmatmul.mubr.f32.vlgmr.msra.gmra.mrb[134].mxu0 %v17197_v30  ;;  %v4832_v55 = vpop.f32.mrb[207].mxu1  ;;  %v13640_v30 = vpack.c.bf16 %v5270_v34, %v5268_v50  ;;  %v5313_v34 = vld [vmem:[#allocation19 + $0x3c8] sm:$0xff] }
 0xba0   :  { %4937 = vmatprep.mubr.f32.mxu0 %v15801_v28  ;;  %13629 = vmatpush1.bf16.msra.mxu0 %v13628_v33  ;;  %v13682_v49 = vpack.c.bf16 %v5315_v53, %v5313_v34  ;;  %v5204_v53 = vld [vmem:[#allocation19 + $0x68] sm:$0xff] }
 0xba1   :  { %13631 = vmatprep.subr.bf16.mxu0 %v13630_v59  ;;  %v13670_v59 = vpack.c.bf16 %v5303_v11, %v5301_v26  ;;  %v5195_v11 = vld [vmem:[#allocation19 + $0x20] sm:$0xff] }
 0xba3   :  { %4938 = vmatmul.mubr.f32.gmra.mrb[136].mxu0 %v17201_v10  ;;  %v5276_v10 = vld [vmem:[#allocation19 + $0x2a0] sm:$0xff] }
 0xba4   :  { %4943 = vmatprep.mubr.f32.mxu0 %v15801_v28  ;;  %13633 = vmatpush1.bf16.msra.mxu0 %v13632_v5  ;;  %v13648_v36 = vpack.c.bf16 %v5278_v51, %v5276_v10  ;;  %v5304_v5 = vld [vmem:[#allocation19 + $0x380] sm:$0xff]  ;;  %v5192_v51 = vld [vmem:[#allocation19 + $0x8] sm:$0xff] }
 0xba5   :  { %13635 = vmatprep.subr.bf16.mxu0 %v13634_v61  ;;  %v5306_v61 = vld [vmem:[#allocation19 + $0x390] sm:$0xff]  ;;  %v13690_v16 = vpack.c.bf16 %v5194_v60, %v5192_v51  ;;  %v5203_v51 = vld [vmem:[#allocation19 + $0x60] sm:$0xff] }
 0xba6   :  { %v13676_v52 = vpack.c.bf16 %v5306_v61, %v5304_v5  ;;  %v5205_v60 = vld [vmem:[#allocation19 + $0x70] sm:$0xff] }
 0xba7   :  { %4944 = vmatmul.mubr.f32.gmra.mrb[138].mxu0 %v17205_v4  ;;  %v5285_v4 = vld [vmem:[#allocation19 + $0x2e8] sm:$0xff] }
 0xba8   :  { %4949 = vmatprep.mubr.f32.mxu0 %v15801_v28  ;;  %13637 = vmatpush1.bf16.msra.mxu0 %v13636_v18  ;;  %v13654_v32 = vpack.c.bf16 %v5287_v35, %v5285_v4  ;;  %v5308_v18 = vld [vmem:[#allocation19 + $0x3a0] sm:$0xff]  ;;  %v5015_v35 = vld [vmem:[#allocation18 + $0x1] ss:$2 sm:$0x3] }
 0xba9   :  { %13639 = vmatprep.subr.bf16.mxu0 %v13638_v56  ;;  %v5310_v56 = vld [vmem:[#allocation19 + $0x3b0] sm:$0xff] }
 0xbaa   :  { %v13680_v50 = vpack.c.bf16 %v5310_v56, %v5308_v18  ;;  %v5201_v18 = vld [vmem:[#allocation19 + $0x50] sm:$0xff] }
 0xbab   :  { %4950 = vmatmul.mubr.f32.gmra.mrb[140].mxu0 %v17209_v6  ;;  %v13656_v6 = vpack.c.bf16 %v5286_v22, %v5284_v25 }
 0xbac   :  { %4955 = vmatprep.mubr.f32.mxu0 %v15801_v28  ;;  %13641 = vmatpush1.bf16.msra.mxu0 %v13640_v30  ;;  %v5312_v30 = vld [vmem:[#allocation19 + $0x3c0] sm:$0xff] }
 0xbad   :  { %13643 = vmatprep.subr.bf16.mxu0 %v13642_v38  ;;  %v5314_v38 = vld [vmem:[#allocation19 + $0x3d0] sm:$0xff] }
 0xbae   :  { %v13684_v23 = vpack.c.bf16 %v5314_v38, %v5312_v30 }
 0xbaf   :  { %4956 = vmatmul.mubr.f32.gmra.mrb[142].mxu0 %v17213_v19  ;;  %v13660_v19 = vpack.c.bf16 %v5290_v47, %v5288_v3  ;;  %v5191_v47 = vld [vmem:[#allocation19] sm:$0xff] }
 0xbb0   :  { %4961 = vmatprep.mubr.f32.mxu0 %v15801_v28  ;;  %13645 = vmatpush1.bf16.msra.mxu0 %v13644_v40  ;;  %v5316_v40 = vld [vmem:[#allocation19 + $0x3e0] sm:$0xff] }
 0xbb1   :  { %13647 = vmatprep.subr.bf16.mxu0 %v13646_v43  ;;  %v5318_v43 = vld [vmem:[#allocation19 + $0x3f0] sm:$0xff] }
 0xbb2   :  { %v13688_v10 = vpack.c.bf16 %v5318_v43, %v5316_v40 }
 0xbb3   :  { %4962 = vmatmul.mubr.f32.gmra.mrb[144].mxu0 %v17217_v42  ;;  %v5296_v42 = vld [vmem:[#allocation19 + $0x340] sm:$0xff] }
 0xbb4   :  { %4967 = vmatprep.mubr.f32.mxu0 %v15801_v28  ;;  %13649 = vmatpush1.bf16.msra.mxu0 %v13648_v36  ;;  %v13668_v33 = vpack.c.bf16 %v5298_v63, %v5296_v42  ;;  %v4990_v36 = vlaneseq }
 0xbb5   :  { %13651 = vmatprep.subr.bf16.mxu0 %v13650_v54 }
 0xbb6   :  { %v4991_v54 = vshrl.u32 %v4990_v36, 7 }
 0xbb7   :  { %4968 = vmatmul.mubr.f32.gmra.mrb[146].mxu0 %v17219_v8  ;;  %v5305_v8 = vld [vmem:[#allocation19 + $0x388] sm:$0xff] }
 0xbb8   :  { %13653 = vmatpush1.bf16.msra.mxu0 %v13652_v9  ;;  %v13674_v55 = vpack.c.bf16 %v5307_v44, %v5305_v8  ;;  %v17234_v48 = vsub.s32 0, %v4991_v54  ;;  %v17236_v4 = vsub.s32 1, %v4991_v54  ;;  %v5202_v8 = vld [vmem:[#allocation19 + $0x58] sm:$0xff]  ;;  %v5208_v54 = vld [vmem:[#allocation19 + $0x88] sm:$0xff] }
 0xbb9   :  { %13655 = vmatprep.subr.bf16.mxu0 %v13654_v32 }
 0xbba   :  { %v17239_v9 = vrot.slane %v4988_v57, %v17234_v48  ;;  %v17242_v32 = vrot.slane %v4988_v57, %v17236_v4  ;;  %v17245_v25 = vrot.slane %v5015_v35, %v17234_v48  ;;  %v17248_v29 = vrot.slane %v5015_v35, %v17236_v4  ;;  %v5210_v57 = vld [vmem:[#allocation19 + $0x98] sm:$0xff] }
 0xbbc   :  { %13657 = vmatpush1.bf16.msra.mxu0 %v13656_v6 }
 0xbbd   :  { %13659 = vmatprep.subr.bf16.mxu0 %v13658_v1 }
 0xbc0   :  { %13661 = vmatpush1.bf16.msra.mxu0 %v13660_v19 }
 0xbc1   :  { %13663 = vmatprep.subr.bf16.mxu0 %v13662_v14  ;;  %v5196_v14 = vld [vmem:[#allocation19 + $0x28] sm:$0xff] }
 0xbc2   :  { %v13694_v26 = vpack.c.bf16 %v5198_v37, %v5196_v14 }
 0xbc4   :  { %13665 = vmatpush1.bf16.msra.mxu0 %v13664_v20 }
 0xbc5   :  { %13667 = vmatprep.subr.bf16.mxu0 %v13666_v13  ;;  %v13692_v13 = vpack.c.bf16 %v5193_v7, %v5191_v47  ;;  %v13706_v7 = vpack.c.bf16 %v5210_v57, %v5208_v54  ;;  %v5221_v54 = vld [vmem:[#allocation19 + $0xf0] sm:$0xff]  ;;  %v5224_v57 = vld [vmem:[#allocation19 + $0x108] sm:$0xff] }
 0xbc8   :  { %13669 = vmatpush1.bf16.msra.mxu0 %v13668_v33  ;;  %v5197_v33 = vld [vmem:[#allocation19 + $0x30] sm:$0xff] }
 0xbc9   :  { %13671 = vmatprep.subr.bf16.mxu0 %v13670_v59  ;;  %v13696_v62 = vpack.c.bf16 %v5197_v33, %v5195_v11 }
 0xbcc   :  { %13673 = vmatpush1.bf16.msra.mxu0 %v13672_v2 }
 0xbcd   :  { %13675 = vmatprep.subr.bf16.mxu0 %v13674_v55 }
 0xbd0   :  { %13677 = vmatpush1.bf16.msra.mxu0 %v13676_v52  ;;  %v13698_v52 = vpack.c.bf16 %v5202_v8, %v5200_v46 }
 0xbd1   :  { %13679 = vmatprep.subr.bf16.mxu0 %v13678_v24  ;;  %v5199_v24 = vld [vmem:[#allocation19 + $0x40] sm:$0xff] }
 0xbd4   :  { %13681 = vmatpush1.bf16.msra.mxu0 %v13680_v50 }
 0xbd5   :  { %13683 = vmatprep.subr.bf16.mxu0 %v13682_v49  ;;  %v5206_v49 = vld [vmem:[#allocation19 + $0x78] sm:$0xff] }
 0xbd8   :  { %13685 = vmatpush1.bf16.msra.mxu0 %v13684_v23 }
 0xbd9   :  { %13687 = vmatprep.subr.bf16.mxu0 %v13686_v27  ;;  %v13700_v27 = vpack.c.bf16 %v5201_v18, %v5199_v24 }
 0xbdc   :  { %13689 = vmatpush1.bf16.msra.mxu0 %v13688_v10  ;;  %v13702_v10 = vpack.c.bf16 %v5206_v49, %v5204_v53 }
 0xbdd   :  { %13691 = vmatprep.subr.bf16.mxu0 %v13690_v16 }
 0xc72   :  { %v4933_v22 = vpop.f32.mrb[134].mxu0 }
 0xc73   :  { %v5000_v12 = vmul.f32 %v17239_v9, %v4933_v22  ;;  %v4935_v6 = vpop.f32.mrb[135].mxu0 }
 0xc74   :  { %v5001_v1 = vmul.f32 %v17242_v32, %v4935_v6 }
 0xc75   :  { %v5027_v3 = vadd.f32 %v17245_v25, %v5000_v12 }
 0xc76   :  { %v5028_v31 = vadd.f32 %v17248_v29, %v5001_v1  ;;  %v4939_v19 = vpop.f32.mrb[136].mxu0 }
 0xc77   :  { %v5002_v41 = vmul.f32 %v17239_v9, %v4939_v19  ;;  %v4941_v21 = vpop.f32.mrb[137].mxu0  ;;  %v17258_v42 = vmax.f32 %v5027_v3, 0.0  ;;  %v13704_v3 = vpack.c.bf16 %v5205_v60, %v5203_v51  ;;  %v5209_v19 = vld [vmem:[#allocation19 + $0x90] sm:$0xff]  ;;  %v5222_v51 = vld [vmem:[#allocation19 + $0xf8] sm:$0xff] }
 0xc78   :  { %v17255_v58 = vmax.f32 %v5028_v31, 0.0  ;;  %v5003_v20 = vmul.f32 %v17242_v32, %v4941_v21  ;;  %v5207_v31 = vld [vmem:[#allocation19 + $0x80] sm:$0xff]  ;;  %v5212_v21 = vld [vmem:[#allocation19 + $0xa8] sm:$0xff] }
 0xc79   :  { %v5029_v63 = vadd.f32 %v17245_v25, %v5002_v41 }
 0xc7a   :  { %v5030_v59 = vadd.f32 %v17248_v29, %v5003_v20  ;;  %v4945_v17 = vpop.f32.mrb[138].mxu0  ;;  %5384 = vmatprep.mubr.f32.mxu0 %v17255_v58  ;;  %v5214_v20 = vld [vmem:[#allocation19 + $0xb8] sm:$0xff] }
 0xc7b   :  { %v17263_v44 = vmax.f32 %v5029_v63, 0.0  ;;  %v5004_v2 = vmul.f32 %v17239_v9, %v4945_v17  ;;  %v4947_v55 = vpop.f32.mrb[139].mxu0  ;;  %5385 = vmatmul.mubr.f32.vlgmr.msra.gmra.mrb[148].mxu0 %v17258_v42  ;;  %v13710_v8 = vpack.c.bf16 %v5214_v20, %v5212_v21  ;;  %v5227_v20 = vld [vmem:[#allocation19 + $0x120] sm:$0xff] }
 0xc7c   :  { %v17267_v5 = vmax.f32 %v5030_v59, 0.0  ;;  %v5005_v61 = vmul.f32 %v17242_v32, %v4947_v55  ;;  %13693 = vmatpush1.bf16.msra.mxu0 %v13692_v13  ;;  %v13708_v59 = vpack.c.bf16 %v5209_v19, %v5207_v31  ;;  %v5213_v55 = vld [vmem:[#allocation19 + $0xb0] sm:$0xff]  ;;  %v5228_v31 = vld [vmem:[#allocation19 + $0x128] sm:$0xff]  ;;  %v5230_v19 = vld [vmem:[#allocation19 + $0x138] sm:$0xff] }
 0xc7d   :  { %v5031_v15 = vadd.f32 %v17245_v25, %v5004_v2  ;;  %13695 = vmatprep.subr.bf16.mxu0 %v13694_v26  ;;  %v17281_v23 = vpack.c.bf16 %v17263_v44, %v17258_v42  ;;  %v5211_v2 = vld [vmem:[#allocation19 + $0xa0] sm:$0xff]  ;;  %v13726_v21 = vpack.c.bf16 %v5230_v19, %v5228_v31 }
 0xc7e   :  { %v5032_v56 = vadd.f32 %v17248_v29, %v5005_v61  ;;  %v4951_v50 = vpop.f32.mrb[140].mxu0  ;;  %5390 = vmatprep.mubr.f32.mxu0 %v17267_v5  ;;  %v17275_v34 = vpack.c.bf16 %v17267_v5, %v17255_v58  ;;  %v13712_v49 = vpack.c.bf16 %v5213_v55, %v5211_v2  ;;  %v5238_v2 = vld [vmem:[#allocation19 + $0x178] sm:$0xff]  ;;  %v5251_v19 = vld [vmem:[#allocation19 + $0x1e0] sm:$0xff] }
 0xc7f   :  { %v5006_v30 = vmul.f32 %v17239_v9, %v4951_v50  ;;  %v4953_v38 = vpop.f32.mrb[141].mxu0  ;;  %5391 = vmatmul.mubr.f32.gmra.mrb[150].mxu0 %v17263_v44  ;;  %v17287_v40 = vmax.f32 %v5031_v15, 0.0  ;;  %v5216_v15 = vld [vmem:[#allocation19 + $0xc8] sm:$0xff]  ;;  %v5058_v55 = vld [vmem:[%s18115_s16 + $0x18] sm:$0xff] }
 0xc80   :  { %v17283_v39 = vmax.f32 %v5032_v56, 0.0  ;;  %v5007_v45 = vmul.f32 %v17242_v32, %v4953_v38  ;;  %13615 = vmatprep.subr.bf16.mxu1 %v17275_v34  ;;  %13697 = vmatpush1.bf16.msra.mxu0 %v13696_v62 }
 0xc81   :  { %v5033_v43 = vadd.f32 %v17245_v25, %v5006_v30  ;;  %13617 = vmatpush1.bf16.msra.mxu1 %v17281_v23  ;;  %13699 = vmatprep.subr.bf16.mxu0 %v13698_v52  ;;  %v5218_v52 = vld [vmem:[#allocation19 + $0xd8] sm:$0xff] }
 0xc82   :  { %v5034_v16 = vadd.f32 %v17248_v29, %v5007_v45  ;;  %v4957_v36 = vpop.f32.mrb[142].mxu0  ;;  %5396 = vmatprep.mubr.f32.mxu0 %v17283_v39  ;;  %v13714_v38 = vpack.c.bf16 %v5218_v52, %v5216_v15  ;;  %v5215_v45 = vld [vmem:[#allocation19 + $0xc0] sm:$0xff]  ;;  %v5237_v15 = vld [vmem:[#allocation19 + $0x170] sm:$0xff]  ;;  %v5240_v52 = vld [vmem:[#allocation19 + $0x188] sm:$0xff] }
 0xc83   :  { %v17293_v35 = vmax.f32 %v5033_v43, 0.0  ;;  %v5008_v22 = vmul.f32 %v17239_v9, %v4957_v36  ;;  %v4959_v12 = vpop.f32.mrb[143].mxu0  ;;  %5397 = vmatmul.mubr.f32.gmra.mrb[152].mxu0 %v17287_v40  ;;  %v5219_v36 = vld [vmem:[#allocation19 + $0xe0] sm:$0xff] }
 0xc84   :  { %v17297_v6 = vmax.f32 %v5034_v16, 0.0  ;;  %v5009_v1 = vmul.f32 %v17242_v32, %v4959_v12  ;;  %13701 = vmatpush1.bf16.msra.mxu0 %v13700_v27  ;;  %v5217_v27 = vld [vmem:[#allocation19 + $0xd0] sm:$0xff]  ;;  %v5055_v12 = vld [vmem:[%s18115_s16] sm:$0xff] }
 0xc85   :  { %v5035_v47 = vadd.f32 %v17245_v25, %v5008_v22  ;;  %13703 = vmatprep.subr.bf16.mxu0 %v13702_v10  ;;  %v17311_v26 = vpack.c.bf16 %v17293_v35, %v17287_v40  ;;  %v5220_v10 = vld [vmem:[#allocation19 + $0xe8] sm:$0xff]  ;;  %v13716_v60 = vpack.c.bf16 %v5217_v27, %v5215_v45  ;;  %v5226_v22 = vld [vmem:[#allocation19 + $0x118] sm:$0xff] }
 0xc86   :  { %v5036_v14 = vadd.f32 %v17248_v29, %v5009_v1  ;;  %v4963_v37 = vpop.f32.mrb[144].mxu0  ;;  %5402 = vmatprep.mubr.f32.mxu0 %v17297_v6  ;;  %v17305_v41 = vpack.c.bf16 %v17297_v6, %v17283_v39  ;;  %v13720_v1 = vpack.c.bf16 %v5221_v54, %v5219_v36  ;;  %v5244_v45 = vld [vmem:[#allocation19 + $0x1a8] sm:$0xff]  ;;  %v5246_v27 = vld [vmem:[#allocation19 + $0x1b8] sm:$0xff] }
 0xc87   :  { %v5010_v13 = vmul.f32 %v17239_v9, %v4963_v37  ;;  %v4965_v63 = vpop.f32.mrb[145].mxu0  ;;  %5403 = vmatmul.mubr.f32.gmra.mrb[154].mxu0 %v17293_v35  ;;  %v17317_v17 = vmax.f32 %v5035_v47, 0.0  ;;  %v5223_v47 = vld [vmem:[#allocation19 + $0x100] sm:$0xff]  ;;  %v5061_v36 = vld [vmem:[%s18115_s16 + $0x30] sm:$0xff] }
 0xc88   :  { %v17313_v11 = vmax.f32 %v5036_v14, 0.0  ;;  %v5011_v33 = vmul.f32 %v17242_v32, %v4965_v63  ;;  %13619 = vmatprep.subr.bf16.mxu1 %v17305_v41  ;;  %13705 = vmatpush1.bf16.msra.mxu0 %v13704_v3  ;;  %v13722_v3 = vpack.c.bf16 %v5226_v22, %v5224_v57  ;;  %v5056_v14 = vld [vmem:[%s18115_s16 + $0x8] sm:$0xff] }
 0xc89   :  { %v5037_v46 = vadd.f32 %v17245_v25, %v5010_v13  ;;  %13621 = vmatpush1.bf16.msra.mxu1 %v17311_v26  ;;  %13707 = vmatprep.subr.bf16.mxu0 %v13706_v7  ;;  %v5225_v7 = vld [vmem:[#allocation19 + $0x110] sm:$0xff]  ;;  %v5232_v63 = vld [vmem:[#allocation19 + $0x148] sm:$0xff]  ;;  %v5247_v22 = vld [vmem:[#allocation19 + $0x1c0] sm:$0xff] }
 0xc8a   :  { %v5038_v61 = vadd.f32 %v17248_v29, %v5011_v33  ;;  %v4969_v62 = vpop.f32.mrb[146].mxu0  ;;  %5408 = vmatprep.mubr.f32.mxu0 %v17313_v11  ;;  %v13724_v37 = vpack.c.bf16 %v5225_v7, %v5223_v47  ;;  %v5229_v13 = vld [vmem:[#allocation19 + $0x130] sm:$0xff] }
 0xc8b   :  { %v17323_v24 = vmax.f32 %v5037_v46, 0.0  ;;  %v5012_v18 = vmul.f32 %v17239_v9, %v4969_v62  ;;  %v4971_v56 = vpop.f32.mrb[147].mxu0  ;;  %5409 = vmatmul.mubr.f32.gmra.mrb[156].mxu0 %v17317_v17  ;;  %v13728_v33 = vpack.c.bf16 %v5229_v13, %v5227_v20  ;;  %v5233_v46 = vld [vmem:[#allocation19 + $0x150] sm:$0xff]  ;;  %v5235_v62 = vld [vmem:[#allocation19 + $0x160] sm:$0xff] }
 0xc8c   :  { %v17327_v50 = vmax.f32 %v5038_v61, 0.0  ;;  %v5013_v53 = vmul.f32 %v17242_v32, %v4971_v56  ;;  %13709 = vmatpush1.bf16.msra.mxu0 %v13708_v59  ;;  %v5231_v59 = vld [vmem:[#allocation19 + $0x140] sm:$0xff]  ;;  %v10666_v47 = vld [vmem:[%s18115_s16 + $0x70] sm:$0xff] }
 0xc8d   :  { %v5039_v30 = vadd.f32 %v17245_v25, %v5012_v18  ;;  %13711 = vmatprep.subr.bf16.mxu0 %v13710_v8  ;;  %v13624_v32 = vpack.c.bf16 %v17323_v24, %v17317_v17  ;;  %v5236_v8 = vld [vmem:[#allocation19 + $0x168] sm:$0xff]  ;;  %v5242_v18 = vld [vmem:[#allocation19 + $0x198] sm:$0xff] }
 0xc8e   :  { %v5040_v43 = vadd.f32 %v17248_v29, %v5013_v53  ;;  %5414 = vmatprep.mubr.f32.mxu0 %v17327_v50  ;;  %v13622_v9 = vpack.c.bf16 %v17327_v50, %v17313_v11  ;;  %v13718_v29 = vpack.c.bf16 %v5222_v51, %v5220_v10  ;;  %v13734_v61 = vpack.c.bf16 %v5238_v2, %v5236_v8  ;;  %v5059_v56 = vld [vmem:[%s18115_s16 + $0x20] sm:$0xff]  ;;  %v10669_v13 = vld [vmem:[%s18115_s16 + $0x88] sm:$0xff]  ;;  %v5673_v8 = vld [vmem:[#allocation19 + $0x410] sm:$0xff] }
 0xc8f   :  { %5415 = vmatmul.mubr.f32.gmra.mrb[158].mxu0 %v17323_v24  ;;  %v17340_v16 = vmax.f32 %v5039_v30, 0.0  ;;  %v13736_v53 = vpack.c.bf16 %v5237_v15, %v5235_v62  ;;  %v5239_v30 = vld [vmem:[#allocation19 + $0x180] sm:$0xff]  ;;  %v13742_v10 = vpack.c.bf16 %v5246_v27, %v5244_v45  ;;  %v5676_v2 = vld [vmem:[#allocation19 + $0x428] sm:$0xff]  ;;  %v5681_v27 = vld [vmem:[#allocation19 + $0x450] sm:$0xff] }
 0xc90   :  { %v17338_v25 = vmax.f32 %v5040_v43, 0.0  ;;  %13623 = vmatprep.subr.bf16.mxu1 %v13622_v9  ;;  %13713 = vmatpush1.bf16.msra.mxu0 %v13712_v49  ;;  %v13738_v49 = vpack.c.bf16 %v5242_v18, %v5240_v52  ;;  %v5060_v43 = vld [vmem:[%s18115_s16 + $0x28] sm:$0xff]  ;;  %v10668_v20 = vld [vmem:[%s18115_s16 + $0x80] sm:$0xff]  ;;  %v5677_v18 = vld [vmem:[#allocation19 + $0x430] sm:$0xff] }
 0xc91   :  { %13625 = vmatpush1.bf16.msra.mxu1 %v13624_v32  ;;  %13715 = vmatprep.subr.bf16.mxu0 %v13714_v38  ;;  %v5241_v38 = vld [vmem:[#allocation19 + $0x190] sm:$0xff]  ;;  %v5243_v51 = vld [vmem:[#allocation19 + $0x1a0] sm:$0xff] }
 0xc92   :  { %5096 = vmatprep.subr.mxu1 %v17338_v25  ;;  %5420 = vmatprep.mubr.f32.mxu0 %v17338_v25  ;;  %v5675_v52 = vld [vmem:[#allocation19 + $0x420] sm:$0xff] }
 0xc93   :  { %5421 = vmatmul.mubr.f32.gmra.mrb[160].mxu0 %v17340_v16  ;;  %v5679_v45 = vld [vmem:[#allocation19 + $0x440] sm:$0xff] }
 0xc94   :  { %13717 = vmatpush1.bf16.msra.mxu0 %v13716_v60  ;;  %v5248_v60 = vld [vmem:[#allocation19 + $0x1c8] sm:$0xff] }
 0xc95   :  { %5097 = vmatpush1.msra.mxu1 %v17340_v16  ;;  %13719 = vmatprep.subr.bf16.mxu0 %v13718_v29  ;;  %v5250_v29 = vld [vmem:[#allocation19 + $0x1d8] sm:$0xff] }
 0xc96   :  { %10659 = vmatmul.mubr.msk.f32.vlgmr.msra.gmra.mrb[208].mxu1 %vm5062_vm1, %v5055_v12  ;;  %13755 = vmatprep.subr.bf16.mxu1 %v17275_v34  ;;  %v5234_v34 = vld [vmem:[#allocation19 + $0x158] sm:$0xff]  ;;  %v13746_v57 = vpack.c.bf16 %v5250_v29, %v5248_v60  ;;  %v5249_v12 = vld [vmem:[#allocation19 + $0x1d0] sm:$0xff]  ;;  %v5683_v29 = vld [vmem:[#allocation19 + $0x460] sm:$0xff] }
 0xc97   :  { %13757 = vmatpush1.bf16.msra.mxu1 %v17281_v23  ;;  %5154 = vmatprep.mubr.f32.mxu1 %v15801_v28  ;;  %v5057_v23 = vld [vmem:[%s18115_s16 + $0x10] sm:$0xff]  ;;  %v13748_v7 = vpack.c.bf16 %v5249_v12, %v5247_v22  ;;  %v5690_v22 = vld [vmem:[#allocation19 + $0x498] sm:$0xff] }
 0xc98   :  { %13759 = vmatprep.subr.bf16.mxu1 %v17305_v41  ;;  %13721 = vmatpush1.bf16.msra.mxu0 %v13720_v1  ;;  %v13730_v41 = vpack.c.bf16 %v5234_v34, %v5232_v63  ;;  %v5252_v1 = vld [vmem:[#allocation19 + $0x1e8] sm:$0xff]  ;;  %v10671_v34 = vld [vmem:[%s18115_s16 + $0x98] sm:$0xff] }
 0xc99   :  { %13723 = vmatprep.subr.bf16.mxu0 %v13722_v3  ;;  %v5254_v3 = vld [vmem:[#allocation19 + $0x1f8] sm:$0xff]  ;;  %v10670_v63 = vld [vmem:[%s18115_s16 + $0x90] sm:$0xff] }
 0xc9a   :  { %10660 = vmatmul.mubr.msk.f32.gmra.mrb[210].mxu1 %vm5062_vm1, %v5056_v14  ;;  %v13750_v31 = vpack.c.bf16 %v5254_v3, %v5252_v1  ;;  %v5253_v14 = vld [vmem:[#allocation19 + $0x1f0] sm:$0xff] }
 0xc9b   :  { %13761 = vmatpush1.bf16.msra.mxu1 %v17311_v26  ;;  %5160 = vmatprep.mubr.f32.mxu1 %v15801_v28  ;;  %v13732_v26 = vpack.c.bf16 %v5233_v46, %v5231_v59  ;;  %v5671_v46 = vld [vmem:[#allocation19 + $0x400] sm:$0xff] }
 0xc9c   :  { %13763 = vmatprep.subr.bf16.mxu1 %v13622_v9  ;;  %13725 = vmatpush1.bf16.msra.mxu0 %v13724_v37  ;;  %v13740_v9 = vpack.c.bf16 %v5241_v38, %v5239_v30  ;;  %v10667_v37 = vld [vmem:[%s18115_s16 + $0x78] sm:$0xff] }
 0xc9d   :  { %13727 = vmatprep.subr.bf16.mxu0 %v13726_v21  ;;  %v13752_v21 = vpack.c.bf16 %v5253_v14, %v5251_v19  ;;  %v5692_v19 = vld [vmem:[#allocation19 + $0x4a8] sm:$0xff]  ;;  %v5694_v14 = vld [vmem:[#allocation19 + $0x4b8] sm:$0xff] }
 0xc9e   :  { %10661 = vmatmul.mubr.msk.f32.gmra.mrb[212].mxu1 %vm5062_vm1, %v5057_v23  ;;  %v10672_v23 = vld [vmem:[%s18115_s16 + $0xa0] sm:$0xff] }
 0xc9f   :  { %13765 = vmatpush1.bf16.msra.mxu1 %v13624_v32  ;;  %5166 = vmatprep.mubr.f32.mxu1 %v15801_v28  ;;  %v5245_v32 = vld [vmem:[#allocation19 + $0x1b0] sm:$0xff] }
 0xca0   :  { %5575 = vmatprep.subr.mxu1 %v17338_v25  ;;  %13729 = vmatpush1.bf16.msra.mxu0 %v13728_v33  ;;  %v13744_v54 = vpack.c.bf16 %v5245_v32, %v5243_v51  ;;  %v5672_v33 = vld [vmem:[#allocation19 + $0x408] sm:$0xff]  ;;  %v13776_v51 = vpack.c.bf16 %v5681_v27, %v5679_v45 }
 0xca1   :  { %13731 = vmatprep.subr.bf16.mxu0 %v13730_v41  ;;  %v5674_v41 = vld [vmem:[#allocation19 + $0x418] sm:$0xff] }
 0xca2   :  { %10662 = vmatmul.mubr.msk.f32.gmra.mrb[214].mxu1 %vm5062_vm1, %v5058_v55  ;;  %v13766_v59 = vpack.c.bf16 %v5674_v41, %v5672_v33  ;;  %v5678_v55 = vld [vmem:[#allocation19 + $0x438] sm:$0xff] }
 0xca3   :  { %5576 = vmatpush1.msra.mxu1 %v17340_v16  ;;  %5172 = vmatprep.mubr.f32.mxu1 %v15801_v28  ;;  %v13770_v15 = vpack.c.bf16 %v5678_v55, %v5676_v2  ;;  %v5698_v33 = vld [vmem:[#allocation19 + $0x4d8] sm:$0xff]  ;;  %v5697_v2 = vld [vmem:[#allocation19 + $0x4d0] sm:$0xff] }
 0xca4   :  { %13733 = vmatpush1.bf16.msra.mxu0 %v13732_v26 }
 0xca5   :  { %13735 = vmatprep.subr.bf16.mxu0 %v13734_v61  ;;  %v13768_v61 = vpack.c.bf16 %v5673_v8, %v5671_v46  ;;  %v5695_v8 = vld [vmem:[#allocation19 + $0x4c0] sm:$0xff] }
 0xca6   :  { %10663 = vmatmul.mubr.msk.f32.gmra.mrb[216].mxu1 %vm5062_vm1, %v5059_v56  ;;  %v5680_v56 = vld [vmem:[#allocation19 + $0x448] sm:$0xff] }
 0xca7   :  { %5178 = vmatprep.mubr.f32.mxu1 %v15801_v28 }
 0xca8   :  { %13737 = vmatpush1.bf16.msra.mxu0 %v13736_v53  ;;  %v5682_v53 = vld [vmem:[#allocation19 + $0x458] sm:$0xff] }
 0xca9   :  { %13739 = vmatprep.subr.bf16.mxu0 %v13738_v49  ;;  %v13772_v49 = vpack.c.bf16 %v5677_v18, %v5675_v52  ;;  %v13774_v38 = vpack.c.bf16 %v5682_v53, %v5680_v56  ;;  %v5699_v18 = vld [vmem:[#allocation19 + $0x4e0] sm:$0xff]  ;;  %v5701_v56 = vld [vmem:[#allocation19 + $0x4f0] sm:$0xff] }
 0xcaa   :  { %10664 = vmatmul.mubr.msk.f32.gmra.mrb[218].mxu1 %vm5062_vm1, %v5060_v43 }
 0xcab   :  { %5184 = vmatprep.mubr.f32.mxu1 %v15801_v28 }
 0xcac   :  { %13741 = vmatpush1.bf16.msra.mxu0 %v13740_v9  ;;  %v5684_v9 = vld [vmem:[#allocation19 + $0x468] sm:$0xff] }
 0xcad   :  { %13743 = vmatprep.subr.bf16.mxu0 %v13742_v10  ;;  %v5686_v10 = vld [vmem:[#allocation19 + $0x478] sm:$0xff] }
 0xcae   :  { %10665 = vmatmul.mubr.msk.f32.gmra.mrb[220].mxu1 %vm5062_vm1, %v5061_v36  ;;  %v13778_v60 = vpack.c.bf16 %v5686_v10, %v5684_v9  ;;  %v5685_v36 = vld [vmem:[#allocation19 + $0x470] sm:$0xff] }
 0xcaf   :  { %5627 = vmatprep.mubr.f32.mxu1 %v15801_v28  ;;  %v13780_v12 = vpack.c.bf16 %v5685_v36, %v5683_v29  ;;  %v5705_v9 = vld [vmem:[#allocation19 + $0x510] sm:$0xff] }
 0xcb0   :  { %13745 = vmatpush1.bf16.msra.mxu0 %v13744_v54 }
 0xcb1   :  { %13747 = vmatprep.subr.bf16.mxu0 %v13746_v57  ;;  %v5688_v57 = vld [vmem:[#allocation19 + $0x488] sm:$0xff] }
 0xcb2   :  { %10673 = vmatmul.mubr.msk.f32.vlgmr.msra.gmra.mrb[222].mxu1 %vm5062_vm1, %v10666_v47  ;;  %v13782_v3 = vpack.c.bf16 %v5690_v22, %v5688_v57  ;;  %v5687_v47 = vld [vmem:[#allocation19 + $0x480] sm:$0xff]  ;;  %v5709_v57 = vld [vmem:[#allocation19 + $0x530] sm:$0xff] }
 0xcb3   :  { %5633 = vmatprep.mubr.f32.mxu1 %v15801_v28 }
 0xcb4   :  { %13749 = vmatpush1.bf16.msra.mxu0 %v13748_v7  ;;  %v5689_v7 = vld [vmem:[#allocation19 + $0x490] sm:$0xff] }
 0xcb5   :  { %13751 = vmatprep.subr.bf16.mxu0 %v13750_v31 }
 0xcb6   :  { %10674 = vmatmul.mubr.msk.f32.gmra.mrb[224].mxu1 %vm5062_vm1, %v10667_v37  ;;  %v13784_v37 = vpack.c.bf16 %v5689_v7, %v5687_v47 }
 0xcb7   :  { %5639 = vmatprep.mubr.f32.mxu1 %v15801_v28 }
 0xcb8   :  { %13753 = vmatpush1.bf16.msra.mxu0 %v13752_v21 }
 0xcb9   :  { %13767 = vmatprep.subr.bf16.mxu0 %v13766_v59 }
 0xcba   :  { %10675 = vmatmul.mubr.msk.f32.gmra.mrb[226].mxu1 %vm5062_vm1, %v10668_v20  ;;  %v13786_v20 = vpack.c.bf16 %v5694_v14, %v5692_v19  ;;  %v5713_v19 = vld [vmem:[#allocation19 + $0x550] sm:$0xff] }
 0xcbb   :  { %5645 = vmatprep.mubr.f32.mxu1 %v15801_v28 }
 0xcbe   :  { %10676 = vmatmul.mubr.msk.f32.gmra.mrb[228].mxu1 %vm5062_vm1, %v10669_v13  ;;  %v5691_v13 = vld [vmem:[#allocation19 + $0x4a0] sm:$0xff] }
 0xcbf   :  { %5651 = vmatprep.mubr.f32.mxu1 %v15801_v28 }
 0xcc2   :  { %10677 = vmatmul.mubr.msk.f32.gmra.mrb[230].mxu1 %vm5062_vm1, %v10670_v63  ;;  %v5693_v63 = vld [vmem:[#allocation19 + $0x4b0] sm:$0xff] }
 0xcc3   :  { %5657 = vmatprep.mubr.f32.mxu1 %v15801_v28  ;;  %v13788_v41 = vpack.c.bf16 %v5693_v63, %v5691_v13 }
 0xcc6   :  { %10678 = vmatmul.mubr.msk.f32.gmra.mrb[232].mxu1 %vm5062_vm1, %v10671_v34 }
 0xcc7   :  { %5663 = vmatprep.mubr.f32.mxu1 %v15801_v28 }
 0xcca   :  { %10679 = vmatmul.mubr.msk.f32.gmra.mrb[234].mxu1 %vm5062_vm1, %v10672_v23  ;;  %v5696_v23 = vld [vmem:[#allocation19 + $0x4c8] sm:$0xff] }
 0xccb   :  { %6029 = vmatprep.mubr.f32.mxu1 %v15801_v28  ;;  %v13790_v46 = vpack.c.bf16 %v5698_v33, %v5696_v23  ;;  %v5717_v23 = vld [vmem:[#allocation19 + $0x570] sm:$0xff] }
 0xd69   :  { %v5150_v26 = vpop.f32.mrb[208].mxu1 }
 0xd6a   :  { %v5152_v62 = vpop.f32.mrb[209].mxu1 }
 0xd6b   :  { %5491 = vmatprep.mubr.f32.mxu0 %v5152_v62  ;;  %v13792_v62 = vpack.c.bf16 %v5697_v2, %v5695_v8 }
 0xd6c   :  { %5492 = vmatmul.mubr.f32.vlgmr.msra.gmra.mrb[148].mxu0 %v5150_v26  ;;  %v5700_v26 = vld [vmem:[#allocation19 + $0x4e8] sm:$0xff] }
 0xd6d   :  { %13769 = vmatpush1.bf16.msra.mxu0 %v13768_v61  ;;  %v5156_v30 = vpop.f32.mrb[210].mxu1  ;;  %v5702_v61 = vld [vmem:[#allocation19 + $0x4f8] sm:$0xff] }
 0xd6e   :  { %13771 = vmatprep.subr.bf16.mxu0 %v13770_v15  ;;  %v5158_v43 = vpop.f32.mrb[211].mxu1  ;;  %v13794_v52 = vpack.c.bf16 %v5702_v61, %v5700_v26  ;;  %v5721_v26 = vld [vmem:[#allocation19 + $0x590] sm:$0xff] }
 0xd6f   :  { %5497 = vmatprep.mubr.f32.mxu0 %v5158_v43  ;;  %v5703_v43 = vld [vmem:[#allocation19 + $0x500] sm:$0xff] }
 0xd70   :  { %5498 = vmatmul.mubr.f32.gmra.mrb[150].mxu0 %v5156_v30  ;;  %v5706_v30 = vld [vmem:[#allocation19 + $0x518] sm:$0xff] }
 0xd71   :  { %13773 = vmatpush1.bf16.msra.mxu0 %v13772_v49  ;;  %v5162_v32 = vpop.f32.mrb[212].mxu1  ;;  %v5704_v49 = vld [vmem:[#allocation19 + $0x508] sm:$0xff] }
 0xd72   :  { %13775 = vmatprep.subr.bf16.mxu0 %v13774_v38  ;;  %v5164_v54 = vpop.f32.mrb[213].mxu1  ;;  %v13796_v38 = vpack.c.bf16 %v5701_v56, %v5699_v18  ;;  %v13798_v27 = vpack.c.bf16 %v5706_v30, %v5704_v49  ;;  %v5725_v49 = vld [vmem:[#allocation19 + $0x5b0] sm:$0xff] }
 0xd73   :  { %5503 = vmatprep.mubr.f32.mxu0 %v5164_v54  ;;  %v5707_v54 = vld [vmem:[#allocation19 + $0x520] sm:$0xff] }
 0xd74   :  { %5504 = vmatmul.mubr.f32.gmra.mrb[152].mxu0 %v5162_v32  ;;  %v5710_v32 = vld [vmem:[#allocation19 + $0x538] sm:$0xff] }
 0xd75   :  { %13777 = vmatpush1.bf16.msra.mxu0 %v13776_v51  ;;  %v5168_v1 = vpop.f32.mrb[214].mxu1  ;;  %v5708_v51 = vld [vmem:[#allocation19 + $0x528] sm:$0xff] }
 0xd76   :  { %13779 = vmatprep.subr.bf16.mxu0 %v13778_v60  ;;  %v5170_v31 = vpop.f32.mrb[215].mxu1  ;;  %v13800_v60 = vpack.c.bf16 %v5705_v9, %v5703_v43  ;;  %v13802_v36 = vpack.c.bf16 %v5710_v32, %v5708_v51  ;;  %v5727_v51 = vld [vmem:[#allocation19 + $0x5c0] sm:$0xff]  ;;  %v5729_v32 = vld [vmem:[#allocation19 + $0x5d0] sm:$0xff] }
 0xd77   :  { %5509 = vmatprep.mubr.f32.mxu0 %v5170_v31  ;;  %v5711_v31 = vld [vmem:[#allocation19 + $0x540] sm:$0xff] }
 0xd78   :  { %5510 = vmatmul.mubr.f32.gmra.mrb[154].mxu0 %v5168_v1  ;;  %v5714_v1 = vld [vmem:[#allocation19 + $0x558] sm:$0xff] }
 0xd79   :  { %13781 = vmatpush1.bf16.msra.mxu0 %v13780_v12  ;;  %v5174_v21 = vpop.f32.mrb[216].mxu1  ;;  %v5712_v12 = vld [vmem:[#allocation19 + $0x548] sm:$0xff] }
 0xd7a   :  { %13783 = vmatprep.subr.bf16.mxu0 %v13782_v3  ;;  %v5176_v34 = vpop.f32.mrb[217].mxu1  ;;  %v13804_v3 = vpack.c.bf16 %v5709_v57, %v5707_v54  ;;  %v13806_v7 = vpack.c.bf16 %v5714_v1, %v5712_v12  ;;  %v5734_v54 = vld [vmem:[#allocation19 + $0x5f8] sm:$0xff]  ;;  %v13824_v57 = vpack.c.bf16 %v5729_v32, %v5727_v51  ;;  %v5731_v1 = vld [vmem:[#allocation19 + $0x5e0] sm:$0xff] }
 0xd7b   :  { %5515 = vmatprep.mubr.f32.mxu0 %v5176_v34  ;;  %v5715_v34 = vld [vmem:[#allocation19 + $0x560] sm:$0xff] }
 0xd7c   :  { %5516 = vmatmul.mubr.f32.gmra.mrb[156].mxu0 %v5174_v21  ;;  %v5718_v21 = vld [vmem:[#allocation19 + $0x578] sm:$0xff] }
 0xd7d   :  { %13785 = vmatpush1.bf16.msra.mxu0 %v13784_v37  ;;  %v5180_v59 = vpop.f32.mrb[218].mxu1  ;;  %v5716_v37 = vld [vmem:[#allocation19 + $0x568] sm:$0xff] }
 0xd7e   :  { %13787 = vmatprep.subr.bf16.mxu0 %v13786_v20  ;;  %v5182_v55 = vpop.f32.mrb[219].mxu1  ;;  %v13808_v20 = vpack.c.bf16 %v5713_v19, %v5711_v31  ;;  %v13810_v63 = vpack.c.bf16 %v5718_v21, %v5716_v37  ;;  %v5856_v31 = vld [vmem:[#allocation21] ss:$2 sm:$0x3] }
 0xd7f   :  { %5521 = vmatprep.mubr.f32.mxu0 %v5182_v55  ;;  %v5719_v55 = vld [vmem:[#allocation19 + $0x580] sm:$0xff]  ;;  %v17405_v19 = vrot.slane %v5856_v31, %v17234_v48 }
 0xd80   :  { %5522 = vmatmul.mubr.f32.gmra.mrb[158].mxu0 %v5180_v59  ;;  %v5722_v59 = vld [vmem:[#allocation19 + $0x598] sm:$0xff] }
 0xd81   :  { %13789 = vmatpush1.bf16.msra.mxu0 %v13788_v41  ;;  %v5186_v15 = vpop.f32.mrb[220].mxu1  ;;  %v5720_v41 = vld [vmem:[#allocation19 + $0x588] sm:$0xff] }
 0xd82   :  { %13791 = vmatprep.subr.bf16.mxu0 %v13790_v46  ;;  %v5188_v53 = vpop.f32.mrb[221].mxu1  ;;  %v13812_v46 = vpack.c.bf16 %v5717_v23, %v5715_v34  ;;  %v13814_v2 = vpack.c.bf16 %v5722_v59, %v5720_v41 }
 0xd83   :  { %5527 = vmatprep.mubr.f32.mxu0 %v5188_v53  ;;  %v5723_v53 = vld [vmem:[#allocation19 + $0x5a0] sm:$0xff] }
 0xd84   :  { %5528 = vmatmul.mubr.f32.gmra.mrb[160].mxu0 %v5186_v15  ;;  %v5726_v15 = vld [vmem:[#allocation19 + $0x5b8] sm:$0xff]  ;;  %v13820_v43 = vpack.c.bf16 %v5725_v49, %v5723_v53 }
 0xd85   :  { %13793 = vmatpush1.bf16.msra.mxu0 %v13792_v62  ;;  %v17394_v45 = vpop.f32.mrb[222].mxu1  ;;  %v5724_v62 = vld [vmem:[#allocation19 + $0x5a8] sm:$0xff] }
 0xd86   :  { %13795 = vmatprep.subr.bf16.mxu0 %v13794_v52  ;;  %v5631_v10 = vpop.f32.mrb[223].mxu1  ;;  %v13816_v52 = vpack.c.bf16 %v5721_v26, %v5719_v55  ;;  %v13818_v56 = vpack.c.bf16 %v5726_v15, %v5724_v62 }
 0xd87   :  { %5799 = vmatprep.mubr.f32.mxu0 %v5631_v10 }
 0xd89   :  { %13797 = vmatpush1.bf16.msra.mxu0 %v13796_v38  ;;  %v17396_v29 = vpop.f32.mrb[224].mxu1  ;;  %v5728_v38 = vld [vmem:[#allocation19 + $0x5c8] sm:$0xff] }
 0xd8a   :  { %13799 = vmatprep.subr.bf16.mxu0 %v13798_v27  ;;  %v17398_v22 = vpop.f32.mrb[225].mxu1  ;;  %v5730_v27 = vld [vmem:[#allocation19 + $0x5d8] sm:$0xff] }
 0xd8b   :  { %v13822_v10 = vpack.c.bf16 %v5730_v27, %v5728_v38 }
 0xd8d   :  { %13801 = vmatpush1.bf16.msra.mxu0 %v13800_v60  ;;  %v5641_v47 = vpop.f32.mrb[226].mxu1 }
 0xd8e   :  { %13803 = vmatprep.subr.bf16.mxu0 %v13802_v36  ;;  %v5643_v14 = vpop.f32.mrb[227].mxu1  ;;  %v5732_v36 = vld [vmem:[#allocation19 + $0x5e8] sm:$0xff] }
 0xd8f   :  { %v13826_v12 = vpack.c.bf16 %v5734_v54, %v5732_v36 }
 0xd91   :  { %13805 = vmatpush1.bf16.msra.mxu0 %v13804_v3  ;;  %v5647_v13 = vpop.f32.mrb[228].mxu1  ;;  %v5733_v3 = vld [vmem:[#allocation19 + $0x5f0] sm:$0xff] }
 0xd92   :  { %13807 = vmatprep.subr.bf16.mxu0 %v13806_v7  ;;  %v5649_v33 = vpop.f32.mrb[229].mxu1  ;;  %v13828_v7 = vpack.c.bf16 %v5733_v3, %v5731_v1 }
 0xd95   :  { %13809 = vmatpush1.bf16.msra.mxu0 %v13808_v20  ;;  %v5653_v8 = vpop.f32.mrb[230].mxu1 }
 0xd96   :  { %13811 = vmatprep.subr.bf16.mxu0 %v13810_v63  ;;  %v5655_v61 = vpop.f32.mrb[231].mxu1 }
 0xd99   :  { %13813 = vmatpush1.bf16.msra.mxu0 %v13812_v46  ;;  %v5659_v18 = vpop.f32.mrb[232].mxu1 }
 0xd9a   :  { %13815 = vmatprep.subr.bf16.mxu0 %v13814_v2  ;;  %v5661_v30 = vpop.f32.mrb[233].mxu1 }
 0xd9d   :  { %13817 = vmatpush1.bf16.msra.mxu0 %v13816_v52  ;;  %v5665_v9 = vpop.f32.mrb[234].mxu1 }
 0xd9e   :  { %13819 = vmatprep.subr.bf16.mxu0 %v13818_v56  ;;  %v5667_v60 = vpop.f32.mrb[235].mxu1 }
 0xda1   :  { %13821 = vmatpush1.bf16.msra.mxu0 %v13820_v43 }
 0xda2   :  { %13823 = vmatprep.subr.bf16.mxu0 %v13822_v10 }
 0xda5   :  { %13825 = vmatpush1.bf16.msra.mxu0 %v13824_v57 }
 0xda6   :  { %13827 = vmatprep.subr.bf16.mxu0 %v13826_v12 }
 0xda9   :  { %13829 = vmatpush1.bf16.msra.mxu0 %v13828_v7 }
 0xdac   :  { %5800 = vmatmul.mubr.f32.vlgmr.msra.gmra.mrb[148].mxu0 %v17394_v45  ;;  %v5883_v45 = vld [vmem:[#allocation21 + $0x1] ss:$2 sm:$0x3] }
 0xdad   :  { %5805 = vmatprep.mubr.f32.mxu0 %v17398_v22  ;;  %v17408_v22 = vrot.slane %v5856_v31, %v17236_v4  ;;  %v17415_v37 = vrot.slane %v5883_v45, %v17234_v48 }
 0xdb0   :  { %5806 = vmatmul.mubr.f32.gmra.mrb[150].mxu0 %v17396_v29 }
 0xdb1   :  { %5811 = vmatprep.mubr.f32.mxu0 %v5643_v14 }
 0xdb4   :  { %5812 = vmatmul.mubr.f32.gmra.mrb[152].mxu0 %v5641_v47  ;;  %v17411_v47 = vrot.slane %v5883_v45, %v17236_v4 }
 0xdb5   :  { %5817 = vmatprep.mubr.f32.mxu0 %v5649_v33 }
 0xdb8   :  { %5818 = vmatmul.mubr.f32.gmra.mrb[154].mxu0 %v5647_v13 }
 0xdb9   :  { %5823 = vmatprep.mubr.f32.mxu0 %v5655_v61 }
 0xdbc   :  { %5824 = vmatmul.mubr.f32.gmra.mrb[156].mxu0 %v5653_v8 }
 0xdbd   :  { %5829 = vmatprep.mubr.f32.mxu0 %v5661_v30 }
 0xdc0   :  { %5830 = vmatmul.mubr.f32.gmra.mrb[158].mxu0 %v5659_v18 }
 0xdc1   :  { %5835 = vmatprep.mubr.f32.mxu0 %v5667_v60 }
 0xdc4   :  { %5836 = vmatmul.mubr.f32.gmra.mrb[160].mxu0 %v5665_v9 }
 0xdc5   :  { %6894 = vmatprep.mubr.f32.mxu0 %v15801_v28 }
 0xe7f   :  { %v5801_v29 = vpop.f32.mrb[148].mxu0 }
 0xe80   :  { %v5868_v14 = vmul.f32 %v17405_v19, %v5801_v29  ;;  %v5803_v21 = vpop.f32.mrb[149].mxu0 }
 0xe81   :  { %v5869_v20 = vmul.f32 %v17408_v22, %v5803_v21 }
 0xe82   :  { %v5895_v34 = vadd.f32 %v17415_v37, %v5868_v14 }
 0xe83   :  { %v5896_v13 = vadd.f32 %v17411_v47, %v5869_v20  ;;  %v5807_v63 = vpop.f32.mrb[150].mxu0 }
 0xe84   :  { %v5870_v23 = vmul.f32 %v17405_v19, %v5807_v63  ;;  %v5809_v33 = vpop.f32.mrb[151].mxu0  ;;  %v5909_v55 = vadd.f32 %v5895_v34, %v17258_v42 }
 0xe85   :  { %v5871_v41 = vmul.f32 %v17408_v22, %v5809_v33  ;;  %v5910_v46 = vadd.f32 %v5896_v13, %v17255_v58 }
 0xe86   :  { %v5897_v59 = vadd.f32 %v17415_v37, %v5870_v23  ;;  %v17437_v30 = vmax.f32 %v5909_v55, 0.0 }
 0xe87   :  { %v5898_v8 = vadd.f32 %v17411_v47, %v5871_v41  ;;  %v5813_v2 = vpop.f32.mrb[152].mxu0  ;;  %v17432_v56 = vmax.f32 %v5910_v46, 0.0 }
 0xe88   :  { %v5911_v26 = vadd.f32 %v5897_v59, %v17263_v44  ;;  %v5872_v61 = vmul.f32 %v17405_v19, %v5813_v2  ;;  %v5815_v62 = vpop.f32.mrb[153].mxu0 }
 0xe89   :  { %v5912_v15 = vadd.f32 %v5898_v8, %v17267_v5  ;;  %v5873_v52 = vmul.f32 %v17408_v22, %v5815_v62 }
 0xe8a   :  { %v17430_v18 = vmax.f32 %v5911_v26, 0.0  ;;  %v5899_v42 = vadd.f32 %v17415_v37, %v5872_v61 }
 0xe8b   :  { %v17434_v53 = vmax.f32 %v5912_v15, 0.0  ;;  %v5900_v58 = vadd.f32 %v17411_v47, %v5873_v52  ;;  %v5819_v49 = vpop.f32.mrb[154].mxu0  ;;  %v6140_v15 = vld [vmem:[#allocation22 + $0x218] sm:$0xff] }
 0xe8c   :  { %v5874_v44 = vmul.f32 %v17405_v19, %v5819_v49  ;;  %v5821_v38 = vpop.f32.mrb[155].mxu0  ;;  %v17449_v9 = vpack.c.bf16 %v17430_v18, %v17437_v30  ;;  %v5913_v60 = vadd.f32 %v5899_v42, %v17287_v40  ;;  %v6144_v49 = vld [vmem:[#allocation22 + $0x238] sm:$0xff] }
 0xe8d   :  { %v5875_v5 = vmul.f32 %v17408_v22, %v5821_v38  ;;  %v17444_v27 = vpack.c.bf16 %v17434_v53, %v17432_v56  ;;  %v5914_v10 = vadd.f32 %v5900_v58, %v17283_v39  ;;  %v6139_v58 = vld [vmem:[#allocation22 + $0x210] sm:$0xff] }
 0xe8e   :  { %v5901_v43 = vadd.f32 %v17415_v37, %v5874_v44  ;;  %v17467_v45 = vmax.f32 %v5913_v60, 0.0  ;;  %v5937_v44 = vld [vmem:[#allocation24] sm:$0xff]  ;;  %v5938_v60 = vld [vmem:[#allocation24 + $0x8] sm:$0xff] }
 0xe8f   :  { %v5902_v51 = vadd.f32 %v17411_v47, %v5875_v5  ;;  %v5825_v32 = vpop.f32.mrb[156].mxu0  ;;  %13831 = vmatprep.subr.bf16.mxu1 %v17444_v27  ;;  %v17462_v39 = vmax.f32 %v5914_v10, 0.0  ;;  %v6143_v10 = vld [vmem:[#allocation22 + $0x230] sm:$0xff] }
 0xe90   :  { %v5915_v36 = vadd.f32 %v5901_v43, %v17293_v35  ;;  %v5876_v54 = vmul.f32 %v17405_v19, %v5825_v32  ;;  %v5827_v57 = vpop.f32.mrb[157].mxu0  ;;  %13833 = vmatpush1.bf16.msra.mxu1 %v17449_v9  ;;  %v6141_v43 = vld [vmem:[#allocation22 + $0x220] sm:$0xff]  ;;  %v6148_v32 = vld [vmem:[#allocation22 + $0x258] sm:$0xff] }
 0xe91   :  { %v5916_v12 = vadd.f32 %v5902_v51, %v17297_v6  ;;  %v5877_v1 = vmul.f32 %v17408_v22, %v5827_v57  ;;  %v6146_v51 = vld [vmem:[#allocation22 + $0x248] sm:$0xff]  ;;  %v6145_v57 = vld [vmem:[#allocation22 + $0x240] sm:$0xff] }
 0xe92   :  { %v17460_v3 = vmax.f32 %v5915_v36, 0.0  ;;  %v5903_v35 = vadd.f32 %v17415_v37, %v5876_v54  ;;  %v13848_v36 = vpack.c.bf16 %v6143_v10, %v6141_v43  ;;  %v13850_v54 = vpack.c.bf16 %v6148_v32, %v6146_v51  ;;  %v6165_v51 = vld [vmem:[#allocation22 + $0x2e0] sm:$0xff]  ;;  %v6167_v32 = vld [vmem:[#allocation22 + $0x2f0] sm:$0xff] }
 0xe93   :  { %v17464_v7 = vmax.f32 %v5916_v12, 0.0  ;;  %v5904_v31 = vadd.f32 %v17411_v47, %v5877_v1  ;;  %v5831_v40 = vpop.f32.mrb[158].mxu0  ;;  %v6147_v12 = vld [vmem:[#allocation22 + $0x250] sm:$0xff]  ;;  %v6150_v1 = vld [vmem:[#allocation22 + $0x268] sm:$0xff] }
 0xe94   :  { %v5878_v29 = vmul.f32 %v17405_v19, %v5831_v40  ;;  %v5833_v14 = vpop.f32.mrb[159].mxu0  ;;  %v17479_v13 = vpack.c.bf16 %v17460_v3, %v17467_v45  ;;  %v5917_v33 = vadd.f32 %v5903_v35, %v17317_v17  ;;  %v5939_v40 = vld [vmem:[#allocation24 + $0x10] sm:$0xff]  ;;  %v13852_v35 = vpack.c.bf16 %v6147_v12, %v6145_v57  ;;  %v6169_v12 = vld [vmem:[#allocation22 + $0x300] sm:$0xff] }
 0xe95   :  { %v5879_v6 = vmul.f32 %v17408_v22, %v5833_v14  ;;  %v17474_v21 = vpack.c.bf16 %v17464_v7, %v17462_v39  ;;  %v5918_v63 = vadd.f32 %v5904_v31, %v17313_v11  ;;  %v6152_v31 = vld [vmem:[#allocation22 + $0x278] sm:$0xff]  ;;  %v6149_v14 = vld [vmem:[#allocation22 + $0x260] sm:$0xff] }
 0xe96   :  { %v5905_v20 = vadd.f32 %v17415_v37, %v5878_v29  ;;  %v13854_v29 = vpack.c.bf16 %v6152_v31, %v6150_v1  ;;  %v6171_v1 = vld [vmem:[#allocation22 + $0x310] sm:$0xff]  ;;  %v6174_v31 = vld [vmem:[#allocation22 + $0x328] sm:$0xff] }
 0xe97   :  { %v5906_v34 = vadd.f32 %v17411_v47, %v5879_v6  ;;  %v5837_v23 = vpop.f32.mrb[160].mxu0  ;;  %13835 = vmatprep.subr.bf16.mxu1 %v17474_v21  ;;  %v17493_v26 = vmax.f32 %v5918_v63, 0.0  ;;  %v6151_v6 = vld [vmem:[#allocation22 + $0x270] sm:$0xff]  ;;  %v6156_v63 = vld [vmem:[#allocation22 + $0x298] sm:$0xff] }
 0xe98   :  { %v5919_v41 = vadd.f32 %v5905_v20, %v17323_v24  ;;  %v5880_v59 = vmul.f32 %v17405_v19, %v5837_v23  ;;  %v5839_v46 = vpop.f32.mrb[161].mxu0  ;;  %13837 = vmatpush1.bf16.msra.mxu1 %v17479_v13  ;;  %v17498_v24 = vmax.f32 %v5917_v33, 0.0  ;;  %v6154_v20 = vld [vmem:[#allocation22 + $0x288] sm:$0xff]  ;;  %v13856_v23 = vpack.c.bf16 %v6151_v6, %v6149_v14  ;;  %v6173_v14 = vld [vmem:[#allocation22 + $0x320] sm:$0xff]  ;;  %v6175_v6 = vld [vmem:[#allocation22 + $0x330] sm:$0xff] }
 0xe99   :  { %v5920_v8 = vadd.f32 %v5906_v34, %v17327_v50  ;;  %v5881_v2 = vmul.f32 %v17408_v22, %v5839_v46  ;;  %v5940_v34 = vld [vmem:[#allocation24 + $0x18] sm:$0xff]  ;;  %v13858_v33 = vpack.c.bf16 %v6156_v63, %v6154_v20  ;;  %v6158_v46 = vld [vmem:[#allocation22 + $0x2a8] sm:$0xff] }
 0xe9a   :  { %v17490_v55 = vmax.f32 %v5919_v41, 0.0  ;;  %v5907_v11 = vadd.f32 %v17415_v37, %v5880_v59  ;;  %v6138_v37 = vld [vmem:[#allocation22 + $0x208] sm:$0xff]  ;;  %v6153_v41 = vld [vmem:[#allocation22 + $0x280] sm:$0xff]  ;;  %v6155_v59 = vld [vmem:[#allocation22 + $0x290] sm:$0xff] }
 0xe9b   :  { %v17495_v61 = vmax.f32 %v5920_v8, 0.0  ;;  %v5908_v17 = vadd.f32 %v17411_v47, %v5881_v2  ;;  %v6137_v47 = vld [vmem:[#allocation22 + $0x200] sm:$0xff]  ;;  %v13842_v42 = vpack.c.bf16 %v6140_v15, %v6138_v37  ;;  %v6160_v8 = vld [vmem:[#allocation22 + $0x2b8] sm:$0xff]  ;;  %v6162_v37 = vld [vmem:[#allocation22 + $0x2c8] sm:$0xff] }
 0xe9c   :  { %v5921_v50 = vadd.f32 %v5907_v11, %v17340_v16  ;;  %v17508_v22 = vpack.c.bf16 %v17490_v55, %v17498_v24  ;;  %v13844_v38 = vpack.c.bf16 %v6139_v58, %v6137_v47  ;;  %v5941_v2 = vld [vmem:[#allocation24 + $0x20] sm:$0xff]  ;;  %v13860_v11 = vpack.c.bf16 %v6155_v59, %v6153_v41  ;;  %v6164_v15 = vld [vmem:[#allocation22 + $0x2d8] sm:$0xff]  ;;  %v5942_v47 = vld [vmem:[#allocation24 + $0x28] sm:$0xff] }
 0xe9d   :  { %v5922_v19 = vadd.f32 %v5908_v17, %v17338_v25  ;;  %v17503_v62 = vpack.c.bf16 %v17495_v61, %v17493_v26  ;;  %v6142_v25 = vld [vmem:[#allocation22 + $0x228] sm:$0xff]  ;;  %v13862_v17 = vpack.c.bf16 %v6160_v8, %v6158_v46  ;;  %v6180_v63 = vld [vmem:[#allocation22 + $0x358] sm:$0xff]  ;;  %v6179_v41 = vld [vmem:[#allocation22 + $0x350] sm:$0xff] }
 0xe9e   :  { %v17515_v16 = vmax.f32 %v5921_v50, 0.0  ;;  %v13846_v5 = vpack.c.bf16 %v6144_v49, %v6142_v25  ;;  %v6159_v50 = vld [vmem:[#allocation22 + $0x2b0] sm:$0xff]  ;;  %v13866_v25 = vpack.c.bf16 %v6164_v15, %v6162_v37  ;;  %v6161_v49 = vld [vmem:[#allocation22 + $0x2c0] sm:$0xff]  ;;  %v6178_v20 = vld [vmem:[#allocation22 + $0x348] sm:$0xff] }
 0xe9f   :  { %v17510_v52 = vmax.f32 %v5922_v19, 0.0  ;;  %13839 = vmatprep.subr.bf16.mxu1 %v17503_v62  ;;  %v6157_v19 = vld [vmem:[#allocation22 + $0x2a0] sm:$0xff]  ;;  %v6182_v59 = vld [vmem:[#allocation22 + $0x368] sm:$0xff]  ;;  %v6184_v46 = vld [vmem:[#allocation22 + $0x378] sm:$0xff] }
 0xea0   :  { %13841 = vmatpush1.bf16.msra.mxu1 %v17508_v22  ;;  %v13864_v58 = vpack.c.bf16 %v6159_v50, %v6157_v19  ;;  %v6186_v19 = vld [vmem:[#allocation22 + $0x388] sm:$0xff]  ;;  %v6188_v50 = vld [vmem:[#allocation22 + $0x398] sm:$0xff] }
 0xea1   :  { %5977 = vmatprep.subr.mxu1 %v17510_v52  ;;  %v13890_v15 = vpack.c.bf16 %v6188_v50, %v6186_v19  ;;  %v6080_v19 = vld [vmem:[#allocation22 + $0x40] sm:$0xff]  ;;  %v6082_v50 = vld [vmem:[#allocation22 + $0x50] sm:$0xff] }
 0xea4   :  { %5978 = vmatpush1.msra.mxu1 %v17515_v16 }
 0xea5   :  { %10680 = vmatmul.mubr.msk.f32.vlgmr.msra.gmra.mrb[236].mxu1 %vm5062_vm1, %v5937_v44  ;;  %13843 = vmatprep.subr.bf16.mxu1 %v13842_v42  ;;  %v6163_v42 = vld [vmem:[#allocation22 + $0x2d0] sm:$0xff]  ;;  %v6166_v44 = vld [vmem:[#allocation22 + $0x2e8] sm:$0xff] }
 0xea6   :  { %13845 = vmatpush1.bf16.msra.mxu1 %v13844_v38  ;;  %6035 = vmatprep.mubr.f32.mxu1 %v15801_v28  ;;  %v6168_v38 = vld [vmem:[#allocation22 + $0x2f8] sm:$0xff]  ;;  %v13868_v43 = vpack.c.bf16 %v6163_v42, %v6161_v49 }
 0xea7   :  { %13847 = vmatprep.subr.bf16.mxu1 %v13846_v5  ;;  %v5943_v5 = vld [vmem:[#allocation24 + $0x30] sm:$0xff]  ;;  %v13870_v10 = vpack.c.bf16 %v6168_v38, %v6166_v44  ;;  %v6192_v49 = vld [vmem:[#allocation22 + $0x3b8] sm:$0xff]  ;;  %v6189_v38 = vld [vmem:[#allocation22 + $0x3a0] sm:$0xff] }
 0xea9   :  { %10681 = vmatmul.mubr.msk.f32.gmra.mrb[238].mxu1 %vm5062_vm1, %v5938_v60  ;;  %v6170_v60 = vld [vmem:[#allocation22 + $0x308] sm:$0xff] }
 0xeaa   :  { %13849 = vmatpush1.bf16.msra.mxu1 %v13848_v36  ;;  %6041 = vmatprep.mubr.f32.mxu1 %v15801_v28  ;;  %v6172_v36 = vld [vmem:[#allocation22 + $0x318] sm:$0xff] }
 0xeab   :  { %13851 = vmatprep.subr.bf16.mxu1 %v13850_v54  ;;  %v13872_v54 = vpack.c.bf16 %v6167_v32, %v6165_v51  ;;  %v13874_v57 = vpack.c.bf16 %v6172_v36, %v6170_v60  ;;  %v6193_v60 = vld [vmem:[#allocation22 + $0x3c0] sm:$0xff]  ;;  %v6195_v36 = vld [vmem:[#allocation22 + $0x3d0] sm:$0xff] }
 0xead   :  { %10682 = vmatmul.mubr.msk.f32.gmra.mrb[240].mxu1 %vm5062_vm1, %v5939_v40  ;;  %v6176_v40 = vld [vmem:[#allocation22 + $0x338] sm:$0xff] }
 0xeae   :  { %13853 = vmatpush1.bf16.msra.mxu1 %v13852_v35  ;;  %6047 = vmatprep.mubr.f32.mxu1 %v15801_v28  ;;  %v13876_v35 = vpack.c.bf16 %v6171_v1, %v6169_v12  ;;  %v13900_v12 = vpack.c.bf16 %v6195_v36, %v6193_v60 }
 0xeaf   :  { %13855 = vmatprep.subr.bf16.mxu1 %v13854_v29  ;;  %v13878_v29 = vpack.c.bf16 %v6176_v40, %v6174_v31  ;;  %v6197_v31 = vld [vmem:[#allocation22 + $0x3e0] sm:$0xff]  ;;  %v6199_v40 = vld [vmem:[#allocation22 + $0x3f0] sm:$0xff] }
 0xeb1   :  { %10683 = vmatmul.mubr.msk.f32.gmra.mrb[242].mxu1 %vm5062_vm1, %v5940_v34  ;;  %v13880_v34 = vpack.c.bf16 %v6175_v6, %v6173_v14  ;;  %v13904_v14 = vpack.c.bf16 %v6199_v40, %v6197_v31 }
 0xeb2   :  { %13857 = vmatpush1.bf16.msra.mxu1 %v13856_v23  ;;  %6053 = vmatprep.mubr.f32.mxu1 %v15801_v28  ;;  %v13882_v23 = vpack.c.bf16 %v6180_v63, %v6178_v20  ;;  %v6072_v20 = vld [vmem:[#allocation22] sm:$0xff]  ;;  %v6074_v63 = vld [vmem:[#allocation22 + $0x10] sm:$0xff] }
 0xeb3   :  { %13859 = vmatprep.subr.bf16.mxu1 %v13858_v33  ;;  %v6177_v33 = vld [vmem:[#allocation22 + $0x340] sm:$0xff] }
 0xeb4   :  { %v13884_v8 = vpack.c.bf16 %v6179_v41, %v6177_v33  ;;  %v13908_v33 = vpack.c.bf16 %v6074_v63, %v6072_v20 }
 0xeb5   :  { %10684 = vmatmul.mubr.msk.f32.gmra.mrb[244].mxu1 %vm5062_vm1, %v5941_v2  ;;  %v13886_v2 = vpack.c.bf16 %v6184_v46, %v6182_v59  ;;  %v6076_v59 = vld [vmem:[#allocation22 + $0x20] sm:$0xff]  ;;  %v6078_v46 = vld [vmem:[#allocation22 + $0x30] sm:$0xff] }
 0xeb6   :  { %13861 = vmatpush1.bf16.msra.mxu1 %v13860_v11  ;;  %6059 = vmatprep.mubr.f32.mxu1 %v15801_v28  ;;  %v6181_v11 = vld [vmem:[#allocation22 + $0x360] sm:$0xff] }
 0xeb7   :  { %13863 = vmatprep.subr.bf16.mxu1 %v13862_v17  ;;  %v6183_v17 = vld [vmem:[#allocation22 + $0x370] sm:$0xff] }
 0xeb8   :  { %v13888_v37 = vpack.c.bf16 %v6183_v17, %v6181_v11  ;;  %v13912_v11 = vpack.c.bf16 %v6078_v46, %v6076_v59 }
 0xeb9   :  { %10685 = vmatmul.mubr.msk.f32.gmra.mrb[246].mxu1 %vm5062_vm1, %v5942_v47  ;;  %v6185_v47 = vld [vmem:[#allocation22 + $0x380] sm:$0xff] }
 0xeba   :  { %13865 = vmatpush1.bf16.msra.mxu1 %v13864_v58  ;;  %6065 = vmatprep.mubr.f32.mxu1 %v15801_v28  ;;  %v6187_v58 = vld [vmem:[#allocation22 + $0x390] sm:$0xff] }
 0xebb   :  { %13867 = vmatprep.subr.bf16.mxu1 %v13866_v25  ;;  %v6190_v25 = vld [vmem:[#allocation22 + $0x3a8] sm:$0xff]  ;;  %v13892_v42 = vpack.c.bf16 %v6187_v58, %v6185_v47  ;;  %v13916_v47 = vpack.c.bf16 %v6082_v50, %v6080_v19 }
 0xebc   :  { %v13894_v44 = vpack.c.bf16 %v6192_v49, %v6190_v25  ;;  %v6084_v25 = vld [vmem:[#allocation22 + $0x60] sm:$0xff]  ;;  %v6086_v49 = vld [vmem:[#allocation22 + $0x70] sm:$0xff] }
 0xebd   :  { %10686 = vmatmul.mubr.msk.f32.gmra.mrb[248].mxu1 %vm5062_vm1, %v5943_v5  ;;  %v6191_v5 = vld [vmem:[#allocation22 + $0x3b0] sm:$0xff] }
 0xebe   :  { %13869 = vmatpush1.bf16.msra.mxu1 %v13868_v43  ;;  %6265 = vmatprep.mubr.f32.mxu1 %v17432_v56  ;;  %v6194_v43 = vld [vmem:[#allocation22 + $0x3c8] sm:$0xff]  ;;  %v13896_v51 = vpack.c.bf16 %v6191_v5, %v6189_v38  ;;  %v13920_v38 = vpack.c.bf16 %v6086_v49, %v6084_v25 }
 0xebf   :  { %13871 = vmatprep.subr.bf16.mxu1 %v13870_v10  ;;  %v6196_v10 = vld [vmem:[#allocation22 + $0x3d8] sm:$0xff] }
 0xec0   :  { %v13898_v32 = vpack.c.bf16 %v6196_v10, %v6194_v43  ;;  %v6088_v43 = vld [vmem:[#allocation22 + $0x80] sm:$0xff]  ;;  %v6090_v10 = vld [vmem:[#allocation22 + $0x90] sm:$0xff] }
 0xec1   :  { %v13924_v60 = vpack.c.bf16 %v6090_v10, %v6088_v43 }
 0xec2   :  { %13873 = vmatpush1.bf16.msra.mxu1 %v13872_v54  ;;  %v6198_v54 = vld [vmem:[#allocation22 + $0x3e8] sm:$0xff] }
 0xec3   :  { %13875 = vmatprep.subr.bf16.mxu1 %v13874_v57  ;;  %v6200_v57 = vld [vmem:[#allocation22 + $0x3f8] sm:$0xff] }
 0xec4   :  { %v13902_v1 = vpack.c.bf16 %v6200_v57, %v6198_v54  ;;  %v6092_v54 = vld [vmem:[#allocation22 + $0xa0] sm:$0xff]  ;;  %v6094_v57 = vld [vmem:[#allocation22 + $0xb0] sm:$0xff] }
 0xec5   :  { %v13928_v31 = vpack.c.bf16 %v6094_v57, %v6092_v54 }
 0xec6   :  { %13877 = vmatpush1.bf16.msra.mxu1 %v13876_v35  ;;  %v6073_v35 = vld [vmem:[#allocation22 + $0x8] sm:$0xff] }
 0xec7   :  { %13879 = vmatprep.subr.bf16.mxu1 %v13878_v29  ;;  %v6075_v29 = vld [vmem:[#allocation22 + $0x18] sm:$0xff] }
 0xec8   :  { %v13906_v6 = vpack.c.bf16 %v6075_v29, %v6073_v35  ;;  %v6096_v35 = vld [vmem:[#allocation22 + $0xc0] sm:$0xff]  ;;  %v6098_v29 = vld [vmem:[#allocation22 + $0xd0] sm:$0xff] }
 0xec9   :  { %v13932_v20 = vpack.c.bf16 %v6098_v29, %v6096_v35 }
 0xeca   :  { %13881 = vmatpush1.bf16.msra.mxu1 %v13880_v34  ;;  %v6077_v34 = vld [vmem:[#allocation22 + $0x28] sm:$0xff] }
 0xecb   :  { %13883 = vmatprep.subr.bf16.mxu1 %v13882_v23  ;;  %v6079_v23 = vld [vmem:[#allocation22 + $0x38] sm:$0xff] }
 0xecc   :  { %v13910_v41 = vpack.c.bf16 %v6079_v23, %v6077_v34  ;;  %v6100_v34 = vld [vmem:[#allocation22 + $0xe0] sm:$0xff]  ;;  %v6102_v23 = vld [vmem:[#allocation22 + $0xf0] sm:$0xff] }
 0xecd   :  { %v13936_v59 = vpack.c.bf16 %v6102_v23, %v6100_v34 }
 0xece   :  { %13885 = vmatpush1.bf16.msra.mxu1 %v13884_v8  ;;  %v6081_v8 = vld [vmem:[#allocation22 + $0x48] sm:$0xff] }
 0xecf   :  { %13887 = vmatprep.subr.bf16.mxu1 %v13886_v2  ;;  %v6083_v2 = vld [vmem:[#allocation22 + $0x58] sm:$0xff] }
 0xed0   :  { %v13914_v17 = vpack.c.bf16 %v6083_v2, %v6081_v8  ;;  %v6104_v8 = vld [vmem:[#allocation22 + $0x100] sm:$0xff]  ;;  %v6106_v2 = vld [vmem:[#allocation22 + $0x110] sm:$0xff] }
 0xed1   :  { %v13940_v19 = vpack.c.bf16 %v6106_v2, %v6104_v8 }
 0xed2   :  { %13889 = vmatpush1.bf16.msra.mxu1 %v13888_v37  ;;  %v6085_v37 = vld [vmem:[#allocation22 + $0x68] sm:$0xff] }
 0xed3   :  { %13891 = vmatprep.subr.bf16.mxu1 %v13890_v15  ;;  %v6087_v15 = vld [vmem:[#allocation22 + $0x78] sm:$0xff] }
 0xed4   :  { %v13918_v58 = vpack.c.bf16 %v6087_v15, %v6085_v37  ;;  %v6108_v37 = vld [vmem:[#allocation22 + $0x120] sm:$0xff]  ;;  %v6110_v15 = vld [vmem:[#allocation22 + $0x130] sm:$0xff] }
 0xed5   :  { %v13944_v25 = vpack.c.bf16 %v6110_v15, %v6108_v37 }
 0xed6   :  { %13893 = vmatpush1.bf16.msra.mxu1 %v13892_v42  ;;  %v6089_v42 = vld [vmem:[#allocation22 + $0x88] sm:$0xff] }
 0xed7   :  { %13895 = vmatprep.subr.bf16.mxu1 %v13894_v44  ;;  %v6091_v44 = vld [vmem:[#allocation22 + $0x98] sm:$0xff] }
 0xed8   :  { %v13922_v5 = vpack.c.bf16 %v6091_v44, %v6089_v42  ;;  %v6112_v42 = vld [vmem:[#allocation22 + $0x140] sm:$0xff]  ;;  %v6114_v44 = vld [vmem:[#allocation22 + $0x150] sm:$0xff] }
 0xed9   :  { %v13948_v43 = vpack.c.bf16 %v6114_v44, %v6112_v42 }
 0xeda   :  { %13897 = vmatpush1.bf16.msra.mxu1 %v13896_v51  ;;  %v6093_v51 = vld [vmem:[#allocation22 + $0xa8] sm:$0xff] }
 0xedb   :  { %13899 = vmatprep.subr.bf16.mxu1 %v13898_v32  ;;  %v6095_v32 = vld [vmem:[#allocation22 + $0xb8] sm:$0xff] }
 0xedc   :  { %v13926_v36 = vpack.c.bf16 %v6095_v32, %v6093_v51  ;;  %v6116_v51 = vld [vmem:[#allocation22 + $0x160] sm:$0xff]  ;;  %v6118_v32 = vld [vmem:[#allocation22 + $0x170] sm:$0xff] }
 0xedd   :  { %v13952_v54 = vpack.c.bf16 %v6118_v32, %v6116_v51  ;;  %v6557_v51 = vld [vmem:[#allocation22 + $0x428] sm:$0xff]  ;;  %v6559_v32 = vld [vmem:[#allocation22 + $0x438] sm:$0xff] }
 0xede   :  { %13901 = vmatpush1.bf16.msra.mxu1 %v13900_v12  ;;  %v6097_v12 = vld [vmem:[#allocation22 + $0xc8] sm:$0xff] }
 0xedf   :  { %13903 = vmatprep.subr.bf16.mxu1 %v13902_v1  ;;  %v6099_v1 = vld [vmem:[#allocation22 + $0xd8] sm:$0xff] }
 0xee0   :  { %v13930_v40 = vpack.c.bf16 %v6099_v1, %v6097_v12  ;;  %v6120_v12 = vld [vmem:[#allocation22 + $0x180] sm:$0xff]  ;;  %v6122_v1 = vld [vmem:[#allocation22 + $0x190] sm:$0xff] }
 0xee1   :  { %v13956_v35 = vpack.c.bf16 %v6122_v1, %v6120_v12  ;;  %v6558_v12 = vld [vmem:[#allocation22 + $0x430] sm:$0xff]  ;;  %v6561_v1 = vld [vmem:[#allocation22 + $0x448] sm:$0xff] }
 0xee2   :  { %13905 = vmatpush1.bf16.msra.mxu1 %v13904_v14  ;;  %v6101_v14 = vld [vmem:[#allocation22 + $0xe8] sm:$0xff] }
 0xee3   :  { %13907 = vmatprep.subr.bf16.mxu1 %v13906_v6  ;;  %v6103_v6 = vld [vmem:[#allocation22 + $0xf8] sm:$0xff] }
 0xee4   :  { %v13934_v63 = vpack.c.bf16 %v6103_v6, %v6101_v14  ;;  %v6124_v14 = vld [vmem:[#allocation22 + $0x1a0] sm:$0xff]  ;;  %v6126_v6 = vld [vmem:[#allocation22 + $0x1b0] sm:$0xff] }
 0xee5   :  { %6266 = vmatmul.mubr.f32.vlgmr.msra.gmra.mrb[250].mxu1 %v17437_v30  ;;  %v13960_v34 = vpack.c.bf16 %v6126_v6, %v6124_v14  ;;  %v6560_v14 = vld [vmem:[#allocation22 + $0x440] sm:$0xff]  ;;  %v6562_v6 = vld [vmem:[#allocation22 + $0x450] sm:$0xff] }
 0xee6   :  { %6271 = vmatprep.mubr.f32.mxu1 %v17434_v53  ;;  %13909 = vmatpush1.bf16.msra.mxu1 %v13908_v33  ;;  %v6105_v33 = vld [vmem:[#allocation22 + $0x108] sm:$0xff] }
 0xee7   :  { %13911 = vmatprep.subr.bf16.mxu1 %v13910_v41  ;;  %v6107_v41 = vld [vmem:[#allocation22 + $0x118] sm:$0xff] }
 0xee8   :  { %v13938_v46 = vpack.c.bf16 %v6107_v41, %v6105_v33  ;;  %v6128_v33 = vld [vmem:[#allocation22 + $0x1c0] sm:$0xff]  ;;  %v6130_v41 = vld [vmem:[#allocation22 + $0x1d0] sm:$0xff] }
 0xee9   :  { %6272 = vmatmul.mubr.f32.gmra.mrb[252].mxu1 %v17430_v18  ;;  %v13964_v8 = vpack.c.bf16 %v6130_v41, %v6128_v33  ;;  %v6564_v41 = vld [vmem:[#allocation22 + $0x460] sm:$0xff] }
 0xeea   :  { %6277 = vmatprep.mubr.f32.mxu1 %v17462_v39  ;;  %13913 = vmatpush1.bf16.msra.mxu1 %v13912_v11  ;;  %v6109_v11 = vld [vmem:[#allocation22 + $0x128] sm:$0xff] }
 0xeeb   :  { %13915 = vmatprep.subr.bf16.mxu1 %v13914_v17  ;;  %v6111_v17 = vld [vmem:[#allocation22 + $0x138] sm:$0xff] }
 0xeec   :  { %v13942_v50 = vpack.c.bf16 %v6111_v17, %v6109_v11  ;;  %v6132_v11 = vld [vmem:[#allocation22 + $0x1e0] sm:$0xff]  ;;  %v6134_v17 = vld [vmem:[#allocation22 + $0x1f0] sm:$0xff] }
 0xeed   :  { %6278 = vmatmul.mubr.f32.gmra.mrb[254].mxu1 %v17467_v45 }
 0xeee   :  { %6283 = vmatprep.mubr.f32.mxu1 %v17464_v7  ;;  %13917 = vmatpush1.bf16.msra.mxu1 %v13916_v47  ;;  %v6113_v47 = vld [vmem:[#allocation22 + $0x148] sm:$0xff] }
 0xeef   :  { %13919 = vmatprep.subr.bf16.mxu1 %v13918_v58  ;;  %v6115_v58 = vld [vmem:[#allocation22 + $0x158] sm:$0xff] }
 0xef0   :  { %v13946_v49 = vpack.c.bf16 %v6115_v58, %v6113_v47 }
 0xef1   :  { %6284 = vmatmul.mubr.f32.gmra.mrb[20].mxu1 %v17460_v3 }
 0xef2   :  { %6289 = vmatprep.mubr.f32.mxu1 %v17493_v26  ;;  %13921 = vmatpush1.bf16.msra.mxu1 %v13920_v38  ;;  %v6117_v38 = vld [vmem:[#allocation22 + $0x168] sm:$0xff] }
 0xef3   :  { %13923 = vmatprep.subr.bf16.mxu1 %v13922_v5  ;;  %v6119_v5 = vld [vmem:[#allocation22 + $0x178] sm:$0xff] }
 0xef4   :  { %v13950_v10 = vpack.c.bf16 %v6119_v5, %v6117_v38 }
 0xef5   :  { %6290 = vmatmul.mubr.f32.gmra.mrb[22].mxu1 %v17498_v24 }
 0xef6   :  { %6295 = vmatprep.mubr.f32.mxu1 %v17495_v61  ;;  %13925 = vmatpush1.bf16.msra.mxu1 %v13924_v60  ;;  %v6121_v60 = vld [vmem:[#allocation22 + $0x188] sm:$0xff] }
 0xef7   :  { %13927 = vmatprep.subr.bf16.mxu1 %v13926_v36  ;;  %v6123_v36 = vld [vmem:[#allocation22 + $0x198] sm:$0xff] }
 0xef8   :  { %v13954_v57 = vpack.c.bf16 %v6123_v36, %v6121_v60  ;;  %v6416_v60 = vld [vmem:[#allocation24 + $0x70] sm:$0xff] }
 0xef9   :  { %6296 = vmatmul.mubr.f32.gmra.mrb[24].mxu1 %v17490_v55 }
 0xefa   :  { %6301 = vmatprep.mubr.f32.mxu1 %v17510_v52  ;;  %13929 = vmatpush1.bf16.msra.mxu1 %v13928_v31  ;;  %v6125_v31 = vld [vmem:[#allocation22 + $0x1a8] sm:$0xff] }
 0xefb   :  { %13931 = vmatprep.subr.bf16.mxu1 %v13930_v40  ;;  %v6127_v40 = vld [vmem:[#allocation22 + $0x1b8] sm:$0xff] }
 0xefc   :  { %v13958_v29 = vpack.c.bf16 %v6127_v40, %v6125_v31  ;;  %v6563_v31 = vld [vmem:[#allocation22 + $0x458] sm:$0xff] }
 0xefd   :  { %6302 = vmatmul.mubr.f32.gmra.mrb[26].mxu1 %v17515_v16  ;;  %v6417_v40 = vld [vmem:[#allocation24 + $0x78] sm:$0xff] }
 0xefe   :  { %13933 = vmatpush1.bf16.msra.mxu1 %v13932_v20  ;;  %v6129_v20 = vld [vmem:[#allocation22 + $0x1c8] sm:$0xff] }
 0xeff   :  { %13935 = vmatprep.subr.bf16.mxu1 %v13934_v63  ;;  %v6131_v63 = vld [vmem:[#allocation22 + $0x1d8] sm:$0xff] }
 0xf00   :  { %v13962_v23 = vpack.c.bf16 %v6131_v63, %v6129_v20  ;;  %v6565_v20 = vld [vmem:[#allocation22 + $0x468] sm:$0xff]  ;;  %v6567_v63 = vld [vmem:[#allocation22 + $0x478] sm:$0xff] }
 0xf01   :  { %v13994_v33 = vpack.c.bf16 %v6567_v63, %v6565_v20  ;;  %v6590_v20 = vld [vmem:[#allocation22 + $0x530] sm:$0xff]  ;;  %v6593_v63 = vld [vmem:[#allocation22 + $0x548] sm:$0xff] }
 0xf02   :  { %13937 = vmatpush1.bf16.msra.mxu1 %v13936_v59  ;;  %v6133_v59 = vld [vmem:[#allocation22 + $0x1e8] sm:$0xff] }
 0xf03   :  { %13939 = vmatprep.subr.bf16.mxu1 %v13938_v46  ;;  %v6135_v46 = vld [vmem:[#allocation22 + $0x1f8] sm:$0xff] }
 0xf04   :  { %v13966_v2 = vpack.c.bf16 %v6135_v46, %v6133_v59  ;;  %v6566_v59 = vld [vmem:[#allocation22 + $0x470] sm:$0xff]  ;;  %v6569_v46 = vld [vmem:[#allocation22 + $0x488] sm:$0xff] }
 0xf06   :  { %13941 = vmatpush1.bf16.msra.mxu1 %v13940_v19  ;;  %v13968_v19 = vpack.c.bf16 %v6134_v17, %v6132_v11  ;;  %v13996_v11 = vpack.c.bf16 %v6566_v59, %v6564_v41  ;;  %v6592_v41 = vld [vmem:[#allocation22 + $0x540] sm:$0xff]  ;;  %v6594_v59 = vld [vmem:[#allocation22 + $0x550] sm:$0xff] }
 0xf07   :  { %13943 = vmatprep.subr.bf16.mxu1 %v13942_v50 }
 0xf0a   :  { %13945 = vmatpush1.bf16.msra.mxu1 %v13944_v25 }
 0xf0b   :  { %13947 = vmatprep.subr.bf16.mxu1 %v13946_v49  ;;  %v6555_v49 = vld [vmem:[#allocation22 + $0x418] sm:$0xff] }
 0xf0e   :  { %13949 = vmatpush1.bf16.msra.mxu1 %v13948_v43  ;;  %v6552_v43 = vld [vmem:[#allocation22 + $0x400] sm:$0xff] }
 0xf0f   :  { %13951 = vmatprep.subr.bf16.mxu1 %v13950_v10  ;;  %v6554_v10 = vld [vmem:[#allocation22 + $0x410] sm:$0xff] }
 0xf10   :  { %v13984_v36 = vpack.c.bf16 %v6554_v10, %v6552_v43  ;;  %v6422_v43 = vld [vmem:[#allocation24 + $0xa0] sm:$0xff] }
 0xf12   :  { %13953 = vmatpush1.bf16.msra.mxu1 %v13952_v54  ;;  %v13986_v54 = vpack.c.bf16 %v6559_v32, %v6557_v51  ;;  %v6580_v32 = vld [vmem:[#allocation22 + $0x4e0] sm:$0xff] }
 0xf13   :  { %13955 = vmatprep.subr.bf16.mxu1 %v13954_v57  ;;  %v6556_v57 = vld [vmem:[#allocation22 + $0x420] sm:$0xff] }
 0xf16   :  { %13957 = vmatpush1.bf16.msra.mxu1 %v13956_v35  ;;  %v13988_v35 = vpack.c.bf16 %v6558_v12, %v6556_v57 }
 0xf17   :  { %13959 = vmatprep.subr.bf16.mxu1 %v13958_v29  ;;  %v13990_v29 = vpack.c.bf16 %v6563_v31, %v6561_v1  ;;  %v6584_v1 = vld [vmem:[#allocation22 + $0x500] sm:$0xff]  ;;  %v6586_v31 = vld [vmem:[#allocation22 + $0x510] sm:$0xff] }
 0xf1a   :  { %13961 = vmatpush1.bf16.msra.mxu1 %v13960_v34  ;;  %v6418_v34 = vld [vmem:[#allocation24 + $0x80] sm:$0xff] }
 0xf1b   :  { %13963 = vmatprep.subr.bf16.mxu1 %v13962_v23  ;;  %v13992_v23 = vpack.c.bf16 %v6562_v6, %v6560_v14  ;;  %v6588_v6 = vld [vmem:[#allocation22 + $0x520] sm:$0xff] }
 0xf1e   :  { %13965 = vmatpush1.bf16.msra.mxu1 %v13964_v8  ;;  %v6571_v8 = vld [vmem:[#allocation22 + $0x498] sm:$0xff] }
 0xf1f   :  { %13967 = vmatprep.subr.bf16.mxu1 %v13966_v2  ;;  %v6419_v2 = vld [vmem:[#allocation24 + $0x88] sm:$0xff]  ;;  %v13998_v17 = vpack.c.bf16 %v6571_v8, %v6569_v46  ;;  %v6599_v8 = vld [vmem:[#allocation22 + $0x578] sm:$0xff] }
 0xf20   :  { %v6597_v46 = vld [vmem:[#allocation22 + $0x568] sm:$0xff] }
 0xf22   :  { %13969 = vmatpush1.bf16.msra.mxu1 %v13968_v19  ;;  %v6568_v19 = vld [vmem:[#allocation22 + $0x480] sm:$0xff] }
 0xf23   :  { %13971 = vmatprep.subr.bf16.mxu1 %v17444_v27  ;;  %v6553_v27 = vld [vmem:[#allocation22 + $0x408] sm:$0xff] }
 0xf78   :  { %v6031_v50 = vpop.f32.mrb[236].mxu1 }
 0xf79   :  { %v6033_v37 = vpop.f32.mrb[237].mxu1 }
 0xf7a   :  { %6372 = vmatprep.mubr.f32.mxu1 %v6033_v37  ;;  %v6573_v37 = vld [vmem:[#allocation22 + $0x4a8] sm:$0xff] }
 0xf7b   :  { %6373 = vmatmul.mubr.f32.vlgmr.msra.gmra.mrb[250].mxu1 %v6031_v50  ;;  %v6570_v50 = vld [vmem:[#allocation22 + $0x490] sm:$0xff] }
 0xf7c   :  { %13973 = vmatpush1.bf16.msra.mxu1 %v17449_v9  ;;  %v6037_v15 = vpop.f32.mrb[238].mxu1 }
 0xf7d   :  { %13975 = vmatprep.subr.bf16.mxu1 %v17474_v21  ;;  %v6039_v47 = vpop.f32.mrb[239].mxu1  ;;  %v13982_v21 = vpack.c.bf16 %v6555_v49, %v6553_v27  ;;  %v6572_v27 = vld [vmem:[#allocation22 + $0x4a0] sm:$0xff]  ;;  %v6574_v49 = vld [vmem:[#allocation22 + $0x4b0] sm:$0xff] }
 0xf7e   :  { %6378 = vmatprep.mubr.f32.mxu1 %v6039_v47  ;;  %v6420_v47 = vld [vmem:[#allocation24 + $0x90] sm:$0xff] }
 0xf7f   :  { %6379 = vmatmul.mubr.f32.gmra.mrb[252].mxu1 %v6037_v15  ;;  %v6575_v15 = vld [vmem:[#allocation22 + $0x4b8] sm:$0xff] }
 0xf80   :  { %13977 = vmatpush1.bf16.msra.mxu1 %v17479_v13  ;;  %v6043_v58 = vpop.f32.mrb[240].mxu1 }
 0xf81   :  { %13979 = vmatprep.subr.bf16.mxu1 %v17503_v62  ;;  %v6045_v25 = vpop.f32.mrb[241].mxu1 }
 0xf82   :  { %6384 = vmatprep.mubr.f32.mxu1 %v6045_v25  ;;  %v14002_v25 = vpack.c.bf16 %v6575_v15, %v6573_v37  ;;  %v6603_v37 = vld [vmem:[#allocation22 + $0x598] sm:$0xff] }
 0xf83   :  { %6385 = vmatmul.mubr.f32.gmra.mrb[254].mxu1 %v6043_v58  ;;  %v14000_v58 = vpack.c.bf16 %v6570_v50, %v6568_v19  ;;  %v6598_v19 = vld [vmem:[#allocation22 + $0x570] sm:$0xff]  ;;  %v6601_v50 = vld [vmem:[#allocation22 + $0x588] sm:$0xff] }
 0xf84   :  { %13981 = vmatpush1.bf16.msra.mxu1 %v17508_v22  ;;  %v6049_v42 = vpop.f32.mrb[242].mxu1 }
 0xf85   :  { %6456 = vmatprep.subr.mxu1 %v17510_v52  ;;  %v6051_v9 = vpop.f32.mrb[243].mxu1 }
 0xf86   :  { %6390 = vmatprep.mubr.f32.mxu1 %v6051_v9  ;;  %v6579_v9 = vld [vmem:[#allocation22 + $0x4d8] sm:$0xff] }
 0xf87   :  { %6391 = vmatmul.mubr.f32.gmra.mrb[20].mxu1 %v6049_v42  ;;  %v6577_v42 = vld [vmem:[#allocation22 + $0x4c8] sm:$0xff] }
 0xf88   :  { %6457 = vmatpush1.msra.mxu1 %v17515_v16  ;;  %v6055_v13 = vpop.f32.mrb[244].mxu1 }
 0xf89   :  { %v6057_v44 = vpop.f32.mrb[245].mxu1  ;;  %13983 = vmatprep.subr.bf16.mxu1 %v13982_v21  ;;  %v6421_v21 = vld [vmem:[#allocation24 + $0x98] sm:$0xff] }
 0xf8a   :  { %6396 = vmatprep.mubr.f32.mxu1 %v6057_v44  ;;  %v14006_v44 = vpack.c.bf16 %v6579_v9, %v6577_v42 }
 0xf8b   :  { %6397 = vmatmul.mubr.f32.gmra.mrb[22].mxu1 %v6055_v13  ;;  %v14004_v13 = vpack.c.bf16 %v6574_v49, %v6572_v27  ;;  %v6605_v27 = vld [vmem:[#allocation22 + $0x5a8] sm:$0xff]  ;;  %v6607_v49 = vld [vmem:[#allocation22 + $0x5b8] sm:$0xff] }
 0xf8c   :  { %v6061_v62 = vpop.f32.mrb[246].mxu1  ;;  %v14034_v9 = vpack.c.bf16 %v6607_v49, %v6605_v27 }
 0xf8d   :  { %v6063_v38 = vpop.f32.mrb[247].mxu1 }
 0xf8e   :  { %6402 = vmatprep.mubr.f32.mxu1 %v6063_v38  ;;  %v6578_v38 = vld [vmem:[#allocation22 + $0x4d0] sm:$0xff] }
 0xf8f   :  { %6403 = vmatmul.mubr.f32.gmra.mrb[24].mxu1 %v6061_v62  ;;  %v6576_v62 = vld [vmem:[#allocation22 + $0x4c0] sm:$0xff] }
 0xf90   :  { %v6067_v5 = vpop.f32.mrb[248].mxu1  ;;  %v14008_v10 = vpack.c.bf16 %v6578_v38, %v6576_v62  ;;  %v6611_v62 = vld [vmem:[#allocation22 + $0x5d8] sm:$0xff] }
 0xf91   :  { %v6069_v22 = vpop.f32.mrb[249].mxu1 }
 0xf92   :  { %6408 = vmatprep.mubr.f32.mxu1 %v6069_v22  ;;  %v6583_v22 = vld [vmem:[#allocation22 + $0x4f8] sm:$0xff] }
 0xf93   :  { %6409 = vmatmul.mubr.f32.gmra.mrb[26].mxu1 %v6067_v5  ;;  %v6581_v5 = vld [vmem:[#allocation22 + $0x4e8] sm:$0xff] }
 0xf94   :  { %6508 = vmatprep.mubr.f32.mxu1 %v15801_v28  ;;  %v14010_v51 = vpack.c.bf16 %v6583_v22, %v6581_v5  ;;  %v6608_v22 = vld [vmem:[#allocation22 + $0x5c0] sm:$0xff] }
 0xf97   :  { %10687 = vmatmul.mubr.msk.f32.vlgmr.msra.gmra.mrb[28].mxu1 %vm5062_vm1, %v6416_v60  ;;  %v6582_v60 = vld [vmem:[#allocation22 + $0x4f0] sm:$0xff] }
 0xf98   :  { %6514 = vmatprep.mubr.f32.mxu1 %v15801_v28  ;;  %13985 = vmatpush1.bf16.msra.mxu1 %v13984_v36  ;;  %v6585_v36 = vld [vmem:[#allocation22 + $0x508] sm:$0xff]  ;;  %v14012_v57 = vpack.c.bf16 %v6582_v60, %v6580_v32 }
 0xf99   :  { %13987 = vmatprep.subr.bf16.mxu1 %v13986_v54  ;;  %v6587_v54 = vld [vmem:[#allocation22 + $0x518] sm:$0xff] }
 0xf9a   :  { %v14014_v12 = vpack.c.bf16 %v6587_v54, %v6585_v36  ;;  %v6612_v36 = vld [vmem:[#allocation22 + $0x5e0] sm:$0xff]  ;;  %v6614_v54 = vld [vmem:[#allocation22 + $0x5f0] sm:$0xff] }
 0xf9b   :  { %10688 = vmatmul.mubr.msk.f32.gmra.mrb[30].mxu1 %vm5062_vm1, %v6417_v40  ;;  %v6589_v40 = vld [vmem:[#allocation22 + $0x528] sm:$0xff] }
 0xf9c   :  { %6520 = vmatprep.mubr.f32.mxu1 %v15801_v28  ;;  %13989 = vmatpush1.bf16.msra.mxu1 %v13988_v35  ;;  %v6591_v35 = vld [vmem:[#allocation22 + $0x538] sm:$0xff] }
 0xf9d   :  { %13991 = vmatprep.subr.bf16.mxu1 %v13990_v29  ;;  %v14016_v29 = vpack.c.bf16 %v6586_v31, %v6584_v1  ;;  %v14018_v14 = vpack.c.bf16 %v6591_v35, %v6589_v40 }
 0xf9f   :  { %10689 = vmatmul.mubr.msk.f32.gmra.mrb[32].mxu1 %vm5062_vm1, %v6418_v34  ;;  %v6595_v34 = vld [vmem:[#allocation22 + $0x558] sm:$0xff] }
 0xfa0   :  { %6526 = vmatprep.mubr.f32.mxu1 %v15801_v28  ;;  %13993 = vmatpush1.bf16.msra.mxu1 %v13992_v23  ;;  %v14020_v23 = vpack.c.bf16 %v6590_v20, %v6588_v6 }
 0xfa1   :  { %13995 = vmatprep.subr.bf16.mxu1 %v13994_v33  ;;  %v14022_v33 = vpack.c.bf16 %v6595_v34, %v6593_v63 }
 0xfa3   :  { %10690 = vmatmul.mubr.msk.f32.gmra.mrb[34].mxu1 %vm5062_vm1, %v6419_v2  ;;  %v14024_v2 = vpack.c.bf16 %v6594_v59, %v6592_v41  ;;  %v6737_v59 = vld [vmem:[#allocation25] ss:$2 sm:$0x3] }
 0xfa4   :  { %6532 = vmatprep.mubr.f32.mxu1 %v15801_v28  ;;  %13997 = vmatpush1.bf16.msra.mxu1 %v13996_v11  ;;  %v14026_v11 = vpack.c.bf16 %v6599_v8, %v6597_v46  ;;  %v6764_v46 = vld [vmem:[#allocation25 + $0x1] ss:$2 sm:$0x3]  ;;  %v17569_v8 = vrot.slane %v6737_v59, %v17234_v48 }
 0xfa5   :  { %13999 = vmatprep.subr.bf16.mxu1 %v13998_v17  ;;  %v6596_v17 = vld [vmem:[#allocation22 + $0x560] sm:$0xff] }
 0xfa6   :  { %v14028_v15 = vpack.c.bf16 %v6598_v19, %v6596_v17  ;;  %v17578_v19 = vrot.slane %v6764_v46, %v17236_v4 }
 0xfa7   :  { %10691 = vmatmul.mubr.msk.f32.gmra.mrb[36].mxu1 %vm5062_vm1, %v6420_v47  ;;  %v14030_v47 = vpack.c.bf16 %v6603_v37, %v6601_v50 }
 0xfa8   :  { %6538 = vmatprep.mubr.f32.mxu1 %v15801_v28  ;;  %14001 = vmatpush1.bf16.msra.mxu1 %v14000_v58  ;;  %v6600_v58 = vld [vmem:[#allocation22 + $0x580] sm:$0xff] }
 0xfa9   :  { %14003 = vmatprep.subr.bf16.mxu1 %v14002_v25  ;;  %v6602_v25 = vld [vmem:[#allocation22 + $0x590] sm:$0xff] }
 0xfaa   :  { %v14032_v42 = vpack.c.bf16 %v6602_v25, %v6600_v58 }
 0xfab   :  { %10692 = vmatmul.mubr.msk.f32.gmra.mrb[38].mxu1 %vm5062_vm1, %v6421_v21  ;;  %v6604_v21 = vld [vmem:[#allocation22 + $0x5a0] sm:$0xff] }
 0xfac   :  { %6544 = vmatprep.mubr.f32.mxu1 %v15801_v28  ;;  %14005 = vmatpush1.bf16.msra.mxu1 %v14004_v13  ;;  %v6606_v13 = vld [vmem:[#allocation22 + $0x5b0] sm:$0xff] }
 0xfad   :  { %14007 = vmatprep.subr.bf16.mxu1 %v14006_v44  ;;  %v6609_v44 = vld [vmem:[#allocation22 + $0x5c8] sm:$0xff]  ;;  %v14036_v38 = vpack.c.bf16 %v6606_v13, %v6604_v21 }
 0xfae   :  { %v14038_v5 = vpack.c.bf16 %v6611_v62, %v6609_v44 }
 0xfaf   :  { %10693 = vmatmul.mubr.msk.f32.gmra.mrb[40].mxu1 %vm5062_vm1, %v6422_v43  ;;  %v6610_v43 = vld [vmem:[#allocation22 + $0x5d0] sm:$0xff] }
 0xfb0   :  { %14009 = vmatpush1.bf16.msra.mxu1 %v14008_v10  ;;  %v6613_v10 = vld [vmem:[#allocation22 + $0x5e8] sm:$0xff]  ;;  %v14040_v32 = vpack.c.bf16 %v6610_v43, %v6608_v22 }
 0xfb1   :  { %14011 = vmatprep.subr.bf16.mxu1 %v14010_v51  ;;  %v6615_v51 = vld [vmem:[#allocation22 + $0x5f8] sm:$0xff] }
 0xfb2   :  { %v14042_v60 = vpack.c.bf16 %v6615_v51, %v6613_v10 }
 0xfb4   :  { %14013 = vmatpush1.bf16.msra.mxu1 %v14012_v57  ;;  %v14044_v57 = vpack.c.bf16 %v6614_v54, %v6612_v36 }
 0xfb5   :  { %14015 = vmatprep.subr.bf16.mxu1 %v14014_v12 }
 0xfb8   :  { %14017 = vmatpush1.bf16.msra.mxu1 %v14016_v29 }
 0xfb9   :  { %14019 = vmatprep.subr.bf16.mxu1 %v14018_v14 }
 0xfbc   :  { %14021 = vmatpush1.bf16.msra.mxu1 %v14020_v23 }
 0xfbd   :  { %14023 = vmatprep.subr.bf16.mxu1 %v14022_v33 }
 0xfc0   :  { %14025 = vmatpush1.bf16.msra.mxu1 %v14024_v2  ;;  %v17572_v2 = vrot.slane %v6737_v59, %v17236_v4 }
 0xfc1   :  { %14027 = vmatprep.subr.bf16.mxu1 %v14026_v11  ;;  %v17575_v11 = vrot.slane %v6764_v46, %v17234_v48 }
 0xfc4   :  { %14029 = vmatpush1.bf16.msra.mxu1 %v14028_v15 }
 0xfc5   :  { %14031 = vmatprep.subr.bf16.mxu1 %v14030_v47 }
 0xfc8   :  { %14033 = vmatpush1.bf16.msra.mxu1 %v14032_v42 }
 0xfc9   :  { %14035 = vmatprep.subr.bf16.mxu1 %v14034_v9 }
 0xfcc   :  { %14037 = vmatpush1.bf16.msra.mxu1 %v14036_v38 }
 0xfcd   :  { %14039 = vmatprep.subr.bf16.mxu1 %v14038_v5 }
 0xfd0   :  { %14041 = vmatpush1.bf16.msra.mxu1 %v14040_v32 }
 0xfd1   :  { %14043 = vmatprep.subr.bf16.mxu1 %v14042_v60 }
 0xfd4   :  { %14045 = vmatpush1.bf16.msra.mxu1 %v14044_v57 }
0x106a   :  { %v6510_v12 = vpop.f32.mrb[28].mxu1 }
0x106b   :  { %v6512_v1 = vpop.f32.mrb[29].mxu1 }
0x106c   :  { %6680 = vmatprep.mubr.f32.mxu1 %v6512_v1 }
0x106d   :  { %6681 = vmatmul.mubr.f32.vlgmr.msra.gmra.mrb[250].mxu1 %v6510_v12 }
0x106e   :  { %v6516_v31 = vpop.f32.mrb[30].mxu1 }
0x106f   :  { %v6518_v40 = vpop.f32.mrb[31].mxu1 }
0x1070   :  { %6686 = vmatprep.mubr.f32.mxu1 %v6518_v40 }
0x1071   :  { %6687 = vmatmul.mubr.f32.gmra.mrb[252].mxu1 %v6516_v31 }
0x1072   :  { %v6522_v35 = vpop.f32.mrb[32].mxu1 }
0x1073   :  { %v6524_v29 = vpop.f32.mrb[33].mxu1 }
0x1074   :  { %6692 = vmatprep.mubr.f32.mxu1 %v6524_v29 }
0x1075   :  { %6693 = vmatmul.mubr.f32.gmra.mrb[254].mxu1 %v6522_v35 }
0x1076   :  { %v6528_v14 = vpop.f32.mrb[34].mxu1 }
0x1077   :  { %v6530_v6 = vpop.f32.mrb[35].mxu1 }
0x1078   :  { %6698 = vmatprep.mubr.f32.mxu1 %v6530_v6 }
0x1079   :  { %6699 = vmatmul.mubr.f32.gmra.mrb[20].mxu1 %v6528_v14 }
0x107a   :  { %v6534_v20 = vpop.f32.mrb[36].mxu1 }
0x107b   :  { %v6536_v63 = vpop.f32.mrb[37].mxu1 }
0x107c   :  { %6704 = vmatprep.mubr.f32.mxu1 %v6536_v63 }
0x107d   :  { %6705 = vmatmul.mubr.f32.gmra.mrb[22].mxu1 %v6534_v20 }
0x107e   :  { %v6540_v34 = vpop.f32.mrb[38].mxu1 }
0x107f   :  { %v6542_v23 = vpop.f32.mrb[39].mxu1 }
0x1080   :  { %6710 = vmatprep.mubr.f32.mxu1 %v6542_v23 }
0x1081   :  { %6711 = vmatmul.mubr.f32.gmra.mrb[24].mxu1 %v6540_v34 }
0x1082   :  { %v6546_v33 = vpop.f32.mrb[40].mxu1 }
0x1083   :  { %v6548_v41 = vpop.f32.mrb[41].mxu1 }
0x1084   :  { %6716 = vmatprep.mubr.f32.mxu1 %v6548_v41 }
0x1085   :  { %6717 = vmatmul.mubr.f32.gmra.mrb[26].mxu1 %v6546_v33 }
0x1086   :  { %7311 = vmatprep.mubr.f32.mxu1 %v15801_v28 }
0x1140   :  { %v6682_v17 = vpop.f32.mrb[250].mxu1 }
0x1141   :  { %v6749_v50 = vmul.f32 %v17569_v8, %v6682_v17  ;;  %v6684_v37 = vpop.f32.mrb[251].mxu1 }
0x1142   :  { %v6750_v15 = vmul.f32 %v17572_v2, %v6684_v37 }
0x1143   :  { %v6776_v47 = vadd.f32 %v17575_v11, %v6749_v50 }
0x1144   :  { %v6777_v58 = vadd.f32 %v17578_v19, %v6750_v15  ;;  %v6688_v25 = vpop.f32.mrb[252].mxu1 }
0x1145   :  { %v6751_v27 = vmul.f32 %v17569_v8, %v6688_v25  ;;  %v6690_v49 = vpop.f32.mrb[253].mxu1  ;;  %v6790_v42 = vadd.f32 %v6776_v47, %v17437_v30 }
0x1146   :  { %v6752_v48 = vmul.f32 %v17572_v2, %v6690_v49  ;;  %v6791_v9 = vadd.f32 %v6777_v58, %v17432_v56 }
0x1147   :  { %v6778_v4 = vadd.f32 %v17575_v11, %v6751_v27  ;;  %v6804_v43 = vmax.f32 %v6790_v42, 0.0 }
0x1148   :  { %v6779_v21 = vadd.f32 %v17578_v19, %v6752_v48  ;;  %v6694_v13 = vpop.f32.mrb[254].mxu1  ;;  %v6805_v51 = vmax.f32 %v6791_v9, 0.0 }
0x1149   :  { %v6792_v44 = vadd.f32 %v6778_v4, %v17430_v18  ;;  %v6753_v62 = vmul.f32 %v17569_v8, %v6694_v13  ;;  %v6696_v38 = vpop.f32.mrb[255].mxu1 }
0x114a   :  { %v6793_v5 = vadd.f32 %v6779_v21, %v17434_v53  ;;  %v6754_v22 = vmul.f32 %v17572_v2, %v6696_v38 }
0x114b   :  { %v6806_v10 = vmax.f32 %v6792_v44, 0.0  ;;  %v6780_v30 = vadd.f32 %v17575_v11, %v6753_v62 }
0x114c   :  { %v6807_v32 = vmax.f32 %v6793_v5, 0.0  ;;  %v6781_v56 = vadd.f32 %v17578_v19, %v6754_v22  ;;  %v6700_v60 = vpop.f32.mrb[20].mxu1  ;;  %v7237_v22 = vld [vmem:[#allocation28 + $0x40] sm:$0xff] }
0x114d   :  { %v17596_v36 = vpack.c.bf16 %v6806_v10, %v6804_v43  ;;  %v6755_v18 = vmul.f32 %v17569_v8, %v6700_v60  ;;  %v6702_v54 = vpop.f32.mrb[21].mxu1  ;;  %v6794_v53 = vadd.f32 %v6780_v30, %v17467_v45  ;;  %v7058_v43 = vld [vmem:[#allocation27 + $0x180] sm:$0xff]  ;;  %v7059_v10 = vld [vmem:[#allocation27 + $0x188] sm:$0xff] }
0x114e   :  { %v6756_v57 = vmul.f32 %v17572_v2, %v6702_v54  ;;  %v14046_v12 = vpack.c.bf16 %v6807_v32, %v6805_v51  ;;  %v6795_v31 = vadd.f32 %v6781_v56, %v17462_v39  ;;  %v7042_v30 = vld [vmem:[#allocation27 + $0x100] sm:$0xff]  ;;  %v7043_v51 = vld [vmem:[#allocation27 + $0x108] sm:$0xff]  ;;  %v7060_v32 = vld [vmem:[#allocation27 + $0x190] sm:$0xff]  ;;  %v14070_v60 = vpack.c.bf16 %v7059_v10, %v7058_v43 }
0x114f   :  { %v6782_v1 = vadd.f32 %v17575_v11, %v6755_v18  ;;  %v6808_v63 = vmax.f32 %v6794_v53, 0.0  ;;  %v7061_v56 = vld [vmem:[#allocation27 + $0x198] sm:$0xff]  ;;  %v14072_v18 = vpack.c.bf16 %v7043_v51, %v7042_v30  ;;  %v7062_v53 = vld [vmem:[#allocation27 + $0x1a0] sm:$0xff] }
0x1150   :  { %v6783_v40 = vadd.f32 %v17578_v19, %v6756_v57  ;;  %v6706_v35 = vpop.f32.mrb[22].mxu1  ;;  %14047 = vmatprep.subr.bf16.mxu0 %v14046_v12  ;;  %14135 = vmatprep.subr.bf16.mxu1 %v14046_v12  ;;  %v6809_v23 = vmax.f32 %v6795_v31, 0.0  ;;  %v14074_v54 = vpack.c.bf16 %v7061_v56, %v7060_v32  ;;  %v7044_v57 = vld [vmem:[#allocation27 + $0x110] sm:$0xff]  ;;  %v6947_v31 = vld [vmem:[#allocation28 + $0x20] sm:$0xff]  ;;  %v6914_v32 = vld [vmem:[#allocation27 + $0x8] sm:$0xff] }
0x1151   :  { %v6796_v29 = vadd.f32 %v6782_v1, %v17460_v3  ;;  %v6757_v14 = vmul.f32 %v17569_v8, %v6706_v35  ;;  %v6708_v6 = vpop.f32.mrb[23].mxu1  ;;  %14049 = vmatpush1.bf16.msra.mxu0 %v17596_v36  ;;  %14137 = vmatpush1.bf16.msra.mxu1 %v17596_v36  ;;  %v7063_v1 = vld [vmem:[#allocation27 + $0x1a8] sm:$0xff]  ;;  %v6913_v51 = vld [vmem:[#allocation27] sm:$0xff] }
0x1152   :  { %v6797_v45 = vadd.f32 %v6783_v40, %v17464_v7  ;;  %v6758_v20 = vmul.f32 %v17572_v2, %v6708_v6  ;;  %v14078_v35 = vpack.c.bf16 %v7063_v1, %v7062_v53  ;;  %v7064_v6 = vld [vmem:[#allocation27 + $0x1b0] sm:$0xff]  ;;  %v6916_v1 = vld [vmem:[#allocation27 + $0x18] sm:$0xff] }
0x1153   :  { %v6810_v39 = vmax.f32 %v6796_v29, 0.0  ;;  %v6784_v34 = vadd.f32 %v17575_v11, %v6757_v14  ;;  %v7046_v29 = vld [vmem:[#allocation27 + $0x120] sm:$0xff]  ;;  %v7047_v14 = vld [vmem:[#allocation27 + $0x128] sm:$0xff]  ;;  %v6915_v53 = vld [vmem:[#allocation27 + $0x10] sm:$0xff] }
0x1154   :  { %v6811_v33 = vmax.f32 %v6797_v45, 0.0  ;;  %v6785_v41 = vadd.f32 %v17578_v19, %v6758_v20  ;;  %v6712_v3 = vpop.f32.mrb[24].mxu1  ;;  %v7065_v45 = vld [vmem:[#allocation27 + $0x1b8] sm:$0xff]  ;;  %v6948_v20 = vld [vmem:[#allocation28 + $0x28] sm:$0xff] }
0x1155   :  { %v14052_v59 = vpack.c.bf16 %v6810_v39, %v6808_v63  ;;  %v6759_v46 = vmul.f32 %v17569_v8, %v6712_v3  ;;  %v6714_v17 = vpop.f32.mrb[25].mxu1  ;;  %v6798_v7 = vadd.f32 %v6784_v34, %v17498_v24  ;;  %v14080_v63 = vpack.c.bf16 %v7047_v14, %v7046_v29  ;;  %v7048_v34 = vld [vmem:[#allocation27 + $0x130] sm:$0xff] }
0x1156   :  { %v6760_v50 = vmul.f32 %v17572_v2, %v6714_v17  ;;  %v14050_v37 = vpack.c.bf16 %v6811_v33, %v6809_v23  ;;  %v6799_v47 = vadd.f32 %v6785_v41, %v17493_v26  ;;  %v14082_v39 = vpack.c.bf16 %v7065_v45, %v7064_v6  ;;  %v7049_v23 = vld [vmem:[#allocation27 + $0x138] sm:$0xff]  ;;  %v7066_v33 = vld [vmem:[#allocation27 + $0x1c0] sm:$0xff]  ;;  %v7067_v41 = vld [vmem:[#allocation27 + $0x1c8] sm:$0xff] }
0x1157   :  { %v6786_v15 = vadd.f32 %v17575_v11, %v6759_v46  ;;  %v6812_v4 = vmax.f32 %v6798_v7, 0.0  ;;  %v14084_v3 = vpack.c.bf16 %v7049_v23, %v7048_v34  ;;  %v7050_v46 = vld [vmem:[#allocation27 + $0x140] sm:$0xff]  ;;  %v7051_v17 = vld [vmem:[#allocation27 + $0x148] sm:$0xff] }
0x1158   :  { %v6787_v58 = vadd.f32 %v17578_v19, %v6760_v50  ;;  %v6718_v25 = vpop.f32.mrb[26].mxu1  ;;  %14051 = vmatprep.subr.bf16.mxu0 %v14050_v37  ;;  %14139 = vmatprep.subr.bf16.mxu1 %v14050_v37  ;;  %v6813_v21 = vmax.f32 %v6799_v47, 0.0  ;;  %v7068_v50 = vld [vmem:[#allocation27 + $0x1d0] sm:$0xff]  ;;  %v14088_v7 = vpack.c.bf16 %v7051_v17, %v7050_v46  ;;  %v6917_v6 = vld [vmem:[#allocation27 + $0x20] sm:$0xff]  ;;  %v6918_v45 = vld [vmem:[#allocation27 + $0x28] sm:$0xff] }
0x1159   :  { %v6800_v27 = vadd.f32 %v6786_v15, %v17490_v55  ;;  %v6761_v49 = vmul.f32 %v17569_v8, %v6718_v25  ;;  %v6720_v48 = vpop.f32.mrb[27].mxu1  ;;  %14053 = vmatpush1.bf16.msra.mxu0 %v14052_v59  ;;  %14141 = vmatpush1.bf16.msra.mxu1 %v14052_v59  ;;  %v7052_v47 = vld [vmem:[#allocation27 + $0x150] sm:$0xff]  ;;  %v14112_v34 = vpack.c.bf16 %v6918_v45, %v6917_v6  ;;  %v6937_v46 = vld [vmem:[#allocation27 + $0xc0] sm:$0xff]  ;;  %v6938_v17 = vld [vmem:[#allocation27 + $0xc8] sm:$0xff] }
0x115a   :  { %v6801_v42 = vadd.f32 %v6787_v58, %v17495_v61  ;;  %v6762_v24 = vmul.f32 %v17572_v2, %v6720_v48  ;;  %v6818_v2 = vld [vmem:[#allocation28] sm:$0xff]  ;;  %v7053_v58 = vld [vmem:[#allocation27 + $0x158] sm:$0xff]  ;;  %v7336_v45 = vld [vmem:[#allocation27 + $0x228] sm:$0xff] }
0x115b   :  { %v6814_v9 = vmax.f32 %v6800_v27, 0.0  ;;  %v6788_v26 = vadd.f32 %v17575_v11, %v6761_v49  ;;  %v7235_v11 = vld [vmem:[#allocation28 + $0x30] sm:$0xff]  ;;  %v14092_v25 = vpack.c.bf16 %v7053_v58, %v7052_v47  ;;  %v7070_v27 = vld [vmem:[#allocation27 + $0x1e0] sm:$0xff]  ;;  %v7071_v49 = vld [vmem:[#allocation27 + $0x1e8] sm:$0xff] }
0x115c   :  { %v6815_v13 = vmax.f32 %v6801_v42, 0.0  ;;  %v6789_v44 = vadd.f32 %v17578_v19, %v6762_v24  ;;  %v6820_v19 = vld [vmem:[#allocation28 + $0x10] sm:$0xff]  ;;  %v14094_v48 = vpack.c.bf16 %v7071_v49, %v7070_v27  ;;  %v7054_v42 = vld [vmem:[#allocation27 + $0x160] sm:$0xff]  ;;  %v7055_v24 = vld [vmem:[#allocation27 + $0x168] sm:$0xff] }
0x115d   :  { %v14056_v62 = vpack.c.bf16 %v6814_v9, %v6812_v4  ;;  %v6802_v8 = vadd.f32 %v6788_v26, %v17515_v16  ;;  %v7236_v16 = vld [vmem:[#allocation28 + $0x38] sm:$0xff]  ;;  %v14096_v4 = vpack.c.bf16 %v7055_v24, %v7054_v42  ;;  %v7072_v9 = vld [vmem:[#allocation27 + $0x1f0] sm:$0xff]  ;;  %v6941_v42 = vld [vmem:[#allocation27 + $0xe0] sm:$0xff] }
0x115e   :  { %v14054_v38 = vpack.c.bf16 %v6815_v13, %v6813_v21  ;;  %v6803_v55 = vadd.f32 %v6789_v44, %v17510_v52  ;;  %v6819_v52 = vld [vmem:[#allocation28 + $0x8] sm:$0xff]  ;;  %v7073_v26 = vld [vmem:[#allocation27 + $0x1f8] sm:$0xff]  ;;  %v7056_v13 = vld [vmem:[#allocation27 + $0x170] sm:$0xff] }
0x115f   :  { %v6816_v61 = vmax.f32 %v6802_v8, 0.0  ;;  %v14098_v21 = vpack.c.bf16 %v7073_v26, %v7072_v9  ;;  %v7057_v44 = vld [vmem:[#allocation27 + $0x178] sm:$0xff]  ;;  %v6939_v47 = vld [vmem:[#allocation27 + $0xd0] sm:$0xff]  ;;  %v6942_v24 = vld [vmem:[#allocation27 + $0xe8] sm:$0xff] }
0x1160   :  { %14055 = vmatprep.subr.bf16.mxu0 %v14054_v38  ;;  %14143 = vmatprep.subr.bf16.mxu1 %v14054_v38  ;;  %v6817_v5 = vmax.f32 %v6803_v55, 0.0  ;;  %v6930_v55 = vld [vmem:[#allocation27 + $0x88] sm:$0xff]  ;;  %v6940_v58 = vld [vmem:[#allocation27 + $0xd8] sm:$0xff]  ;;  %v6923_v49 = vld [vmem:[#allocation27 + $0x50] sm:$0xff]  ;;  %v14126_v9 = vpack.c.bf16 %v6942_v24, %v6941_v42 }
0x1161   :  { %14057 = vmatpush1.bf16.msra.mxu0 %v14056_v62  ;;  %14145 = vmatpush1.bf16.msra.mxu1 %v14056_v62  ;;  %v14122_v27 = vpack.c.bf16 %v6940_v58, %v6939_v47  ;;  %v6925_v26 = vld [vmem:[#allocation27 + $0x60] sm:$0xff]  ;;  %v7360_v47 = vld [vmem:[#allocation27 + $0x2e8] sm:$0xff]  ;;  %v7345_v24 = vld [vmem:[#allocation27 + $0x270] sm:$0xff] }
0x1162   :  { %6842 = vmatprep.subr.mxu0 %v6817_v5  ;;  %7259 = vmatprep.subr.mxu1 %v6817_v5  ;;  %v7335_v6 = vld [vmem:[#allocation27 + $0x220] sm:$0xff] }
0x1165   :  { %6843 = vmatpush1.msra.mxu0 %v6816_v61  ;;  %7260 = vmatpush1.msra.mxu1 %v6816_v61 }
0x1166   :  { %14059 = vmatprep.subr.bf16.mxu0 %v14046_v12  ;;  %10694 = vmatmul.mubr.msk.f32.vlgmr.msra.gmra.mrb[162].mxu0 %vm5062_vm1, %v6818_v2  ;;  %v7045_v12 = vld [vmem:[#allocation27 + $0x118] sm:$0xff] }
0x1167   :  { %14061 = vmatpush1.bf16.msra.mxu0 %v17596_v36  ;;  %6900 = vmatprep.mubr.f32.mxu0 %v15801_v28  ;;  %v6946_v36 = vld [vmem:[#allocation28 + $0x18] sm:$0xff]  ;;  %v14076_v40 = vpack.c.bf16 %v7045_v12, %v7044_v57 }
0x1168   :  { %14063 = vmatprep.subr.bf16.mxu0 %v14050_v37  ;;  %10700 = vmatmul.mubr.msk.f32.vlgmr.msra.gmra.mrb[42].mxu1 %vm5062_vm1, %v7235_v11  ;;  %v7069_v37 = vld [vmem:[#allocation27 + $0x1d8] sm:$0xff] }
0x1169   :  { %7317 = vmatprep.mubr.f32.mxu1 %v15801_v28  ;;  %14178 = vmatprep.subr.bf16.mxu1 %v15800_v0  ;;  %v14090_v15 = vpack.c.bf16 %v7069_v37, %v7068_v50  ;;  %v14118_v37 = vpack.c.bf16 %v6938_v17, %v6937_v46  ;;  %v7357_v46 = vld [vmem:[#allocation27 + $0x2d0] sm:$0xff] }
0x116a   :  { %10695 = vmatmul.mubr.msk.f32.gmra.mrb[164].mxu0 %vm5062_vm1, %v6819_v52 }
0x116b   :  { %14065 = vmatpush1.bf16.msra.mxu0 %v14052_v59  ;;  %6906 = vmatprep.mubr.f32.mxu0 %v15801_v28  ;;  %v14086_v59 = vpack.c.bf16 %v7067_v41, %v7066_v33  ;;  %v6919_v41 = vld [vmem:[#allocation27 + $0x30] sm:$0xff] }
0x116c   :  { %14067 = vmatprep.subr.bf16.mxu0 %v14054_v38  ;;  %10701 = vmatmul.mubr.msk.f32.gmra.mrb[44].mxu1 %vm5062_vm1, %v7236_v16  ;;  %v6929_v38 = vld [vmem:[#allocation27 + $0x80] sm:$0xff] }
0x116d   :  { %7323 = vmatprep.mubr.f32.mxu1 %v15801_v28  ;;  %v14102_v8 = vpack.c.bf16 %v6930_v55, %v6929_v38  ;;  %v6927_v55 = vld [vmem:[#allocation27 + $0x70] sm:$0xff] }
0x116e   :  { %10696 = vmatmul.mubr.msk.f32.gmra.mrb[166].mxu0 %vm5062_vm1, %v6820_v19 }
0x116f   :  { %14069 = vmatpush1.bf16.msra.mxu0 %v14056_v62  ;;  %7022 = vmatprep.mubr.f32.mxu0 %v15801_v28  ;;  %v14100_v62 = vpack.c.bf16 %v7057_v44, %v7056_v13  ;;  %v6943_v13 = vld [vmem:[#allocation27 + $0xf0] sm:$0xff]  ;;  %v6944_v44 = vld [vmem:[#allocation27 + $0xf8] sm:$0xff] }
0x1170   :  { %6970 = vmatprep.subr.mxu0 %v6817_v5  ;;  %10702 = vmatmul.mubr.msk.f32.gmra.mrb[46].mxu1 %vm5062_vm1, %v7237_v22  ;;  %v14130_v38 = vpack.c.bf16 %v6944_v44, %v6943_v13 }
0x1171   :  { %12143 = vmatprep.mubr.msk.f32.mxu1 %vm15802_vm2, %v15801_v28 }
0x1173   :  { %6971 = vmatpush1.msra.mxu0 %v6816_v61 }
0x1174   :  { %10697 = vmatmul.mubr.msk.f32.vlgmr.msra.gmra.mrb[168].mxu0 %vm5062_vm1, %v6946_v36  ;;  %14071 = vmatprep.subr.bf16.mxu0 %v14070_v60  ;;  %v6931_v60 = vld [vmem:[#allocation27 + $0x90] sm:$0xff]  ;;  %v6932_v36 = vld [vmem:[#allocation27 + $0x98] sm:$0xff] }
0x1175   :  { %7028 = vmatprep.mubr.f32.mxu0 %v15801_v28  ;;  %14073 = vmatpush3.bf16.msra.mxu0 %v14072_v18  ;;  %v14106_v12 = vpack.c.bf16 %v6932_v36, %v6931_v60  ;;  %v7331_v36 = vld [vmem:[#allocation27 + $0x200] sm:$0xff] }
0x1176   :  { %14075 = vmatprep.subr.bf16.mxu0 %v14074_v54  ;;  %v14104_v54 = vpack.c.bf16 %v6914_v32, %v6913_v51  ;;  %v7348_v51 = vld [vmem:[#allocation27 + $0x288] sm:$0xff] }
0x1178   :  { %10698 = vmatmul.mubr.msk.f32.gmra.mrb[170].mxu0 %vm5062_vm1, %v6947_v31  ;;  %v6933_v31 = vld [vmem:[#allocation27 + $0xa0] sm:$0xff] }
0x1179   :  { %7034 = vmatprep.mubr.f32.mxu0 %v15801_v28  ;;  %14077 = vmatpush3.bf16.msra.mxu0 %v14076_v40  ;;  %v6934_v40 = vld [vmem:[#allocation27 + $0xa8] sm:$0xff] }
0x117a   :  { %14079 = vmatprep.subr.bf16.mxu0 %v14078_v35  ;;  %v14108_v35 = vpack.c.bf16 %v6916_v1, %v6915_v53  ;;  %v14110_v14 = vpack.c.bf16 %v6934_v40, %v6933_v31  ;;  %v7333_v1 = vld [vmem:[#allocation27 + $0x210] sm:$0xff]  ;;  %v7334_v31 = vld [vmem:[#allocation27 + $0x218] sm:$0xff]  ;;  %v7351_v40 = vld [vmem:[#allocation27 + $0x2a0] sm:$0xff] }
0x117c   :  { %10699 = vmatmul.mubr.msk.f32.gmra.mrb[172].mxu0 %vm5062_vm1, %v6948_v20 }
0x117d   :  { %14081 = vmatpush3.bf16.msra.mxu0 %v14080_v63  ;;  %v6935_v63 = vld [vmem:[#allocation27 + $0xb0] sm:$0xff] }
0x117e   :  { %14083 = vmatprep.subr.bf16.mxu0 %v14082_v39  ;;  %v6936_v39 = vld [vmem:[#allocation27 + $0xb8] sm:$0xff] }
0x117f   :  { %v14114_v33 = vpack.c.bf16 %v6936_v39, %v6935_v63  ;;  %v7354_v63 = vld [vmem:[#allocation27 + $0x2b8] sm:$0xff]  ;;  %v14156_v39 = vpack.c.bf16 %v7336_v45, %v7335_v6  ;;  %v10704_v45 = vld [vmem:[#allocation30 + $0x1] ss:$0 sm:$0xff] }
0x1181   :  { %14085 = vmatpush3.bf16.msra.mxu0 %v14084_v3  ;;  %v6920_v3 = vld [vmem:[#allocation27 + $0x38] sm:$0xff] }
0x1182   :  { %14087 = vmatprep.subr.bf16.mxu0 %v14086_v59  ;;  %v14116_v50 = vpack.c.bf16 %v6920_v3, %v6919_v41 }
0x1185   :  { %14089 = vmatpush3.bf16.msra.mxu0 %v14088_v7  ;;  %v6921_v7 = vld [vmem:[#allocation27 + $0x40] sm:$0xff] }
0x1186   :  { %14091 = vmatprep.subr.bf16.mxu0 %v14090_v15  ;;  %v6922_v15 = vld [vmem:[#allocation27 + $0x48] sm:$0xff] }
0x1189   :  { %14093 = vmatpush3.bf16.msra.mxu0 %v14092_v25  ;;  %v14120_v25 = vpack.c.bf16 %v6922_v15, %v6921_v7  ;;  %v7342_v7 = vld [vmem:[#allocation27 + $0x258] sm:$0xff]  ;;  %v7359_v15 = vld [vmem:[#allocation27 + $0x2e0] sm:$0xff] }
0x118a   :  { %14095 = vmatprep.subr.bf16.mxu0 %v14094_v48  ;;  %v6924_v48 = vld [vmem:[#allocation27 + $0x58] sm:$0xff]  ;;  %v14170_v58 = vpack.c.bf16 %v7360_v47, %v7359_v15  ;;  %v7578_v47 = vld [vmem:[#allocation31 + $0x98] sm:$0xff] }
0x118b   :  { %v7577_v15 = vld [vmem:[#allocation31 + $0x90] sm:$0xff] }
0x118d   :  { %14097 = vmatpush3.bf16.msra.mxu0 %v14096_v4  ;;  %v14124_v4 = vpack.c.bf16 %v6924_v48, %v6923_v49  ;;  %v7362_v49 = vld [vmem:[#allocation27 + $0x2f8] sm:$0xff] }
0x118e   :  { %14099 = vmatprep.subr.bf16.mxu0 %v14098_v21  ;;  %v6926_v21 = vld [vmem:[#allocation27 + $0x68] sm:$0xff] }
0x1191   :  { %14101 = vmatpush3.bf16.msra.mxu0 %v14100_v62  ;;  %v14128_v62 = vpack.c.bf16 %v6926_v21, %v6925_v26 }
0x1192   :  { %14103 = vmatprep.subr.bf16.mxu0 %v14102_v8  ;;  %v6928_v8 = vld [vmem:[#allocation27 + $0x78] sm:$0xff] }
0x1193   :  { %v14132_v32 = vpack.c.bf16 %v6928_v8, %v6927_v55 }
0x1239   :  { %v17644_v5 = vpop.f32.mrb[162].mxu0 }
0x123a   :  { %v6898_v61 = vpop.f32.mrb[163].mxu0 }
0x123b   :  { %v17646_v2 = vpop.f32.mrb[42].mxu1 }
0x123c   :  { %v17648_v11 = vpop.f32.mrb[43].mxu1 }
0x123d   :  { %v17650_v52 = vpop.f32.mrb[164].mxu0 }
0x123e   :  { %v17652_v16 = vpop.f32.mrb[165].mxu0 }
0x123f   :  { %v17654_v19 = vpop.f32.mrb[44].mxu1 }
0x1240   :  { %v17656_v22 = vpop.f32.mrb[45].mxu1 }
0x1241   :  { %v17658_v43 = vpop.f32.mrb[166].mxu0 }
0x1242   :  { %v17660_v10 = vpop.f32.mrb[167].mxu0 }
0x1243   :  { %v17662_v30 = vpop.f32.mrb[46].mxu1 }
0x1244   :  { %v17664_v56 = vpop.f32.mrb[47].mxu1 }
0x1247   :  { %v7024_v18 = vpop.f32.mrb[168].mxu0 }
0x1248   :  { %v7026_v57 = vpop.f32.mrb[169].mxu0 }
0x1249   :  { %7138 = vmatprep.mubr.f32.mxu0 %v7026_v57  ;;  %v7350_v57 = vld [vmem:[#allocation27 + $0x298] sm:$0xff] }
0x124a   :  { %7139 = vmatmul.mubr.f32.vlgmr.msra.gmra.mrb[174].mxu0 %v7024_v18  ;;  %v7332_v18 = vld [vmem:[#allocation27 + $0x208] sm:$0xff] }
0x124b   :  { %14105 = vmatpush3.bf16.msra.mxu0 %v14104_v54  ;;  %v7030_v29 = vpop.f32.mrb[170].mxu0  ;;  %v7349_v54 = vld [vmem:[#allocation27 + $0x290] sm:$0xff] }
0x124c   :  { %14107 = vmatprep.subr.bf16.mxu0 %v14106_v12  ;;  %v7032_v20 = vpop.f32.mrb[171].mxu0  ;;  %v14148_v12 = vpack.c.bf16 %v7332_v18, %v7331_v36  ;;  %v14150_v53 = vpack.c.bf16 %v7350_v57, %v7349_v54 }
0x124d   :  { %7143 = vmatprep.mubr.f32.mxu0 %v7032_v20  ;;  %v7353_v20 = vld [vmem:[#allocation27 + $0x2b0] sm:$0xff] }
0x124e   :  { %7144 = vmatmul.mubr.f32.gmra.mrb[176].mxu0 %v7030_v29  ;;  %v14152_v29 = vpack.c.bf16 %v7334_v31, %v7333_v1  ;;  %v10703_v31 = vld [vmem:[#allocation30] ss:$0 sm:$0xff] }
0x124f   :  { %14109 = vmatpush3.bf16.msra.mxu0 %v14108_v35  ;;  %v7036_v23 = vpop.f32.mrb[172].mxu0  ;;  %v7352_v35 = vld [vmem:[#allocation27 + $0x2a8] sm:$0xff] }
0x1250   :  { %14111 = vmatprep.subr.bf16.mxu0 %v14110_v14  ;;  %v7038_v59 = vpop.f32.mrb[173].mxu0  ;;  %v14154_v14 = vpack.c.bf16 %v7352_v35, %v7351_v40 }
0x1251   :  { %7148 = vmatprep.mubr.f32.mxu0 %v7038_v59  ;;  %v7339_v59 = vld [vmem:[#allocation27 + $0x240] sm:$0xff] }
0x1252   :  { %7149 = vmatmul.mubr.f32.gmra.mrb[178].mxu0 %v7036_v23  ;;  %v7337_v23 = vld [vmem:[#allocation27 + $0x230] sm:$0xff] }
0x1253   :  { %14113 = vmatpush3.bf16.msra.mxu0 %v14112_v34  ;;  %7218 = vmatprep.mubr.f32.mxu0 %v6898_v61  ;;  %v7347_v61 = vld [vmem:[#allocation27 + $0x280] sm:$0xff]  ;;  %v14158_v34 = vpack.c.bf16 %v7354_v63, %v7353_v20 }
0x1254   :  { %14115 = vmatprep.subr.bf16.mxu0 %v14114_v33  ;;  %v14146_v60 = vpack.c.bf16 %v7348_v51, %v7347_v61  ;;  %v7355_v33 = vld [vmem:[#allocation27 + $0x2c0] sm:$0xff] }
0x1257   :  { %14117 = vmatpush3.bf16.msra.mxu0 %v14116_v50 }
0x1258   :  { %14119 = vmatprep.subr.bf16.mxu0 %v14118_v37  ;;  %v7341_v37 = vld [vmem:[#allocation27 + $0x250] sm:$0xff] }
0x125b   :  { %14121 = vmatpush3.bf16.msra.mxu0 %v14120_v25  ;;  %v7343_v25 = vld [vmem:[#allocation27 + $0x260] sm:$0xff] }
0x125c   :  { %14123 = vmatprep.subr.bf16.mxu0 %v14122_v27  ;;  %v7361_v27 = vld [vmem:[#allocation27 + $0x2f0] sm:$0xff] }
0x125d   :  { %v14174_v42 = vpack.c.bf16 %v7362_v49, %v7361_v27  ;;  %v7580_v27 = vld [vmem:[#allocation31 + $0xa8] sm:$0xff]  ;;  %v7753_v49 = vld [vmem:[#allocation33 + $0x38] sm:$0xff] }
0x125f   :  { %14125 = vmatpush3.bf16.msra.mxu0 %v14124_v4  ;;  %v7346_v4 = vld [vmem:[#allocation27 + $0x278] sm:$0xff] }
0x1260   :  { %14127 = vmatprep.subr.bf16.mxu0 %v14126_v9  ;;  %v14176_v9 = vpack.c.bf16 %v7346_v4, %v7345_v24  ;;  %v7581_v24 = vld [vmem:[#allocation31 + $0xb0] sm:$0xff]  ;;  %v7582_v4 = vld [vmem:[#allocation31 + $0xb8] sm:$0xff] }
0x1263   :  { %14129 = vmatpush3.bf16.msra.mxu0 %v14128_v62 }
0x1264   :  { %14131 = vmatprep.subr.bf16.mxu0 %v14130_v38 }
0x1267   :  { %14133 = vmatpush3.bf16.msra.mxu0 %v14132_v32 }
0x1268   :  { %14147 = vmatprep.subr.bf16.mxu0 %v14146_v60 }
0x126a   :  { %7219 = vmatmul.mubr.f32.vlgmr.msra.gmra.mrb[180].mxu0 %v17644_v5  ;;  %v7338_v5 = vld [vmem:[#allocation27 + $0x238] sm:$0xff] }
0x126b   :  { %7223 = vmatprep.mubr.f32.mxu0 %v17652_v16  ;;  %14149 = vmatpush3.bf16.msra.mxu0 %v14148_v12  ;;  %v7356_v16 = vld [vmem:[#allocation27 + $0x2c8] sm:$0xff]  ;;  %v14160_v41 = vpack.c.bf16 %v7338_v5, %v7337_v23 }
0x126c   :  { %14151 = vmatprep.subr.bf16.mxu0 %v14150_v53  ;;  %v14162_v3 = vpack.c.bf16 %v7356_v16, %v7355_v33 }
0x126e   :  { %7224 = vmatmul.mubr.f32.gmra.mrb[182].mxu0 %v17650_v52  ;;  %v7340_v52 = vld [vmem:[#allocation27 + $0x248] sm:$0xff] }
0x126f   :  { %7228 = vmatprep.mubr.f32.mxu0 %v17660_v10  ;;  %14153 = vmatpush3.bf16.msra.mxu0 %v14152_v29  ;;  %v7358_v10 = vld [vmem:[#allocation27 + $0x2d8] sm:$0xff]  ;;  %v14164_v17 = vpack.c.bf16 %v7340_v52, %v7339_v59 }
0x1270   :  { %14155 = vmatprep.subr.bf16.mxu0 %v14154_v14  ;;  %v14166_v50 = vpack.c.bf16 %v7358_v10, %v7357_v46  ;;  %v7575_v10 = vld [vmem:[#allocation31 + $0x80] sm:$0xff] }
0x1272   :  { %7229 = vmatmul.mubr.f32.gmra.mrb[184].mxu0 %v17658_v43  ;;  %v14168_v43 = vpack.c.bf16 %v7342_v7, %v7341_v37  ;;  %v7465_v37 = vld [vmem:[#allocation33] sm:$0xff] }
0x1273   :  { %14157 = vmatpush3.bf16.msra.mxu0 %v14156_v39  ;;  %7427 = vmatprep.mubr.f32.mxu0 %v17648_v11  ;;  %v7344_v11 = vld [vmem:[#allocation27 + $0x268] sm:$0xff] }
0x1274   :  { %14159 = vmatprep.subr.bf16.mxu0 %v14158_v34  ;;  %v14172_v48 = vpack.c.bf16 %v7344_v11, %v7343_v25  ;;  %v7466_v25 = vld [vmem:[#allocation33 + $0x8] sm:$0xff]  ;;  %v7579_v11 = vld [vmem:[#allocation31 + $0xa0] sm:$0xff] }
0x1277   :  { %14161 = vmatpush3.bf16.msra.mxu0 %v14160_v41 }
0x1278   :  { %14163 = vmatprep.subr.bf16.mxu0 %v14162_v3 }
0x127b   :  { %14165 = vmatpush3.bf16.msra.mxu0 %v14164_v17  ;;  %v7576_v17 = vld [vmem:[#allocation31 + $0x88] sm:$0xff] }
0x127c   :  { %14167 = vmatprep.subr.bf16.mxu0 %v14166_v50  ;;  %v14182_v7 = vpack.c.bf16 %v7576_v17, %v7575_v10 }
0x127f   :  { %14169 = vmatpush3.bf16.msra.mxu0 %v14168_v43  ;;  %v7752_v43 = vld [vmem:[#allocation33 + $0x30] sm:$0xff] }
0x1280   :  { %14171 = vmatprep.subr.bf16.mxu0 %v14170_v58  ;;  %v14185_v58 = vpack.c.bf16 %v7578_v47, %v7577_v15  ;;  %v7849_v15 = vld [vmem:[#allocation31 + $0x120] sm:$0xff]  ;;  %v7850_v47 = vld [vmem:[#allocation31 + $0x128] sm:$0xff] }
0x1283   :  { %14173 = vmatpush3.bf16.msra.mxu0 %v14172_v48  ;;  %v14188_v48 = vpack.c.bf16 %v7580_v27, %v7579_v11  ;;  %v14239_v11 = vpack.c.bf16 %v7850_v47, %v7849_v15  ;;  %v8081_v15 = vld [vmem:[#allocation34 + $0xb0] sm:$0xff]  ;;  %v8082_v47 = vld [vmem:[#allocation34 + $0xb8] sm:$0xff] }
0x1284   :  { %14175 = vmatprep.subr.bf16.mxu0 %v14174_v42  ;;  %v7467_v42 = vld [vmem:[#allocation33 + $0x10] sm:$0xff] }
0x1287   :  { %14177 = vmatpush3.bf16.msra.mxu0 %v14176_v9  ;;  %v7754_v9 = vld [vmem:[#allocation33 + $0x40] sm:$0xff] }
0x1288   :  { %14229 = vmatprep.subr.bf16.mxu0 %v15800_v0 }
0x128a   :  { %7428 = vmatmul.mubr.f32.vlgmr.msra.gmra.mrb[186].mxu0 %v17646_v2 }
0x128b   :  { %7432 = vmatprep.mubr.f32.mxu0 %v17656_v22 }
0x128e   :  { %7433 = vmatmul.mubr.f32.gmra.mrb[188].mxu0 %v17654_v19 }
0x128f   :  { %7437 = vmatprep.mubr.f32.mxu0 %v17664_v56 }
0x1292   :  { %7438 = vmatmul.mubr.f32.gmra.mrb[190].mxu0 %v17662_v30 }
0x1293   :  { %12240 = vmatprep.mubr.msk.f32.mxu0 %vm15802_vm2, %v15801_v28 }
0x131d   :  { %v11103_v26 = vpop.f32.mrb[174].mxu0 }
0x131e   :  { %v11104_v21 = vpop.f32.mrb[175].mxu0 }
0x131f   :  { %v11105_v13 = vadd.f32 %v11104_v21, %v11103_v26  ;;  %v14191_v26 = vpack.c.bf16 %v7582_v4, %v7581_v24  ;;  %v7583_v21 = vld [vmem:[#allocation31 + $0xc0] sm:$0xff] }
0x1321   :  { %v11106_v44 = vpop.f32.mrb[176].mxu0 }
0x1322   :  { %v11107_v2 = vpop.f32.mrb[177].mxu0 }
0x1323   :  { %v11108_v62 = vadd.f32 %v11107_v2, %v11106_v44  ;;  %v7585_v2 = vld [vmem:[#allocation31 + $0xd0] sm:$0xff] }
0x1325   :  { %v11109_v22 = vpop.f32.mrb[178].mxu0 }
0x1326   :  { %v11110_v38 = vpop.f32.mrb[179].mxu0 }
0x1327   :  { %v11111_v19 = vadd.f32 %v11110_v38, %v11109_v22  ;;  %v7587_v38 = vld [vmem:[#allocation31 + $0xe0] sm:$0xff] }
0x133d   :  { %v11144_v55 = vpop.f32.mrb[180].mxu0 }
0x133e   :  { %v11145_v56 = vpop.f32.mrb[181].mxu0 }
0x133f   :  { %v11146_v8 = vadd.f32 %v11145_v56, %v11144_v55  ;;  %v7589_v56 = vld [vmem:[#allocation31 + $0xf0] sm:$0xff] }
0x1341   :  { %v7221_v30 = vadd.f32 %v11146_v8, %v11105_v13  ;;  %v11147_v61 = vpop.f32.mrb[182].mxu0  ;;  %v7584_v13 = vld [vmem:[#allocation31 + $0xc8] sm:$0xff]  ;;  %v7590_v8 = vld [vmem:[#allocation31 + $0xf8] sm:$0xff] }
0x1342   :  { %v11148_v51 = vpop.f32.mrb[183].mxu0  ;;  %v14194_v44 = vpack.c.bf16 %v7584_v13, %v7583_v21  ;;  %v7853_v21 = vld [vmem:[#allocation31 + $0x140] sm:$0xff]  ;;  %v7854_v13 = vld [vmem:[#allocation31 + $0x148] sm:$0xff] }
0x1343   :  { %v11149_v32 = vadd.f32 %v11148_v51, %v11147_v61  ;;  %v7558_v61 = vld [vmem:[#allocation31] sm:$0xff]  ;;  %v7559_v51 = vld [vmem:[#allocation31 + $0x8] sm:$0xff] }
0x1345   :  { %v7226_v60 = vadd.f32 %v11149_v32, %v11108_v62  ;;  %v11150_v36 = vpop.f32.mrb[184].mxu0  ;;  %v7586_v62 = vld [vmem:[#allocation31 + $0xd8] sm:$0xff]  ;;  %v14206_v32 = vpack.c.bf16 %v7559_v51, %v7558_v61  ;;  %v10711_v51 = vld [vmem:[%s18116_s25] ss:$0 sm:$0xff] }
0x1346   :  { %v11151_v18 = vpop.f32.mrb[185].mxu0  ;;  %v14197_v22 = vpack.c.bf16 %v7586_v62, %v7585_v2  ;;  %v14245_v2 = vpack.c.bf16 %v7854_v13, %v7853_v21  ;;  %v7855_v62 = vld [vmem:[#allocation31 + $0x150] sm:$0xff]  ;;  %v8090_v21 = vld [vmem:[#allocation34 + $0xf8] sm:$0xff] }
0x1347   :  { %v11152_v54 = vadd.f32 %v11151_v18, %v11150_v36  ;;  %v7561_v36 = vld [vmem:[#allocation31 + $0x18] sm:$0xff] }
0x1349   :  { %v7231_v57 = vadd.f32 %v11152_v54, %v11111_v19  ;;  %v7588_v19 = vld [vmem:[#allocation31 + $0xe8] sm:$0xff]  ;;  %v7562_v54 = vld [vmem:[#allocation31 + $0x20] sm:$0xff] }
0x134a   :  { %v14200_v55 = vpack.c.bf16 %v7588_v19, %v7587_v38  ;;  %v7857_v19 = vld [vmem:[#allocation31 + $0x160] sm:$0xff] }
0x135d   :  { %v11185_v12 = vpop.f32.mrb[186].mxu0 }
0x135e   :  { %v11186_v53 = vpop.f32.mrb[187].mxu0 }
0x135f   :  { %v11187_v1 = vadd.f32 %v11186_v53, %v11185_v12  ;;  %v7564_v53 = vld [vmem:[#allocation31 + $0x30] sm:$0xff] }
0x1361   :  { %v7443_v40 = vadd.f32 %v11187_v1, %v7221_v30  ;;  %v11188_v35 = vpop.f32.mrb[188].mxu0  ;;  %v14203_v30 = vpack.c.bf16 %v7590_v8, %v7589_v56  ;;  %v7565_v1 = vld [vmem:[#allocation31 + $0x38] sm:$0xff]  ;;  %v7859_v8 = vld [vmem:[#allocation31 + $0x170] sm:$0xff] }
0x1362   :  { %v11189_v29 = vpop.f32.mrb[189].mxu0 }
0x1363   :  { %v7451_v14 = vmul.f32 %v10703_v31, %v7443_v40  ;;  %v11190_v6 = vadd.f32 %v11189_v29, %v11188_v35  ;;  %v7566_v40 = vld [vmem:[#allocation31 + $0x40] sm:$0xff]  ;;  %v7567_v35 = vld [vmem:[#allocation31 + $0x48] sm:$0xff] }
0x1364   :  { %v14218_v29 = vpack.c.bf16 %v7567_v35, %v7566_v40 }
0x1365   :  { %v7444_v20 = vadd.f32 %v11190_v6, %v7226_v60  ;;  %v11191_v63 = vpop.f32.mrb[190].mxu0  ;;  %v7459_v34 = vadd.f32 %v10704_v45, %v7451_v14  ;;  %v7560_v60 = vld [vmem:[#allocation31 + $0x10] sm:$0xff]  ;;  %v7569_v6 = vld [vmem:[#allocation31 + $0x58] sm:$0xff] }
0x1366   :  { %v11192_v39 = vpop.f32.mrb[191].mxu0  ;;  %v14209_v18 = vpack.c.bf16 %v7561_v36, %v7560_v60  ;;  %v7568_v14 = vld [vmem:[#allocation31 + $0x50] sm:$0xff]  ;;  %v10712_v60 = vld [vmem:[%s18116_s25 + $0x1] ss:$0 sm:$0xff] }
0x1367   :  { %v7452_v23 = vmul.f32 %v10703_v31, %v7444_v20  ;;  %v11193_v5 = vadd.f32 %v11192_v39, %v11191_v63  ;;  %v17682_v41 = vmax.f32 %v7459_v34, 0.0  ;;  %v7570_v20 = vld [vmem:[#allocation31 + $0x60] sm:$0xff]  ;;  %v7571_v63 = vld [vmem:[#allocation31 + $0x68] sm:$0xff]  ;;  %v7572_v34 = vld [vmem:[#allocation31 + $0x70] sm:$0xff] }
0x1368   :  { %v14224_v39 = vpack.c.bf16 %v7571_v63, %v7570_v20 }
0x1369   :  { %v7460_v33 = vadd.f32 %v10704_v45, %v7452_v23  ;;  %v7445_v16 = vadd.f32 %v11193_v5, %v7231_v57  ;;  %v7563_v57 = vld [vmem:[#allocation31 + $0x28] sm:$0xff]  ;;  %v7573_v23 = vld [vmem:[#allocation31 + $0x78] sm:$0xff] }
0x136a   :  { %v14212_v12 = vpack.c.bf16 %v7563_v57, %v7562_v54  ;;  %v14227_v5 = vpack.c.bf16 %v7573_v23, %v7572_v34  ;;  %v8075_v34 = vld [vmem:[#allocation34 + $0x80] sm:$0xff]  ;;  %v8076_v23 = vld [vmem:[#allocation34 + $0x88] sm:$0xff] }
0x136b   :  { %v17684_v3 = vmax.f32 %v7460_v33, 0.0  ;;  %v7453_v59 = vmul.f32 %v10703_v31, %v7445_v16  ;;  %v14215_v31 = vpack.c.bf16 %v7565_v1, %v7564_v53  ;;  %v7845_v33 = vld [vmem:[#allocation31 + $0x100] sm:$0xff]  ;;  %v7846_v16 = vld [vmem:[#allocation31 + $0x108] sm:$0xff] }
0x136d   :  { %v7461_v52 = vadd.f32 %v10704_v45, %v7453_v59  ;;  %v14179_v46 = vpack.c.bf16 %v17684_v3, %v17682_v41  ;;  %v14221_v45 = vpack.c.bf16 %v7569_v6, %v7568_v14  ;;  %v14233_v59 = vpack.c.bf16 %v7846_v16, %v7845_v33  ;;  %v8077_v33 = vld [vmem:[#allocation34 + $0x90] sm:$0xff]  ;;  %v8078_v16 = vld [vmem:[#allocation34 + $0x98] sm:$0xff] }
0x136f   :  { %14180 = vmatpush3.bf16.msra.mxu1 %v14179_v46  ;;  %14231 = vmatpush3.bf16.msra.mxu0 %v14179_v46  ;;  %v17690_v50 = vmax.f32 %v7461_v52, 0.0  ;;  %v7847_v52 = vld [vmem:[#allocation31 + $0x110] sm:$0xff]  ;;  %v7848_v46 = vld [vmem:[#allocation31 + $0x118] sm:$0xff] }
0x1370   :  { %12141 = vmatprep.subr.mxu1 %v15801_v28  ;;  %12238 = vmatprep.subr.mxu0 %v15801_v28 }
0x1373   :  { %12142 = vmatpush3.msra.mxu1 %v17690_v50  ;;  %12239 = vmatpush3.msra.mxu0 %v17690_v50 }
0x1374   :  { %12144 = vmatmul.mubr.msk.f32.vlgmr.msra.gmra.mrb[48].mxu1 %vm7468_vm3, %v7465_v37  ;;  %14181 = vmatprep.subr.bf16.mxu1 %v15800_v0  ;;  %v14236_v37 = vpack.c.bf16 %v7848_v46, %v7847_v52  ;;  %v7967_v52 = vld [vmem:[#allocation36 + $0x8] sm:$0xff]  ;;  %v8079_v46 = vld [vmem:[#allocation34 + $0xa0] sm:$0xff] }
0x1375   :  { %14183 = vmatpush3.bf16.msra.mxu1 %v14182_v7  ;;  %12146 = vmatprep.mubr.msk.f32.mxu1 %vm15802_vm2, %v15801_v28 }
0x1376   :  { %14184 = vmatprep.subr.bf16.mxu1 %v15800_v0  ;;  %12241 = vmatmul.mubr.msk.f32.vlgmr.msra.gmra.mrb[192].mxu0 %vm7468_vm3, %v7752_v43 }
0x1377   :  { %12243 = vmatprep.mubr.msk.f32.mxu0 %vm15802_vm2, %v15801_v28  ;;  %14256 = vmatprep.subr.bf16.mxu0 %v15800_v0 }
0x1378   :  { %12147 = vmatmul.mubr.msk.f32.gmra.mrb[50].mxu1 %vm7468_vm3, %v7466_v25 }
0x1379   :  { %14186 = vmatpush3.bf16.msra.mxu1 %v14185_v58  ;;  %12149 = vmatprep.mubr.msk.f32.mxu1 %vm15802_vm2, %v15801_v28 }
0x137a   :  { %14187 = vmatprep.subr.bf16.mxu1 %v15800_v0  ;;  %12244 = vmatmul.mubr.msk.f32.gmra.mrb[194].mxu0 %vm7468_vm3, %v7753_v49  ;;  %v7851_v49 = vld [vmem:[#allocation31 + $0x130] sm:$0xff] }
0x137b   :  { %12246 = vmatprep.mubr.msk.f32.mxu0 %vm15802_vm2, %v15801_v28 }
0x137c   :  { %12150 = vmatmul.mubr.msk.f32.gmra.mrb[52].mxu1 %vm7468_vm3, %v7467_v42 }
0x137d   :  { %14189 = vmatpush3.bf16.msra.mxu1 %v14188_v48  ;;  %12184 = vmatprep.mubr.msk.f32.mxu1 %vm15802_vm2, %v15801_v28  ;;  %v7852_v48 = vld [vmem:[#allocation31 + $0x138] sm:$0xff] }
0x137e   :  { %14190 = vmatprep.subr.bf16.mxu1 %v15800_v0  ;;  %12247 = vmatmul.mubr.msk.f32.gmra.mrb[196].mxu0 %vm7468_vm3, %v7754_v9  ;;  %v14242_v9 = vpack.c.bf16 %v7852_v48, %v7851_v49  ;;  %v8085_v49 = vld [vmem:[#allocation34 + $0xd0] sm:$0xff]  ;;  %v8086_v48 = vld [vmem:[#allocation34 + $0xd8] sm:$0xff] }
0x137f   :  { %12296 = vmatprep.mubr.msk.f32.mxu0 %vm15802_vm2, %v15801_v28 }
0x1381   :  { %14192 = vmatpush3.bf16.msra.mxu1 %v14191_v26 }
0x1382   :  { %14193 = vmatprep.subr.bf16.mxu1 %v15800_v0 }
0x1385   :  { %14195 = vmatpush3.bf16.msra.mxu1 %v14194_v44 }
0x1386   :  { %14196 = vmatprep.subr.bf16.mxu1 %v15800_v0 }
0x1389   :  { %14198 = vmatpush3.bf16.msra.mxu1 %v14197_v22  ;;  %v7856_v22 = vld [vmem:[#allocation31 + $0x158] sm:$0xff] }
0x138a   :  { %14199 = vmatprep.subr.bf16.mxu1 %v15800_v0  ;;  %v14248_v38 = vpack.c.bf16 %v7856_v22, %v7855_v62  ;;  %v8060_v22 = vld [vmem:[#allocation34 + $0x10] sm:$0xff] }
0x138d   :  { %14201 = vmatpush3.bf16.msra.mxu1 %v14200_v55  ;;  %v7858_v55 = vld [vmem:[#allocation31 + $0x168] sm:$0xff] }
0x138e   :  { %14202 = vmatprep.subr.bf16.mxu1 %v15800_v0  ;;  %v14251_v56 = vpack.c.bf16 %v7858_v55, %v7857_v19  ;;  %v8062_v55 = vld [vmem:[#allocation34 + $0x20] sm:$0xff] }
0x1391   :  { %14204 = vmatpush3.bf16.msra.mxu1 %v14203_v30  ;;  %v7860_v30 = vld [vmem:[#allocation31 + $0x178] sm:$0xff] }
0x1392   :  { %14205 = vmatprep.subr.bf16.mxu1 %v15800_v0  ;;  %v14254_v61 = vpack.c.bf16 %v7860_v30, %v7859_v8  ;;  %v8064_v30 = vld [vmem:[#allocation34 + $0x30] sm:$0xff] }
0x1394   :  { %12185 = vmatmul.mubr.f32.vlgmr.msra.gmra.mrb[54].mxu1 %v17682_v41 }
0x1395   :  { %12187 = vmatprep.mubr.msk.f32.mxu1 %vm15802_vm2, %v15801_v28  ;;  %14207 = vmatpush3.bf16.msra.mxu1 %v14206_v32 }
0x1396   :  { %14208 = vmatprep.subr.bf16.mxu1 %v15800_v0 }
0x1398   :  { %12188 = vmatmul.mubr.f32.gmra.mrb[56].mxu1 %v17684_v3 }
0x1399   :  { %12190 = vmatprep.mubr.msk.f32.mxu1 %vm15802_vm2, %v15801_v28  ;;  %14210 = vmatpush3.bf16.msra.mxu1 %v14209_v18 }
0x139a   :  { %14211 = vmatprep.subr.bf16.mxu1 %v15800_v0 }
0x139c   :  { %12191 = vmatmul.mubr.f32.gmra.mrb[58].mxu1 %v17690_v50 }
0x139d   :  { %14213 = vmatpush3.bf16.msra.mxu1 %v14212_v12  ;;  %12225 = vmatprep.mubr.msk.f32.mxu1 %vm15802_vm2, %v15801_v28 }
0x139e   :  { %14214 = vmatprep.subr.bf16.mxu1 %v15800_v0 }
0x13a1   :  { %14216 = vmatpush3.bf16.msra.mxu1 %v14215_v31 }
0x13a2   :  { %14217 = vmatprep.subr.bf16.mxu1 %v15800_v0 }
0x13a5   :  { %14219 = vmatpush3.bf16.msra.mxu1 %v14218_v29 }
0x13a6   :  { %14220 = vmatprep.subr.bf16.mxu1 %v15800_v0 }
0x13a9   :  { %14222 = vmatpush3.bf16.msra.mxu1 %v14221_v45 }
0x13aa   :  { %14223 = vmatprep.subr.bf16.mxu1 %v15800_v0 }
0x13ad   :  { %14225 = vmatpush3.bf16.msra.mxu1 %v14224_v39 }
0x13ae   :  { %14226 = vmatprep.subr.bf16.mxu1 %v15800_v0 }
0x13b1   :  { %14228 = vmatpush3.bf16.msra.mxu1 %v14227_v5  ;;  %v14260_v5 = vpack.c.bf16 %v8076_v23, %v8075_v34 }
0x13b2   :  { %14232 = vmatprep.subr.bf16.mxu1 %v15800_v0 }
0x1447   :  { %v7544_v10 = vpop.f32.mrb[48].mxu1 }
0x1448   :  { %12226 = vmatmul.mubr.f32.vlgmr.msra.gmra.mrb[54].mxu1 %v7544_v10  ;;  %v12145_v17 = vpop.f32.mrb[49].mxu1  ;;  %v8080_v10 = vld [vmem:[#allocation34 + $0xa8] sm:$0xff] }
0x1449   :  { %14234 = vmatpush3.bf16.msra.mxu1 %v14233_v59  ;;  %12228 = vmatprep.mubr.msk.f32.mxu1 %vm15802_vm2, %v15801_v28  ;;  %v7830_v7 = vpop.f32.mrb[192].mxu0  ;;  %v14263_v59 = vpack.c.bf16 %v8078_v16, %v8077_v33  ;;  %v8253_v17 = vld [vmem:[#allocation36 + $0x38] sm:$0xff]  ;;  %v8349_v33 = vld [vmem:[#allocation34 + $0x120] sm:$0xff]  ;;  %v8350_v16 = vld [vmem:[#allocation34 + $0x128] sm:$0xff] }
0x144a   :  { %14235 = vmatprep.subr.bf16.mxu1 %v15800_v0  ;;  %v12242_v43 = vpop.f32.mrb[193].mxu0 }
0x144b   :  { %v7549_v58 = vpop.f32.mrb[50].mxu1  ;;  %v8254_v43 = vld [vmem:[#allocation36 + $0x40] sm:$0xff] }
0x144c   :  { %12229 = vmatmul.mubr.f32.gmra.mrb[56].mxu1 %v7549_v58  ;;  %v12148_v25 = vpop.f32.mrb[51].mxu1  ;;  %v14269_v58 = vpack.c.bf16 %v8082_v47, %v8081_v15 }
0x144d   :  { %14237 = vmatpush3.bf16.msra.mxu1 %v14236_v37  ;;  %12231 = vmatprep.mubr.msk.f32.mxu1 %vm15802_vm2, %v15801_v28  ;;  %v7835_v27 = vpop.f32.mrb[194].mxu0  ;;  %v14266_v37 = vpack.c.bf16 %v8080_v10, %v8079_v46  ;;  %v8083_v25 = vld [vmem:[#allocation34 + $0xc0] sm:$0xff]  ;;  %v14317_v46 = vpack.c.bf16 %v8350_v16, %v8349_v33  ;;  %v8640_v16 = vld [vmem:[#allocation37 + $0xc0] sm:$0xff] }
0x144e   :  { %14238 = vmatprep.subr.bf16.mxu1 %v15800_v0  ;;  %v12245_v42 = vpop.f32.mrb[195].mxu0 }
0x144f   :  { %v7554_v24 = vpop.f32.mrb[52].mxu1  ;;  %v14275_v42 = vpack.c.bf16 %v8086_v48, %v8085_v49  ;;  %v8355_v48 = vld [vmem:[#allocation34 + $0x150] sm:$0xff] }
0x1450   :  { %12232 = vmatmul.mubr.f32.gmra.mrb[58].mxu1 %v7554_v24  ;;  %v12151_v4 = vpop.f32.mrb[53].mxu1  ;;  %v8087_v24 = vld [vmem:[#allocation34 + $0xe0] sm:$0xff] }
0x1451   :  { %14240 = vmatpush3.bf16.msra.mxu1 %v14239_v11  ;;  %12281 = vmatprep.mubr.msk.f32.mxu1 %vm15802_vm2, %v15801_v28  ;;  %v7840_v26 = vpop.f32.mrb[196].mxu0  ;;  %v8084_v11 = vld [vmem:[#allocation34 + $0xc8] sm:$0xff] }
0x1452   :  { %14241 = vmatprep.subr.bf16.mxu1 %v15800_v0  ;;  %v12248_v44 = vpop.f32.mrb[197].mxu0  ;;  %v8088_v4 = vld [vmem:[#allocation34 + $0xe8] sm:$0xff] }
0x1453   :  { %v8058_v44 = vld [vmem:[#allocation34] sm:$0xff] }
0x1455   :  { %14243 = vmatpush3.bf16.msra.mxu1 %v14242_v9  ;;  %v14278_v9 = vpack.c.bf16 %v8088_v4, %v8087_v24  ;;  %v8357_v4 = vld [vmem:[#allocation34 + $0x160] sm:$0xff] }
0x1456   :  { %14244 = vmatprep.subr.bf16.mxu1 %v15800_v0 }
0x1459   :  { %14246 = vmatpush3.bf16.msra.mxu1 %v14245_v2  ;;  %v8059_v2 = vld [vmem:[#allocation34 + $0x8] sm:$0xff] }
0x145a   :  { %14247 = vmatprep.subr.bf16.mxu1 %v15800_v0  ;;  %v14284_v62 = vpack.c.bf16 %v8059_v2, %v8058_v44  ;;  %v10719_v2 = vld [vmem:[%s18117_s17] ss:$0 sm:$0xff] }
0x145d   :  { %14249 = vmatpush3.bf16.msra.mxu1 %v14248_v38  ;;  %v8061_v38 = vld [vmem:[#allocation34 + $0x18] sm:$0xff] }
0x145e   :  { %14250 = vmatprep.subr.bf16.mxu1 %v15800_v0  ;;  %v14287_v19 = vpack.c.bf16 %v8061_v38, %v8060_v22  ;;  %v10720_v22 = vld [vmem:[%s18117_s17 + $0x1] ss:$0 sm:$0xff] }
0x1461   :  { %14252 = vmatpush3.bf16.msra.mxu1 %v14251_v56  ;;  %v8063_v56 = vld [vmem:[#allocation34 + $0x28] sm:$0xff] }
0x1462   :  { %14253 = vmatprep.subr.bf16.mxu1 %v15800_v0  ;;  %v14290_v8 = vpack.c.bf16 %v8063_v56, %v8062_v55 }
0x1465   :  { %14255 = vmatpush3.bf16.msra.mxu1 %v14254_v61  ;;  %v8065_v61 = vld [vmem:[#allocation34 + $0x38] sm:$0xff] }
0x1466   :  { %14307 = vmatprep.subr.bf16.mxu1 %v15800_v0 }
0x1468   :  { %12282 = vmatmul.mubr.f32.vlgmr.msra.gmra.mrb[54].mxu1 %v7830_v7  ;;  %v7968_v7 = vld [vmem:[#allocation36 + $0x10] sm:$0xff] }
0x1469   :  { %12284 = vmatprep.mubr.msk.f32.mxu1 %vm15802_vm2, %v15801_v28 }
0x146c   :  { %12285 = vmatmul.mubr.f32.gmra.mrb[56].mxu1 %v7835_v27  ;;  %v14272_v27 = vpack.c.bf16 %v8084_v11, %v8083_v25  ;;  %v8353_v25 = vld [vmem:[#allocation34 + $0x140] sm:$0xff]  ;;  %v8354_v11 = vld [vmem:[#allocation34 + $0x148] sm:$0xff] }
0x146d   :  { %12287 = vmatprep.mubr.msk.f32.mxu1 %vm15802_vm2, %v15801_v28  ;;  %v14323_v49 = vpack.c.bf16 %v8354_v11, %v8353_v25  ;;  %v8540_v11 = vld [vmem:[#allocation37] sm:$0xff] }
0x1470   :  { %12288 = vmatmul.mubr.f32.gmra.mrb[58].mxu1 %v7840_v26  ;;  %v8089_v26 = vld [vmem:[#allocation34 + $0xf0] sm:$0xff] }
0x1471   :  { %12393 = vmatprep.mubr.msk.f32.mxu1 %vm15802_vm2, %v15801_v28  ;;  %v14281_v13 = vpack.c.bf16 %v8090_v21, %v8089_v26  ;;  %v8359_v21 = vld [vmem:[#allocation34 + $0x170] sm:$0xff] }
0x153b   :  { %v7927_v32 = vpop.f32.mrb[54].mxu1 }
0x153c   :  { %v7949_v36 = vmul.f32 %v10711_v51, %v7927_v32  ;;  %v12283_v18 = vpop.f32.mrb[55].mxu1  ;;  %v8066_v32 = vld [vmem:[#allocation34 + $0x40] sm:$0xff] }
0x153d   :  { %v8068_v18 = vld [vmem:[#allocation34 + $0x50] sm:$0xff] }
0x153e   :  { %v7957_v54 = vadd.f32 %v10712_v60, %v7949_v36 }
0x153f   :  { %v7932_v57 = vpop.f32.mrb[56].mxu1 }
0x1540   :  { %v7950_v12 = vmul.f32 %v10711_v51, %v7932_v57  ;;  %v12286_v53 = vpop.f32.mrb[57].mxu1  ;;  %v7960_v1 = vadd.f32 %v7957_v54, %v17682_v41  ;;  %v8069_v54 = vld [vmem:[#allocation34 + $0x58] sm:$0xff] }
0x1541   :  { %v14299_v57 = vpack.c.bf16 %v8069_v54, %v8068_v18  ;;  %v8071_v53 = vld [vmem:[#allocation34 + $0x68] sm:$0xff] }
0x1542   :  { %v7958_v31 = vadd.f32 %v10712_v60, %v7950_v12  ;;  %v17763_v6 = vmax.f32 %v7960_v1, 0.0  ;;  %v8070_v12 = vld [vmem:[#allocation34 + $0x60] sm:$0xff] }
0x1543   :  { %v7937_v40 = vpop.f32.mrb[58].mxu1  ;;  %v14302_v1 = vpack.c.bf16 %v8071_v53, %v8070_v12 }
0x1544   :  { %v7961_v35 = vadd.f32 %v7958_v31, %v17684_v3  ;;  %v7951_v29 = vmul.f32 %v10711_v51, %v7937_v40  ;;  %v12289_v14 = vpop.f32.mrb[59].mxu1  ;;  %v7966_v3 = vld [vmem:[#allocation36] sm:$0xff]  ;;  %v14293_v51 = vpack.c.bf16 %v8065_v61, %v8064_v30  ;;  %v8072_v31 = vld [vmem:[#allocation34 + $0x70] sm:$0xff]  ;;  %v8073_v40 = vld [vmem:[#allocation34 + $0x78] sm:$0xff] }
0x1545   :  { %v8346_v14 = vld [vmem:[#allocation34 + $0x108] sm:$0xff] }
0x1546   :  { %v17765_v45 = vmax.f32 %v7961_v35, 0.0  ;;  %v7959_v20 = vadd.f32 %v10712_v60, %v7951_v29  ;;  %v8067_v60 = vld [vmem:[#allocation34 + $0x48] sm:$0xff]  ;;  %v14305_v35 = vpack.c.bf16 %v8073_v40, %v8072_v31  ;;  %v8345_v29 = vld [vmem:[#allocation34 + $0x100] sm:$0xff] }
0x1547   :  { %v14296_v36 = vpack.c.bf16 %v8067_v60, %v8066_v32  ;;  %v8466_v31 = vld [vmem:[%s18118_s18] sm:$0xff]  ;;  %v8632_v40 = vld [vmem:[#allocation37 + $0x80] sm:$0xff] }
0x1548   :  { %v7962_v63 = vadd.f32 %v7959_v20, %v17690_v50  ;;  %v14257_v39 = vpack.c.bf16 %v17765_v45, %v17763_v6  ;;  %v8252_v50 = vld [vmem:[#allocation36 + $0x30] sm:$0xff]  ;;  %v14311_v20 = vpack.c.bf16 %v8346_v14, %v8345_v29  ;;  %v8634_v14 = vld [vmem:[#allocation37 + $0x90] sm:$0xff] }
0x154a   :  { %14258 = vmatpush3.bf16.msra.mxu0 %v14257_v39  ;;  %14309 = vmatpush3.bf16.msra.mxu1 %v14257_v39  ;;  %v17772_v41 = vmax.f32 %v7962_v63, 0.0  ;;  %v8347_v63 = vld [vmem:[#allocation34 + $0x110] sm:$0xff]  ;;  %v8348_v39 = vld [vmem:[#allocation34 + $0x118] sm:$0xff] }
0x154b   :  { %12294 = vmatprep.subr.mxu0 %v15801_v28  ;;  %12391 = vmatprep.subr.mxu1 %v15801_v28 }
0x154e   :  { %12295 = vmatpush3.msra.mxu0 %v17772_v41  ;;  %12392 = vmatpush3.msra.mxu1 %v17772_v41 }
0x154f   :  { %12297 = vmatmul.mubr.msk.f32.vlgmr.msra.gmra.mrb[198].mxu0 %vm7468_vm3, %v7966_v3  ;;  %14259 = vmatprep.subr.bf16.mxu0 %v15800_v0  ;;  %v14314_v3 = vpack.c.bf16 %v8348_v39, %v8347_v63  ;;  %v8636_v39 = vld [vmem:[#allocation37 + $0xa0] sm:$0xff] }
0x1550   :  { %14261 = vmatpush3.bf16.msra.mxu0 %v14260_v5  ;;  %12299 = vmatprep.mubr.msk.f32.mxu0 %vm15802_vm2, %v15801_v28 }
0x1551   :  { %14262 = vmatprep.subr.bf16.mxu0 %v15800_v0  ;;  %12394 = vmatmul.mubr.msk.f32.vlgmr.msra.gmra.mrb[0].mxu1 %vm7468_vm3, %v8252_v50 }
0x1552   :  { %12396 = vmatprep.mubr.msk.f32.mxu1 %vm15802_vm2, %v15801_v28  ;;  %14334 = vmatprep.subr.bf16.mxu1 %v15800_v0 }
0x1553   :  { %12300 = vmatmul.mubr.msk.f32.gmra.mrb[200].mxu0 %vm7468_vm3, %v7967_v52 }
0x1554   :  { %14264 = vmatpush3.bf16.msra.mxu0 %v14263_v59  ;;  %12302 = vmatprep.mubr.msk.f32.mxu0 %vm15802_vm2, %v15801_v28 }
0x1555   :  { %14265 = vmatprep.subr.bf16.mxu0 %v15800_v0  ;;  %12397 = vmatmul.mubr.msk.f32.gmra.mrb[2].mxu1 %vm7468_vm3, %v8253_v17  ;;  %v8351_v17 = vld [vmem:[#allocation34 + $0x130] sm:$0xff] }
0x1556   :  { %12399 = vmatprep.mubr.msk.f32.mxu1 %vm15802_vm2, %v15801_v28 }
0x1557   :  { %12303 = vmatmul.mubr.msk.f32.gmra.mrb[202].mxu0 %vm7468_vm3, %v7968_v7 }
0x1558   :  { %14267 = vmatpush3.bf16.msra.mxu0 %v14266_v37  ;;  %12337 = vmatprep.mubr.msk.f32.mxu0 %vm15802_vm2, %v15801_v28  ;;  %v8352_v37 = vld [vmem:[#allocation34 + $0x138] sm:$0xff] }
0x1559   :  { %14268 = vmatprep.subr.bf16.mxu0 %v15800_v0  ;;  %12400 = vmatmul.mubr.msk.f32.gmra.mrb[4].mxu1 %vm7468_vm3, %v8254_v43  ;;  %v14320_v43 = vpack.c.bf16 %v8352_v37, %v8351_v17  ;;  %v8644_v17 = vld [vmem:[#allocation37 + $0xe0] sm:$0xff]  ;;  %v8645_v37 = vld [vmem:[#allocation37 + $0xe8] sm:$0xff] }
0x155a   :  { %12449 = vmatprep.mubr.msk.f32.mxu1 %vm15802_vm2, %v15801_v28 }
0x155c   :  { %14270 = vmatpush3.bf16.msra.mxu0 %v14269_v58 }
0x155d   :  { %14271 = vmatprep.subr.bf16.mxu0 %v15800_v0 }
0x1560   :  { %14273 = vmatpush3.bf16.msra.mxu0 %v14272_v27 }
0x1561   :  { %14274 = vmatprep.subr.bf16.mxu0 %v15800_v0 }
0x1564   :  { %14276 = vmatpush3.bf16.msra.mxu0 %v14275_v42  ;;  %v8356_v42 = vld [vmem:[#allocation34 + $0x158] sm:$0xff] }
0x1565   :  { %14277 = vmatprep.subr.bf16.mxu0 %v15800_v0  ;;  %v14326_v24 = vpack.c.bf16 %v8356_v42, %v8355_v48 }
0x1568   :  { %14279 = vmatpush3.bf16.msra.mxu0 %v14278_v9  ;;  %v8358_v9 = vld [vmem:[#allocation34 + $0x168] sm:$0xff] }
0x1569   :  { %14280 = vmatprep.subr.bf16.mxu0 %v15800_v0  ;;  %v14329_v26 = vpack.c.bf16 %v8358_v9, %v8357_v4  ;;  %v8543_v4 = vld [vmem:[#allocation37 + $0x18] sm:$0xff] }
0x156c   :  { %14282 = vmatpush3.bf16.msra.mxu0 %v14281_v13  ;;  %v8360_v13 = vld [vmem:[#allocation34 + $0x178] sm:$0xff] }
0x156d   :  { %14283 = vmatprep.subr.bf16.mxu0 %v15800_v0  ;;  %v14332_v44 = vpack.c.bf16 %v8360_v13, %v8359_v21  ;;  %v8544_v13 = vld [vmem:[#allocation37 + $0x20] sm:$0xff] }
0x156f   :  { %12338 = vmatmul.mubr.f32.vlgmr.msra.gmra.mrb[204].mxu0 %v17763_v6 }
0x1570   :  { %12340 = vmatprep.mubr.msk.f32.mxu0 %vm15802_vm2, %v15801_v28  ;;  %14285 = vmatpush3.bf16.msra.mxu0 %v14284_v62 }
0x1571   :  { %14286 = vmatprep.subr.bf16.mxu0 %v15800_v0 }
0x1573   :  { %12341 = vmatmul.mubr.f32.gmra.mrb[206].mxu0 %v17765_v45 }
0x1574   :  { %12343 = vmatprep.mubr.msk.f32.mxu0 %vm15802_vm2, %v15801_v28  ;;  %14288 = vmatpush3.bf16.msra.mxu0 %v14287_v19 }
0x1575   :  { %14289 = vmatprep.subr.bf16.mxu0 %v15800_v0 }
0x1577   :  { %12344 = vmatmul.mubr.f32.gmra.mrb[208].mxu0 %v17772_v41 }
0x1578   :  { %14291 = vmatpush3.bf16.msra.mxu0 %v14290_v8  ;;  %12378 = vmatprep.mubr.msk.f32.mxu0 %vm15802_vm2, %v15801_v28 }
0x1579   :  { %14292 = vmatprep.subr.bf16.mxu0 %v15800_v0 }
0x157c   :  { %14294 = vmatpush3.bf16.msra.mxu0 %v14293_v51 }
0x157d   :  { %14295 = vmatprep.subr.bf16.mxu0 %v15800_v0 }
0x1580   :  { %14297 = vmatpush3.bf16.msra.mxu0 %v14296_v36 }
0x1581   :  { %14298 = vmatprep.subr.bf16.mxu0 %v15800_v0 }
0x1584   :  { %14300 = vmatpush3.bf16.msra.mxu0 %v14299_v57 }
0x1585   :  { %14301 = vmatprep.subr.bf16.mxu0 %v15800_v0 }
0x1588   :  { %14303 = vmatpush3.bf16.msra.mxu0 %v14302_v1 }
0x1589   :  { %14304 = vmatprep.subr.bf16.mxu0 %v15800_v0 }
0x158c   :  { %14306 = vmatpush3.bf16.msra.mxu0 %v14305_v35  ;;  %v8633_v35 = vld [vmem:[#allocation37 + $0x88] sm:$0xff] }
0x158d   :  { %14310 = vmatprep.subr.bf16.mxu0 %v15800_v0  ;;  %v14341_v29 = vpack.c.bf16 %v8633_v35, %v8632_v40  ;;  %v8869_v40 = vld [vmem:[#allocation37 + $0x128] sm:$0xff] }
0x1622   :  { %v8044_v34 = vpop.f32.mrb[198].mxu0 }
0x1623   :  { %12379 = vmatmul.mubr.f32.vlgmr.msra.gmra.mrb[204].mxu0 %v8044_v34  ;;  %v12298_v23 = vpop.f32.mrb[199].mxu0  ;;  %v8637_v34 = vld [vmem:[#allocation37 + $0xa8] sm:$0xff] }
0x1624   :  { %14312 = vmatpush3.bf16.msra.mxu0 %v14311_v20  ;;  %12381 = vmatprep.mubr.msk.f32.mxu0 %vm15802_vm2, %v15801_v28  ;;  %v8330_v5 = vpop.f32.mrb[0].mxu1  ;;  %v8635_v20 = vld [vmem:[#allocation37 + $0x98] sm:$0xff]  ;;  %v14347_v23 = vpack.c.bf16 %v8637_v34, %v8636_v39  ;;  %v8874_v34 = vld [vmem:[#allocation37 + $0x150] sm:$0xff] }
0x1625   :  { %14313 = vmatprep.subr.bf16.mxu0 %v15800_v0  ;;  %v12395_v50 = vpop.f32.mrb[1].mxu1  ;;  %v14344_v63 = vpack.c.bf16 %v8635_v20, %v8634_v14  ;;  %v8872_v20 = vld [vmem:[#allocation37 + $0x140] sm:$0xff] }
0x1626   :  { %v8049_v59 = vpop.f32.mrb[200].mxu0  ;;  %v8641_v50 = vld [vmem:[#allocation37 + $0xc8] sm:$0xff] }
0x1627   :  { %12382 = vmatmul.mubr.f32.gmra.mrb[206].mxu0 %v8049_v59  ;;  %v12301_v52 = vpop.f32.mrb[201].mxu0  ;;  %v14353_v59 = vpack.c.bf16 %v8641_v50, %v8640_v16  ;;  %v8878_v50 = vld [vmem:[#allocation37 + $0x170] sm:$0xff] }
0x1628   :  { %14315 = vmatpush3.bf16.msra.mxu0 %v14314_v3  ;;  %12384 = vmatprep.mubr.msk.f32.mxu0 %vm15802_vm2, %v15801_v28  ;;  %v8335_v10 = vpop.f32.mrb[2].mxu1  ;;  %v8638_v3 = vld [vmem:[#allocation37 + $0xb0] sm:$0xff] }
0x1629   :  { %14316 = vmatprep.subr.bf16.mxu0 %v15800_v0  ;;  %v12398_v7 = vpop.f32.mrb[3].mxu1  ;;  %v8642_v52 = vld [vmem:[#allocation37 + $0xd0] sm:$0xff] }
0x162a   :  { %v8054_v15 = vpop.f32.mrb[202].mxu0  ;;  %v14359_v7 = vpack.c.bf16 %v8645_v37, %v8644_v17  ;;  %v10727_v17 = vld [vmem:[#allocation39 + $0x1] ss:$0 sm:$0xff] }
0x162b   :  { %12385 = vmatmul.mubr.f32.gmra.mrb[208].mxu0 %v8054_v15  ;;  %v12304_v47 = vpop.f32.mrb[203].mxu0  ;;  %v8646_v15 = vld [vmem:[#allocation37 + $0xf0] sm:$0xff] }
0x162c   :  { %14318 = vmatpush3.bf16.msra.mxu0 %v14317_v46  ;;  %12434 = vmatprep.mubr.msk.f32.mxu0 %vm15802_vm2, %v15801_v28  ;;  %v8340_v58 = vpop.f32.mrb[4].mxu1  ;;  %v8643_v46 = vld [vmem:[#allocation37 + $0xd8] sm:$0xff] }
0x162d   :  { %14319 = vmatprep.subr.bf16.mxu0 %v15800_v0  ;;  %v12401_v27 = vpop.f32.mrb[5].mxu1  ;;  %v8647_v47 = vld [vmem:[#allocation37 + $0xf8] sm:$0xff] }
0x162e   :  { %v8541_v27 = vld [vmem:[#allocation37 + $0x8] sm:$0xff] }
0x162f   :  { %v14365_v42 = vpack.c.bf16 %v8541_v27, %v8540_v11  ;;  %v9058_v27 = vld [vmem:[#allocation40 + $0x90] sm:$0xff] }
0x1630   :  { %14321 = vmatpush3.bf16.msra.mxu0 %v14320_v43  ;;  %v14362_v43 = vpack.c.bf16 %v8647_v47, %v8646_v15  ;;  %v9056_v15 = vld [vmem:[#allocation40 + $0x80] sm:$0xff]  ;;  %v9057_v47 = vld [vmem:[#allocation40 + $0x88] sm:$0xff] }
0x1631   :  { %14322 = vmatprep.subr.bf16.mxu0 %v15800_v0  ;;  %v14416_v11 = vpack.c.bf16 %v9057_v47, %v9056_v15  ;;  %v9294_v47 = vld [vmem:[#allocation40 + $0x130] sm:$0xff] }
0x1634   :  { %14324 = vmatpush3.bf16.msra.mxu0 %v14323_v49 }
0x1635   :  { %14325 = vmatprep.subr.bf16.mxu0 %v15800_v0 }
0x1638   :  { %14327 = vmatpush3.bf16.msra.mxu0 %v14326_v24  ;;  %v8542_v24 = vld [vmem:[#allocation37 + $0x10] sm:$0xff] }
0x1639   :  { %14328 = vmatprep.subr.bf16.mxu0 %v15800_v0  ;;  %v14368_v21 = vpack.c.bf16 %v8543_v4, %v8542_v24  ;;  %v9061_v24 = vld [vmem:[#allocation40 + $0xa8] sm:$0xff] }
0x163c   :  { %14330 = vmatpush3.bf16.msra.mxu0 %v14329_v26 }
0x163d   :  { %14331 = vmatprep.subr.bf16.mxu0 %v15800_v0 }
0x1640   :  { %14333 = vmatpush3.bf16.msra.mxu0 %v14332_v44  ;;  %v8545_v44 = vld [vmem:[#allocation37 + $0x28] sm:$0xff] }
0x1641   :  { %14388 = vmatprep.subr.bf16.mxu0 %v15800_v0 }
0x1643   :  { %12435 = vmatmul.mubr.f32.vlgmr.msra.gmra.mrb[204].mxu0 %v8330_v5  ;;  %v8639_v5 = vld [vmem:[#allocation37 + $0xb8] sm:$0xff] }
0x1644   :  { %12437 = vmatprep.mubr.msk.f32.mxu0 %vm15802_vm2, %v15801_v28  ;;  %v14350_v33 = vpack.c.bf16 %v8639_v5, %v8638_v3  ;;  %v8876_v5 = vld [vmem:[#allocation37 + $0x160] sm:$0xff] }
0x1647   :  { %12438 = vmatmul.mubr.f32.gmra.mrb[206].mxu0 %v8335_v10  ;;  %v14356_v10 = vpack.c.bf16 %v8643_v46, %v8642_v52  ;;  %v10726_v46 = vld [vmem:[#allocation39] ss:$0 sm:$0xff] }
0x1648   :  { %12440 = vmatprep.mubr.msk.f32.mxu0 %vm15802_vm2, %v15801_v28 }
0x164b   :  { %12441 = vmatmul.mubr.f32.gmra.mrb[208].mxu0 %v8340_v58 }
0x164c   :  { %12537 = vmatprep.mubr.msk.f32.mxu0 %vm15802_vm2, %v15801_v28 }
0x1716   :  { %v8427_v62 = vpop.f32.mrb[204].mxu0 }
0x1717   :  { %v8449_v38 = vmul.f32 %v10719_v2, %v8427_v62  ;;  %v12436_v19 = vpop.f32.mrb[205].mxu0  ;;  %v8546_v62 = vld [vmem:[#allocation37 + $0x30] sm:$0xff] }
0x1718   :  { %v8548_v19 = vld [vmem:[#allocation37 + $0x40] sm:$0xff] }
0x1719   :  { %v8457_v55 = vadd.f32 %v10720_v22, %v8449_v38 }
0x171a   :  { %v8432_v56 = vpop.f32.mrb[206].mxu0 }
0x171b   :  { %v8450_v8 = vmul.f32 %v10719_v2, %v8432_v56  ;;  %v12439_v30 = vpop.f32.mrb[207].mxu0  ;;  %v8460_v61 = vadd.f32 %v8457_v55, %v17763_v6  ;;  %v8549_v55 = vld [vmem:[#allocation37 + $0x48] sm:$0xff] }
0x171c   :  { %v14377_v56 = vpack.c.bf16 %v8549_v55, %v8548_v19  ;;  %v8551_v30 = vld [vmem:[#allocation37 + $0x58] sm:$0xff]  ;;  %v9068_v19 = vld [vmem:[#allocation40 + $0xe0] sm:$0xff]  ;;  %v9069_v55 = vld [vmem:[#allocation40 + $0xe8] sm:$0xff] }
0x171d   :  { %v8458_v51 = vadd.f32 %v10720_v22, %v8450_v8  ;;  %v8463_v54 = vmax.f32 %v8460_v61, 0.0  ;;  %v8550_v8 = vld [vmem:[#allocation37 + $0x50] sm:$0xff] }
0x171e   :  { %v8437_v32 = vpop.f32.mrb[208].mxu0  ;;  %v14380_v61 = vpack.c.bf16 %v8551_v30, %v8550_v8  ;;  %v9070_v8 = vld [vmem:[#allocation40 + $0xf0] sm:$0xff]  ;;  %v9071_v30 = vld [vmem:[#allocation40 + $0xf8] sm:$0xff] }
0x171f   :  { %v8461_v60 = vadd.f32 %v8458_v51, %v17765_v45  ;;  %v8451_v36 = vmul.f32 %v10719_v2, %v8437_v32  ;;  %v12442_v18 = vpop.f32.mrb[209].mxu0  ;;  %v10724_v45 = vld [vmem:[%s18118_s18 + $0x10] sm:$0xff]  ;;  %v14371_v2 = vpack.c.bf16 %v8545_v44, %v8544_v13 }
0x1720   :  { %v8552_v51 = vld [vmem:[#allocation37 + $0x60] sm:$0xff]  ;;  %v8553_v32 = vld [vmem:[#allocation37 + $0x68] sm:$0xff]  ;;  %v8555_v18 = vld [vmem:[#allocation37 + $0x78] sm:$0xff] }
0x1721   :  { %v8464_v57 = vmax.f32 %v8461_v60, 0.0  ;;  %v8459_v12 = vadd.f32 %v10720_v22, %v8451_v36  ;;  %v8547_v22 = vld [vmem:[#allocation37 + $0x38] sm:$0xff]  ;;  %v14383_v60 = vpack.c.bf16 %v8553_v32, %v8552_v51  ;;  %v8554_v36 = vld [vmem:[#allocation37 + $0x70] sm:$0xff]  ;;  %v9064_v13 = vld [vmem:[#allocation40 + $0xc0] sm:$0xff] }
0x1722   :  { %v14374_v38 = vpack.c.bf16 %v8547_v22, %v8546_v62  ;;  %v9065_v44 = vld [vmem:[#allocation40 + $0xc8] sm:$0xff]  ;;  %v9066_v62 = vld [vmem:[#allocation40 + $0xd0] sm:$0xff]  ;;  %v9067_v22 = vld [vmem:[#allocation40 + $0xd8] sm:$0xff] }
0x1723   :  { %v14335_v53 = vpack.c.bf16 %v8464_v57, %v8463_v54  ;;  %v8462_v1 = vadd.f32 %v8459_v12, %v17772_v41  ;;  %v10722_v41 = vld [vmem:[%s18118_s18 + $0x8] sm:$0xff]  ;;  %v14386_v54 = vpack.c.bf16 %v8555_v18, %v8554_v36  ;;  %v8865_v12 = vld [vmem:[#allocation37 + $0x108] sm:$0xff]  ;;  %v9041_v36 = vld [vmem:[#allocation40 + $0x10] sm:$0xff] }
0x1724   :  { %v8864_v57 = vld [vmem:[#allocation37 + $0x100] sm:$0xff]  ;;  %v9040_v32 = vld [vmem:[#allocation40 + $0x8] sm:$0xff] }
0x1725   :  { %14336 = vmatpush3.bf16.msra.mxu1 %v14335_v53  ;;  %14390 = vmatpush3.bf16.msra.mxu0 %v14335_v53  ;;  %v8465_v6 = vmax.f32 %v8462_v1, 0.0  ;;  %v8866_v1 = vld [vmem:[#allocation37 + $0x110] sm:$0xff]  ;;  %v9039_v51 = vld [vmem:[#allocation40] sm:$0xff]  ;;  %v9042_v18 = vld [vmem:[#allocation40 + $0x18] sm:$0xff] }
0x1726   :  { %12447 = vmatprep.subr.mxu1 %v15801_v28  ;;  %12535 = vmatprep.subr.mxu0 %v15801_v28 }
0x1729   :  { %12448 = vmatpush3.msra.mxu1 %v8465_v6  ;;  %12536 = vmatpush3.msra.mxu0 %v8465_v6 }
0x172a   :  { %14337 = vmatprep.subr.bf16.mxu1 %v15800_v0  ;;  %12450 = vmatmul.mubr.msk.f32.vlgmr.msra.gmra.mrb[6].mxu1 %vm7468_vm3, %v8466_v31 }
0x172b   :  { %14339 = vmatpush3.bf16.msra.mxu1 %v14335_v53  ;;  %12458 = vmatprep.mubr.msk.f32.mxu1 %vm15802_vm2, %v15801_v28  ;;  %v14392_v53 = vpack.c.bf16 %v8865_v12, %v8864_v57  ;;  %v9043_v57 = vld [vmem:[#allocation40 + $0x20] sm:$0xff]  ;;  %v9044_v12 = vld [vmem:[#allocation40 + $0x28] sm:$0xff] }
0x172c   :  { %12456 = vmatprep.subr.mxu1 %v15801_v28  ;;  %12538 = vmatmul.mubr.msk.f32.vlgmr.msra.gmra.mrb[210].mxu0 %vm7468_vm3, %v10724_v45  ;;  %v8868_v45 = vld [vmem:[#allocation37 + $0x120] sm:$0xff] }
0x172d   :  { %12575 = vmatprep.subr.mxu0 %v15801_v28  ;;  %12577 = vmatprep.mubr.msk.f32.mxu0 %vm15802_vm2, %v15801_v28  ;;  %v14398_v35 = vpack.c.bf16 %v8869_v40, %v8868_v45  ;;  %v9047_v45 = vld [vmem:[#allocation40 + $0x40] sm:$0xff]  ;;  %v9048_v40 = vld [vmem:[#allocation40 + $0x48] sm:$0xff] }
0x172f   :  { %12457 = vmatpush3.msra.mxu1 %v8465_v6  ;;  %v8867_v6 = vld [vmem:[#allocation37 + $0x118] sm:$0xff] }
0x1730   :  { %12459 = vmatmul.mubr.msk.f32.vlgmr.msra.gmra.mrb[8].mxu1 %vm7468_vm3, %v10722_v41  ;;  %14340 = vmatprep.subr.bf16.mxu1 %v15800_v0  ;;  %v14395_v31 = vpack.c.bf16 %v8867_v6, %v8866_v1  ;;  %v8870_v41 = vld [vmem:[#allocation37 + $0x130] sm:$0xff]  ;;  %v9046_v6 = vld [vmem:[#allocation40 + $0x38] sm:$0xff] }
0x1731   :  { %14342 = vmatpush3.bf16.msra.mxu1 %v14341_v29  ;;  %12493 = vmatprep.mubr.msk.f32.mxu1 %vm15802_vm2, %v15801_v28  ;;  %v8871_v29 = vld [vmem:[#allocation37 + $0x138] sm:$0xff] }
0x1732   :  { %14343 = vmatprep.subr.bf16.mxu1 %v15800_v0  ;;  %v14401_v14 = vpack.c.bf16 %v8871_v29, %v8870_v41  ;;  %v9045_v1 = vld [vmem:[#allocation40 + $0x30] sm:$0xff]  ;;  %v9050_v29 = vld [vmem:[#allocation40 + $0x58] sm:$0xff] }
0x1733   :  { %v9049_v41 = vld [vmem:[#allocation40 + $0x50] sm:$0xff] }
0x1735   :  { %14345 = vmatpush3.bf16.msra.mxu1 %v14344_v63  ;;  %v8873_v63 = vld [vmem:[#allocation37 + $0x148] sm:$0xff] }
0x1736   :  { %14346 = vmatprep.subr.bf16.mxu1 %v15800_v0  ;;  %v14404_v39 = vpack.c.bf16 %v8873_v63, %v8872_v20  ;;  %v9051_v20 = vld [vmem:[#allocation40 + $0x60] sm:$0xff]  ;;  %v9052_v63 = vld [vmem:[#allocation40 + $0x68] sm:$0xff] }
0x1739   :  { %14348 = vmatpush3.bf16.msra.mxu1 %v14347_v23  ;;  %v8875_v23 = vld [vmem:[#allocation37 + $0x158] sm:$0xff] }
0x173a   :  { %14349 = vmatprep.subr.bf16.mxu1 %v15800_v0  ;;  %v14407_v3 = vpack.c.bf16 %v8875_v23, %v8874_v34  ;;  %v9053_v34 = vld [vmem:[#allocation40 + $0x70] sm:$0xff]  ;;  %v9054_v23 = vld [vmem:[#allocation40 + $0x78] sm:$0xff] }
0x173d   :  { %14351 = vmatpush3.bf16.msra.mxu1 %v14350_v33  ;;  %v8877_v33 = vld [vmem:[#allocation37 + $0x168] sm:$0xff] }
0x173e   :  { %14352 = vmatprep.subr.bf16.mxu1 %v15800_v0  ;;  %v14410_v16 = vpack.c.bf16 %v8877_v33, %v8876_v5  ;;  %v9288_v5 = vld [vmem:[#allocation40 + $0x100] sm:$0xff]  ;;  %v9289_v33 = vld [vmem:[#allocation40 + $0x108] sm:$0xff] }
0x1741   :  { %14354 = vmatpush3.bf16.msra.mxu1 %v14353_v59  ;;  %v8879_v59 = vld [vmem:[#allocation37 + $0x178] sm:$0xff] }
0x1742   :  { %14355 = vmatprep.subr.bf16.mxu1 %v15800_v0  ;;  %v14413_v52 = vpack.c.bf16 %v8879_v59, %v8878_v50  ;;  %v10729_v59 = vld [vmem:[%s18119_s4 + $0x10] sm:$0xff] }
0x1745   :  { %14357 = vmatpush3.bf16.msra.mxu1 %v14356_v10 }
0x1746   :  { %14358 = vmatprep.subr.bf16.mxu1 %v15800_v0 }
0x1749   :  { %14360 = vmatpush3.bf16.msra.mxu1 %v14359_v7 }
0x174a   :  { %14361 = vmatprep.subr.bf16.mxu1 %v15800_v0 }
0x174d   :  { %14363 = vmatpush3.bf16.msra.mxu1 %v14362_v43 }
0x174e   :  { %14364 = vmatprep.subr.bf16.mxu1 %v15800_v0 }
0x17fd   :  { %v8536_v58 = vpop.f32.mrb[6].mxu1 }
0x17fe   :  { %v12451_v25 = vpop.f32.mrb[7].mxu1 }
0x17ff   :  { %v17872_v49 = vpop.f32.mrb[210].mxu0  ;;  %v8964_v25 = vld [vmem:[%s18119_s4] sm:$0xff] }
0x1800   :  { %v12539_v48 = vpop.f32.mrb[211].mxu0 }
0x1801   :  { %v9059_v48 = vld [vmem:[#allocation40 + $0x98] sm:$0xff] }
0x1803   :  { %v8627_v9 = vpop.f32.mrb[8].mxu1 }
0x1804   :  { %12494 = vmatmul.mubr.f32.vlgmr.msra.gmra.mrb[10].mxu1 %v8627_v9  ;;  %v12460_v26 = vpop.f32.mrb[9].mxu1  ;;  %v9062_v9 = vld [vmem:[#allocation40 + $0xb0] sm:$0xff] }
0x1805   :  { %14366 = vmatpush3.bf16.msra.mxu1 %v14365_v42  ;;  %12528 = vmatprep.mubr.msk.f32.mxu1 %vm15802_vm2, %v15801_v28  ;;  %v9060_v42 = vld [vmem:[#allocation40 + $0xa0] sm:$0xff]  ;;  %v9063_v26 = vld [vmem:[#allocation40 + $0xb8] sm:$0xff] }
0x1806   :  { %14367 = vmatprep.subr.bf16.mxu1 %v15800_v0  ;;  %v14422_v4 = vpack.c.bf16 %v9061_v24, %v9060_v42  ;;  %v9299_v42 = vld [vmem:[#allocation40 + $0x158] sm:$0xff] }
0x1809   :  { %14369 = vmatpush3.bf16.msra.mxu1 %v14368_v21  ;;  %v14425_v21 = vpack.c.bf16 %v9063_v26, %v9062_v9  ;;  %v9301_v9 = vld [vmem:[#allocation40 + $0x168] sm:$0xff] }
0x180a   :  { %14370 = vmatprep.subr.bf16.mxu1 %v15800_v0 }
0x180d   :  { %14372 = vmatpush3.bf16.msra.mxu1 %v14371_v2  ;;  %v14428_v2 = vpack.c.bf16 %v9065_v44, %v9064_v13  ;;  %v9303_v13 = vld [vmem:[#allocation40 + $0x178] sm:$0xff] }
0x180e   :  { %14373 = vmatprep.subr.bf16.mxu1 %v15800_v0 }
0x1811   :  { %14375 = vmatpush3.bf16.msra.mxu1 %v14374_v38  ;;  %v14431_v38 = vpack.c.bf16 %v9067_v22, %v9066_v62  ;;  %v10731_v22 = vld [vmem:[#allocation42] ss:$0 sm:$0xff] }
0x1812   :  { %14376 = vmatprep.subr.bf16.mxu1 %v15800_v0 }
0x1815   :  { %14378 = vmatpush3.bf16.msra.mxu1 %v14377_v56  ;;  %v14434_v56 = vpack.c.bf16 %v9069_v55, %v9068_v19  ;;  %v10732_v19 = vld [vmem:[#allocation42 + $0x1] ss:$0 sm:$0xff] }
0x1816   :  { %14379 = vmatprep.subr.bf16.mxu1 %v15800_v0 }
0x1819   :  { %14381 = vmatpush3.bf16.msra.mxu1 %v14380_v61  ;;  %v14437_v61 = vpack.c.bf16 %v9071_v30, %v9070_v8  ;;  %v9480_v30 = vld [vmem:[#allocation43 + $0x80] sm:$0xff] }
0x181a   :  { %14382 = vmatprep.subr.bf16.mxu1 %v15800_v0 }
0x181d   :  { %14384 = vmatpush3.bf16.msra.mxu1 %v14383_v60  ;;  %v14440_v60 = vpack.c.bf16 %v9040_v32, %v9039_v51 }
0x181e   :  { %14385 = vmatprep.subr.bf16.mxu1 %v15800_v0 }
0x1821   :  { %14387 = vmatpush3.bf16.msra.mxu1 %v14386_v54  ;;  %v14443_v54 = vpack.c.bf16 %v9042_v18, %v9041_v36  ;;  %v9482_v18 = vld [vmem:[#allocation43 + $0x90] sm:$0xff] }
0x1822   :  { %14391 = vmatprep.subr.bf16.mxu1 %v15800_v0 }
0x1824   :  { %12529 = vmatmul.mubr.f32.vlgmr.msra.gmra.mrb[10].mxu1 %v8536_v58 }
0x1825   :  { %14393 = vmatpush3.bf16.msra.mxu1 %v14392_v53  ;;  %12572 = vmatprep.mubr.msk.f32.mxu1 %vm15802_vm2, %v15801_v28  ;;  %v14446_v53 = vpack.c.bf16 %v9044_v12, %v9043_v57  ;;  %v10734_v57 = vld [vmem:[%s18120_s22 + $0x10] sm:$0xff] }
0x1826   :  { %14394 = vmatprep.subr.bf16.mxu1 %v15800_v0 }
0x1829   :  { %14396 = vmatpush3.bf16.msra.mxu1 %v14395_v31  ;;  %v14449_v31 = vpack.c.bf16 %v9046_v6, %v9045_v1  ;;  %v9486_v6 = vld [vmem:[#allocation43 + $0xb0] sm:$0xff] }
0x182a   :  { %14397 = vmatprep.subr.bf16.mxu1 %v15800_v0 }
0x182d   :  { %14399 = vmatpush3.bf16.msra.mxu1 %v14398_v35  ;;  %v14452_v35 = vpack.c.bf16 %v9048_v40, %v9047_v45  ;;  %v9488_v40 = vld [vmem:[#allocation43 + $0xc0] sm:$0xff] }
0x182e   :  { %14400 = vmatprep.subr.bf16.mxu1 %v15800_v0 }
0x1831   :  { %14402 = vmatpush3.bf16.msra.mxu1 %v14401_v14  ;;  %v14455_v14 = vpack.c.bf16 %v9050_v29, %v9049_v41  ;;  %v9490_v29 = vld [vmem:[#allocation43 + $0xd0] sm:$0xff] }
0x1832   :  { %14403 = vmatprep.subr.bf16.mxu1 %v15800_v0 }
0x1835   :  { %14405 = vmatpush3.bf16.msra.mxu1 %v14404_v39  ;;  %v14458_v39 = vpack.c.bf16 %v9052_v63, %v9051_v20  ;;  %v9492_v63 = vld [vmem:[#allocation43 + $0xe0] sm:$0xff] }
0x1836   :  { %14406 = vmatprep.subr.bf16.mxu1 %v15800_v0 }
0x1839   :  { %14408 = vmatpush3.bf16.msra.mxu1 %v14407_v3  ;;  %v14461_v3 = vpack.c.bf16 %v9054_v23, %v9053_v34  ;;  %v9494_v23 = vld [vmem:[#allocation43 + $0xf0] sm:$0xff] }
0x183a   :  { %14409 = vmatprep.subr.bf16.mxu1 %v15800_v0 }
0x183d   :  { %14411 = vmatpush3.bf16.msra.mxu1 %v14410_v16 }
0x183e   :  { %14412 = vmatprep.subr.bf16.mxu1 %v15800_v0 }
0x1841   :  { %14414 = vmatpush3.bf16.msra.mxu1 %v14413_v52  ;;  %v14464_v52 = vpack.c.bf16 %v9289_v33, %v9288_v5  ;;  %v9463_v33 = vld [vmem:[#allocation43] sm:$0xff] }
0x1842   :  { %12690 = vmatprep.subr.mxu1 %v15801_v28 }
0x1844   :  { %12573 = vmatmul.mubr.f32.vlgmr.msra.gmra.mrb[10].mxu1 %v17872_v49  ;;  %v14419_v49 = vpack.c.bf16 %v9059_v48, %v9058_v27  ;;  %v9297_v27 = vld [vmem:[#allocation40 + $0x148] sm:$0xff] }
0x1845   :  { %12692 = vmatprep.mubr.msk.f32.mxu1 %vm15802_vm2, %v15801_v28 }
0x1917   :  { %v8946_v10 = vpop.f32.mrb[10].mxu1 }
0x1918   :  { %v8956_v37 = vmul.f32 %v10726_v46, %v8946_v10  ;;  %v12574_v7 = vpop.f32.mrb[11].mxu1  ;;  %v9290_v46 = vld [vmem:[#allocation40 + $0x110] sm:$0xff]  ;;  %v9291_v10 = vld [vmem:[#allocation40 + $0x118] sm:$0xff] }
0x1919   :  { %v9293_v7 = vld [vmem:[#allocation40 + $0x128] sm:$0xff] }
0x191a   :  { %v8962_v43 = vadd.f32 %v10727_v17, %v8956_v37  ;;  %v14467_v17 = vpack.c.bf16 %v9291_v10, %v9290_v46  ;;  %v9292_v37 = vld [vmem:[#allocation40 + $0x120] sm:$0xff] }
0x191b   :  { %v14470_v15 = vpack.c.bf16 %v9293_v7, %v9292_v37  ;;  %v9467_v10 = vld [vmem:[#allocation43 + $0x20] sm:$0xff]  ;;  %v9469_v7 = vld [vmem:[#allocation43 + $0x30] sm:$0xff] }
0x191c   :  { %v17897_v58 = vmax.f32 %v8962_v43, 0.0  ;;  %v9295_v43 = vld [vmem:[#allocation40 + $0x138] sm:$0xff] }
0x191e   :  { %12576 = vmatpush3.msra.mxu0 %v17897_v58 }
0x191f   :  { %12578 = vmatmul.mubr.msk.f32.vlgmr.msra.gmra.mrb[212].mxu0 %vm8965_vm4, %v8964_v25  ;;  %14415 = vmatprep.subr.bf16.mxu0 %v15800_v0  ;;  %v14473_v25 = vpack.c.bf16 %v9295_v43, %v9294_v47  ;;  %v9471_v43 = vld [vmem:[#allocation43 + $0x40] sm:$0xff] }
0x1920   :  { %14417 = vmatpush3.bf16.msra.mxu0 %v14416_v11  ;;  %12612 = vmatprep.mubr.msk.f32.mxu0 %vm15802_vm2, %v15801_v28  ;;  %v9296_v11 = vld [vmem:[#allocation40 + $0x140] sm:$0xff] }
0x1921   :  { %14418 = vmatprep.subr.bf16.mxu0 %v15800_v0  ;;  %v14476_v48 = vpack.c.bf16 %v9297_v27, %v9296_v11  ;;  %v9473_v27 = vld [vmem:[#allocation43 + $0x50] sm:$0xff] }
0x1924   :  { %14420 = vmatpush3.bf16.msra.mxu0 %v14419_v49  ;;  %v9298_v49 = vld [vmem:[#allocation40 + $0x150] sm:$0xff] }
0x1925   :  { %14421 = vmatprep.subr.bf16.mxu0 %v15800_v0  ;;  %v14479_v24 = vpack.c.bf16 %v9299_v42, %v9298_v49  ;;  %v9475_v42 = vld [vmem:[#allocation43 + $0x60] sm:$0xff] }
0x1928   :  { %14423 = vmatpush3.bf16.msra.mxu0 %v14422_v4  ;;  %v9300_v4 = vld [vmem:[#allocation40 + $0x160] sm:$0xff] }
0x1929   :  { %14424 = vmatprep.subr.bf16.mxu0 %v15800_v0  ;;  %v14482_v26 = vpack.c.bf16 %v9301_v9, %v9300_v4  ;;  %v9477_v9 = vld [vmem:[#allocation43 + $0x70] sm:$0xff] }
0x192c   :  { %14426 = vmatpush3.bf16.msra.mxu0 %v14425_v21  ;;  %v9302_v21 = vld [vmem:[#allocation40 + $0x170] sm:$0xff] }
0x192d   :  { %14427 = vmatprep.subr.bf16.mxu0 %v15800_v0  ;;  %v14485_v44 = vpack.c.bf16 %v9303_v13, %v9302_v21  ;;  %v9712_v13 = vld [vmem:[#allocation43 + $0x100] sm:$0xff] }
0x1930   :  { %14429 = vmatpush3.bf16.msra.mxu0 %v14428_v2 }
0x1931   :  { %14430 = vmatprep.subr.bf16.mxu0 %v15800_v0 }
0x1934   :  { %14432 = vmatpush3.bf16.msra.mxu0 %v14431_v38 }
0x1935   :  { %14433 = vmatprep.subr.bf16.mxu0 %v15800_v0 }
0x1938   :  { %14435 = vmatpush3.bf16.msra.mxu0 %v14434_v56 }
0x1939   :  { %14436 = vmatprep.subr.bf16.mxu0 %v15800_v0 }
0x193c   :  { %14438 = vmatpush3.bf16.msra.mxu0 %v14437_v61  ;;  %v9481_v61 = vld [vmem:[#allocation43 + $0x88] sm:$0xff] }
0x193d   :  { %14439 = vmatprep.subr.bf16.mxu0 %v15800_v0  ;;  %v14488_v36 = vpack.c.bf16 %v9481_v61, %v9480_v30  ;;  %v9717_v30 = vld [vmem:[#allocation43 + $0x128] sm:$0xff] }
0x193f   :  { %12613 = vmatmul.mubr.f32.vlgmr.msra.gmra.mrb[214].mxu0 %v17897_v58 }
0x1940   :  { %14441 = vmatpush3.bf16.msra.mxu0 %v14440_v60  ;;  %12647 = vmatprep.mubr.msk.f32.mxu0 %vm15802_vm2, %v15801_v28  ;;  %v9389_v60 = vld [vmem:[%s18120_s22] sm:$0xff] }
0x1941   :  { %14442 = vmatprep.subr.bf16.mxu0 %v15800_v0 }
0x1944   :  { %14444 = vmatpush3.bf16.msra.mxu0 %v14443_v54  ;;  %v9483_v54 = vld [vmem:[#allocation43 + $0x98] sm:$0xff] }
0x1945   :  { %14445 = vmatprep.subr.bf16.mxu0 %v15800_v0  ;;  %v14491_v12 = vpack.c.bf16 %v9483_v54, %v9482_v18  ;;  %v9720_v54 = vld [vmem:[#allocation43 + $0x140] sm:$0xff] }
0x1948   :  { %14447 = vmatpush3.bf16.msra.mxu0 %v14446_v53  ;;  %v9485_v53 = vld [vmem:[#allocation43 + $0xa8] sm:$0xff] }
0x1949   :  { %14448 = vmatprep.subr.bf16.mxu0 %v15800_v0 }
0x194c   :  { %14450 = vmatpush3.bf16.msra.mxu0 %v14449_v31  ;;  %v9487_v31 = vld [vmem:[#allocation43 + $0xb8] sm:$0xff] }
0x194d   :  { %14451 = vmatprep.subr.bf16.mxu0 %v15800_v0  ;;  %v14497_v45 = vpack.c.bf16 %v9487_v31, %v9486_v6  ;;  %v9724_v6 = vld [vmem:[#allocation43 + $0x160] sm:$0xff]  ;;  %v9725_v31 = vld [vmem:[#allocation43 + $0x168] sm:$0xff] }
0x1950   :  { %14453 = vmatpush3.bf16.msra.mxu0 %v14452_v35  ;;  %v9489_v35 = vld [vmem:[#allocation43 + $0xc8] sm:$0xff] }
0x1951   :  { %14454 = vmatprep.subr.bf16.mxu0 %v15800_v0  ;;  %v14500_v41 = vpack.c.bf16 %v9489_v35, %v9488_v40  ;;  %v9726_v40 = vld [vmem:[#allocation43 + $0x170] sm:$0xff]  ;;  %v9727_v35 = vld [vmem:[#allocation43 + $0x178] sm:$0xff] }
0x1954   :  { %14456 = vmatpush3.bf16.msra.mxu0 %v14455_v14  ;;  %v9491_v14 = vld [vmem:[#allocation43 + $0xd8] sm:$0xff] }
0x1955   :  { %14457 = vmatprep.subr.bf16.mxu0 %v15800_v0  ;;  %v14503_v20 = vpack.c.bf16 %v9491_v14, %v9490_v29  ;;  %v10736_v29 = vld [vmem:[#allocation45] ss:$0 sm:$0xff] }
0x1958   :  { %14459 = vmatpush3.bf16.msra.mxu0 %v14458_v39  ;;  %v9493_v39 = vld [vmem:[#allocation43 + $0xe8] sm:$0xff] }
0x1959   :  { %14460 = vmatprep.subr.bf16.mxu0 %v15800_v0  ;;  %v14506_v34 = vpack.c.bf16 %v9493_v39, %v9492_v63 }
0x195c   :  { %14462 = vmatpush3.bf16.msra.mxu0 %v14461_v3  ;;  %v9495_v3 = vld [vmem:[#allocation43 + $0xf8] sm:$0xff] }
0x195d   :  { %12650 = vmatprep.subr.mxu0 %v15801_v28  ;;  %v14509_v5 = vpack.c.bf16 %v9495_v3, %v9494_v23 }
0x19f2   :  { %v9035_v16 = vpop.f32.mrb[212].mxu0 }
0x19f3   :  { %12648 = vmatmul.mubr.f32.vlgmr.msra.gmra.mrb[214].mxu0 %v9035_v16  ;;  %v12579_v50 = vpop.f32.mrb[213].mxu0  ;;  %v9464_v16 = vld [vmem:[#allocation43 + $0x8] sm:$0xff] }
0x19f4   :  { %12651 = vmatpush3.msra.mxu0 %v17897_v58  ;;  %12652 = vmatprep.mubr.msk.f32.mxu0 %vm15802_vm2, %v15801_v28  ;;  %v14512_v50 = vpack.c.bf16 %v9464_v16, %v9463_v33  ;;  %v9979_v33 = vld [vmem:[#allocation46 + $0x80] sm:$0xff]  ;;  %v9980_v16 = vld [vmem:[#allocation46 + $0x88] sm:$0xff] }
0x19f5   :  { %14463 = vmatprep.subr.bf16.mxu0 %v15800_v0 }
0x19f7   :  { %12653 = vmatmul.mubr.msk.f32.vlgmr.msra.gmra.mrb[216].mxu0 %vm8965_vm4, %v10729_v59  ;;  %v9465_v59 = vld [vmem:[#allocation43 + $0x10] sm:$0xff] }
0x19f8   :  { %14465 = vmatpush3.bf16.msra.mxu0 %v14464_v52  ;;  %12687 = vmatprep.mubr.msk.f32.mxu0 %vm15802_vm2, %v15801_v28  ;;  %v9466_v52 = vld [vmem:[#allocation43 + $0x18] sm:$0xff] }
0x19f9   :  { %14466 = vmatprep.subr.bf16.mxu0 %v15800_v0  ;;  %v14515_v46 = vpack.c.bf16 %v9466_v52, %v9465_v59  ;;  %v14560_v59 = vpack.c.bf16 %v9980_v16, %v9979_v33  ;;  %v9982_v52 = vld [vmem:[#allocation46 + $0x98] sm:$0xff]  ;;  %v10217_v16 = vld [vmem:[#allocation46 + $0x130] sm:$0xff] }
0x19fc   :  { %14468 = vmatpush3.bf16.msra.mxu0 %v14467_v17  ;;  %v9468_v17 = vld [vmem:[#allocation43 + $0x28] sm:$0xff] }
0x19fd   :  { %14469 = vmatprep.subr.bf16.mxu0 %v15800_v0  ;;  %v14518_v37 = vpack.c.bf16 %v9468_v17, %v9467_v10  ;;  %v9983_v10 = vld [vmem:[#allocation46 + $0xa0] sm:$0xff]  ;;  %v9984_v17 = vld [vmem:[#allocation46 + $0xa8] sm:$0xff] }
0x1a00   :  { %14471 = vmatpush3.bf16.msra.mxu0 %v14470_v15  ;;  %v9470_v15 = vld [vmem:[#allocation43 + $0x38] sm:$0xff] }
0x1a01   :  { %14472 = vmatprep.subr.bf16.mxu0 %v15800_v0  ;;  %v14521_v47 = vpack.c.bf16 %v9470_v15, %v9469_v7  ;;  %v9985_v7 = vld [vmem:[#allocation46 + $0xb0] sm:$0xff]  ;;  %v9986_v15 = vld [vmem:[#allocation46 + $0xb8] sm:$0xff] }
0x1a04   :  { %14474 = vmatpush3.bf16.msra.mxu0 %v14473_v25  ;;  %v9472_v25 = vld [vmem:[#allocation43 + $0x48] sm:$0xff] }
0x1a05   :  { %14475 = vmatprep.subr.bf16.mxu0 %v15800_v0  ;;  %v14524_v11 = vpack.c.bf16 %v9472_v25, %v9471_v43  ;;  %v9987_v43 = vld [vmem:[#allocation46 + $0xc0] sm:$0xff]  ;;  %v9988_v25 = vld [vmem:[#allocation46 + $0xc8] sm:$0xff] }
0x1a08   :  { %14477 = vmatpush3.bf16.msra.mxu0 %v14476_v48  ;;  %v9474_v48 = vld [vmem:[#allocation43 + $0x58] sm:$0xff] }
0x1a09   :  { %14478 = vmatprep.subr.bf16.mxu0 %v15800_v0  ;;  %v14527_v49 = vpack.c.bf16 %v9474_v48, %v9473_v27  ;;  %v9989_v27 = vld [vmem:[#allocation46 + $0xd0] sm:$0xff]  ;;  %v9990_v48 = vld [vmem:[#allocation46 + $0xd8] sm:$0xff] }
0x1a0c   :  { %14480 = vmatpush3.bf16.msra.mxu0 %v14479_v24  ;;  %v9476_v24 = vld [vmem:[#allocation43 + $0x68] sm:$0xff] }
0x1a0d   :  { %14481 = vmatprep.subr.bf16.mxu0 %v15800_v0  ;;  %v14530_v4 = vpack.c.bf16 %v9476_v24, %v9475_v42  ;;  %v9991_v42 = vld [vmem:[#allocation46 + $0xe0] sm:$0xff]  ;;  %v9992_v24 = vld [vmem:[#allocation46 + $0xe8] sm:$0xff] }
0x1a10   :  { %14483 = vmatpush3.bf16.msra.mxu0 %v14482_v26  ;;  %v9478_v26 = vld [vmem:[#allocation43 + $0x78] sm:$0xff] }
0x1a11   :  { %14484 = vmatprep.subr.bf16.mxu0 %v15800_v0  ;;  %v14533_v21 = vpack.c.bf16 %v9478_v26, %v9477_v9  ;;  %v9993_v9 = vld [vmem:[#allocation46 + $0xf0] sm:$0xff]  ;;  %v9994_v26 = vld [vmem:[#allocation46 + $0xf8] sm:$0xff] }
0x1a14   :  { %14486 = vmatpush3.bf16.msra.mxu0 %v14485_v44  ;;  %v9713_v44 = vld [vmem:[#allocation43 + $0x108] sm:$0xff] }
0x1a15   :  { %12765 = vmatprep.subr.mxu0 %v15801_v28 }
0x1aca   :  { %v9283_v2 = vpop.f32.mrb[216].mxu0 }
0x1acb   :  { %12688 = vmatmul.mubr.f32.vlgmr.msra.gmra.mrb[214].mxu0 %v9283_v2  ;;  %v12654_v62 = vpop.f32.mrb[217].mxu0  ;;  %v14536_v2 = vpack.c.bf16 %v9713_v44, %v9712_v13  ;;  %v9887_v13 = vld [vmem:[#allocation46] sm:$0xff]  ;;  %v9888_v44 = vld [vmem:[#allocation46 + $0x8] sm:$0xff] }
0x1acc   :  { %12767 = vmatprep.mubr.msk.f32.mxu0 %vm15802_vm2, %v15801_v28  ;;  %v9714_v62 = vld [vmem:[#allocation43 + $0x110] sm:$0xff] }
0x1b9e   :  { %v9370_v38 = vpop.f32.mrb[214].mxu0 }
0x1b9f   :  { %v9380_v55 = vmul.f32 %v10731_v22, %v9370_v38  ;;  %v12689_v56 = vpop.f32.mrb[215].mxu0  ;;  %v9715_v22 = vld [vmem:[#allocation43 + $0x118] sm:$0xff] }
0x1ba1   :  { %v9386_v8 = vadd.f32 %v10732_v19, %v9380_v55  ;;  %v14539_v55 = vpack.c.bf16 %v9715_v22, %v9714_v62  ;;  %v14584_v22 = vpack.c.bf16 %v9888_v44, %v9887_v13  ;;  %v10318_v13 = vld [vmem:[#allocation49 + $0x38] sm:$0xff] }
0x1ba3   :  { %v9387_v51 = vadd.f32 %v9386_v8, %v17897_v58  ;;  %v9484_v58 = vld [vmem:[#allocation43 + $0xa0] sm:$0xff] }
0x1ba4   :  { %v14494_v1 = vpack.c.bf16 %v9485_v53, %v9484_v58  ;;  %v9716_v8 = vld [vmem:[#allocation43 + $0x120] sm:$0xff]  ;;  %v9722_v58 = vld [vmem:[#allocation43 + $0x150] sm:$0xff]  ;;  %v9723_v53 = vld [vmem:[#allocation43 + $0x158] sm:$0xff] }
0x1ba5   :  { %v17943_v32 = vmax.f32 %v9387_v51, 0.0  ;;  %v14542_v51 = vpack.c.bf16 %v9717_v30, %v9716_v8  ;;  %v9891_v30 = vld [vmem:[#allocation46 + $0x20] sm:$0xff] }
0x1ba7   :  { %12691 = vmatpush3.msra.mxu1 %v17943_v32  ;;  %12766 = vmatpush3.msra.mxu0 %v17943_v32 }
0x1ba8   :  { %12693 = vmatmul.mubr.msk.f32.vlgmr.msra.gmra.mrb[12].mxu1 %vm8965_vm4, %v9389_v60  ;;  %14487 = vmatprep.subr.bf16.mxu1 %v15800_v0  ;;  %v9718_v60 = vld [vmem:[#allocation43 + $0x130] sm:$0xff] }
0x1ba9   :  { %14489 = vmatpush3.bf16.msra.mxu1 %v14488_v36  ;;  %12727 = vmatprep.mubr.msk.f32.mxu1 %vm15802_vm2, %v15801_v28  ;;  %v9719_v36 = vld [vmem:[#allocation43 + $0x138] sm:$0xff] }
0x1baa   :  { %14490 = vmatprep.subr.bf16.mxu1 %v15800_v0  ;;  %12768 = vmatmul.mubr.msk.f32.vlgmr.msra.gmra.mrb[218].mxu0 %vm8965_vm4, %v10734_v57  ;;  %v14545_v18 = vpack.c.bf16 %v9719_v36, %v9718_v60  ;;  %v9721_v57 = vld [vmem:[#allocation43 + $0x148] sm:$0xff]  ;;  %v9893_v60 = vld [vmem:[#allocation46 + $0x30] sm:$0xff]  ;;  %v9894_v36 = vld [vmem:[#allocation46 + $0x38] sm:$0xff] }
0x1bab   :  { %12805 = vmatprep.subr.mxu0 %v15801_v28  ;;  %12807 = vmatprep.mubr.msk.f32.mxu0 %vm15802_vm2, %v15801_v28 }
0x1bad   :  { %14492 = vmatpush3.bf16.msra.mxu1 %v14491_v12  ;;  %v14548_v12 = vpack.c.bf16 %v9721_v57, %v9720_v54  ;;  %v9895_v54 = vld [vmem:[#allocation46 + $0x40] sm:$0xff]  ;;  %v9896_v57 = vld [vmem:[#allocation46 + $0x48] sm:$0xff] }
0x1bae   :  { %14493 = vmatprep.subr.bf16.mxu1 %v15800_v0 }
0x1bb1   :  { %14495 = vmatpush3.bf16.msra.mxu1 %v14494_v1  ;;  %v14551_v1 = vpack.c.bf16 %v9723_v53, %v9722_v58  ;;  %v9897_v58 = vld [vmem:[#allocation46 + $0x50] sm:$0xff]  ;;  %v9898_v53 = vld [vmem:[#allocation46 + $0x58] sm:$0xff] }
0x1bb2   :  { %14496 = vmatprep.subr.bf16.mxu1 %v15800_v0 }
0x1bb5   :  { %14498 = vmatpush3.bf16.msra.mxu1 %v14497_v45  ;;  %v14554_v45 = vpack.c.bf16 %v9725_v31, %v9724_v6  ;;  %v9899_v6 = vld [vmem:[#allocation46 + $0x60] sm:$0xff]  ;;  %v9900_v31 = vld [vmem:[#allocation46 + $0x68] sm:$0xff] }
0x1bb6   :  { %14499 = vmatprep.subr.bf16.mxu1 %v15800_v0 }
0x1bb9   :  { %14501 = vmatpush3.bf16.msra.mxu1 %v14500_v41  ;;  %v14557_v41 = vpack.c.bf16 %v9727_v35, %v9726_v40  ;;  %v9901_v40 = vld [vmem:[#allocation46 + $0x70] sm:$0xff]  ;;  %v9902_v35 = vld [vmem:[#allocation46 + $0x78] sm:$0xff] }
0x1bba   :  { %14502 = vmatprep.subr.bf16.mxu1 %v15800_v0 }
0x1bbd   :  { %14504 = vmatpush3.bf16.msra.mxu1 %v14503_v20  ;;  %v10737_v20 = vld [vmem:[#allocation45 + $0x1] ss:$0 sm:$0xff] }
0x1bbe   :  { %14505 = vmatprep.subr.bf16.mxu1 %v15800_v0 }
0x1bc1   :  { %14507 = vmatpush3.bf16.msra.mxu1 %v14506_v34 }
0x1bc2   :  { %14508 = vmatprep.subr.bf16.mxu1 %v15800_v0 }
0x1bc5   :  { %14510 = vmatpush3.bf16.msra.mxu1 %v14509_v5  ;;  %v9813_v5 = vld [vmem:[%s18121_s6] sm:$0xff] }
0x1bc6   :  { %14511 = vmatprep.subr.bf16.mxu1 %v15800_v0 }
0x1bc8   :  { %12728 = vmatmul.mubr.f32.vlgmr.msra.gmra.mrb[14].mxu1 %v17943_v32 }
0x1bc9   :  { %14513 = vmatpush3.bf16.msra.mxu1 %v14512_v50  ;;  %12762 = vmatprep.mubr.msk.f32.mxu1 %vm15802_vm2, %v15801_v28  ;;  %v10739_v50 = vld [vmem:[%s18121_s6 + $0x8] sm:$0xff] }
0x1bca   :  { %14514 = vmatprep.subr.bf16.mxu1 %v15800_v0 }
0x1bcd   :  { %14516 = vmatpush3.bf16.msra.mxu1 %v14515_v46 }
0x1bce   :  { %14517 = vmatprep.subr.bf16.mxu1 %v15800_v0 }
0x1bd1   :  { %14519 = vmatpush3.bf16.msra.mxu1 %v14518_v37  ;;  %v14566_v37 = vpack.c.bf16 %v9984_v17, %v9983_v10  ;;  %v10222_v10 = vld [vmem:[#allocation46 + $0x158] sm:$0xff] }
0x1bd2   :  { %14520 = vmatprep.subr.bf16.mxu1 %v15800_v0 }
0x1bd5   :  { %14522 = vmatpush3.bf16.msra.mxu1 %v14521_v47  ;;  %v14569_v47 = vpack.c.bf16 %v9986_v15, %v9985_v7  ;;  %v10224_v7 = vld [vmem:[#allocation46 + $0x168] sm:$0xff] }
0x1bd6   :  { %14523 = vmatprep.subr.bf16.mxu1 %v15800_v0 }
0x1bd9   :  { %14525 = vmatpush3.bf16.msra.mxu1 %v14524_v11  ;;  %v14572_v11 = vpack.c.bf16 %v9988_v25, %v9987_v43  ;;  %v10226_v43 = vld [vmem:[#allocation46 + $0x178] sm:$0xff] }
0x1bda   :  { %14526 = vmatprep.subr.bf16.mxu1 %v15800_v0 }
0x1bdd   :  { %14528 = vmatpush3.bf16.msra.mxu1 %v14527_v49  ;;  %v14575_v49 = vpack.c.bf16 %v9990_v48, %v9989_v27  ;;  %v10312_v27 = vld [vmem:[#allocation49 + $0x8] sm:$0xff]  ;;  %v10313_v48 = vld [vmem:[#allocation49 + $0x10] sm:$0xff] }
0x1bde   :  { %14529 = vmatprep.subr.bf16.mxu1 %v15800_v0 }
0x1be1   :  { %14531 = vmatpush3.bf16.msra.mxu1 %v14530_v4  ;;  %v14578_v4 = vpack.c.bf16 %v9992_v24, %v9991_v42  ;;  %v10314_v42 = vld [vmem:[#allocation49 + $0x18] sm:$0xff] }
0x1be2   :  { %14532 = vmatprep.subr.bf16.mxu1 %v15800_v0  ;;  %v14635_v24 = vpack.c.bf16 %v10314_v42, %v10313_v48 }
0x1be5   :  { %14534 = vmatpush3.bf16.msra.mxu1 %v14533_v21  ;;  %v14581_v21 = vpack.c.bf16 %v9994_v26, %v9993_v9  ;;  %v10316_v9 = vld [vmem:[#allocation49 + $0x28] sm:$0xff] }
0x1be6   :  { %14535 = vmatprep.subr.bf16.mxu1 %v15800_v0 }
0x1c7b   :  { %v9459_v38 = vpop.f32.mrb[12].mxu1 }
0x1c7c   :  { %12763 = vmatmul.mubr.f32.vlgmr.msra.gmra.mrb[14].mxu1 %v9459_v38  ;;  %v12694_v19 = vpop.f32.mrb[13].mxu1  ;;  %v9889_v38 = vld [vmem:[#allocation46 + $0x10] sm:$0xff] }
0x1c7d   :  { %14537 = vmatpush3.bf16.msra.mxu1 %v14536_v2  ;;  %v9707_v56 = vpop.f32.mrb[218].mxu0  ;;  %12802 = vmatprep.mubr.msk.f32.mxu1 %vm15802_vm2, %v15801_v28  ;;  %v9890_v19 = vld [vmem:[#allocation46 + $0x18] sm:$0xff] }
0x1c7e   :  { %14538 = vmatprep.subr.bf16.mxu1 %v15800_v0  ;;  %v12769_v61 = vpop.f32.mrb[219].mxu0  ;;  %v14587_v8 = vpack.c.bf16 %v9890_v19, %v9889_v38  ;;  %v10321_v38 = vld [vmem:[#allocation49 + $0x50] sm:$0xff]  ;;  %v10322_v19 = vld [vmem:[#allocation49 + $0x58] sm:$0xff] }
0x1c7f   :  { %v9892_v61 = vld [vmem:[#allocation46 + $0x28] sm:$0xff] }
0x1c81   :  { %14540 = vmatpush3.bf16.msra.mxu1 %v14539_v55 }
0x1c82   :  { %14541 = vmatprep.subr.bf16.mxu1 %v15800_v0 }
0x1c85   :  { %14543 = vmatpush3.bf16.msra.mxu1 %v14542_v51  ;;  %v14590_v51 = vpack.c.bf16 %v9892_v61, %v9891_v30  ;;  %v10323_v30 = vld [vmem:[#allocation49 + $0x60] sm:$0xff]  ;;  %v10324_v61 = vld [vmem:[#allocation49 + $0x68] sm:$0xff] }
0x1c86   :  { %14544 = vmatprep.subr.bf16.mxu1 %v15800_v0 }
0x1c89   :  { %14546 = vmatpush3.bf16.msra.mxu1 %v14545_v18  ;;  %v14593_v18 = vpack.c.bf16 %v9894_v36, %v9893_v60  ;;  %v10325_v60 = vld [vmem:[#allocation49 + $0x70] sm:$0xff]  ;;  %v10326_v36 = vld [vmem:[#allocation49 + $0x78] sm:$0xff] }
0x1c8a   :  { %14547 = vmatprep.subr.bf16.mxu1 %v15800_v0 }
0x1c8d   :  { %14549 = vmatpush3.bf16.msra.mxu1 %v14548_v12  ;;  %v14596_v12 = vpack.c.bf16 %v9896_v57, %v9895_v54  ;;  %v10743_v54 = vld [vmem:[#allocation48] ss:$0 sm:$0xff] }
0x1c8e   :  { %14550 = vmatprep.subr.bf16.mxu1 %v15800_v0 }
0x1c91   :  { %14552 = vmatpush3.bf16.msra.mxu1 %v14551_v1  ;;  %v14599_v1 = vpack.c.bf16 %v9898_v53, %v9897_v58 }
0x1c92   :  { %14553 = vmatprep.subr.bf16.mxu1 %v15800_v0 }
0x1c95   :  { %14555 = vmatpush3.bf16.msra.mxu1 %v14554_v45  ;;  %v14602_v45 = vpack.c.bf16 %v9900_v31, %v9899_v6  ;;  %v10745_v31 = vld [vmem:[%s16016_s8] ss:$0 sm:$0xff] }
0x1c96   :  { %14556 = vmatprep.subr.bf16.mxu1 %v15800_v0 }
0x1c99   :  { %14558 = vmatpush3.bf16.msra.mxu1 %v14557_v41  ;;  %v14605_v41 = vpack.c.bf16 %v9902_v35, %v9901_v40  ;;  %v10746_v40 = vld [vmem:[%s16016_s8 + $0x1] ss:$0 sm:$0xff] }
0x1c9a   :  { %14631 = vmatprep.subr.bf16.mxu1 %v15800_v0 }
0x1c9c   :  { %12803 = vmatmul.mubr.f32.vlgmr.msra.gmra.mrb[14].mxu1 %v9707_v56 }
0x1c9d   :  { %12957 = vmatprep.mubr.msk.f32.mxu1 %vm15802_vm2, %v15801_v28 }
0x1d6f   :  { %v9794_v14 = vpop.f32.mrb[14].mxu1 }
0x1d70   :  { %v9804_v63 = vmul.f32 %v10736_v29, %v9794_v14  ;;  %v12804_v39 = vpop.f32.mrb[15].mxu1  ;;  %v10211_v29 = vld [vmem:[#allocation46 + $0x100] sm:$0xff]  ;;  %v10212_v14 = vld [vmem:[#allocation46 + $0x108] sm:$0xff] }
0x1d71   :  { %v10213_v39 = vld [vmem:[#allocation46 + $0x110] sm:$0xff] }
0x1d72   :  { %v9810_v34 = vadd.f32 %v10737_v20, %v9804_v63  ;;  %v10741_v20 = vld [vmem:[%s18121_s6 + $0x10] sm:$0xff]  ;;  %v14608_v63 = vpack.c.bf16 %v10212_v14, %v10211_v29 }
0x1d74   :  { %v9811_v23 = vadd.f32 %v9810_v34, %v17943_v32  ;;  %v9981_v32 = vld [vmem:[#allocation46 + $0x90] sm:$0xff]  ;;  %v10214_v34 = vld [vmem:[#allocation46 + $0x118] sm:$0xff] }
0x1d75   :  { %v14563_v46 = vpack.c.bf16 %v9982_v52, %v9981_v32  ;;  %v10219_v32 = vld [vmem:[#allocation46 + $0x140] sm:$0xff]  ;;  %v10220_v52 = vld [vmem:[#allocation46 + $0x148] sm:$0xff] }
0x1d76   :  { %v17989_v3 = vmax.f32 %v9811_v23, 0.0  ;;  %v14611_v23 = vpack.c.bf16 %v10214_v34, %v10213_v39 }
0x1d78   :  { %12806 = vmatpush3.msra.mxu0 %v17989_v3 }
0x1d79   :  { %12808 = vmatmul.mubr.msk.f32.vlgmr.msra.gmra.mrb[220].mxu0 %vm8965_vm4, %v9813_v5  ;;  %12810 = vmatprep.subr.mxu0 %v15801_v28  ;;  %v10215_v5 = vld [vmem:[#allocation46 + $0x120] sm:$0xff] }
0x1d7a   :  { %12811 = vmatpush3.msra.mxu0 %v17989_v3  ;;  %12812 = vmatprep.mubr.msk.f32.mxu0 %vm15802_vm2, %v15801_v28 }
0x1d7b   :  { %14559 = vmatprep.subr.bf16.mxu0 %v15800_v0 }
0x1d7d   :  { %12813 = vmatmul.mubr.msk.f32.vlgmr.msra.gmra.mrb[222].mxu0 %vm8965_vm4, %v10739_v50  ;;  %v10218_v50 = vld [vmem:[#allocation46 + $0x138] sm:$0xff] }
0x1d7e   :  { %14561 = vmatpush3.bf16.msra.mxu0 %v14560_v59  ;;  %12847 = vmatprep.mubr.msk.f32.mxu0 %vm15802_vm2, %v15801_v28  ;;  %v14617_v59 = vpack.c.bf16 %v10218_v50, %v10217_v16 }
0x1d7f   :  { %14562 = vmatprep.subr.bf16.mxu0 %v15800_v0 }
0x1d82   :  { %14564 = vmatpush3.bf16.msra.mxu0 %v14563_v46  ;;  %v14620_v46 = vpack.c.bf16 %v10220_v52, %v10219_v32 }
0x1d83   :  { %14565 = vmatprep.subr.bf16.mxu0 %v15800_v0 }
0x1d86   :  { %14567 = vmatpush3.bf16.msra.mxu0 %v14566_v37  ;;  %v10223_v37 = vld [vmem:[#allocation46 + $0x160] sm:$0xff] }
0x1d87   :  { %14568 = vmatprep.subr.bf16.mxu0 %v15800_v0  ;;  %v14626_v15 = vpack.c.bf16 %v10224_v7, %v10223_v37 }
0x1d8a   :  { %14570 = vmatpush3.bf16.msra.mxu0 %v14569_v47  ;;  %v10225_v47 = vld [vmem:[#allocation46 + $0x170] sm:$0xff] }
0x1d8b   :  { %14571 = vmatprep.subr.bf16.mxu0 %v15800_v0  ;;  %v14629_v25 = vpack.c.bf16 %v10226_v43, %v10225_v47 }
0x1d8e   :  { %14573 = vmatpush3.bf16.msra.mxu0 %v14572_v11  ;;  %v10311_v11 = vld [vmem:[#allocation49] sm:$0xff] }
0x1d8f   :  { %14574 = vmatprep.subr.bf16.mxu0 %v15800_v0 }
0x1d92   :  { %14576 = vmatpush3.bf16.msra.mxu0 %v14575_v49  ;;  %v14632_v49 = vpack.c.bf16 %v10312_v27, %v10311_v11 }
0x1d93   :  { %14577 = vmatprep.subr.bf16.mxu0 %v15800_v0 }
0x1d94   :  { %14633 = vmatpush3.bf16.msra.mxu1 %v14632_v49 }
0x1d95   :  { %14634 = vmatprep.subr.bf16.mxu1 %v15800_v0 }
0x1d96   :  { %14579 = vmatpush3.bf16.msra.mxu0 %v14578_v4  ;;  %v10315_v4 = vld [vmem:[#allocation49 + $0x20] sm:$0xff] }
0x1d97   :  { %14580 = vmatprep.subr.bf16.mxu0 %v15800_v0  ;;  %v14638_v26 = vpack.c.bf16 %v10316_v9, %v10315_v4 }
0x1d98   :  { %14636 = vmatpush3.bf16.msra.mxu1 %v14635_v24 }
0x1d99   :  { %14637 = vmatprep.subr.bf16.mxu1 %v15800_v0 }
0x1d9a   :  { %14582 = vmatpush3.bf16.msra.mxu0 %v14581_v21  ;;  %v10317_v21 = vld [vmem:[#allocation49 + $0x30] sm:$0xff] }
0x1d9b   :  { %14583 = vmatprep.subr.bf16.mxu0 %v15800_v0  ;;  %v14641_v44 = vpack.c.bf16 %v10318_v13, %v10317_v21 }
0x1d9c   :  { %14639 = vmatpush3.bf16.msra.mxu1 %v14638_v26 }
0x1d9d   :  { %14640 = vmatprep.subr.bf16.mxu1 %v15800_v0 }
0x1da0   :  { %14642 = vmatpush3.bf16.msra.mxu1 %v14641_v44 }
0x1da1   :  { %14643 = vmatprep.subr.bf16.mxu1 %v15800_v0 }
0x1e4c   :  { %v9883_v2 = vpop.f32.mrb[220].mxu0 }
0x1e4d   :  { %v12809_v62 = vpop.f32.mrb[221].mxu0 }
0x1e4e   :  { %v10320_v62 = vld [vmem:[#allocation49 + $0x48] sm:$0xff] }
0x1e50   :  { %v9974_v55 = vpop.f32.mrb[222].mxu0 }
0x1e51   :  { %12848 = vmatmul.mubr.f32.vlgmr.msra.gmra.mrb[224].mxu0 %v9974_v55  ;;  %v12814_v56 = vpop.f32.mrb[223].mxu0  ;;  %v14647_v55 = vpack.c.bf16 %v10322_v19, %v10321_v38 }
0x1e52   :  { %14585 = vmatpush3.bf16.msra.mxu0 %v14584_v22  ;;  %12882 = vmatprep.mubr.msk.f32.mxu0 %vm15802_vm2, %v15801_v28 }
0x1e53   :  { %14586 = vmatprep.subr.bf16.mxu0 %v15800_v0 }
0x1e56   :  { %14588 = vmatpush3.bf16.msra.mxu0 %v14587_v8 }
0x1e57   :  { %14589 = vmatprep.subr.bf16.mxu0 %v15800_v0 }
0x1e5a   :  { %14591 = vmatpush3.bf16.msra.mxu0 %v14590_v51  ;;  %v14650_v51 = vpack.c.bf16 %v10324_v61, %v10323_v30 }
0x1e5b   :  { %14592 = vmatprep.subr.bf16.mxu0 %v15800_v0 }
0x1e5e   :  { %14594 = vmatpush3.bf16.msra.mxu0 %v14593_v18  ;;  %v14653_v18 = vpack.c.bf16 %v10326_v36, %v10325_v60 }
0x1e5f   :  { %14595 = vmatprep.subr.bf16.mxu0 %v15800_v0 }
0x1e62   :  { %14597 = vmatpush3.bf16.msra.mxu0 %v14596_v12  ;;  %v10744_v12 = vld [vmem:[#allocation48 + $0x1] ss:$0 sm:$0xff] }
0x1e63   :  { %14598 = vmatprep.subr.bf16.mxu0 %v15800_v0 }
0x1e66   :  { %14600 = vmatpush3.bf16.msra.mxu0 %v14599_v1 }
0x1e67   :  { %14601 = vmatprep.subr.bf16.mxu0 %v15800_v0 }
0x1e6a   :  { %14603 = vmatpush3.bf16.msra.mxu0 %v14602_v45 }
0x1e6b   :  { %14604 = vmatprep.subr.bf16.mxu0 %v15800_v0 }
0x1e6e   :  { %14606 = vmatpush3.bf16.msra.mxu0 %v14605_v41 }
0x1e6f   :  { %12885 = vmatprep.subr.mxu0 %v15801_v28 }
0x1e71   :  { %12883 = vmatmul.mubr.f32.vlgmr.msra.gmra.mrb[224].mxu0 %v9883_v2  ;;  %v10319_v2 = vld [vmem:[#allocation49 + $0x40] sm:$0xff] }
0x1e72   :  { %12886 = vmatpush3.msra.mxu0 %v17989_v3  ;;  %12887 = vmatprep.mubr.msk.f32.mxu0 %vm15802_vm2, %v15801_v28  ;;  %v10216_v3 = vld [vmem:[#allocation46 + $0x128] sm:$0xff]  ;;  %v14644_v22 = vpack.c.bf16 %v10320_v62, %v10319_v2 }
0x1e73   :  { %14607 = vmatprep.subr.bf16.mxu0 %v15800_v0  ;;  %v14614_v33 = vpack.c.bf16 %v10216_v3, %v10215_v5 }
0x1e74   :  { %14645 = vmatpush3.bf16.msra.mxu1 %v14644_v22 }
0x1e75   :  { %12888 = vmatmul.mubr.msk.f32.vlgmr.msra.gmra.mrb[226].mxu0 %vm8965_vm4, %v10741_v20  ;;  %14646 = vmatprep.subr.bf16.mxu1 %v15800_v0 }
0x1e76   :  { %14609 = vmatpush3.bf16.msra.mxu0 %v14608_v63  ;;  %12922 = vmatprep.mubr.msk.f32.mxu0 %vm15802_vm2, %v15801_v28  ;;  %v10221_v28 = vld [vmem:[#allocation46 + $0x150] sm:$0xff] }
0x1e77   :  { %14610 = vmatprep.subr.bf16.mxu0 %v15800_v0  ;;  %v14623_v17 = vpack.c.bf16 %v10222_v10, %v10221_v28 }
0x1e78   :  { %14648 = vmatpush3.bf16.msra.mxu1 %v14647_v55 }
0x1e79   :  { %14649 = vmatprep.subr.bf16.mxu1 %v15800_v0 }
0x1e7a   :  { %14612 = vmatpush3.bf16.msra.mxu0 %v14611_v23 }
0x1e7b   :  { %14613 = vmatprep.subr.bf16.mxu0 %v15800_v0 }
0x1e7c   :  { %14651 = vmatpush3.bf16.msra.mxu1 %v14650_v51 }
0x1e7d   :  { %14652 = vmatprep.subr.bf16.mxu1 %v15800_v0 }
0x1e7e   :  { %14615 = vmatpush3.bf16.msra.mxu0 %v14614_v33 }
0x1e7f   :  { %14616 = vmatprep.subr.bf16.mxu0 %v15800_v0 }
0x1e80   :  { %14654 = vmatpush3.bf16.msra.mxu1 %v14653_v18 }
0x1e82   :  { %14618 = vmatpush3.bf16.msra.mxu0 %v14617_v59 }
0x1e83   :  { %14619 = vmatprep.subr.bf16.mxu0 %v15800_v0 }
0x1e86   :  { %14621 = vmatpush3.bf16.msra.mxu0 %v14620_v46 }
0x1e87   :  { %14622 = vmatprep.subr.bf16.mxu0 %v15800_v0 }
0x1e8a   :  { %14624 = vmatpush3.bf16.msra.mxu0 %v14623_v17 }
0x1e8b   :  { %14625 = vmatprep.subr.bf16.mxu0 %v15800_v0 }
0x1e8e   :  { %14627 = vmatpush3.bf16.msra.mxu0 %v14626_v15 }
0x1e8f   :  { %14628 = vmatprep.subr.bf16.mxu0 %v15800_v0 }
0x1e92   :  { %14630 = vmatpush3.bf16.msra.mxu0 %v14629_v25 }
0x1f48   :  { %v10206_v56 = vpop.f32.mrb[226].mxu0 }
0x1f49   :  { %12923 = vmatmul.mubr.f32.vlgmr.msra.gmra.mrb[224].mxu0 %v10206_v56  ;;  %v12889_v8 = vpop.f32.mrb[227].mxu0 }
0x201c   :  { %v10293_v57 = vpop.f32.mrb[224].mxu0 }
0x201d   :  { %v10303_v58 = vmul.f32 %v10743_v54, %v10293_v57  ;;  %v12924_v53 = vpop.f32.mrb[225].mxu0 }
0x201f   :  { %v10309_v1 = vadd.f32 %v10744_v12, %v10303_v58 }
0x2021   :  { %v10310_v6 = vmax.f32 %v10309_v1, 0.0 }
0x2023   :  { %12958 = vmatmul.mubr.f32.vlgmr.msra.gmra.mrb[16].mxu1 %v10310_v6 }
0x20f6   :  { %v10393_v45 = vpop.f32.mrb[16].mxu1 }
0x20f7   :  { %v10402_v35 = vmul.f32 %v10745_v31, %v10393_v45  ;;  %v12959_v41 = vpop.f32.mrb[17].mxu1 }
0x20f9   :  { %v10408_v29 = vadd.f32 %v10746_v40, %v10402_v35 }
0x20fb   :  { %v10409_v0 = vmax.f32 %v10408_v29, 0.0 }
0x20fd   :  { %v10410_v14 = vsub.f32 0.0, %v10409_v0 }
0x20ff   :  { %v10411_v20 = vmul.f32 1.442695, %v10410_v14 }
0x2101   :  { %14980 = vpow2.f32 %v10411_v20 }
0x210b   :  { %v14981_v63 = vpop.eup %14980 }
0x210c   :  { %v10413_v39 = vadd.f32 1.0, %v14981_v63 }
0x210e   :  { %14982 = vrcp.f32 %v10413_v39 }
0x2118   :  { %v14983_v34 = vpop.eup %14982 }
0x2119   :  { %10416 = vst [vmem:[%s16021_s13] sm:$0xff] %v14983_v34 }
0x211a   :  { %10421 = vsyncpa [#allocation3], 1 }
0x211b   :  { %10422 = vsyncpa [#allocation5], 1 }
0x211c   :  { %10423 = vsyncpa [#allocation8], 1 }
0x211d   :  { %10424 = vsyncpa [#allocation11], 1 }
0x211e   :  { %10425 = vsyncpa [#allocation14], 1 }
0x211f   :  { %10426 = vsyncpa [#allocation17], 1 }
0x2120   :  { %10427 = vsyncpa [#allocation20], 1 }
0x2121   :  { %10428 = vsyncpa [#allocation23], 1 }
0x2122   :  { %10429 = vsyncpa [#allocation26], 1 }
0x2123   :  { %10430 = vsyncpa [#allocation29], 1 }
0x2124   :  { %10431 = vsyncpa [#allocation32], 1 }
0x2125   :  { %10432 = vsyncpa [#allocation35], 1 }
0x2126   :  { %10433 = vsyncpa [#allocation38], 1 }
0x2127   :  { %10434 = vsyncpa [#allocation41], 1 }
0x2128   :  { %10435 = vsyncpa [#allocation44], 1 }
0x2129   :  { %10436 = vsyncpa [#allocation47], 1 }
0x212a   :  { %10437 = vsyncpa [#allocation50], 1 }

</bundles_post_ra>
